<compile_context>
chip_gen: v7x
topology: tpu7x:2x2x1
jax: 0.10.0
libtpu: 0.0.40
codegen_flags: <defaults>
</compile_context>

<pallas_src>
import jax
import jax.numpy as jnp
from jax.experimental import pallas as pl
from jax.experimental.pallas import tpu as pltpu


# ----------------------------------------------------------------------------
# Generic fused conv (+BN [+residual +ReLU]) Pallas kernel.
#   taps: static tuple of (src_idx, chan_start, chan_size, dh, dw); the patch
#   columns are concatenated in tap order and the fused weight's K rows are
#   built in exactly the same order (BN scale already folded into the weight).
# ----------------------------------------------------------------------------
def _make_conv_kernel(taps, th, out_w, n_src, has_residual, apply_relu):
    def kernel(*refs):
        src_refs = refs[:n_src]
        w_ref = refs[n_src]
        bias_ref = refs[n_src + 1]
        res_ref = refs[n_src + 2] if has_residual else None
        out_ref = refs[-1]

        h = pl.program_id(1)
        row0 = h * th                      # first output row of this H tile
        cols = []
        for (s, c0, csz, dh, dw) in taps:
            piece = src_refs[s][0, pl.ds(row0 + dh, th), dw:dw + out_w,
                                c0:c0 + csz]
            cols.append(piece.reshape(th * out_w, csz))
        patch = cols[0] if len(cols) == 1 else jnp.concatenate(cols, axis=-1)

        acc = jnp.dot(patch, w_ref[...], preferred_element_type=jnp.float32)
        y = acc + bias_ref[...]                        # f32 epilogue
        n_out = out_ref.shape[-1]
        y = y.reshape(th, out_w, n_out)
        if has_residual:
            y = y + res_ref[0].astype(jnp.float32)     # bf16 residual, upcast
        if apply_relu:
            y = jnp.maximum(y, 0.0)
        out_ref[0] = y.astype(out_ref.dtype)
    return kernel


def _choose_nh(B, H):
    """Pick H tiles: >= 4 total grid steps when possible (v7x: 2 TCs x double
    buffering), and bound per-step patch rows on large feature maps."""
    n_h = 1
    while (B * n_h < 4) and (H % (2 * n_h) == 0) and (H // (2 * n_h)) >= 4:
        n_h *= 2
    while (H // n_h) > 64 and (H % (2 * n_h) == 0):
        n_h *= 2
    return n_h


def fused_conv(layer, srcs, B, H, W, residual=None, out_dtype=jnp.bfloat16,
               apply_relu=False):
    """One fused conv layer as a single pallas_call over grid (B, n_h)."""
    w, bias, taps = layer["w"], layer["bias"], layer["taps"]
    n_out = w.shape[1]
    n_h = _choose_nh(B, H)
    th = H // n_h

    kernel = _make_conv_kernel(tuple(taps), th, W, len(srcs),
                               residual is not None, apply_relu)

    # Padded sources: whole image resident per batch item (index constant
    # across the h axis -> DMA'd once per b).  Weights / bias: resident.
    in_specs = [pl.BlockSpec((1,) + s.shape[1:], lambda b, h: (b, 0, 0, 0))
                for s in srcs]
    in_specs.append(pl.BlockSpec(w.shape, lambda b, h: (0, 0)))
    in_specs.append(pl.BlockSpec(bias.shape, lambda b, h: (0, 0)))
    args = list(srcs) + [w, bias]
    if residual is not None:
        in_specs.append(pl.BlockSpec((1, th, W, residual.shape[-1]),
                                     lambda b, h: (b, h, 0, 0)))
        args.append(residual)

    return pl.pallas_call(
        kernel,
        out_shape=jax.ShapeDtypeStruct((B, H, W, n_out), out_dtype),
        grid=(B, n_h),
        in_specs=in_specs,
        out_specs=pl.BlockSpec((1, th, W, n_out), lambda b, h: (b, h, 0, 0)),
        compiler_params=pltpu.CompilerParams(
            dimension_semantics=("parallel", "parallel")),
    )(*args)


# ----------------------------------------------------------------------------
# Deterministic parameter construction (matches nn.Module __init__ shapes).
# Eval-mode BN folded to scale = gamma/sqrt(var+eps), bias = beta - mean*scale.
# ----------------------------------------------------------------------------
def _make_conv_bn_params(key, cin, cout, ksize, dil):
    kh, kw = ksize
    k_w, k_g, k_b, k_m, k_v = jax.random.split(key, 5)
    fan_in = kh * kw * cin
    w = jax.random.normal(k_w, (kh, kw, cin, cout), jnp.float32) * (fan_in ** -0.5)
    gamma = 1.0 + 0.1 * jax.random.normal(k_g, (cout,), jnp.float32)
    beta = 0.1 * jax.random.normal(k_b, (cout,), jnp.float32)
    running_mean = 0.1 * jax.random.normal(k_m, (cout,), jnp.float32)
    running_var = 1.0 + 0.1 * jnp.abs(jax.random.normal(k_v, (cout,), jnp.float32))
    eps = 1e-5
    scale = gamma / jnp.sqrt(running_var + eps)
    bias = beta - running_mean * scale
    return {"w": w, "scale": scale, "bias": bias, "dil": dil}


def init_rfb_params(key, in_channel, out_channel):
    keys = iter(jax.random.split(key, 16))
    mk = _make_conv_bn_params
    return {
        "branch0": [mk(next(keys), in_channel, out_channel, (1, 1), 1)],
        "branch1": [
            mk(next(keys), in_channel, out_channel, (1, 1), 1),
            mk(next(keys), out_channel, out_channel, (1, 3), 1),
            mk(next(keys), out_channel, out_channel, (3, 1), 1),
            mk(next(keys), out_channel, out_channel, (3, 3), 3),
        ],
        "branch2": [
            mk(next(keys), in_channel, out_channel, (1, 1), 1),
            mk(next(keys), out_channel, out_channel, (1, 5), 1),
            mk(next(keys), out_channel, out_channel, (5, 1), 1),
            mk(next(keys), out_channel, out_channel, (3, 3), 5),
        ],
        "branch3": [
            mk(next(keys), in_channel, out_channel, (1, 1), 1),
            mk(next(keys), out_channel, out_channel, (1, 7), 1),
            mk(next(keys), out_channel, out_channel, (7, 1), 1),
            mk(next(keys), out_channel, out_channel, (3, 3), 7),
        ],
        "conv_cat": mk(next(keys), 4 * out_channel, out_channel, (3, 3), 1),
        "conv_res": mk(next(keys), in_channel, out_channel, (1, 1), 1),
    }


# ----------------------------------------------------------------------------
# Plan builder: fold BN scale into weights and build the fused / block-diag
# weights + tap lists once, outside jit.
# ----------------------------------------------------------------------------
def _fold(p):
    return p["w"] * p["scale"].reshape(1, 1, 1, -1)


def _fused_branch_layer(branch_ps, cout, halo, mode):
    """Batch 3 same-depth branch convs into one block-diagonal layer."""
    n_b = len(branch_ps)
    taps, rows, biases = [], [], []
    for j, p in enumerate(branch_ps):
        wj = _fold(p)                               # (kh, kw, cout, cout)
        kh, kw = wj.shape[0], wj.shape[1]
        d = p["dil"]
        for ih in range(kh):
            for iw in range(kw):
                if mode == "w":      # (1, kw) conv; source padded along W
                    dh, dw = 0, iw + halo - (kw - 1) // 2
                elif mode == "h":    # (kh, 1) conv; source padded along H
                    dh, dw = ih + halo - (kh - 1) // 2, 0
                else:                # dilated 3x3 (padding = dilation)
                    dh = ih * d + halo - d
                    dw = iw * d + halo - d
                taps.append((0, j * cout, cout, dh, dw))
                blk = jnp.zeros((wj.shape[2], n_b * cout), jnp.float32)
                blk = blk.at[:, j * cout:(j + 1) * cout].set(wj[ih, iw])
                rows.append(blk)
        biases.append(p["bias"])
    return {"w": jnp.concatenate(rows, axis=0).astype(jnp.bfloat16),
            "bias": jnp.concatenate(biases, axis=0).reshape(1, -1),
            "taps": taps}


def build_rfb_plan(params, in_channel, out_channel):
    c = out_channel
    # 1) fused 1x1 stem: [branch0 | branch1[0] | branch2[0] | branch3[0] | conv_res]
    stem_ps = [params["branch0"][0], params["branch1"][0], params["branch2"][0],
               params["branch3"][0], params["conv_res"]]
    stem = {"w": jnp.concatenate([_fold(p)[0, 0] for p in stem_ps],
                                 axis=-1).astype(jnp.bfloat16),
            "bias": jnp.concatenate([p["bias"] for p in stem_ps],
                                    axis=0).reshape(1, -1),
            "taps": [(0, 0, in_channel, 0, 0)]}
    # 2-4) batched branch tails (branch1/2/3) with block-diagonal weights
    l2 = _fused_branch_layer([params["branch1"][1], params["branch2"][1],
                              params["branch3"][1]], c, halo=3, mode="w")
    l3 = _fused_branch_layer([params["branch1"][2], params["branch2"][2],
                              params["branch3"][2]], c, halo=3, mode="h")
    l4 = _fused_branch_layer([params["branch1"][3], params["branch2"][3],
                              params["branch3"][3]], c, halo=7, mode="d")
    # 5) conv_cat: two sources (x0, [x1|x2|x3]); K-row order (kh, kw, cin)
    #    matches the tap order [(tap, x0 chans), (tap, x1x2x3 chans)].
    pcat = params["conv_cat"]
    wcat = _fold(pcat).reshape(9 * 4 * c, c).astype(jnp.bfloat16)
    taps_cat = []
    for ih in range(3):
        for iw in range(3):
            taps_cat.append((0, 0, c, ih, iw))        # x0 source
            taps_cat.append((1, 0, 3 * c, ih, iw))    # [x1|x2|x3] source
    tail = {"w": wcat, "bias": pcat["bias"].reshape(1, -1), "taps": taps_cat}
    return {"cout": c, "stem": stem, "l2": l2, "l3": l3, "l4": l4, "tail": tail}


# ----------------------------------------------------------------------------
# RFB_modified forward (5 pallas_calls total)
# ----------------------------------------------------------------------------
def rfb_modified_forward_nhwc(x, plan):
    B, H, W, _ = x.shape
    c = plan["cout"]
    x_bf = x.astype(jnp.bfloat16)

    # fused 1x1 stem -> (B,H,W,5c) bf16 slab: [x0 | b1 | b2 | b3 | conv_res]
    slab = fused_conv(plan["stem"], [x_bf], B, H, W)

    # batched (1,3)/(1,5)/(1,7) convs over the branch stems; pad W by 3 (max)
    src2 = jnp.pad(slab[..., c:4 * c], ((0, 0), (0, 0), (3, 3), (0, 0)))
    y2 = fused_conv(plan["l2"], [src2], B, H, W)

    # batched (3,1)/(5,1)/(7,1) convs; pad H by 3 (max)
    src3 = jnp.pad(y2, ((0, 0), (3, 3), (0, 0), (0, 0)))
    y3 = fused_conv(plan["l3"], [src3], B, H, W)

    # batched dilated 3x3 convs (dil 3/5/7); pad H and W by 7 (max)
    src4 = jnp.pad(y3, ((0, 0), (7, 7), (7, 7), (0, 0)))
    y4 = fused_conv(plan["l4"], [src4], B, H, W)          # = [x1 | x2 | x3]

    # conv_cat(cat(x0,x1,x2,x3)) + BN + conv_res residual + ReLU, all fused.
    x0p = jnp.pad(slab[..., :c], ((0, 0), (1, 1), (1, 1), (0, 0)))
    y4p = jnp.pad(y4, ((0, 0), (1, 1), (1, 1), (0, 0)))
    res = slab[..., 4 * c:]                               # conv_res out, bf16
    out = fused_conv(plan["tail"], [x0p, y4p], B, H, W, residual=res,
                     out_dtype=jnp.float32, apply_relu=True)
    return out


def rfb_modified_forward(x_nchw, plan):
    x = jnp.transpose(x_nchw, (0, 2, 3, 1))               # NCHW -> NHWC
    out = rfb_modified_forward_nhwc(x, plan)
    return jnp.transpose(out, (0, 3, 1, 2))               # NHWC -> NCHW


# ----------------------------------------------------------------------------
# Pure-JAX f32 reference (for a tolerance check; bf16 MXU is not bit-exact)
# ----------------------------------------------------------------------------
def _ref_conv_bn(x, p):
    y = jax.lax.conv_general_dilated(
        x, p["w"], window_strides=(1, 1), padding="SAME",
        rhs_dilation=(p["dil"], p["dil"]),
        dimension_numbers=("NHWC", "HWIO", "NHWC"))
    return y * p["scale"].reshape(1, 1, 1, -1) + p["bias"].reshape(1, 1, 1, -1)


def rfb_reference(x_nchw, params):
    x = jnp.transpose(x_nchw, (0, 2, 3, 1))

    def run(layers):
        y = x
        for p in layers:
            y = _ref_conv_bn(y, p)
        return y

    x0 = run(params["branch0"])
    x1 = run(params["branch1"])
    x2 = run(params["branch2"])
    x3 = run(params["branch3"])
    xc = _ref_conv_bn(jnp.concatenate([x0, x1, x2, x3], axis=-1),
                      params["conv_cat"])
    res = _ref_conv_bn(x, params["conv_res"])
    out = jnp.maximum(xc + res, 0.0)
    return jnp.transpose(out, (0, 3, 1, 2))


# ----------------------------------------------------------------------------
if __name__ == "__main__":
    B, C_IN, H, W = 2, 4, 16, 16
    C_OUT = 8

    key = jax.random.PRNGKey(0)
    k_x, k_p = jax.random.split(key)
    x_nchw = jax.random.normal(k_x, (B, C_IN, H, W), jnp.float32)
    params = init_rfb_params(k_p, C_IN, C_OUT)
    plan = build_rfb_plan(params, C_IN, C_OUT)   # fused weights, built once

    forward = jax.jit(lambda inp: rfb_modified_forward(inp, plan))
    out = jax.block_until_ready(forward(x_nchw))

    assert out.shape == (B, C_OUT, H, W), out.shape
    assert out.dtype == jnp.float32
    assert bool(jnp.all(jnp.isfinite(out)))
    assert bool(jnp.all(out >= 0.0))             # final ReLU

    # Relative-tolerance check vs. an f32 XLA reference (bf16 inputs on the MXU).
    ref = jax.block_until_ready(rfb_reference(x_nchw, params))
    max_ref = float(jnp.max(jnp.abs(ref)))
    max_err = float(jnp.max(jnp.abs(out - ref)))
    assert max_err <= 0.08 * max_ref + 0.08, (max_err, max_ref)

    print("KERNEL_OK")
</pallas_src>

<mosaic_0001>
module attributes {stable_mosaic.version = 11 : i64} {
  func.func @kernel(%arg0: i32, %arg1: i32, %arg2: memref<1x16x16x4xbf16, #tpu.memory_space<vmem>>, %arg3: memref<4x40xbf16, #tpu.memory_space<vmem>>, %arg4: memref<1x40xf32, #tpu.memory_space<vmem>>, %arg5: memref<1x8x16x40xbf16, #tpu.memory_space<vmem>>) attributes {dimension_semantics = [#tpu.dimension_semantics<parallel>, #tpu.dimension_semantics<parallel>], iteration_bounds = array<i64: 2, 2>, scalar_prefetch = 0 : i64, scratch_operands = 0 : i64, tpu.core_type = #tpu.core_type<tc>, window_params = [{transform_indices = @transform_0, window_bounds = array<i64: 1, 16, 16, 4>}, {pipeline_mode = #tpu.pipeline_mode<synchronous>, transform_indices = @transform_1, window_bounds = array<i64: 4, 40>}, {pipeline_mode = #tpu.pipeline_mode<synchronous>, transform_indices = @transform_2, window_bounds = array<i64: 1, 40>}, {transform_indices = @transform_3, window_bounds = array<i64: 1, 8, 16, 40>}]} {
    %c8_i32 = arith.constant 8 : i32
    %0 = arith.muli %arg1, %c8_i32 : i32
    %c0_i32 = arith.constant 0 : i32
    %1 = arith.addi %0, %c0_i32 : i32
    %c0 = arith.constant 0 : index
    %2 = arith.index_cast %1 : i32 to index
    %c0_0 = arith.constant 0 : index
    %c0_1 = arith.constant 0 : index
    %3 = vector.load %arg2[%c0, %2, %c0_0, %c0_1] : memref<1x16x16x4xbf16, #tpu.memory_space<vmem>>, vector<1x8x16x4xbf16>
    %4 = vector.shape_cast %3 : vector<1x8x16x4xbf16> to vector<8x16x4xbf16>
    %5 = vector.shape_cast %4 : vector<8x16x4xbf16> to vector<128x4xbf16>
    %c0_2 = arith.constant 0 : index
    %c0_3 = arith.constant 0 : index
    %6 = vector.load %arg3[%c0_2, %c0_3] : memref<4x40xbf16, #tpu.memory_space<vmem>>, vector<4x40xbf16>
    %cst = arith.constant dense<0.000000e+00> : vector<128x40xf32>
    %7 = tpu.matmul %5, %6, %cst {dimension_numbers = #tpu.dot_dimension_numbers<[1], [0], [0], [1], [0, 0, 1, 1], [], []>} : vector<128x4xbf16>, vector<4x40xbf16>, vector<128x40xf32> -> vector<128x40xf32>
    %c0_4 = arith.constant 0 : index
    %c0_5 = arith.constant 0 : index
    %8 = vector.load %arg4[%c0_4, %c0_5] : memref<1x40xf32, #tpu.memory_space<vmem>>, vector<1x40xf32>
    %9 = vector.broadcast %8 : vector<1x40xf32> to vector<128x40xf32>
    %10 = arith.addf %7, %9 : vector<128x40xf32>
    %11 = vector.shape_cast %10 : vector<128x40xf32> to vector<8x16x40xf32>
    %12 = arith.truncf %11 : vector<8x16x40xf32> to vector<8x16x40xbf16>
    %c0_6 = arith.constant 0 : index
    %c0_7 = arith.constant 0 : index
    %c0_8 = arith.constant 0 : index
    %c0_9 = arith.constant 0 : index
    %13 = vector.load %arg5[%c0_6, %c0_7, %c0_8, %c0_9] : memref<1x8x16x40xbf16, #tpu.memory_space<vmem>>, vector<1x8x16x40xbf16>
    %14 = vector.shape_cast %13 : vector<1x8x16x40xbf16> to vector<8x16x40xbf16>
    %15 = vector.shape_cast %12 : vector<8x16x40xbf16> to vector<1x8x16x40xbf16>
    tpu.vector_store %arg5[%c0_6, %c0_7, %c0_8, %c0_9], %15 {strides = array<i32>} : memref<1x8x16x40xbf16, #tpu.memory_space<vmem>>, vector<1x8x16x40xbf16>,
    return
  }
  func.func @transform_0(%arg0: i32, %arg1: i32) -> (i32, i32, i32, i32) {
    %c0_i32 = arith.constant 0 : i32
    %c0_i32_0 = arith.constant 0 : i32
    %c0_i32_1 = arith.constant 0 : i32
    %c0_i32_2 = arith.constant 0 : i32
    return %arg0, %c0_i32, %c0_i32_0, %c0_i32_1 : i32, i32, i32, i32
  }
  func.func @transform_1(%arg0: i32, %arg1: i32) -> (i32, i32) {
    %c0_i32 = arith.constant 0 : i32
    %c0_i32_0 = arith.constant 0 : i32
    %c0_i32_1 = arith.constant 0 : i32
    return %c0_i32, %c0_i32_0 : i32, i32
  }
  func.func @transform_2(%arg0: i32, %arg1: i32) -> (i32, i32) {
    %c0_i32 = arith.constant 0 : i32
    %c0_i32_0 = arith.constant 0 : i32
    %c0_i32_1 = arith.constant 0 : i32
    return %c0_i32, %c0_i32_0 : i32, i32
  }
  func.func @transform_3(%arg0: i32, %arg1: i32) -> (i32, i32, i32, i32) {
    %c0_i32 = arith.constant 0 : i32
    %c0_i32_0 = arith.constant 0 : i32
    %c0_i32_1 = arith.constant 0 : i32
    return %arg0, %arg1, %c0_i32, %c0_i32_0 : i32, i32, i32, i32
  }
}

module attributes {stable_mosaic.version = 11 : i64} {
  func.func @kernel(%arg0: i32, %arg1: i32, %arg2: memref<1x16x22x24xbf16, #tpu.memory_space<vmem>>, %arg3: memref<120x24xbf16, #tpu.memory_space<vmem>>, %arg4: memref<1x24xf32, #tpu.memory_space<vmem>>, %arg5: memref<1x8x16x24xbf16, #tpu.memory_space<vmem>>) attributes {dimension_semantics = [#tpu.dimension_semantics<parallel>, #tpu.dimension_semantics<parallel>], iteration_bounds = array<i64: 2, 2>, scalar_prefetch = 0 : i64, scratch_operands = 0 : i64, tpu.core_type = #tpu.core_type<tc>, window_params = [{transform_indices = @transform_0, window_bounds = array<i64: 1, 16, 22, 24>}, {pipeline_mode = #tpu.pipeline_mode<synchronous>, transform_indices = @transform_1, window_bounds = array<i64: 120, 24>}, {pipeline_mode = #tpu.pipeline_mode<synchronous>, transform_indices = @transform_2, window_bounds = array<i64: 1, 24>}, {transform_indices = @transform_3, window_bounds = array<i64: 1, 8, 16, 24>}]} {
    %c8_i32 = arith.constant 8 : i32
    %0 = arith.muli %arg1, %c8_i32 : i32
    %c0_i32 = arith.constant 0 : i32
    %1 = arith.addi %0, %c0_i32 : i32
    %c0 = arith.constant 0 : index
    %2 = arith.index_cast %1 : i32 to index
    %c2 = arith.constant 2 : index
    %c0_0 = arith.constant 0 : index
    %3 = vector.load %arg2[%c0, %2, %c2, %c0_0] : memref<1x16x22x24xbf16, #tpu.memory_space<vmem>>, vector<1x8x16x8xbf16>
    %4 = vector.shape_cast %3 : vector<1x8x16x8xbf16> to vector<8x16x8xbf16>
    %5 = vector.shape_cast %4 : vector<8x16x8xbf16> to vector<128x8xbf16>
    %c0_i32_1 = arith.constant 0 : i32
    %6 = arith.addi %0, %c0_i32_1 : i32
    %c0_2 = arith.constant 0 : index
    %7 = arith.index_cast %6 : i32 to index
    %c3 = arith.constant 3 : index
    %c0_3 = arith.constant 0 : index
    %8 = vector.load %arg2[%c0_2, %7, %c3, %c0_3] : memref<1x16x22x24xbf16, #tpu.memory_space<vmem>>, vector<1x8x16x8xbf16>
    %9 = vector.shape_cast %8 : vector<1x8x16x8xbf16> to vector<8x16x8xbf16>
    %10 = vector.shape_cast %9 : vector<8x16x8xbf16> to vector<128x8xbf16>
    %c0_i32_4 = arith.constant 0 : i32
    %11 = arith.addi %0, %c0_i32_4 : i32
    %c0_5 = arith.constant 0 : index
    %12 = arith.index_cast %11 : i32 to index
    %c4 = arith.constant 4 : index
    %c0_6 = arith.constant 0 : index
    %13 = vector.load %arg2[%c0_5, %12, %c4, %c0_6] : memref<1x16x22x24xbf16, #tpu.memory_space<vmem>>, vector<1x8x16x8xbf16>
    %14 = vector.shape_cast %13 : vector<1x8x16x8xbf16> to vector<8x16x8xbf16>
    %15 = vector.shape_cast %14 : vector<8x16x8xbf16> to vector<128x8xbf16>
    %c0_i32_7 = arith.constant 0 : i32
    %16 = arith.addi %0, %c0_i32_7 : i32
    %c0_8 = arith.constant 0 : index
    %17 = arith.index_cast %16 : i32 to index
    %c1 = arith.constant 1 : index
    %c8 = arith.constant 8 : index
    %18 = vector.load %arg2[%c0_8, %17, %c1, %c8] : memref<1x16x22x24xbf16, #tpu.memory_space<vmem>>, vector<1x8x16x8xbf16>
    %19 = vector.shape_cast %18 : vector<1x8x16x8xbf16> to vector<8x16x8xbf16>
    %20 = vector.shape_cast %19 : vector<8x16x8xbf16> to vector<128x8xbf16>
    %c0_i32_9 = arith.constant 0 : i32
    %21 = arith.addi %0, %c0_i32_9 : i32
    %c0_10 = arith.constant 0 : index
    %22 = arith.index_cast %21 : i32 to index
    %c2_11 = arith.constant 2 : index
    %c8_12 = arith.constant 8 : index
    %23 = vector.load %arg2[%c0_10, %22, %c2_11, %c8_12] : memref<1x16x22x24xbf16, #tpu.memory_space<vmem>>, vector<1x8x16x8xbf16>
    %24 = vector.shape_cast %23 : vector<1x8x16x8xbf16> to vector<8x16x8xbf16>
    %25 = vector.shape_cast %24 : vector<8x16x8xbf16> to vector<128x8xbf16>
    %c0_i32_13 = arith.constant 0 : i32
    %26 = arith.addi %0, %c0_i32_13 : i32
    %c0_14 = arith.constant 0 : index
    %27 = arith.index_cast %26 : i32 to index
    %c3_15 = arith.constant 3 : index
    %c8_16 = arith.constant 8 : index
    %28 = vector.load %arg2[%c0_14, %27, %c3_15, %c8_16] : memref<1x16x22x24xbf16, #tpu.memory_space<vmem>>, vector<1x8x16x8xbf16>
    %29 = vector.shape_cast %28 : vector<1x8x16x8xbf16> to vector<8x16x8xbf16>
    %30 = vector.shape_cast %29 : vector<8x16x8xbf16> to vector<128x8xbf16>
    %c0_i32_17 = arith.constant 0 : i32
    %31 = arith.addi %0, %c0_i32_17 : i32
    %c0_18 = arith.constant 0 : index
    %32 = arith.index_cast %31 : i32 to index
    %c4_19 = arith.constant 4 : index
    %c8_20 = arith.constant 8 : index
    %33 = vector.load %arg2[%c0_18, %32, %c4_19, %c8_20] : memref<1x16x22x24xbf16, #tpu.memory_space<vmem>>, vector<1x8x16x8xbf16>
    %34 = vector.shape_cast %33 : vector<1x8x16x8xbf16> to vector<8x16x8xbf16>
    %35 = vector.shape_cast %34 : vector<8x16x8xbf16> to vector<128x8xbf16>
    %c0_i32_21 = arith.constant 0 : i32
    %36 = arith.addi %0, %c0_i32_21 : i32
    %c0_22 = arith.constant 0 : index
    %37 = arith.index_cast %36 : i32 to index
    %c5 = arith.constant 5 : index
    %c8_23 = arith.constant 8 : index
    %38 = vector.load %arg2[%c0_22, %37, %c5, %c8_23] : memref<1x16x22x24xbf16, #tpu.memory_space<vmem>>, vector<1x8x16x8xbf16>
    %39 = vector.shape_cast %38 : vector<1x8x16x8xbf16> to vector<8x16x8xbf16>
    %40 = vector.shape_cast %39 : vector<8x16x8xbf16> to vector<128x8xbf16>
    %c0_i32_24 = arith.constant 0 : i32
    %41 = arith.addi %0, %c0_i32_24 : i32
    %c0_25 = arith.constant 0 : index
    %42 = arith.index_cast %41 : i32 to index
    %c0_26 = arith.constant 0 : index
    %c16 = arith.constant 16 : index
    %43 = vector.load %arg2[%c0_25, %42, %c0_26, %c16] : memref<1x16x22x24xbf16, #tpu.memory_space<vmem>>, vector<1x8x16x8xbf16>
    %44 = vector.shape_cast %43 : vector<1x8x16x8xbf16> to vector<8x16x8xbf16>
    %45 = vector.shape_cast %44 : vector<8x16x8xbf16> to vector<128x8xbf16>
    %c0_i32_27 = arith.constant 0 : i32
    %46 = arith.addi %0, %c0_i32_27 : i32
    %c0_28 = arith.constant 0 : index
    %47 = arith.index_cast %46 : i32 to index
    %c1_29 = arith.constant 1 : index
    %c16_30 = arith.constant 16 : index
    %48 = vector.load %arg2[%c0_28, %47, %c1_29, %c16_30] : memref<1x16x22x24xbf16, #tpu.memory_space<vmem>>, vector<1x8x16x8xbf16>
    %49 = vector.shape_cast %48 : vector<1x8x16x8xbf16> to vector<8x16x8xbf16>
    %50 = vector.shape_cast %49 : vector<8x16x8xbf16> to vector<128x8xbf16>
    %c0_i32_31 = arith.constant 0 : i32
    %51 = arith.addi %0, %c0_i32_31 : i32
    %c0_32 = arith.constant 0 : index
    %52 = arith.index_cast %51 : i32 to index
    %c2_33 = arith.constant 2 : index
    %c16_34 = arith.constant 16 : index
    %53 = vector.load %arg2[%c0_32, %52, %c2_33, %c16_34] : memref<1x16x22x24xbf16, #tpu.memory_space<vmem>>, vector<1x8x16x8xbf16>
    %54 = vector.shape_cast %53 : vector<1x8x16x8xbf16> to vector<8x16x8xbf16>
    %55 = vector.shape_cast %54 : vector<8x16x8xbf16> to vector<128x8xbf16>
    %c0_i32_35 = arith.constant 0 : i32
    %56 = arith.addi %0, %c0_i32_35 : i32
    %c0_36 = arith.constant 0 : index
    %57 = arith.index_cast %56 : i32 to index
    %c3_37 = arith.constant 3 : index
    %c16_38 = arith.constant 16 : index
    %58 = vector.load %arg2[%c0_36, %57, %c3_37, %c16_38] : memref<1x16x22x24xbf16, #tpu.memory_space<vmem>>, vector<1x8x16x8xbf16>
    %59 = vector.shape_cast %58 : vector<1x8x16x8xbf16> to vector<8x16x8xbf16>
    %60 = vector.shape_cast %59 : vector<8x16x8xbf16> to vector<128x8xbf16>
    %c0_i32_39 = arith.constant 0 : i32
    %61 = arith.addi %0, %c0_i32_39 : i32
    %c0_40 = arith.constant 0 : index
    %62 = arith.index_cast %61 : i32 to index
    %c4_41 = arith.constant 4 : index
    %c16_42 = arith.constant 16 : index
    %63 = vector.load %arg2[%c0_40, %62, %c4_41, %c16_42] : memref<1x16x22x24xbf16, #tpu.memory_space<vmem>>, vector<1x8x16x8xbf16>
    %64 = vector.shape_cast %63 : vector<1x8x16x8xbf16> to vector<8x16x8xbf16>
    %65 = vector.shape_cast %64 : vector<8x16x8xbf16> to vector<128x8xbf16>
    %c0_i32_43 = arith.constant 0 : i32
    %66 = arith.addi %0, %c0_i32_43 : i32
    %c0_44 = arith.constant 0 : index
    %67 = arith.index_cast %66 : i32 to index
    %c5_45 = arith.constant 5 : index
    %c16_46 = arith.constant 16 : index
    %68 = vector.load %arg2[%c0_44, %67, %c5_45, %c16_46] : memref<1x16x22x24xbf16, #tpu.memory_space<vmem>>, vector<1x8x16x8xbf16>
    %69 = vector.shape_cast %68 : vector<1x8x16x8xbf16> to vector<8x16x8xbf16>
    %70 = vector.shape_cast %69 : vector<8x16x8xbf16> to vector<128x8xbf16>
    %c0_i32_47 = arith.constant 0 : i32
    %71 = arith.addi %0, %c0_i32_47 : i32
    %c0_48 = arith.constant 0 : index
    %72 = arith.index_cast %71 : i32 to index
    %c6 = arith.constant 6 : index
    %c16_49 = arith.constant 16 : index
    %73 = vector.load %arg2[%c0_48, %72, %c6, %c16_49] : memref<1x16x22x24xbf16, #tpu.memory_space<vmem>>, vector<1x8x16x8xbf16>
    %74 = vector.shape_cast %73 : vector<1x8x16x8xbf16> to vector<8x16x8xbf16>
    %75 = vector.shape_cast %74 : vector<8x16x8xbf16> to vector<128x8xbf16>
    %76 = tpu.concatenate %5, %10, %15, %20, %25, %30, %35, %40, %45, %50, %55, %60, %65, %70, %75 in 1 : vector<128x8xbf16>, vector<128x8xbf16>, vector<128x8xbf16>, vector<128x8xbf16>, vector<128x8xbf16>, vector<128x8xbf16>, vector<128x8xbf16>, vector<128x8xbf16>, vector<128x8xbf16>, vector<128x8xbf16>, vector<128x8xbf16>, vector<128x8xbf16>, vector<128x8xbf16>, vector<128x8xbf16>, vector<128x8xbf16> -> vector<128x120xbf16>
    %c0_50 = arith.constant 0 : index
    %c0_51 = arith.constant 0 : index
    %77 = vector.load %arg3[%c0_50, %c0_51] : memref<120x24xbf16, #tpu.memory_space<vmem>>, vector<120x24xbf16>
    %cst = arith.constant dense<0.000000e+00> : vector<128x24xf32>
    %78 = tpu.matmul %76, %77, %cst {dimension_numbers = #tpu.dot_dimension_numbers<[1], [0], [0], [1], [0, 0, 1, 1], [], []>} : vector<128x120xbf16>, vector<120x24xbf16>, vector<128x24xf32> -> vector<128x24xf32>
    %c0_52 = arith.constant 0 : index
    %c0_53 = arith.constant 0 : index
    %79 = vector.load %arg4[%c0_52, %c0_53] : memref<1x24xf32, #tpu.memory_space<vmem>>, vector<1x24xf32>
    %80 = vector.broadcast %79 : vector<1x24xf32> to vector<128x24xf32>
    %81 = arith.addf %78, %80 : vector<128x24xf32>
    %82 = vector.shape_cast %81 : vector<128x24xf32> to vector<8x16x24xf32>
    %83 = arith.truncf %82 : vector<8x16x24xf32> to vector<8x16x24xbf16>
    %c0_54 = arith.constant 0 : index
    %c0_55 = arith.constant 0 : index
    %c0_56 = arith.constant 0 : index
    %c0_57 = arith.constant 0 : index
    %84 = vector.load %arg5[%c0_54, %c0_55, %c0_56, %c0_57] : memref<1x8x16x24xbf16, #tpu.memory_space<vmem>>, vector<1x8x16x24xbf16>
    %85 = vector.shape_cast %84 : vector<1x8x16x24xbf16> to vector<8x16x24xbf16>
    %86 = vector.shape_cast %83 : vector<8x16x24xbf16> to vector<1x8x16x24xbf16>
    tpu.vector_store %arg5[%c0_54, %c0_55, %c0_56, %c0_57], %86 {strides = array<i32>} : memref<1x8x16x24xbf16, #tpu.memory_space<vmem>>, vector<1x8x16x24xbf16>,
    return
  }
  func.func @transform_0(%arg0: i32, %arg1: i32) -> (i32, i32, i32, i32) {
    %c0_i32 = arith.constant 0 : i32
    %c0_i32_0 = arith.constant 0 : i32
    %c0_i32_1 = arith.constant 0 : i32
    %c0_i32_2 = arith.constant 0 : i32
    return %arg0, %c0_i32, %c0_i32_0, %c0_i32_1 : i32, i32, i32, i32
  }
  func.func @transform_1(%arg0: i32, %arg1: i32) -> (i32, i32) {
    %c0_i32 = arith.constant 0 : i32
    %c0_i32_0 = arith.constant 0 : i32
    %c0_i32_1 = arith.constant 0 : i32
    return %c0_i32, %c0_i32_0 : i32, i32
  }
  func.func @transform_2(%arg0: i32, %arg1: i32) -> (i32, i32) {
    %c0_i32 = arith.constant 0 : i32
    %c0_i32_0 = arith.constant 0 : i32
    %c0_i32_1 = arith.constant 0 : i32
    return %c0_i32, %c0_i32_0 : i32, i32
  }
  func.func @transform_3(%arg0: i32, %arg1: i32) -> (i32, i32, i32, i32) {
    %c0_i32 = arith.constant 0 : i32
    %c0_i32_0 = arith.constant 0 : i32
    %c0_i32_1 = arith.constant 0 : i32
    return %arg0, %arg1, %c0_i32, %c0_i32_0 : i32, i32, i32, i32
  }
}

module attributes {stable_mosaic.version = 11 : i64} {
  func.func @kernel(%arg0: i32, %arg1: i32, %arg2: memref<1x22x16x24xbf16, #tpu.memory_space<vmem>>, %arg3: memref<120x24xbf16, #tpu.memory_space<vmem>>, %arg4: memref<1x24xf32, #tpu.memory_space<vmem>>, %arg5: memref<1x8x16x24xbf16, #tpu.memory_space<vmem>>) attributes {dimension_semantics = [#tpu.dimension_semantics<parallel>, #tpu.dimension_semantics<parallel>], iteration_bounds = array<i64: 2, 2>, scalar_prefetch = 0 : i64, scratch_operands = 0 : i64, tpu.core_type = #tpu.core_type<tc>, window_params = [{transform_indices = @transform_0, window_bounds = array<i64: 1, 22, 16, 24>}, {pipeline_mode = #tpu.pipeline_mode<synchronous>, transform_indices = @transform_1, window_bounds = array<i64: 120, 24>}, {pipeline_mode = #tpu.pipeline_mode<synchronous>, transform_indices = @transform_2, window_bounds = array<i64: 1, 24>}, {transform_indices = @transform_3, window_bounds = array<i64: 1, 8, 16, 24>}]} {
    %c8_i32 = arith.constant 8 : i32
    %0 = arith.muli %arg1, %c8_i32 : i32
    %c2_i32 = arith.constant 2 : i32
    %1 = arith.addi %0, %c2_i32 : i32
    %c0 = arith.constant 0 : index
    %2 = arith.index_cast %1 : i32 to index
    %c0_0 = arith.constant 0 : index
    %c0_1 = arith.constant 0 : index
    %3 = vector.load %arg2[%c0, %2, %c0_0, %c0_1] : memref<1x22x16x24xbf16, #tpu.memory_space<vmem>>, vector<1x8x16x8xbf16>
    %4 = vector.shape_cast %3 : vector<1x8x16x8xbf16> to vector<8x16x8xbf16>
    %5 = vector.shape_cast %4 : vector<8x16x8xbf16> to vector<128x8xbf16>
    %c3_i32 = arith.constant 3 : i32
    %6 = arith.addi %0, %c3_i32 : i32
    %c0_2 = arith.constant 0 : index
    %7 = arith.index_cast %6 : i32 to index
    %c0_3 = arith.constant 0 : index
    %c0_4 = arith.constant 0 : index
    %8 = vector.load %arg2[%c0_2, %7, %c0_3, %c0_4] : memref<1x22x16x24xbf16, #tpu.memory_space<vmem>>, vector<1x8x16x8xbf16>
    %9 = vector.shape_cast %8 : vector<1x8x16x8xbf16> to vector<8x16x8xbf16>
    %10 = vector.shape_cast %9 : vector<8x16x8xbf16> to vector<128x8xbf16>
    %c4_i32 = arith.constant 4 : i32
    %11 = arith.addi %0, %c4_i32 : i32
    %c0_5 = arith.constant 0 : index
    %12 = arith.index_cast %11 : i32 to index
    %c0_6 = arith.constant 0 : index
    %c0_7 = arith.constant 0 : index
    %13 = vector.load %arg2[%c0_5, %12, %c0_6, %c0_7] : memref<1x22x16x24xbf16, #tpu.memory_space<vmem>>, vector<1x8x16x8xbf16>
    %14 = vector.shape_cast %13 : vector<1x8x16x8xbf16> to vector<8x16x8xbf16>
    %15 = vector.shape_cast %14 : vector<8x16x8xbf16> to vector<128x8xbf16>
    %c1_i32 = arith.constant 1 : i32
    %16 = arith.addi %0, %c1_i32 : i32
    %c0_8 = arith.constant 0 : index
    %17 = arith.index_cast %16 : i32 to index
    %c0_9 = arith.constant 0 : index
    %c8 = arith.constant 8 : index
    %18 = vector.load %arg2[%c0_8, %17, %c0_9, %c8] : memref<1x22x16x24xbf16, #tpu.memory_space<vmem>>, vector<1x8x16x8xbf16>
    %19 = vector.shape_cast %18 : vector<1x8x16x8xbf16> to vector<8x16x8xbf16>
    %20 = vector.shape_cast %19 : vector<8x16x8xbf16> to vector<128x8xbf16>
    %c2_i32_10 = arith.constant 2 : i32
    %21 = arith.addi %0, %c2_i32_10 : i32
    %c0_11 = arith.constant 0 : index
    %22 = arith.index_cast %21 : i32 to index
    %c0_12 = arith.constant 0 : index
    %c8_13 = arith.constant 8 : index
    %23 = vector.load %arg2[%c0_11, %22, %c0_12, %c8_13] : memref<1x22x16x24xbf16, #tpu.memory_space<vmem>>, vector<1x8x16x8xbf16>
    %24 = vector.shape_cast %23 : vector<1x8x16x8xbf16> to vector<8x16x8xbf16>
    %25 = vector.shape_cast %24 : vector<8x16x8xbf16> to vector<128x8xbf16>
    %c3_i32_14 = arith.constant 3 : i32
    %26 = arith.addi %0, %c3_i32_14 : i32
    %c0_15 = arith.constant 0 : index
    %27 = arith.index_cast %26 : i32 to index
    %c0_16 = arith.constant 0 : index
    %c8_17 = arith.constant 8 : index
    %28 = vector.load %arg2[%c0_15, %27, %c0_16, %c8_17] : memref<1x22x16x24xbf16, #tpu.memory_space<vmem>>, vector<1x8x16x8xbf16>
    %29 = vector.shape_cast %28 : vector<1x8x16x8xbf16> to vector<8x16x8xbf16>
    %30 = vector.shape_cast %29 : vector<8x16x8xbf16> to vector<128x8xbf16>
    %c4_i32_18 = arith.constant 4 : i32
    %31 = arith.addi %0, %c4_i32_18 : i32
    %c0_19 = arith.constant 0 : index
    %32 = arith.index_cast %31 : i32 to index
    %c0_20 = arith.constant 0 : index
    %c8_21 = arith.constant 8 : index
    %33 = vector.load %arg2[%c0_19, %32, %c0_20, %c8_21] : memref<1x22x16x24xbf16, #tpu.memory_space<vmem>>, vector<1x8x16x8xbf16>
    %34 = vector.shape_cast %33 : vector<1x8x16x8xbf16> to vector<8x16x8xbf16>
    %35 = vector.shape_cast %34 : vector<8x16x8xbf16> to vector<128x8xbf16>
    %c5_i32 = arith.constant 5 : i32
    %36 = arith.addi %0, %c5_i32 : i32
    %c0_22 = arith.constant 0 : index
    %37 = arith.index_cast %36 : i32 to index
    %c0_23 = arith.constant 0 : index
    %c8_24 = arith.constant 8 : index
    %38 = vector.load %arg2[%c0_22, %37, %c0_23, %c8_24] : memref<1x22x16x24xbf16, #tpu.memory_space<vmem>>, vector<1x8x16x8xbf16>
    %39 = vector.shape_cast %38 : vector<1x8x16x8xbf16> to vector<8x16x8xbf16>
    %40 = vector.shape_cast %39 : vector<8x16x8xbf16> to vector<128x8xbf16>
    %c0_i32 = arith.constant 0 : i32
    %41 = arith.addi %0, %c0_i32 : i32
    %c0_25 = arith.constant 0 : index
    %42 = arith.index_cast %41 : i32 to index
    %c0_26 = arith.constant 0 : index
    %c16 = arith.constant 16 : index
    %43 = vector.load %arg2[%c0_25, %42, %c0_26, %c16] : memref<1x22x16x24xbf16, #tpu.memory_space<vmem>>, vector<1x8x16x8xbf16>
    %44 = vector.shape_cast %43 : vector<1x8x16x8xbf16> to vector<8x16x8xbf16>
    %45 = vector.shape_cast %44 : vector<8x16x8xbf16> to vector<128x8xbf16>
    %c1_i32_27 = arith.constant 1 : i32
    %46 = arith.addi %0, %c1_i32_27 : i32
    %c0_28 = arith.constant 0 : index
    %47 = arith.index_cast %46 : i32 to index
    %c0_29 = arith.constant 0 : index
    %c16_30 = arith.constant 16 : index
    %48 = vector.load %arg2[%c0_28, %47, %c0_29, %c16_30] : memref<1x22x16x24xbf16, #tpu.memory_space<vmem>>, vector<1x8x16x8xbf16>
    %49 = vector.shape_cast %48 : vector<1x8x16x8xbf16> to vector<8x16x8xbf16>
    %50 = vector.shape_cast %49 : vector<8x16x8xbf16> to vector<128x8xbf16>
    %c2_i32_31 = arith.constant 2 : i32
    %51 = arith.addi %0, %c2_i32_31 : i32
    %c0_32 = arith.constant 0 : index
    %52 = arith.index_cast %51 : i32 to index
    %c0_33 = arith.constant 0 : index
    %c16_34 = arith.constant 16 : index
    %53 = vector.load %arg2[%c0_32, %52, %c0_33, %c16_34] : memref<1x22x16x24xbf16, #tpu.memory_space<vmem>>, vector<1x8x16x8xbf16>
    %54 = vector.shape_cast %53 : vector<1x8x16x8xbf16> to vector<8x16x8xbf16>
    %55 = vector.shape_cast %54 : vector<8x16x8xbf16> to vector<128x8xbf16>
    %c3_i32_35 = arith.constant 3 : i32
    %56 = arith.addi %0, %c3_i32_35 : i32
    %c0_36 = arith.constant 0 : index
    %57 = arith.index_cast %56 : i32 to index
    %c0_37 = arith.constant 0 : index
    %c16_38 = arith.constant 16 : index
    %58 = vector.load %arg2[%c0_36, %57, %c0_37, %c16_38] : memref<1x22x16x24xbf16, #tpu.memory_space<vmem>>, vector<1x8x16x8xbf16>
    %59 = vector.shape_cast %58 : vector<1x8x16x8xbf16> to vector<8x16x8xbf16>
    %60 = vector.shape_cast %59 : vector<8x16x8xbf16> to vector<128x8xbf16>
    %c4_i32_39 = arith.constant 4 : i32
    %61 = arith.addi %0, %c4_i32_39 : i32
    %c0_40 = arith.constant 0 : index
    %62 = arith.index_cast %61 : i32 to index
    %c0_41 = arith.constant 0 : index
    %c16_42 = arith.constant 16 : index
    %63 = vector.load %arg2[%c0_40, %62, %c0_41, %c16_42] : memref<1x22x16x24xbf16, #tpu.memory_space<vmem>>, vector<1x8x16x8xbf16>
    %64 = vector.shape_cast %63 : vector<1x8x16x8xbf16> to vector<8x16x8xbf16>
    %65 = vector.shape_cast %64 : vector<8x16x8xbf16> to vector<128x8xbf16>
    %c5_i32_43 = arith.constant 5 : i32
    %66 = arith.addi %0, %c5_i32_43 : i32
    %c0_44 = arith.constant 0 : index
    %67 = arith.index_cast %66 : i32 to index
    %c0_45 = arith.constant 0 : index
    %c16_46 = arith.constant 16 : index
    %68 = vector.load %arg2[%c0_44, %67, %c0_45, %c16_46] : memref<1x22x16x24xbf16, #tpu.memory_space<vmem>>, vector<1x8x16x8xbf16>
    %69 = vector.shape_cast %68 : vector<1x8x16x8xbf16> to vector<8x16x8xbf16>
    %70 = vector.shape_cast %69 : vector<8x16x8xbf16> to vector<128x8xbf16>
    %c6_i32 = arith.constant 6 : i32
    %71 = arith.addi %0, %c6_i32 : i32
    %c0_47 = arith.constant 0 : index
    %72 = arith.index_cast %71 : i32 to index
    %c0_48 = arith.constant 0 : index
    %c16_49 = arith.constant 16 : index
    %73 = vector.load %arg2[%c0_47, %72, %c0_48, %c16_49] : memref<1x22x16x24xbf16, #tpu.memory_space<vmem>>, vector<1x8x16x8xbf16>
    %74 = vector.shape_cast %73 : vector<1x8x16x8xbf16> to vector<8x16x8xbf16>
    %75 = vector.shape_cast %74 : vector<8x16x8xbf16> to vector<128x8xbf16>
    %76 = tpu.concatenate %5, %10, %15, %20, %25, %30, %35, %40, %45, %50, %55, %60, %65, %70, %75 in 1 : vector<128x8xbf16>, vector<128x8xbf16>, vector<128x8xbf16>, vector<128x8xbf16>, vector<128x8xbf16>, vector<128x8xbf16>, vector<128x8xbf16>, vector<128x8xbf16>, vector<128x8xbf16>, vector<128x8xbf16>, vector<128x8xbf16>, vector<128x8xbf16>, vector<128x8xbf16>, vector<128x8xbf16>, vector<128x8xbf16> -> vector<128x120xbf16>
    %c0_50 = arith.constant 0 : index
    %c0_51 = arith.constant 0 : index
    %77 = vector.load %arg3[%c0_50, %c0_51] : memref<120x24xbf16, #tpu.memory_space<vmem>>, vector<120x24xbf16>
    %cst = arith.constant dense<0.000000e+00> : vector<128x24xf32>
    %78 = tpu.matmul %76, %77, %cst {dimension_numbers = #tpu.dot_dimension_numbers<[1], [0], [0], [1], [0, 0, 1, 1], [], []>} : vector<128x120xbf16>, vector<120x24xbf16>, vector<128x24xf32> -> vector<128x24xf32>
    %c0_52 = arith.constant 0 : index
    %c0_53 = arith.constant 0 : index
    %79 = vector.load %arg4[%c0_52, %c0_53] : memref<1x24xf32, #tpu.memory_space<vmem>>, vector<1x24xf32>
    %80 = vector.broadcast %79 : vector<1x24xf32> to vector<128x24xf32>
    %81 = arith.addf %78, %80 : vector<128x24xf32>
    %82 = vector.shape_cast %81 : vector<128x24xf32> to vector<8x16x24xf32>
    %83 = arith.truncf %82 : vector<8x16x24xf32> to vector<8x16x24xbf16>
    %c0_54 = arith.constant 0 : index
    %c0_55 = arith.constant 0 : index
    %c0_56 = arith.constant 0 : index
    %c0_57 = arith.constant 0 : index
    %84 = vector.load %arg5[%c0_54, %c0_55, %c0_56, %c0_57] : memref<1x8x16x24xbf16, #tpu.memory_space<vmem>>, vector<1x8x16x24xbf16>
    %85 = vector.shape_cast %84 : vector<1x8x16x24xbf16> to vector<8x16x24xbf16>
    %86 = vector.shape_cast %83 : vector<8x16x24xbf16> to vector<1x8x16x24xbf16>
    tpu.vector_store %arg5[%c0_54, %c0_55, %c0_56, %c0_57], %86 {strides = array<i32>} : memref<1x8x16x24xbf16, #tpu.memory_space<vmem>>, vector<1x8x16x24xbf16>,
    return
  }
  func.func @transform_0(%arg0: i32, %arg1: i32) -> (i32, i32, i32, i32) {
    %c0_i32 = arith.constant 0 : i32
    %c0_i32_0 = arith.constant 0 : i32
    %c0_i32_1 = arith.constant 0 : i32
    %c0_i32_2 = arith.constant 0 : i32
    return %arg0, %c0_i32, %c0_i32_0, %c0_i32_1 : i32, i32, i32, i32
  }
  func.func @transform_1(%arg0: i32, %arg1: i32) -> (i32, i32) {
    %c0_i32 = arith.constant 0 : i32
    %c0_i32_0 = arith.constant 0 : i32
    %c0_i32_1 = arith.constant 0 : i32
    return %c0_i32, %c0_i32_0 : i32, i32
  }
  func.func @transform_2(%arg0: i32, %arg1: i32) -> (i32, i32) {
    %c0_i32 = arith.constant 0 : i32
    %c0_i32_0 = arith.constant 0 : i32
    %c0_i32_1 = arith.constant 0 : i32
    return %c0_i32, %c0_i32_0 : i32, i32
  }
  func.func @transform_3(%arg0: i32, %arg1: i32) -> (i32, i32, i32, i32) {
    %c0_i32 = arith.constant 0 : i32
    %c0_i32_0 = arith.constant 0 : i32
    %c0_i32_1 = arith.constant 0 : i32
    return %arg0, %arg1, %c0_i32, %c0_i32_0 : i32, i32, i32, i32
  }
}

module attributes {stable_mosaic.version = 11 : i64} {
  func.func @kernel(%arg0: i32, %arg1: i32, %arg2: memref<1x30x30x24xbf16, #tpu.memory_space<vmem>>, %arg3: memref<216x24xbf16, #tpu.memory_space<vmem>>, %arg4: memref<1x24xf32, #tpu.memory_space<vmem>>, %arg5: memref<1x8x16x24xbf16, #tpu.memory_space<vmem>>) attributes {dimension_semantics = [#tpu.dimension_semantics<parallel>, #tpu.dimension_semantics<parallel>], iteration_bounds = array<i64: 2, 2>, scalar_prefetch = 0 : i64, scratch_operands = 0 : i64, tpu.core_type = #tpu.core_type<tc>, window_params = [{transform_indices = @transform_0, window_bounds = array<i64: 1, 30, 30, 24>}, {pipeline_mode = #tpu.pipeline_mode<synchronous>, transform_indices = @transform_1, window_bounds = array<i64: 216, 24>}, {pipeline_mode = #tpu.pipeline_mode<synchronous>, transform_indices = @transform_2, window_bounds = array<i64: 1, 24>}, {transform_indices = @transform_3, window_bounds = array<i64: 1, 8, 16, 24>}]} {
    %c8_i32 = arith.constant 8 : i32
    %0 = arith.muli %arg1, %c8_i32 : i32
    %c4_i32 = arith.constant 4 : i32
    %1 = arith.addi %0, %c4_i32 : i32
    %c0 = arith.constant 0 : index
    %2 = arith.index_cast %1 : i32 to index
    %c4 = arith.constant 4 : index
    %c0_0 = arith.constant 0 : index
    %3 = vector.load %arg2[%c0, %2, %c4, %c0_0] : memref<1x30x30x24xbf16, #tpu.memory_space<vmem>>, vector<1x8x16x8xbf16>
    %4 = vector.shape_cast %3 : vector<1x8x16x8xbf16> to vector<8x16x8xbf16>
    %5 = vector.shape_cast %4 : vector<8x16x8xbf16> to vector<128x8xbf16>
    %c4_i32_1 = arith.constant 4 : i32
    %6 = arith.addi %0, %c4_i32_1 : i32
    %c0_2 = arith.constant 0 : index
    %7 = arith.index_cast %6 : i32 to index
    %c7 = arith.constant 7 : index
    %c0_3 = arith.constant 0 : index
    %8 = vector.load %arg2[%c0_2, %7, %c7, %c0_3] : memref<1x30x30x24xbf16, #tpu.memory_space<vmem>>, vector<1x8x16x8xbf16>
    %9 = vector.shape_cast %8 : vector<1x8x16x8xbf16> to vector<8x16x8xbf16>
    %10 = vector.shape_cast %9 : vector<8x16x8xbf16> to vector<128x8xbf16>
    %c4_i32_4 = arith.constant 4 : i32
    %11 = arith.addi %0, %c4_i32_4 : i32
    %c0_5 = arith.constant 0 : index
    %12 = arith.index_cast %11 : i32 to index
    %c10 = arith.constant 10 : index
    %c0_6 = arith.constant 0 : index
    %13 = vector.load %arg2[%c0_5, %12, %c10, %c0_6] : memref<1x30x30x24xbf16, #tpu.memory_space<vmem>>, vector<1x8x16x8xbf16>
    %14 = vector.shape_cast %13 : vector<1x8x16x8xbf16> to vector<8x16x8xbf16>
    %15 = vector.shape_cast %14 : vector<8x16x8xbf16> to vector<128x8xbf16>
    %c7_i32 = arith.constant 7 : i32
    %16 = arith.addi %0, %c7_i32 : i32
    %c0_7 = arith.constant 0 : index
    %17 = arith.index_cast %16 : i32 to index
    %c4_8 = arith.constant 4 : index
    %c0_9 = arith.constant 0 : index
    %18 = vector.load %arg2[%c0_7, %17, %c4_8, %c0_9] : memref<1x30x30x24xbf16, #tpu.memory_space<vmem>>, vector<1x8x16x8xbf16>
    %19 = vector.shape_cast %18 : vector<1x8x16x8xbf16> to vector<8x16x8xbf16>
    %20 = vector.shape_cast %19 : vector<8x16x8xbf16> to vector<128x8xbf16>
    %c7_i32_10 = arith.constant 7 : i32
    %21 = arith.addi %0, %c7_i32_10 : i32
    %c0_11 = arith.constant 0 : index
    %22 = arith.index_cast %21 : i32 to index
    %c7_12 = arith.constant 7 : index
    %c0_13 = arith.constant 0 : index
    %23 = vector.load %arg2[%c0_11, %22, %c7_12, %c0_13] : memref<1x30x30x24xbf16, #tpu.memory_space<vmem>>, vector<1x8x16x8xbf16>
    %24 = vector.shape_cast %23 : vector<1x8x16x8xbf16> to vector<8x16x8xbf16>
    %25 = vector.shape_cast %24 : vector<8x16x8xbf16> to vector<128x8xbf16>
    %c7_i32_14 = arith.constant 7 : i32
    %26 = arith.addi %0, %c7_i32_14 : i32
    %c0_15 = arith.constant 0 : index
    %27 = arith.index_cast %26 : i32 to index
    %c10_16 = arith.constant 10 : index
    %c0_17 = arith.constant 0 : index
    %28 = vector.load %arg2[%c0_15, %27, %c10_16, %c0_17] : memref<1x30x30x24xbf16, #tpu.memory_space<vmem>>, vector<1x8x16x8xbf16>
    %29 = vector.shape_cast %28 : vector<1x8x16x8xbf16> to vector<8x16x8xbf16>
    %30 = vector.shape_cast %29 : vector<8x16x8xbf16> to vector<128x8xbf16>
    %c10_i32 = arith.constant 10 : i32
    %31 = arith.addi %0, %c10_i32 : i32
    %c0_18 = arith.constant 0 : index
    %32 = arith.index_cast %31 : i32 to index
    %c4_19 = arith.constant 4 : index
    %c0_20 = arith.constant 0 : index
    %33 = vector.load %arg2[%c0_18, %32, %c4_19, %c0_20] : memref<1x30x30x24xbf16, #tpu.memory_space<vmem>>, vector<1x8x16x8xbf16>
    %34 = vector.shape_cast %33 : vector<1x8x16x8xbf16> to vector<8x16x8xbf16>
    %35 = vector.shape_cast %34 : vector<8x16x8xbf16> to vector<128x8xbf16>
    %c10_i32_21 = arith.constant 10 : i32
    %36 = arith.addi %0, %c10_i32_21 : i32
    %c0_22 = arith.constant 0 : index
    %37 = arith.index_cast %36 : i32 to index
    %c7_23 = arith.constant 7 : index
    %c0_24 = arith.constant 0 : index
    %38 = vector.load %arg2[%c0_22, %37, %c7_23, %c0_24] : memref<1x30x30x24xbf16, #tpu.memory_space<vmem>>, vector<1x8x16x8xbf16>
    %39 = vector.shape_cast %38 : vector<1x8x16x8xbf16> to vector<8x16x8xbf16>
    %40 = vector.shape_cast %39 : vector<8x16x8xbf16> to vector<128x8xbf16>
    %c10_i32_25 = arith.constant 10 : i32
    %41 = arith.addi %0, %c10_i32_25 : i32
    %c0_26 = arith.constant 0 : index
    %42 = arith.index_cast %41 : i32 to index
    %c10_27 = arith.constant 10 : index
    %c0_28 = arith.constant 0 : index
    %43 = vector.load %arg2[%c0_26, %42, %c10_27, %c0_28] : memref<1x30x30x24xbf16, #tpu.memory_space<vmem>>, vector<1x8x16x8xbf16>
    %44 = vector.shape_cast %43 : vector<1x8x16x8xbf16> to vector<8x16x8xbf16>
    %45 = vector.shape_cast %44 : vector<8x16x8xbf16> to vector<128x8xbf16>
    %c2_i32 = arith.constant 2 : i32
    %46 = arith.addi %0, %c2_i32 : i32
    %c0_29 = arith.constant 0 : index
    %47 = arith.index_cast %46 : i32 to index
    %c2 = arith.constant 2 : index
    %c8 = arith.constant 8 : index
    %48 = vector.load %arg2[%c0_29, %47, %c2, %c8] : memref<1x30x30x24xbf16, #tpu.memory_space<vmem>>, vector<1x8x16x8xbf16>
    %49 = vector.shape_cast %48 : vector<1x8x16x8xbf16> to vector<8x16x8xbf16>
    %50 = vector.shape_cast %49 : vector<8x16x8xbf16> to vector<128x8xbf16>
    %c2_i32_30 = arith.constant 2 : i32
    %51 = arith.addi %0, %c2_i32_30 : i32
    %c0_31 = arith.constant 0 : index
    %52 = arith.index_cast %51 : i32 to index
    %c7_32 = arith.constant 7 : index
    %c8_33 = arith.constant 8 : index
    %53 = vector.load %arg2[%c0_31, %52, %c7_32, %c8_33] : memref<1x30x30x24xbf16, #tpu.memory_space<vmem>>, vector<1x8x16x8xbf16>
    %54 = vector.shape_cast %53 : vector<1x8x16x8xbf16> to vector<8x16x8xbf16>
    %55 = vector.shape_cast %54 : vector<8x16x8xbf16> to vector<128x8xbf16>
    %c2_i32_34 = arith.constant 2 : i32
    %56 = arith.addi %0, %c2_i32_34 : i32
    %c0_35 = arith.constant 0 : index
    %57 = arith.index_cast %56 : i32 to index
    %c12 = arith.constant 12 : index
    %c8_36 = arith.constant 8 : index
    %58 = vector.load %arg2[%c0_35, %57, %c12, %c8_36] : memref<1x30x30x24xbf16, #tpu.memory_space<vmem>>, vector<1x8x16x8xbf16>
    %59 = vector.shape_cast %58 : vector<1x8x16x8xbf16> to vector<8x16x8xbf16>
    %60 = vector.shape_cast %59 : vector<8x16x8xbf16> to vector<128x8xbf16>
    %c7_i32_37 = arith.constant 7 : i32
    %61 = arith.addi %0, %c7_i32_37 : i32
    %c0_38 = arith.constant 0 : index
    %62 = arith.index_cast %61 : i32 to index
    %c2_39 = arith.constant 2 : index
    %c8_40 = arith.constant 8 : index
    %63 = vector.load %arg2[%c0_38, %62, %c2_39, %c8_40] : memref<1x30x30x24xbf16, #tpu.memory_space<vmem>>, vector<1x8x16x8xbf16>
    %64 = vector.shape_cast %63 : vector<1x8x16x8xbf16> to vector<8x16x8xbf16>
    %65 = vector.shape_cast %64 : vector<8x16x8xbf16> to vector<128x8xbf16>
    %c7_i32_41 = arith.constant 7 : i32
    %66 = arith.addi %0, %c7_i32_41 : i32
    %c0_42 = arith.constant 0 : index
    %67 = arith.index_cast %66 : i32 to index
    %c7_43 = arith.constant 7 : index
    %c8_44 = arith.constant 8 : index
    %68 = vector.load %arg2[%c0_42, %67, %c7_43, %c8_44] : memref<1x30x30x24xbf16, #tpu.memory_space<vmem>>, vector<1x8x16x8xbf16>
    %69 = vector.shape_cast %68 : vector<1x8x16x8xbf16> to vector<8x16x8xbf16>
    %70 = vector.shape_cast %69 : vector<8x16x8xbf16> to vector<128x8xbf16>
    %c7_i32_45 = arith.constant 7 : i32
    %71 = arith.addi %0, %c7_i32_45 : i32
    %c0_46 = arith.constant 0 : index
    %72 = arith.index_cast %71 : i32 to index
    %c12_47 = arith.constant 12 : index
    %c8_48 = arith.constant 8 : index
    %73 = vector.load %arg2[%c0_46, %72, %c12_47, %c8_48] : memref<1x30x30x24xbf16, #tpu.memory_space<vmem>>, vector<1x8x16x8xbf16>
    %74 = vector.shape_cast %73 : vector<1x8x16x8xbf16> to vector<8x16x8xbf16>
    %75 = vector.shape_cast %74 : vector<8x16x8xbf16> to vector<128x8xbf16>
    %c12_i32 = arith.constant 12 : i32
    %76 = arith.addi %0, %c12_i32 : i32
    %c0_49 = arith.constant 0 : index
    %77 = arith.index_cast %76 : i32 to index
    %c2_50 = arith.constant 2 : index
    %c8_51 = arith.constant 8 : index
    %78 = vector.load %arg2[%c0_49, %77, %c2_50, %c8_51] : memref<1x30x30x24xbf16, #tpu.memory_space<vmem>>, vector<1x8x16x8xbf16>
    %79 = vector.shape_cast %78 : vector<1x8x16x8xbf16> to vector<8x16x8xbf16>
    %80 = vector.shape_cast %79 : vector<8x16x8xbf16> to vector<128x8xbf16>
    %c12_i32_52 = arith.constant 12 : i32
    %81 = arith.addi %0, %c12_i32_52 : i32
    %c0_53 = arith.constant 0 : index
    %82 = arith.index_cast %81 : i32 to index
    %c7_54 = arith.constant 7 : index
    %c8_55 = arith.constant 8 : index
    %83 = vector.load %arg2[%c0_53, %82, %c7_54, %c8_55] : memref<1x30x30x24xbf16, #tpu.memory_space<vmem>>, vector<1x8x16x8xbf16>
    %84 = vector.shape_cast %83 : vector<1x8x16x8xbf16> to vector<8x16x8xbf16>
    %85 = vector.shape_cast %84 : vector<8x16x8xbf16> to vector<128x8xbf16>
    %c12_i32_56 = arith.constant 12 : i32
    %86 = arith.addi %0, %c12_i32_56 : i32
    %c0_57 = arith.constant 0 : index
    %87 = arith.index_cast %86 : i32 to index
    %c12_58 = arith.constant 12 : index
    %c8_59 = arith.constant 8 : index
    %88 = vector.load %arg2[%c0_57, %87, %c12_58, %c8_59] : memref<1x30x30x24xbf16, #tpu.memory_space<vmem>>, vector<1x8x16x8xbf16>
    %89 = vector.shape_cast %88 : vector<1x8x16x8xbf16> to vector<8x16x8xbf16>
    %90 = vector.shape_cast %89 : vector<8x16x8xbf16> to vector<128x8xbf16>
    %c0_i32 = arith.constant 0 : i32
    %91 = arith.addi %0, %c0_i32 : i32
    %c0_60 = arith.constant 0 : index
    %92 = arith.index_cast %91 : i32 to index
    %c0_61 = arith.constant 0 : index
    %c16 = arith.constant 16 : index
    %93 = vector.load %arg2[%c0_60, %92, %c0_61, %c16] : memref<1x30x30x24xbf16, #tpu.memory_space<vmem>>, vector<1x8x16x8xbf16>
    %94 = vector.shape_cast %93 : vector<1x8x16x8xbf16> to vector<8x16x8xbf16>
    %95 = vector.shape_cast %94 : vector<8x16x8xbf16> to vector<128x8xbf16>
    %c0_i32_62 = arith.constant 0 : i32
    %96 = arith.addi %0, %c0_i32_62 : i32
    %c0_63 = arith.constant 0 : index
    %97 = arith.index_cast %96 : i32 to index
    %c7_64 = arith.constant 7 : index
    %c16_65 = arith.constant 16 : index
    %98 = vector.load %arg2[%c0_63, %97, %c7_64, %c16_65] : memref<1x30x30x24xbf16, #tpu.memory_space<vmem>>, vector<1x8x16x8xbf16>
    %99 = vector.shape_cast %98 : vector<1x8x16x8xbf16> to vector<8x16x8xbf16>
    %100 = vector.shape_cast %99 : vector<8x16x8xbf16> to vector<128x8xbf16>
    %c0_i32_66 = arith.constant 0 : i32
    %101 = arith.addi %0, %c0_i32_66 : i32
    %c0_67 = arith.constant 0 : index
    %102 = arith.index_cast %101 : i32 to index
    %c14 = arith.constant 14 : index
    %c16_68 = arith.constant 16 : index
    %103 = vector.load %arg2[%c0_67, %102, %c14, %c16_68] : memref<1x30x30x24xbf16, #tpu.memory_space<vmem>>, vector<1x8x16x8xbf16>
    %104 = vector.shape_cast %103 : vector<1x8x16x8xbf16> to vector<8x16x8xbf16>
    %105 = vector.shape_cast %104 : vector<8x16x8xbf16> to vector<128x8xbf16>
    %c7_i32_69 = arith.constant 7 : i32
    %106 = arith.addi %0, %c7_i32_69 : i32
    %c0_70 = arith.constant 0 : index
    %107 = arith.index_cast %106 : i32 to index
    %c0_71 = arith.constant 0 : index
    %c16_72 = arith.constant 16 : index
    %108 = vector.load %arg2[%c0_70, %107, %c0_71, %c16_72] : memref<1x30x30x24xbf16, #tpu.memory_space<vmem>>, vector<1x8x16x8xbf16>
    %109 = vector.shape_cast %108 : vector<1x8x16x8xbf16> to vector<8x16x8xbf16>
    %110 = vector.shape_cast %109 : vector<8x16x8xbf16> to vector<128x8xbf16>
    %c7_i32_73 = arith.constant 7 : i32
    %111 = arith.addi %0, %c7_i32_73 : i32
    %c0_74 = arith.constant 0 : index
    %112 = arith.index_cast %111 : i32 to index
    %c7_75 = arith.constant 7 : index
    %c16_76 = arith.constant 16 : index
    %113 = vector.load %arg2[%c0_74, %112, %c7_75, %c16_76] : memref<1x30x30x24xbf16, #tpu.memory_space<vmem>>, vector<1x8x16x8xbf16>
    %114 = vector.shape_cast %113 : vector<1x8x16x8xbf16> to vector<8x16x8xbf16>
    %115 = vector.shape_cast %114 : vector<8x16x8xbf16> to vector<128x8xbf16>
    %c7_i32_77 = arith.constant 7 : i32
    %116 = arith.addi %0, %c7_i32_77 : i32
    %c0_78 = arith.constant 0 : index
    %117 = arith.index_cast %116 : i32 to index
    %c14_79 = arith.constant 14 : index
    %c16_80 = arith.constant 16 : index
    %118 = vector.load %arg2[%c0_78, %117, %c14_79, %c16_80] : memref<1x30x30x24xbf16, #tpu.memory_space<vmem>>, vector<1x8x16x8xbf16>
    %119 = vector.shape_cast %118 : vector<1x8x16x8xbf16> to vector<8x16x8xbf16>
    %120 = vector.shape_cast %119 : vector<8x16x8xbf16> to vector<128x8xbf16>
    %c14_i32 = arith.constant 14 : i32
    %121 = arith.addi %0, %c14_i32 : i32
    %c0_81 = arith.constant 0 : index
    %122 = arith.index_cast %121 : i32 to index
    %c0_82 = arith.constant 0 : index
    %c16_83 = arith.constant 16 : index
    %123 = vector.load %arg2[%c0_81, %122, %c0_82, %c16_83] : memref<1x30x30x24xbf16, #tpu.memory_space<vmem>>, vector<1x8x16x8xbf16>
    %124 = vector.shape_cast %123 : vector<1x8x16x8xbf16> to vector<8x16x8xbf16>
    %125 = vector.shape_cast %124 : vector<8x16x8xbf16> to vector<128x8xbf16>
    %c14_i32_84 = arith.constant 14 : i32
    %126 = arith.addi %0, %c14_i32_84 : i32
    %c0_85 = arith.constant 0 : index
    %127 = arith.index_cast %126 : i32 to index
    %c7_86 = arith.constant 7 : index
    %c16_87 = arith.constant 16 : index
    %128 = vector.load %arg2[%c0_85, %127, %c7_86, %c16_87] : memref<1x30x30x24xbf16, #tpu.memory_space<vmem>>, vector<1x8x16x8xbf16>
    %129 = vector.shape_cast %128 : vector<1x8x16x8xbf16> to vector<8x16x8xbf16>
    %130 = vector.shape_cast %129 : vector<8x16x8xbf16> to vector<128x8xbf16>
    %c14_i32_88 = arith.constant 14 : i32
    %131 = arith.addi %0, %c14_i32_88 : i32
    %c0_89 = arith.constant 0 : index
    %132 = arith.index_cast %131 : i32 to index
    %c14_90 = arith.constant 14 : index
    %c16_91 = arith.constant 16 : index
    %133 = vector.load %arg2[%c0_89, %132, %c14_90, %c16_91] : memref<1x30x30x24xbf16, #tpu.memory_space<vmem>>, vector<1x8x16x8xbf16>
    %134 = vector.shape_cast %133 : vector<1x8x16x8xbf16> to vector<8x16x8xbf16>
    %135 = vector.shape_cast %134 : vector<8x16x8xbf16> to vector<128x8xbf16>
    %136 = tpu.concatenate %5, %10, %15, %20, %25, %30, %35, %40, %45, %50, %55, %60, %65, %70, %75, %80 in 1 : vector<128x8xbf16>, vector<128x8xbf16>, vector<128x8xbf16>, vector<128x8xbf16>, vector<128x8xbf16>, vector<128x8xbf16>, vector<128x8xbf16>, vector<128x8xbf16>, vector<128x8xbf16>, vector<128x8xbf16>, vector<128x8xbf16>, vector<128x8xbf16>, vector<128x8xbf16>, vector<128x8xbf16>, vector<128x8xbf16>, vector<128x8xbf16> -> vector<128x128xbf16>
    %137 = tpu.concatenate %85, %90, %95, %100, %105, %110, %115, %120, %125, %130, %135 in 1 : vector<128x8xbf16>, vector<128x8xbf16>, vector<128x8xbf16>, vector<128x8xbf16>, vector<128x8xbf16>, vector<128x8xbf16>, vector<128x8xbf16>, vector<128x8xbf16>, vector<128x8xbf16>, vector<128x8xbf16>, vector<128x8xbf16> -> vector<128x88xbf16>
    %138 = tpu.concatenate %136, %137 in 1 : vector<128x128xbf16>, vector<128x88xbf16> -> vector<128x216xbf16>
    %c0_92 = arith.constant 0 : index
    %c0_93 = arith.constant 0 : index
    %139 = vector.load %arg3[%c0_92, %c0_93] : memref<216x24xbf16, #tpu.memory_space<vmem>>, vector<216x24xbf16>
    %cst = arith.constant dense<0.000000e+00> : vector<128x24xf32>
    %140 = tpu.matmul %138, %139, %cst {dimension_numbers = #tpu.dot_dimension_numbers<[1], [0], [0], [1], [0, 0, 1, 1], [], []>} : vector<128x216xbf16>, vector<216x24xbf16>, vector<128x24xf32> -> vector<128x24xf32>
    %c0_94 = arith.constant 0 : index
    %c0_95 = arith.constant 0 : index
    %141 = vector.load %arg4[%c0_94, %c0_95] : memref<1x24xf32, #tpu.memory_space<vmem>>, vector<1x24xf32>
    %142 = vector.broadcast %141 : vector<1x24xf32> to vector<128x24xf32>
    %143 = arith.addf %140, %142 : vector<128x24xf32>
    %144 = vector.shape_cast %143 : vector<128x24xf32> to vector<8x16x24xf32>
    %145 = arith.truncf %144 : vector<8x16x24xf32> to vector<8x16x24xbf16>
    %c0_96 = arith.constant 0 : index
    %c0_97 = arith.constant 0 : index
    %c0_98 = arith.constant 0 : index
    %c0_99 = arith.constant 0 : index
    %146 = vector.load %arg5[%c0_96, %c0_97, %c0_98, %c0_99] : memref<1x8x16x24xbf16, #tpu.memory_space<vmem>>, vector<1x8x16x24xbf16>
    %147 = vector.shape_cast %146 : vector<1x8x16x24xbf16> to vector<8x16x24xbf16>
    %148 = vector.shape_cast %145 : vector<8x16x24xbf16> to vector<1x8x16x24xbf16>
    tpu.vector_store %arg5[%c0_96, %c0_97, %c0_98, %c0_99], %148 {strides = array<i32>} : memref<1x8x16x24xbf16, #tpu.memory_space<vmem>>, vector<1x8x16x24xbf16>,
    return
  }
  func.func @transform_0(%arg0: i32, %arg1: i32) -> (i32, i32, i32, i32) {
    %c0_i32 = arith.constant 0 : i32
    %c0_i32_0 = arith.constant 0 : i32
    %c0_i32_1 = arith.constant 0 : i32
    %c0_i32_2 = arith.constant 0 : i32
    return %arg0, %c0_i32, %c0_i32_0, %c0_i32_1 : i32, i32, i32, i32
  }
  func.func @transform_1(%arg0: i32, %arg1: i32) -> (i32, i32) {
    %c0_i32 = arith.constant 0 : i32
    %c0_i32_0 = arith.constant 0 : i32
    %c0_i32_1 = arith.constant 0 : i32
    return %c0_i32, %c0_i32_0 : i32, i32
  }
  func.func @transform_2(%arg0: i32, %arg1: i32) -> (i32, i32) {
    %c0_i32 = arith.constant 0 : i32
    %c0_i32_0 = arith.constant 0 : i32
    %c0_i32_1 = arith.constant 0 : i32
    return %c0_i32, %c0_i32_0 : i32, i32
  }
  func.func @transform_3(%arg0: i32, %arg1: i32) -> (i32, i32, i32, i32) {
    %c0_i32 = arith.constant 0 : i32
    %c0_i32_0 = arith.constant 0 : i32
    %c0_i32_1 = arith.constant 0 : i32
    return %arg0, %arg1, %c0_i32, %c0_i32_0 : i32, i32, i32, i32
  }
}

module attributes {stable_mosaic.version = 11 : i64} {
  func.func @kernel(%arg0: i32, %arg1: i32, %arg2: memref<1x18x18x8xbf16, #tpu.memory_space<vmem>>, %arg3: memref<1x18x18x24xbf16, #tpu.memory_space<vmem>>, %arg4: memref<288x8xbf16, #tpu.memory_space<vmem>>, %arg5: memref<1x8xf32, #tpu.memory_space<vmem>>, %arg6: memref<1x8x16x8xbf16, #tpu.memory_space<vmem>>, %arg7: memref<1x8x16x8xf32, #tpu.memory_space<vmem>>) attributes {dimension_semantics = [#tpu.dimension_semantics<parallel>, #tpu.dimension_semantics<parallel>], iteration_bounds = array<i64: 2, 2>, scalar_prefetch = 0 : i64, scratch_operands = 0 : i64, tpu.core_type = #tpu.core_type<tc>, window_params = [{transform_indices = @transform_0, window_bounds = array<i64: 1, 18, 18, 8>}, {transform_indices = @transform_1, window_bounds = array<i64: 1, 18, 18, 24>}, {pipeline_mode = #tpu.pipeline_mode<synchronous>, transform_indices = @transform_2, window_bounds = array<i64: 288, 8>}, {pipeline_mode = #tpu.pipeline_mode<synchronous>, transform_indices = @transform_3, window_bounds = array<i64: 1, 8>}, {transform_indices = @transform_4, window_bounds = array<i64: 1, 8, 16, 8>}, {transform_indices = @transform_5, window_bounds = array<i64: 1, 8, 16, 8>}]} {
    %c8_i32 = arith.constant 8 : i32
    %0 = arith.muli %arg1, %c8_i32 : i32
    %c0_i32 = arith.constant 0 : i32
    %1 = arith.addi %0, %c0_i32 : i32
    %c0 = arith.constant 0 : index
    %2 = arith.index_cast %1 : i32 to index
    %c0_0 = arith.constant 0 : index
    %c0_1 = arith.constant 0 : index
    %3 = vector.load %arg2[%c0, %2, %c0_0, %c0_1] : memref<1x18x18x8xbf16, #tpu.memory_space<vmem>>, vector<1x8x16x8xbf16>
    %4 = vector.shape_cast %3 : vector<1x8x16x8xbf16> to vector<8x16x8xbf16>
    %5 = vector.shape_cast %4 : vector<8x16x8xbf16> to vector<128x8xbf16>
    %c0_i32_2 = arith.constant 0 : i32
    %6 = arith.addi %0, %c0_i32_2 : i32
    %c0_3 = arith.constant 0 : index
    %7 = arith.index_cast %6 : i32 to index
    %c0_4 = arith.constant 0 : index
    %c0_5 = arith.constant 0 : index
    %8 = vector.load %arg3[%c0_3, %7, %c0_4, %c0_5] : memref<1x18x18x24xbf16, #tpu.memory_space<vmem>>, vector<1x8x16x24xbf16>
    %9 = vector.shape_cast %8 : vector<1x8x16x24xbf16> to vector<8x16x24xbf16>
    %10 = vector.shape_cast %9 : vector<8x16x24xbf16> to vector<128x24xbf16>
    %c0_i32_6 = arith.constant 0 : i32
    %11 = arith.addi %0, %c0_i32_6 : i32
    %c0_7 = arith.constant 0 : index
    %12 = arith.index_cast %11 : i32 to index
    %c1 = arith.constant 1 : index
    %c0_8 = arith.constant 0 : index
    %13 = vector.load %arg2[%c0_7, %12, %c1, %c0_8] : memref<1x18x18x8xbf16, #tpu.memory_space<vmem>>, vector<1x8x16x8xbf16>
    %14 = vector.shape_cast %13 : vector<1x8x16x8xbf16> to vector<8x16x8xbf16>
    %15 = vector.shape_cast %14 : vector<8x16x8xbf16> to vector<128x8xbf16>
    %c0_i32_9 = arith.constant 0 : i32
    %16 = arith.addi %0, %c0_i32_9 : i32
    %c0_10 = arith.constant 0 : index
    %17 = arith.index_cast %16 : i32 to index
    %c1_11 = arith.constant 1 : index
    %c0_12 = arith.constant 0 : index
    %18 = vector.load %arg3[%c0_10, %17, %c1_11, %c0_12] : memref<1x18x18x24xbf16, #tpu.memory_space<vmem>>, vector<1x8x16x24xbf16>
    %19 = vector.shape_cast %18 : vector<1x8x16x24xbf16> to vector<8x16x24xbf16>
    %20 = vector.shape_cast %19 : vector<8x16x24xbf16> to vector<128x24xbf16>
    %c0_i32_13 = arith.constant 0 : i32
    %21 = arith.addi %0, %c0_i32_13 : i32
    %c0_14 = arith.constant 0 : index
    %22 = arith.index_cast %21 : i32 to index
    %c2 = arith.constant 2 : index
    %c0_15 = arith.constant 0 : index
    %23 = vector.load %arg2[%c0_14, %22, %c2, %c0_15] : memref<1x18x18x8xbf16, #tpu.memory_space<vmem>>, vector<1x8x16x8xbf16>
    %24 = vector.shape_cast %23 : vector<1x8x16x8xbf16> to vector<8x16x8xbf16>
    %25 = vector.shape_cast %24 : vector<8x16x8xbf16> to vector<128x8xbf16>
    %c0_i32_16 = arith.constant 0 : i32
    %26 = arith.addi %0, %c0_i32_16 : i32
    %c0_17 = arith.constant 0 : index
    %27 = arith.index_cast %26 : i32 to index
    %c2_18 = arith.constant 2 : index
    %c0_19 = arith.constant 0 : index
    %28 = vector.load %arg3[%c0_17, %27, %c2_18, %c0_19] : memref<1x18x18x24xbf16, #tpu.memory_space<vmem>>, vector<1x8x16x24xbf16>
    %29 = vector.shape_cast %28 : vector<1x8x16x24xbf16> to vector<8x16x24xbf16>
    %30 = vector.shape_cast %29 : vector<8x16x24xbf16> to vector<128x24xbf16>
    %c1_i32 = arith.constant 1 : i32
    %31 = arith.addi %0, %c1_i32 : i32
    %c0_20 = arith.constant 0 : index
    %32 = arith.index_cast %31 : i32 to index
    %c0_21 = arith.constant 0 : index
    %c0_22 = arith.constant 0 : index
    %33 = vector.load %arg2[%c0_20, %32, %c0_21, %c0_22] : memref<1x18x18x8xbf16, #tpu.memory_space<vmem>>, vector<1x8x16x8xbf16>
    %34 = vector.shape_cast %33 : vector<1x8x16x8xbf16> to vector<8x16x8xbf16>
    %35 = vector.shape_cast %34 : vector<8x16x8xbf16> to vector<128x8xbf16>
    %c1_i32_23 = arith.constant 1 : i32
    %36 = arith.addi %0, %c1_i32_23 : i32
    %c0_24 = arith.constant 0 : index
    %37 = arith.index_cast %36 : i32 to index
    %c0_25 = arith.constant 0 : index
    %c0_26 = arith.constant 0 : index
    %38 = vector.load %arg3[%c0_24, %37, %c0_25, %c0_26] : memref<1x18x18x24xbf16, #tpu.memory_space<vmem>>, vector<1x8x16x24xbf16>
    %39 = vector.shape_cast %38 : vector<1x8x16x24xbf16> to vector<8x16x24xbf16>
    %40 = vector.shape_cast %39 : vector<8x16x24xbf16> to vector<128x24xbf16>
    %c1_i32_27 = arith.constant 1 : i32
    %41 = arith.addi %0, %c1_i32_27 : i32
    %c0_28 = arith.constant 0 : index
    %42 = arith.index_cast %41 : i32 to index
    %c1_29 = arith.constant 1 : index
    %c0_30 = arith.constant 0 : index
    %43 = vector.load %arg2[%c0_28, %42, %c1_29, %c0_30] : memref<1x18x18x8xbf16, #tpu.memory_space<vmem>>, vector<1x8x16x8xbf16>
    %44 = vector.shape_cast %43 : vector<1x8x16x8xbf16> to vector<8x16x8xbf16>
    %45 = vector.shape_cast %44 : vector<8x16x8xbf16> to vector<128x8xbf16>
    %c1_i32_31 = arith.constant 1 : i32
    %46 = arith.addi %0, %c1_i32_31 : i32
    %c0_32 = arith.constant 0 : index
    %47 = arith.index_cast %46 : i32 to index
    %c1_33 = arith.constant 1 : index
    %c0_34 = arith.constant 0 : index
    %48 = vector.load %arg3[%c0_32, %47, %c1_33, %c0_34] : memref<1x18x18x24xbf16, #tpu.memory_space<vmem>>, vector<1x8x16x24xbf16>
    %49 = vector.shape_cast %48 : vector<1x8x16x24xbf16> to vector<8x16x24xbf16>
    %50 = vector.shape_cast %49 : vector<8x16x24xbf16> to vector<128x24xbf16>
    %c1_i32_35 = arith.constant 1 : i32
    %51 = arith.addi %0, %c1_i32_35 : i32
    %c0_36 = arith.constant 0 : index
    %52 = arith.index_cast %51 : i32 to index
    %c2_37 = arith.constant 2 : index
    %c0_38 = arith.constant 0 : index
    %53 = vector.load %arg2[%c0_36, %52, %c2_37, %c0_38] : memref<1x18x18x8xbf16, #tpu.memory_space<vmem>>, vector<1x8x16x8xbf16>
    %54 = vector.shape_cast %53 : vector<1x8x16x8xbf16> to vector<8x16x8xbf16>
    %55 = vector.shape_cast %54 : vector<8x16x8xbf16> to vector<128x8xbf16>
    %c1_i32_39 = arith.constant 1 : i32
    %56 = arith.addi %0, %c1_i32_39 : i32
    %c0_40 = arith.constant 0 : index
    %57 = arith.index_cast %56 : i32 to index
    %c2_41 = arith.constant 2 : index
    %c0_42 = arith.constant 0 : index
    %58 = vector.load %arg3[%c0_40, %57, %c2_41, %c0_42] : memref<1x18x18x24xbf16, #tpu.memory_space<vmem>>, vector<1x8x16x24xbf16>
    %59 = vector.shape_cast %58 : vector<1x8x16x24xbf16> to vector<8x16x24xbf16>
    %60 = vector.shape_cast %59 : vector<8x16x24xbf16> to vector<128x24xbf16>
    %c2_i32 = arith.constant 2 : i32
    %61 = arith.addi %0, %c2_i32 : i32
    %c0_43 = arith.constant 0 : index
    %62 = arith.index_cast %61 : i32 to index
    %c0_44 = arith.constant 0 : index
    %c0_45 = arith.constant 0 : index
    %63 = vector.load %arg2[%c0_43, %62, %c0_44, %c0_45] : memref<1x18x18x8xbf16, #tpu.memory_space<vmem>>, vector<1x8x16x8xbf16>
    %64 = vector.shape_cast %63 : vector<1x8x16x8xbf16> to vector<8x16x8xbf16>
    %65 = vector.shape_cast %64 : vector<8x16x8xbf16> to vector<128x8xbf16>
    %c2_i32_46 = arith.constant 2 : i32
    %66 = arith.addi %0, %c2_i32_46 : i32
    %c0_47 = arith.constant 0 : index
    %67 = arith.index_cast %66 : i32 to index
    %c0_48 = arith.constant 0 : index
    %c0_49 = arith.constant 0 : index
    %68 = vector.load %arg3[%c0_47, %67, %c0_48, %c0_49] : memref<1x18x18x24xbf16, #tpu.memory_space<vmem>>, vector<1x8x16x24xbf16>
    %69 = vector.shape_cast %68 : vector<1x8x16x24xbf16> to vector<8x16x24xbf16>
    %70 = vector.shape_cast %69 : vector<8x16x24xbf16> to vector<128x24xbf16>
    %c2_i32_50 = arith.constant 2 : i32
    %71 = arith.addi %0, %c2_i32_50 : i32
    %c0_51 = arith.constant 0 : index
    %72 = arith.index_cast %71 : i32 to index
    %c1_52 = arith.constant 1 : index
    %c0_53 = arith.constant 0 : index
    %73 = vector.load %arg2[%c0_51, %72, %c1_52, %c0_53] : memref<1x18x18x8xbf16, #tpu.memory_space<vmem>>, vector<1x8x16x8xbf16>
    %74 = vector.shape_cast %73 : vector<1x8x16x8xbf16> to vector<8x16x8xbf16>
    %75 = vector.shape_cast %74 : vector<8x16x8xbf16> to vector<128x8xbf16>
    %c2_i32_54 = arith.constant 2 : i32
    %76 = arith.addi %0, %c2_i32_54 : i32
    %c0_55 = arith.constant 0 : index
    %77 = arith.index_cast %76 : i32 to index
    %c1_56 = arith.constant 1 : index
    %c0_57 = arith.constant 0 : index
    %78 = vector.load %arg3[%c0_55, %77, %c1_56, %c0_57] : memref<1x18x18x24xbf16, #tpu.memory_space<vmem>>, vector<1x8x16x24xbf16>
    %79 = vector.shape_cast %78 : vector<1x8x16x24xbf16> to vector<8x16x24xbf16>
    %80 = vector.shape_cast %79 : vector<8x16x24xbf16> to vector<128x24xbf16>
    %c2_i32_58 = arith.constant 2 : i32
    %81 = arith.addi %0, %c2_i32_58 : i32
    %c0_59 = arith.constant 0 : index
    %82 = arith.index_cast %81 : i32 to index
    %c2_60 = arith.constant 2 : index
    %c0_61 = arith.constant 0 : index
    %83 = vector.load %arg2[%c0_59, %82, %c2_60, %c0_61] : memref<1x18x18x8xbf16, #tpu.memory_space<vmem>>, vector<1x8x16x8xbf16>
    %84 = vector.shape_cast %83 : vector<1x8x16x8xbf16> to vector<8x16x8xbf16>
    %85 = vector.shape_cast %84 : vector<8x16x8xbf16> to vector<128x8xbf16>
    %c2_i32_62 = arith.constant 2 : i32
    %86 = arith.addi %0, %c2_i32_62 : i32
    %c0_63 = arith.constant 0 : index
    %87 = arith.index_cast %86 : i32 to index
    %c2_64 = arith.constant 2 : index
    %c0_65 = arith.constant 0 : index
    %88 = vector.load %arg3[%c0_63, %87, %c2_64, %c0_65] : memref<1x18x18x24xbf16, #tpu.memory_space<vmem>>, vector<1x8x16x24xbf16>
    %89 = vector.shape_cast %88 : vector<1x8x16x24xbf16> to vector<8x16x24xbf16>
    %90 = vector.shape_cast %89 : vector<8x16x24xbf16> to vector<128x24xbf16>
    %91 = tpu.concatenate %5, %10, %15, %20, %25, %30, %35, %40, %45, %50, %55, %60, %65, %70, %75, %80 in 1 : vector<128x8xbf16>, vector<128x24xbf16>, vector<128x8xbf16>, vector<128x24xbf16>, vector<128x8xbf16>, vector<128x24xbf16>, vector<128x8xbf16>, vector<128x24xbf16>, vector<128x8xbf16>, vector<128x24xbf16>, vector<128x8xbf16>, vector<128x24xbf16>, vector<128x8xbf16>, vector<128x24xbf16>, vector<128x8xbf16>, vector<128x24xbf16> -> vector<128x256xbf16>
    %92 = tpu.concatenate %85, %90 in 1 : vector<128x8xbf16>, vector<128x24xbf16> -> vector<128x32xbf16>
    %93 = tpu.concatenate %91, %92 in 1 : vector<128x256xbf16>, vector<128x32xbf16> -> vector<128x288xbf16>
    %c0_66 = arith.constant 0 : index
    %c0_67 = arith.constant 0 : index
    %94 = vector.load %arg4[%c0_66, %c0_67] : memref<288x8xbf16, #tpu.memory_space<vmem>>, vector<288x8xbf16>
    %cst = arith.constant dense<0.000000e+00> : vector<128x8xf32>
    %95 = tpu.matmul %93, %94, %cst {dimension_numbers = #tpu.dot_dimension_numbers<[1], [0], [0], [1], [0, 0, 1, 1], [], []>} : vector<128x288xbf16>, vector<288x8xbf16>, vector<128x8xf32> -> vector<128x8xf32>
    %c0_68 = arith.constant 0 : index
    %c0_69 = arith.constant 0 : index
    %96 = vector.load %arg5[%c0_68, %c0_69] : memref<1x8xf32, #tpu.memory_space<vmem>>, vector<1x8xf32>
    %97 = vector.broadcast %96 : vector<1x8xf32> to vector<128x8xf32>
    %98 = arith.addf %95, %97 : vector<128x8xf32>
    %99 = vector.shape_cast %98 : vector<128x8xf32> to vector<8x16x8xf32>
    %c0_70 = arith.constant 0 : index
    %c0_71 = arith.constant 0 : index
    %c0_72 = arith.constant 0 : index
    %c0_73 = arith.constant 0 : index
    %100 = vector.load %arg6[%c0_70, %c0_71, %c0_72, %c0_73] : memref<1x8x16x8xbf16, #tpu.memory_space<vmem>>, vector<1x8x16x8xbf16>
    %101 = vector.shape_cast %100 : vector<1x8x16x8xbf16> to vector<8x16x8xbf16>
    %102 = arith.extf %101 : vector<8x16x8xbf16> to vector<8x16x8xf32>
    %103 = arith.addf %99, %102 : vector<8x16x8xf32>
    %cst_74 = arith.constant 0.000000e+00 : f32
    %104 = vector.broadcast %cst_74 : f32 to vector<8x16x8xf32>
    %105 = arith.maximumf %103, %104 : vector<8x16x8xf32>
    %c0_75 = arith.constant 0 : index
    %c0_76 = arith.constant 0 : index
    %c0_77 = arith.constant 0 : index
    %c0_78 = arith.constant 0 : index
    %106 = vector.load %arg7[%c0_75, %c0_76, %c0_77, %c0_78] : memref<1x8x16x8xf32, #tpu.memory_space<vmem>>, vector<1x8x16x8xf32>
    %107 = vector.shape_cast %106 : vector<1x8x16x8xf32> to vector<8x16x8xf32>
    %108 = vector.shape_cast %105 : vector<8x16x8xf32> to vector<1x8x16x8xf32>
    tpu.vector_store %arg7[%c0_75, %c0_76, %c0_77, %c0_78], %108 {strides = array<i32>} : memref<1x8x16x8xf32, #tpu.memory_space<vmem>>, vector<1x8x16x8xf32>,
    return
  }
  func.func @transform_0(%arg0: i32, %arg1: i32) -> (i32, i32, i32, i32) {
    %c0_i32 = arith.constant 0 : i32
    %c0_i32_0 = arith.constant 0 : i32
    %c0_i32_1 = arith.constant 0 : i32
    %c0_i32_2 = arith.constant 0 : i32
    return %arg0, %c0_i32, %c0_i32_0, %c0_i32_1 : i32, i32, i32, i32
  }
  func.func @transform_1(%arg0: i32, %arg1: i32) -> (i32, i32, i32, i32) {
    %c0_i32 = arith.constant 0 : i32
    %c0_i32_0 = arith.constant 0 : i32
    %c0_i32_1 = arith.constant 0 : i32
    %c0_i32_2 = arith.constant 0 : i32
    return %arg0, %c0_i32, %c0_i32_0, %c0_i32_1 : i32, i32, i32, i32
  }
  func.func @transform_2(%arg0: i32, %arg1: i32) -> (i32, i32) {
    %c0_i32 = arith.constant 0 : i32
    %c0_i32_0 = arith.constant 0 : i32
    %c0_i32_1 = arith.constant 0 : i32
    return %c0_i32, %c0_i32_0 : i32, i32
  }
  func.func @transform_3(%arg0: i32, %arg1: i32) -> (i32, i32) {
    %c0_i32 = arith.constant 0 : i32
    %c0_i32_0 = arith.constant 0 : i32
    %c0_i32_1 = arith.constant 0 : i32
    return %c0_i32, %c0_i32_0 : i32, i32
  }
  func.func @transform_4(%arg0: i32, %arg1: i32) -> (i32, i32, i32, i32) {
    %c0_i32 = arith.constant 0 : i32
    %c0_i32_0 = arith.constant 0 : i32
    %c0_i32_1 = arith.constant 0 : i32
    return %arg0, %arg1, %c0_i32, %c0_i32_0 : i32, i32, i32, i32
  }
  func.func @transform_5(%arg0: i32, %arg1: i32) -> (i32, i32, i32, i32) {
    %c0_i32 = arith.constant 0 : i32
    %c0_i32_0 = arith.constant 0 : i32
    %c0_i32_1 = arith.constant 0 : i32
    return %arg0, %arg1, %c0_i32, %c0_i32_0 : i32, i32, i32, i32
  }
}

</mosaic_0001>

<bundles_post_ra>
// kernel: _lambda_.5
= control target key start
LH: loop header
LB: loop body
LE: loop exit
PB: predicated region body
PF: predicated region fallthrough
CT: control target
= control target key end

     0   :  { %s771_s12 = smov 0   ;;  %s773_s13 = smov 0   ;;  %s874_s0 = inlined_call_operand.vmem [shape: bf16[2,16,16,4], index: 0, kind: input, shape index: {}]   ;;  %s875_s1 = inlined_call_operand.vmem [shape: bf16[4,40], index: 1, kind: input, shape index: {}]   ;;  %s876_s2 = inlined_call_operand.vmem [shape: f32[1,40], index: 2, kind: input, shape index: {}]   ;;  %s877_s3 = inlined_call_operand.vmem [shape: bf16[2,16,16,40], index: 3, kind: output, shape index: {}]  }
   0x1   :  { %s775_s14 = smov 0   ;;  %s777_s15 = smov 0  }
   0x2   :  { %s779_s16 = smov 0  }
   0x3 LB: > { %s22_s17 = sadd.s32 1, %s741_s14  ;;  %s25_s18 = sadd.s32 1, %s745_s15  ;;  %s749_s16 = sphi %s779_s16, %s13_s16   ;;  %s745_s15 = sphi %s777_s15, %s881_s15   ;;  %s741_s14 = sphi %s775_s14, %s880_s14   ;;  %s737_s13 = sphi %s773_s13, %s879_s13   ;;  %s733_s12 = sphi %s771_s12, %s878_s12  }
   0x4   : > { %p23_p0 = scmp.ge.s32.totalorder %s22_s17, 2  ;;  %p568_p1 = scmp.ge.s32.totalorder %s749_s16, 1 }
   0x5   : > { %p151_p2 = scmp.lt.s32.totalorder %s749_s16, 5 }
   0x6   : > { %s883_s17 = smov (%p23_p0, %s22_s17), 0  ;;  %s885_s18 = smov (!%p23_p0, %s25_s18), %s745_s15 }
   0x7   : > { %p152_p3 = pnand %p568_p1, %p151_p2  ;;  %p27_p4 = scmp.ge.s32.totalorder %s885_s18, 2 }
   0x8   : > { %v217_v0 = vld [vmem:[%s875_s1] sm:$0x3] (!%p152_p3)  ;;  %vm290_vm0 = vcmask (!%p152_p3), 1041408   ;;  %p180_p5 = scmp.lt.s32.totalorder (!%p152_p3), %s737_s13, 1  ;;  %s615_s21 = sshll.u32 (!%p152_p3), %s733_s12, 6  ;;  %vm265_vm1 = vcmask (!%p152_p3), 31744  }
   0x9   : > { %s887_s18 = smov (%p27_p4, %s885_s18), 0  ;;  %155 = sbr.rel (%p152_p3) target bundleno = 251 (0xfb), region = 32 }
   0xa   : > { %661 = vmatprep.subr.msk.bf16.mxu0 (!%p152_p3), %vm290_vm0, %v217_v0  ;;  %662 = vmatprep.subr.msk.bf16.mxu1 (!%p152_p3), %vm290_vm0, %v217_v0  ;;  %v292_v1 = vsel (!%p152_p3), %vm290_vm0, %v217_v0, 0  ;;  %s571_s27 = sshll.u32 (!%p152_p3), %s733_s12, 3  ;;  %v578_v10 = vld [vmem:[%s876_s2] ss:$0 sm:$0xff] (!%p152_p3)  ;;  %vm455_vm2 = vcmask (!%p152_p3), 322560  }
   0xb   : > { %642 = vmatpush3.bf16.msra.mxu0 (!%p152_p3), %v292_v1  ;;  %660 = vmatpush3.bf16.msra.mxu1 (!%p152_p3), %v292_v1  ;;  %p188_p6 = scmp.lt.s32.totalorder (!%p152_p3), %s571_s27, 15 }
  0x10   : > { %s889_s13 = smov (!%p180_p5, %s737_s13), 1  ;;  %s891_s27 = smov (!%p188_p6, %s571_s27), 15 }
  0x11   : > { %s613_s22 = sshll.u32 %s889_s13, 7  ;;  %s572_s28 = sshll.u32 %s891_s27, 1 }
  0x12   : > { %s184_s25 = scalar_lea.vmem %s874_s0, %s613_s22  ;;  %s573_s29 = sshll.u32 %s889_s13, 5 }
  0x13   : > { %s200_s26 = scalar_lea.vmem %s184_s25, %s615_s21  ;;  %s192_s30 = sadd.s32 %s573_s29, %s572_s28 }
  0x14   : > { %v703_v2 = vld [vmem:[%s200_s26] sm:$0xff]   ;;  %v705_v4 = vld [vmem:[%s200_s26 + $0x8] sm:$0xff]   ;;  %v707_v6 = vld [vmem:[%s200_s26 + $0x10] sm:$0xff]   ;;  %s574_s6 = sshll.u32 %s192_s30, 2 }
  0x15   : > { %v704_v3 = vld [vmem:[%s200_s26 + $0x20] sm:$0xff]   ;;  %643 = vmatprep.mubr.msk.bf16.mxu0 %vm265_vm1, %v703_v2  ;;  %v706_v5 = vld [vmem:[%s200_s26 + $0x28] sm:$0xff]   ;;  %v708_v7 = vld [vmem:[%s200_s26 + $0x30] sm:$0xff]   ;;  %s825_s9 = scalar_lea.vmem %s877_s3, %s574_s6 }
  0x16   : > { %651 = vmatprep.mubr.msk.bf16.mxu1 %vm265_vm1, %v704_v3  ;;  %644 = vmatmul.mubr.msk.bf16.vlgmr.msra.gmra.mrb[0].mxu0 %vm265_vm1, %v705_v4  ;;  %v709_v8 = vld [vmem:[%s200_s26 + $0x18] sm:$0xff]  }
  0x17   : > { %652 = vmatmul.mubr.msk.bf16.vlgmr.msra.gmra.mrb[0].mxu1 %vm265_vm1, %v706_v5  ;;  %647 = vmatprep.mubr.msk.bf16.mxu0 %vm265_vm1, %v707_v6  ;;  %v710_v9 = vld [vmem:[%s200_s26 + $0x38] sm:$0xff]  }
  0x18   : > { %655 = vmatprep.mubr.msk.bf16.mxu1 %vm265_vm1, %v708_v7 }
  0x1e   : > { %648 = vmatmul.mubr.msk.bf16.gmra.mrb[4].mxu0 %vm265_vm1, %v709_v8 }
  0x1f   : > { %656 = vmatmul.mubr.msk.bf16.gmra.mrb[4].mxu1 %vm265_vm1, %v710_v9 }
  0xe9   : > { %v645_v11 = vpop.f32.mrb[0].mxu0 }
  0xea   : > { %v337_v12 = vadd.f32 %v645_v11, %v578_v10  ;;  %v653_v13 = vpop.f32.mrb[0].mxu1  ;;  %v328_v14 = vpop.f32.mrb[1].mxu0 }
  0xeb   : > { %v369_v15 = vadd.f32 %v653_v13, %v578_v10  ;;  %v329_v16 = vadd.f32 %v578_v10, %v328_v14  ;;  %v360_v17 = vpop.f32.mrb[1].mxu1  ;;  %v646_v18 = vpop.f32.mrb[2].mxu0 }
  0xec   : > { %v618_v19 = vpack.c.bf16 %v337_v12, %v337_v12  ;;  %v361_v20 = vadd.f32 %v578_v10, %v360_v17  ;;  %v340_v21 = vadd.f32 %v646_v18, %v578_v10  ;;  %v654_v22 = vpop.f32.mrb[2].mxu1  ;;  %v331_v23 = vpop.f32.mrb[3].mxu0 }
  0xed   : > { %v626_v24 = vpack.c.bf16 %v369_v15, %v369_v15  ;;  %v616_v25 = vpack.c.bf16 %v329_v16, %v329_v16  ;;  %v372_v26 = vadd.f32 %v654_v22, %v578_v10  ;;  %v332_v27 = vadd.f32 %v578_v10, %v331_v23  ;;  %v363_v28 = vpop.f32.mrb[3].mxu1 }
  0xee   : > { %458 = vst.msk [vmem:[%s825_s9 + $0x8] sm:$0xf] %vm455_vm2, %v618_v19  ;;  %v624_v29 = vpack.c.bf16 %v361_v20, %v361_v20  ;;  %v619_v30 = vpack.c.bf16 %v340_v21, %v340_v21  ;;  %v364_v31 = vadd.f32 %v578_v10, %v363_v28 }
  0xef   : > { %466 = vst.msk [vmem:[%s825_s9 + $0x28] sm:$0xf] %vm455_vm2, %v626_v24  ;;  %456 = vst.msk [vmem:[%s825_s9] sm:$0xf] %vm455_vm2, %v616_v25  ;;  %v627_v32 = vpack.c.bf16 %v372_v26, %v372_v26  ;;  %v617_v33 = vpack.c.bf16 %v332_v27, %v332_v27 }
  0xf0   : > { %464 = vst.msk [vmem:[%s825_s9 + $0x20] sm:$0xf] %vm455_vm2, %v624_v29  ;;  %459 = vst.msk [vmem:[%s825_s9 + $0xc] sm:$0xf] %vm455_vm2, %v619_v30  ;;  %v625_v34 = vpack.c.bf16 %v364_v31, %v364_v31 }
  0xf1   : > { %467 = vst.msk [vmem:[%s825_s9 + $0x2c] sm:$0xf] %vm455_vm2, %v627_v32  ;;  %457 = vst.msk [vmem:[%s825_s9 + $0x4] sm:$0xf] %vm455_vm2, %v617_v33  ;;  %v649_v35 = vpop.f32.mrb[4].mxu0 }
  0xf2   : > { %465 = vst.msk [vmem:[%s825_s9 + $0x24] sm:$0xf] %vm455_vm2, %v625_v34  ;;  %v353_v36 = vadd.f32 %v649_v35, %v578_v10  ;;  %v657_v37 = vpop.f32.mrb[4].mxu1  ;;  %v344_v38 = vpop.f32.mrb[5].mxu0 }
  0xf3   : > { %v385_v39 = vadd.f32 %v657_v37, %v578_v10  ;;  %v345_v40 = vadd.f32 %v578_v10, %v344_v38  ;;  %v376_v41 = vpop.f32.mrb[5].mxu1  ;;  %v650_v42 = vpop.f32.mrb[6].mxu0 }
  0xf4   : > { %v622_v43 = vpack.c.bf16 %v353_v36, %v353_v36  ;;  %v377_v44 = vadd.f32 %v578_v10, %v376_v41  ;;  %v356_v45 = vadd.f32 %v650_v42, %v578_v10  ;;  %v658_v46 = vpop.f32.mrb[6].mxu1  ;;  %v347_v47 = vpop.f32.mrb[7].mxu0 }
  0xf5   : > { %v630_v48 = vpack.c.bf16 %v385_v39, %v385_v39  ;;  %v620_v49 = vpack.c.bf16 %v345_v40, %v345_v40  ;;  %v388_v50 = vadd.f32 %v658_v46, %v578_v10  ;;  %v348_v51 = vadd.f32 %v578_v10, %v347_v47  ;;  %v379_v52 = vpop.f32.mrb[7].mxu1 }
  0xf6   : > { %462 = vst.msk [vmem:[%s825_s9 + $0x18] sm:$0xf] %vm455_vm2, %v622_v43  ;;  %v628_v53 = vpack.c.bf16 %v377_v44, %v377_v44  ;;  %v623_v54 = vpack.c.bf16 %v356_v45, %v356_v45  ;;  %v380_v55 = vadd.f32 %v578_v10, %v379_v52 }
  0xf7   : > { %470 = vst.msk [vmem:[%s825_s9 + $0x38] sm:$0xf] %vm455_vm2, %v630_v48  ;;  %460 = vst.msk [vmem:[%s825_s9 + $0x10] sm:$0xf] %vm455_vm2, %v620_v49  ;;  %v631_v56 = vpack.c.bf16 %v388_v50, %v388_v50  ;;  %v621_v57 = vpack.c.bf16 %v348_v51, %v348_v51 }
  0xf8   : > { %468 = vst.msk [vmem:[%s825_s9 + $0x30] sm:$0xf] %vm455_vm2, %v628_v53  ;;  %463 = vst.msk [vmem:[%s825_s9 + $0x1c] sm:$0xf] %vm455_vm2, %v623_v54  ;;  %v629_v58 = vpack.c.bf16 %v380_v55, %v380_v55 }
  0xf9   : > { %471 = vst.msk [vmem:[%s825_s9 + $0x3c] sm:$0xf] %vm455_vm2, %v631_v56  ;;  %461 = vst.msk [vmem:[%s825_s9 + $0x14] sm:$0xf] %vm455_vm2, %v621_v57 }
  0xfa   : > { %469 = vst.msk [vmem:[%s825_s9 + $0x34] sm:$0xf] %vm455_vm2, %v629_v58 }
  0xfb PF: > { %s13_s16 = sadd.s32 1, %s749_s16   ;;  %s878_s12 = smov %s741_s14 }
  0xfc   : > { %p10_p7 = scmp.ge.s32.totalorder %s13_s16, 6   ;;  %s879_s13 = smov %s745_s15 }
  0xfd   : > { %s880_s14 = smov %s883_s17  ;;  %s881_s15 = smov %s887_s18 }
  0xfe   :  { %12 = sbr.rel (!%p10_p7) target bundleno = 3 (0x3), region = 63 }

// kernel: _lambda_.7
= control target key start
LH: loop header
LB: loop body
LE: loop exit
PB: predicated region body
PF: predicated region fallthrough
CT: control target
= control target key end

     0   :  { %s1960_s12 = smov 0   ;;  %s1962_s13 = smov 0   ;;  %s2598_s0 = inlined_call_operand.vmem [shape: bf16[2,22,16,24], index: 0, kind: input, shape index: {}]   ;;  %s2599_s1 = inlined_call_operand.vmem [shape: bf16[120,24], index: 1, kind: input, shape index: {}]   ;;  %s2600_s2 = inlined_call_operand.vmem [shape: f32[1,24], index: 2, kind: input, shape index: {}]   ;;  %s2601_s3 = inlined_call_operand.vmem [shape: bf16[2,16,16,24], index: 3, kind: output, shape index: {}]  }
   0x1   :  { %s1964_s14 = smov 0   ;;  %s1966_s15 = smov 0  }
   0x2   :  { %s1968_s16 = smov 0  }
   0x3 LB: > { %s22_s17 = sadd.s32 1, %s1918_s14  ;;  %s25_s18 = sadd.s32 1, %s1922_s15  ;;  %s1926_s16 = sphi %s1968_s16, %s13_s16   ;;  %s1922_s15 = sphi %s1966_s15, %s2605_s15   ;;  %s1918_s14 = sphi %s1964_s14, %s2604_s14   ;;  %s1914_s13 = sphi %s1962_s13, %s2603_s13   ;;  %s1910_s12 = sphi %s1960_s12, %s2602_s12  }
   0x4   : > { %p23_p0 = scmp.ge.s32.totalorder %s22_s17, 2  ;;  %p1473_p1 = scmp.ge.s32.totalorder %s1926_s16, 1 }
   0x5   : > { %p151_p2 = scmp.lt.s32.totalorder %s1926_s16, 5 }
   0x6   : > { %s2607_s17 = smov (%p23_p0, %s22_s17), 0  ;;  %s2609_s18 = smov (!%p23_p0, %s25_s18), %s1922_s15 }
   0x7   : > { %p152_p3 = pnand %p1473_p1, %p151_p2  ;;  %p27_p4 = scmp.ge.s32.totalorder %s2609_s18, 2 }
   0x8   : > { %p180_p5 = scmp.lt.s32.totalorder (!%p152_p3), %s1914_s13, 1  ;;  %s1681_s20 = sshll.u32 (!%p152_p3), %s1910_s12, 6  ;;  %v1880_v40 = vld [vmem:[%s2599_s1] sm:$0xff] (!%p152_p3)   ;;  %v1881_v45 = vld [vmem:[%s2599_s1 + $0x8] sm:$0xff] (!%p152_p3)   ;;  %v1882_v48 = vld [vmem:[%s2599_s1 + $0x10] sm:$0xff] (!%p152_p3)   ;;  %vm1171_vm0 = vcmask (!%p152_p3), 1043456  }
   0x9   : > { %s2611_s18 = smov (%p27_p4, %s2609_s18), 0  ;;  %155 = sbr.rel (%p152_p3) target bundleno = 578 (0x242), region = 32 }
   0xa   : > { %s1928_s25 = smov (!%p152_p3), 8   ;;  %s1929_s26 = smov (!%p152_p3), 16   ;;  %1721 = vmatprep.subr.bf16.mxu0 (!%p152_p3), %v1880_v40  ;;  %1753 = vmatprep.subr.bf16.mxu1 (!%p152_p3), %v1880_v40  ;;  %v1883_v51 = vld [vmem:[%s2599_s1 + $0x18] sm:$0xff] (!%p152_p3)   ;;  %v1884_v54 = vld [vmem:[%s2599_s1 + $0x20] sm:$0xff] (!%p152_p3)   ;;  %v1885_v57 = vld [vmem:[%s2599_s1 + $0x28] sm:$0xff] (!%p152_p3)   ;;  %vm841_vm1 = vcmask (!%p152_p3), 64512  }
   0xb   : > { %s1930_s27 = smov (!%p152_p3), 24   ;;  %s1931_s28 = smov (!%p152_p3), 32   ;;  %1722 = vmatpush3.bf16.msra.mxu0 (!%p152_p3), %v1880_v40  ;;  %1761 = vmatpush3.bf16.msra.mxu1 (!%p152_p3), %v1880_v40  ;;  %v1886_v60 = vld [vmem:[%s2599_s1 + $0x30] sm:$0xff] (!%p152_p3)   ;;  %v1887_v63 = vld [vmem:[%s2599_s1 + $0x38] ss:$0 sps:$4 sm:$0xff] (!%p152_p3)   ;;  %vm866_vm2 = vcmask (!%p152_p3), 130048  }
   0xc   : > { %s1932_s29 = smov (!%p152_p3), 40   ;;  %s1933_s30 = smov (!%p152_p3), 48   ;;  %1723 = vmatprep.subr.bf16.mxu0 (!%p152_p3), %v1881_v45  ;;  %1754 = vmatprep.subr.bf16.mxu1 (!%p152_p3), %v1881_v45  ;;  %vm883_vm3 = vcmask (!%p152_p3), 195584   ;;  %vm900_vm4 = vcmask (!%p152_p3), 261120   ;;  %vm917_vm5 = vcmask (!%p152_p3), 326656   ;;  %vm934_vm6 = vcmask (!%p152_p3), 392192  }
   0xd   : > { %s1934_s4 = smov (!%p152_p3), 56   ;;  %s1935_s5 = smov (!%p152_p3), 64   ;;  %vm951_vm7 = vcmask (!%p152_p3), 457728   ;;  %vm968_vm8 = vcmask (!%p152_p3), 523264   ;;  %vm985_vm9 = vcmask (!%p152_p3), 588800   ;;  %vm1002_vm10 = vcmask (!%p152_p3), 654336  }
   0xe   : > { %s1936_s6 = smov (!%p152_p3), 72   ;;  %s1937_s9 = smov (!%p152_p3), 80   ;;  %vm1019_vm11 = vcmask (!%p152_p3), 719872   ;;  %vm1036_vm12 = vcmask (!%p152_p3), 785408   ;;  %vm1053_vm13 = vcmask (!%p152_p3), 850944   ;;  %vm1070_vm14 = vcmask (!%p152_p3), 916480  }
   0xf   : > { %1724 = vmatpush3.bf16.msra.mxu0 (!%p152_p3), %v1881_v45  ;;  %1762 = vmatpush3.bf16.msra.mxu1 (!%p152_p3), %v1881_v45  ;;  %vm1154_vm15 = vcmask (!%p152_p3), 982016  }
  0x10   : > { %s2613_s13 = smov (!%p180_p5, %s1914_s13), 1  ;;  %1725 = vmatprep.subr.bf16.mxu0 %v1882_v48  ;;  %1755 = vmatprep.subr.bf16.mxu1 %v1882_v48 }
  0x11   : > { %s1771_s19 = smul.u32 176, %s2613_s13 }
  0x13   : > { %s184_s23 = scalar_lea.vmem %s2598_s0, %s1771_s19  ;;  %1726 = vmatpush3.bf16.msra.mxu0 %v1882_v48  ;;  %1763 = vmatpush3.bf16.msra.mxu1 %v1882_v48  ;;  %s1939_s19 = smov 96  }
  0x14   : > { %s1999_s24 = scalar_lea.vmem %s184_s23, %s1681_s20  ;;  %1727 = vmatprep.subr.bf16.mxu0 %v1883_v51  ;;  %1756 = vmatprep.subr.bf16.mxu1 %v1883_v51 }
  0x15   : > { %v2002_v0 = vld [vmem:[%s1999_s24 + $0x20] sm:$0xff]   ;;  %v2005_v1 = vld [vmem:[%s1999_s24 + $0x18] sm:$0xff]   ;;  %v2030_v6 = vld [vmem:[%s1999_s24 + $0x48] sm:$0xff]  }
  0x16   : > { %419 = vrot.lane.b32.xlu1 %v2002_v0, %s1928_s25  ;;  %v2010_v2 = vld [vmem:[%s1999_s24 + $0x40] sm:$0xff]   ;;  %417 = vrot.lane.b32.xlu0 %v2005_v1, %s1928_s25  ;;  %v2015_v3 = vld [vmem:[%s1999_s24 + $0x38] sm:$0xff]  }
  0x17   : > { %v2020_v4 = vld [vmem:[%s1999_s24 + $0x40] sm:$0xff]   ;;  %v2035_v7 = vld [vmem:[%s1999_s24 + $0x28] sm:$0xff]   ;;  %v1834_v10 = vld [vmem:[%s1999_s24 + $0x30] sm:$0xff]   ;;  %1728 = vmatpush3.bf16.msra.mxu0 %v1883_v51  ;;  %1764 = vmatpush3.bf16.msra.mxu1 %v1883_v51 }
  0x18   : > { %v2025_v5 = vld [vmem:[%s1999_s24 + $0x20] sm:$0xff]   ;;  %v1832_v8 = vld [vmem:[%s1999_s24 + $0x28] sm:$0xff]   ;;  %v1835_v11 = vld [vmem:[%s1999_s24 + $0x10] sm:$0xff]   ;;  %1729 = vmatprep.subr.bf16.mxu0 %v1884_v54  ;;  %1757 = vmatprep.subr.bf16.mxu1 %v1884_v54 }
  0x19   : > { %v1833_v9 = vld [vmem:[%s1999_s24 + $0x8] sm:$0xff]   ;;  %v2049_v12 = vld [vmem:[%s1999_s24 + $0x30] sm:$0xff]   ;;  %v2058_v14 = vld [vmem:[%s1999_s24 + $0x38] sm:$0xff]  }
  0x1a   : > { %427 = vrot.lane.b32.xlu1 %v2010_v2, %s1928_s25  ;;  %425 = vrot.lane.b32.xlu0 %v2015_v3, %s1928_s25  ;;  %v2053_v13 = vld [vmem:[%s1999_s24 + $0x10] sm:$0xff]   ;;  %v2063_v15 = vld [vmem:[%s1999_s24 + $0x18] sm:$0xff]  }
  0x1b   : > { %v2084_v16 = vld [vmem:[%s1999_s24 + $0x48] sm:$0xff]   ;;  %v2094_v18 = vld [vmem:[%s1999_s24 + $0x50] sm:$0xff]   ;;  %v1844_v20 = vld [vmem:[%s1999_s24 + $0x20] sm:$0xff]   ;;  %1730 = vmatpush3.bf16.msra.mxu0 %v1884_v54  ;;  %1765 = vmatpush3.bf16.msra.mxu1 %v1884_v54 }
  0x1c   : > { %v2089_v17 = vld [vmem:[%s1999_s24 + $0x28] sm:$0xff]   ;;  %v2099_v19 = vld [vmem:[%s1999_s24 + $0x30] sm:$0xff]   ;;  %v1845_v21 = vld [vmem:[%s1999_s24] sm:$0xff]   ;;  %1731 = vmatprep.subr.bf16.mxu0 %v1885_v57  ;;  %1758 = vmatprep.subr.bf16.mxu1 %v1885_v57 }
  0x1d   : > { %v2109_v22 = vld [vmem:[%s1999_s24 + $0x48] sm:$0xff]   ;;  %v2125_v26 = vld [vmem:[%s1999_s24 + $0x50] sm:$0xff]   ;;  %v2150_v30 = vld [vmem:[%s1999_s24 + $0x58] sm:$0xff]  }
  0x1e   : > { %481 = vrot.lane.b32.xlu1 %v2020_v4, %s1929_s26  ;;  %473 = vrot.lane.b32.xlu0 %v2025_v5, %s1929_s26  ;;  %v2113_v23 = vld [vmem:[%s1999_s24 + $0x28] sm:$0xff]   ;;  %v2129_v27 = vld [vmem:[%s1999_s24 + $0x30] sm:$0xff]  }
  0x1f   : > { %v1848_v24 = vld [vmem:[%s1999_s24 + $0x28] sm:$0xff]   ;;  %v2134_v28 = vld [vmem:[%s1999_s24 + $0x50] sm:$0xff]   ;;  %v2155_v31 = vld [vmem:[%s1999_s24 + $0x38] sm:$0xff]   ;;  %1732 = vmatpush3.bf16.msra.mxu0 %v1885_v57  ;;  %1766 = vmatpush3.bf16.msra.mxu1 %v1885_v57 }
  0x20   : > { %v1849_v25 = vld [vmem:[%s1999_s24 + $0x8] sm:$0xff]   ;;  %v2139_v29 = vld [vmem:[%s1999_s24 + $0x30] sm:$0xff]   ;;  %v2160_v32 = vld [vmem:[%s1999_s24 + $0x38] sm:$0xff]   ;;  %1733 = vmatprep.subr.bf16.mxu0 %v1886_v60  ;;  %1759 = vmatprep.subr.bf16.mxu1 %v1886_v60 }
  0x21   : > { %v2165_v33 = vld [vmem:[%s1999_s24 + $0x18] sm:$0xff]   ;;  %v2178_v34 = vld [vmem:[%s1999_s24 + $0x40] sm:$0xff]   ;;  %v2213_v41 = vld [vmem:[%s1999_s24 + $0x48] sm:$0xff]  }
  0x22   : > { %483 = vrot.lane.b32.xlu1 %v2030_v6, %s1929_s26  ;;  %475 = vrot.lane.b32.xlu0 %v2035_v7, %s1929_s26  ;;  %v2183_v35 = vld [vmem:[%s1999_s24 + $0x20] sm:$0xff]   ;;  %v2218_v42 = vld [vmem:[%s1999_s24 + $0x28] sm:$0xff]  }
  0x23   : > { %v2188_v36 = vld [vmem:[%s1999_s24 + $0x40] sm:$0xff]   ;;  %1734 = vmatpush3.bf16.msra.mxu0 %v1886_v60  ;;  %1767 = vmatpush3.bf16.msra.mxu1 %v1886_v60 }
  0x24   : > { %v2193_v37 = vld [vmem:[%s1999_s24 + $0x20] sm:$0xff]   ;;  %1769 = vmatprep.subr.msk.bf16.mxu0 %vm1171_vm0, %v1887_v63  ;;  %1770 = vmatprep.subr.msk.bf16.mxu1 %vm1171_vm0, %v1887_v63 }
  0x26   : > { %537 = vrot.lane.b32.xlu1 %v1832_v8, %s1929_s26  ;;  %529 = vrot.lane.b32.xlu0 %v1833_v9, %s1929_s26 }
  0x2a   : > { %539 = vrot.lane.b32.xlu1 %v1834_v10, %s1929_s26  ;;  %531 = vrot.lane.b32.xlu0 %v1835_v11, %s1929_s26 }
  0x2e   : > { %553 = vrot.lane.b32.xlu1 %v2049_v12, %s1930_s27  ;;  %545 = vrot.lane.b32.xlu0 %v2053_v13, %s1930_s27 }
  0x32   : > { %555 = vrot.lane.b32.xlu1 %v2058_v14, %s1930_s27  ;;  %547 = vrot.lane.b32.xlu0 %v2063_v15, %s1930_s27 }
  0x36   : > { %569 = vrot.lane.b32.xlu1 %v2015_v3, %s1931_s28  ;;  %561 = vrot.lane.b32.xlu0 %v2005_v1, %s1931_s28 }
  0x3a   : > { %571 = vrot.lane.b32.xlu1 %v2010_v2, %s1931_s28  ;;  %563 = vrot.lane.b32.xlu0 %v2002_v0, %s1931_s28 }
  0x3e   : > { %585 = vrot.lane.b32.xlu1 %v2020_v4, %s1932_s29  ;;  %577 = vrot.lane.b32.xlu0 %v2025_v5, %s1932_s29 }
  0x42   : > { %587 = vrot.lane.b32.xlu1 %v2030_v6, %s1932_s29  ;;  %579 = vrot.lane.b32.xlu0 %v2035_v7, %s1932_s29 }
  0x46   : > { %641 = vrot.lane.b32.xlu1 %v2084_v16, %s1933_s30  ;;  %633 = vrot.lane.b32.xlu0 %v2089_v17, %s1933_s30 }
  0x4a   : > { %643 = vrot.lane.b32.xlu1 %v2094_v18, %s1933_s30  ;;  %635 = vrot.lane.b32.xlu0 %v2099_v19, %s1933_s30 }
  0x4e   : > { %697 = vrot.lane.b32.xlu1 %v1844_v20, %s1933_s30  ;;  %689 = vrot.lane.b32.xlu0 %v1845_v21, %s1933_s30 }
  0x52   : > { %429 = vrot.lane.b32.xlu1 %v2109_v22, %s1928_s25  ;;  %421 = vrot.lane.b32.xlu0 %v2113_v23, %s1928_s25 }
  0x56   : > { %699 = vrot.lane.b32.xlu1 %v1848_v24, %s1933_s30  ;;  %691 = vrot.lane.b32.xlu0 %v1849_v25, %s1933_s30 }
  0x5a   : > { %713 = vrot.lane.b32.xlu1 %v1832_v8, %s1934_s4  ;;  %705 = vrot.lane.b32.xlu0 %v1833_v9, %s1934_s4 }
  0x5e   : > { %431 = vrot.lane.b32.xlu1 %v2125_v26, %s1928_s25  ;;  %423 = vrot.lane.b32.xlu0 %v2129_v27, %s1928_s25 }
  0x62   : > { %485 = vrot.lane.b32.xlu1 %v2134_v28, %s1929_s26  ;;  %477 = vrot.lane.b32.xlu0 %v2139_v29, %s1929_s26 }
  0x66   : > { %715 = vrot.lane.b32.xlu1 %v1834_v10, %s1934_s4  ;;  %707 = vrot.lane.b32.xlu0 %v1835_v11, %s1934_s4 }
  0x6a   : > { %729 = vrot.lane.b32.xlu1 %v2049_v12, %s1935_s5  ;;  %721 = vrot.lane.b32.xlu0 %v2053_v13, %s1935_s5 }
  0x6e   : > { %487 = vrot.lane.b32.xlu1 %v2150_v30, %s1929_s26  ;;  %479 = vrot.lane.b32.xlu0 %v2155_v31, %s1929_s26 }
  0x72   : > { %541 = vrot.lane.b32.xlu1 %v2160_v32, %s1929_s26  ;;  %533 = vrot.lane.b32.xlu0 %v2165_v33, %s1929_s26 }
  0x76   : > { %731 = vrot.lane.b32.xlu1 %v2058_v14, %s1935_s5  ;;  %723 = vrot.lane.b32.xlu0 %v2063_v15, %s1935_s5 }
  0x7a   : > { %745 = vrot.lane.b32.xlu1 %v2015_v3, %s1936_s6  ;;  %737 = vrot.lane.b32.xlu0 %v2005_v1, %s1936_s6  ;;  %v1865_v1 = vld [vmem:[%s1999_s24 + $0x30] sm:$0xff]  }
  0x7e   : > { %543 = vrot.lane.b32.xlu1 %v2178_v34, %s1929_s26  ;;  %535 = vrot.lane.b32.xlu0 %v2183_v35, %s1929_s26  ;;  %s1938_s26 = smov 88  }
  0x82   : > { %557 = vrot.lane.b32.xlu1 %v2188_v36, %s1930_s27  ;;  %549 = vrot.lane.b32.xlu0 %v2193_v37, %s1930_s27 }
  0x86   : > { %747 = vrot.lane.b32.xlu1 %v2010_v2, %s1936_s6  ;;  %739 = vrot.lane.b32.xlu0 %v2002_v0, %s1936_s6  ;;  %v1864_v0 = vld [vmem:[%s1999_s24 + $0x50] sm:$0xff]   ;;  %v1173_v2 = vsel %vm1171_vm0, %v1887_v63, 0  ;;  %vm1336_vm0 = vcmask 191488  }
  0x87   : > { %1736 = vmatpush3.bf16.msra.mxu0 %v1173_v2  ;;  %1768 = vmatpush3.bf16.msra.mxu1 %v1173_v2 }
  0x88   : > { %v2203_v38 = vpop.permute.xlu1 %419  ;;  %v2205_v39 = vpop.permute.xlu0 %417 }
  0x8a   : > { %761 = vrot.lane.b32.xlu1 %v2020_v4, %s1937_s9  ;;  %753 = vrot.lane.b32.xlu0 %v2025_v5, %s1937_s9 }
  0x8c   : > { %v2220_v43 = vpop.permute.xlu1 %427  ;;  %v2222_v44 = vpop.permute.xlu0 %425 }
  0x8d   : > { %v859_v4 = vsel %vm841_vm1, %v2058_v14, %v2220_v43  ;;  %v856_v10 = vsel %vm841_vm1, %v2049_v12, %v2222_v44 }
  0x8e   : > { %559 = vrot.lane.b32.xlu1 %v2213_v41, %s1930_s27  ;;  %551 = vrot.lane.b32.xlu0 %v2218_v42, %s1930_s27 }
  0x90   : > { %v2231_v46 = vpop.permute.xlu1 %481  ;;  %v2233_v47 = vpop.permute.xlu0 %473 }
  0x92   : > { %573 = vrot.lane.b32.xlu1 %v2109_v22, %s1931_s28  ;;  %565 = vrot.lane.b32.xlu0 %v2113_v23, %s1931_s28 }
  0x94   : > { %v484_v49 = vpop.permute.xlu1 %483  ;;  %v476_v50 = vpop.permute.xlu0 %475 }
  0x96   : > { %763 = vrot.lane.b32.xlu1 %v2030_v6, %s1937_s9  ;;  %755 = vrot.lane.b32.xlu0 %v2035_v7, %s1937_s9  ;;  %v847_v6 = vsel %vm841_vm1, %v2063_v15, %v2203_v38  ;;  %v878_v7 = vsel %vm866_vm2, %v859_v4, %v484_v49  ;;  %v1868_v49 = vld [vmem:[%s1999_s24 + $0x58] sm:$0xff]  }
  0x97   : > { %v870_v8 = vsel %vm866_vm2, %v847_v6, %v476_v50  ;;  %v1869_v50 = vld [vmem:[%s1999_s24 + $0x38] sm:$0xff]  }
  0x98   : > { %v2249_v52 = vpop.permute.xlu1 %537  ;;  %v2251_v53 = vpop.permute.xlu0 %529  ;;  %v1875_v4 = vld [vmem:[%s1999_s24 + $0x18] sm:$0xff]  }
  0x9a   : > { %777 = vrot.lane.b32.xlu1 %v2084_v16, %s1938_s26  ;;  %769 = vrot.lane.b32.xlu0 %v2089_v17, %s1938_s26  ;;  %v844_v16 = vsel %vm841_vm1, %v2053_v13, %v2205_v39  ;;  %v876_v17 = vsel %vm866_vm2, %v856_v10, %v2231_v46  ;;  %v2314_v13 = vld [vmem:[%s1999_s24 + $0x58] sm:$0xff]  }
  0x9b   : > { %v868_v12 = vsel %vm866_vm2, %v844_v16, %v2233_v47  ;;  %v893_v21 = vsel %vm883_vm3, %v876_v17, %v2249_v52  ;;  %v2322_v39 = vld [vmem:[%s1999_s24 + $0x38] sm:$0xff]  }
  0x9c   : > { %v540_v55 = vpop.permute.xlu1 %539  ;;  %v532_v56 = vpop.permute.xlu0 %531  ;;  %v885_v25 = vsel %vm883_vm3, %v868_v12, %v2251_v53 }
  0x9d   : > { %v895_v9 = vsel %vm883_vm3, %v878_v7, %v540_v55  ;;  %v887_v11 = vsel %vm883_vm3, %v870_v8, %v532_v56  ;;  %v2339_v55 = vld [vmem:[%s1999_s24 + $0x60] sm:$0xff]  }
  0x9e   : > { %575 = vrot.lane.b32.xlu1 %v2125_v26, %s1931_s28  ;;  %567 = vrot.lane.b32.xlu0 %v2129_v27, %s1931_s28  ;;  %v2343_v56 = vld [vmem:[%s1999_s24 + $0x40] sm:$0xff]  }
  0xa0   : > { %v554_v58 = vpop.permute.xlu1 %553  ;;  %v546_v59 = vpop.permute.xlu0 %545 }
  0xa1   : > { %v910_v38 = vsel %vm900_vm4, %v893_v21, %v554_v58  ;;  %v902_v40 = vsel %vm900_vm4, %v885_v25, %v546_v59 }
  0xa2   : > { %589 = vrot.lane.b32.xlu1 %v2134_v28, %s1932_s29  ;;  %581 = vrot.lane.b32.xlu0 %v2139_v29, %s1932_s29 }
  0xa4   : > { %v556_v61 = vpop.permute.xlu1 %555  ;;  %v548_v62 = vpop.permute.xlu0 %547 }
  0xa5   : > { %v912_v14 = vsel %vm900_vm4, %v895_v9, %v556_v61  ;;  %v1872_v61 = vld [vmem:[%s1999_s24 + $0x30] sm:$0xff]  }
  0xa6   : > { %779 = vrot.lane.b32.xlu1 %v2094_v18, %s1938_s26  ;;  %771 = vrot.lane.b32.xlu0 %v2099_v19, %s1938_s26  ;;  %v904_v18 = vsel %vm900_vm4, %v887_v11, %v548_v62  ;;  %v1873_v62 = vld [vmem:[%s1999_s24 + $0x10] sm:$0xff]  }
  0xa8   : > { %v570_v3 = vpop.permute.xlu1 %569  ;;  %v562_v5 = vpop.permute.xlu0 %561 }
  0xa9   : > { %v927_v43 = vsel %vm917_vm5, %v910_v38, %v570_v3  ;;  %v919_v45 = vsel %vm917_vm5, %v902_v40, %v562_v5  ;;  %v1874_v3 = vld [vmem:[%s1999_s24 + $0x38] sm:$0xff]  }
  0xaa   : > { %833 = vrot.lane.b32.xlu1 %v1864_v0, %s1939_s19  ;;  %825 = vrot.lane.b32.xlu0 %v1865_v1, %s1939_s19 }
  0xac   : > { %v572_v15 = vpop.permute.xlu1 %571  ;;  %v564_v20 = vpop.permute.xlu0 %563 }
  0xad   : > { %v929_v19 = vsel %vm917_vm5, %v912_v14, %v572_v15  ;;  %v921_v24 = vsel %vm917_vm5, %v904_v18, %v564_v20 }
  0xae   : > { %591 = vrot.lane.b32.xlu1 %v2150_v30, %s1932_s29  ;;  %583 = vrot.lane.b32.xlu0 %v2155_v31, %s1932_s29 }
  0xb0   : > { %v586_v44 = vpop.permute.xlu1 %585  ;;  %v578_v47 = vpop.permute.xlu0 %577 }
  0xb1   : > { %v944_v46 = vsel %vm934_vm6, %v927_v43, %v586_v44  ;;  %v936_v48 = vsel %vm934_vm6, %v919_v45, %v578_v47 }
  0xb2   : > { %645 = vrot.lane.b32.xlu1 %v2314_v13, %s1933_s30  ;;  %637 = vrot.lane.b32.xlu0 %v2322_v39, %s1933_s30 }
  0xb4   : > { %v588_v51 = vpop.permute.xlu1 %587  ;;  %v580_v53 = vpop.permute.xlu0 %579 }
  0xb5   : > { %v946_v52 = vsel %vm934_vm6, %v929_v19, %v588_v51  ;;  %v938_v54 = vsel %vm934_vm6, %v921_v24, %v580_v53 }
  0xb6   : > { %835 = vrot.lane.b32.xlu1 %v1868_v49, %s1939_s19  ;;  %827 = vrot.lane.b32.xlu0 %v1869_v50, %s1939_s19 }
  0xb8   : > { %v642_v57 = vpop.permute.xlu1 %641  ;;  %v634_v59 = vpop.permute.xlu0 %633 }
  0xb9   : > { %v961_v58 = vsel %vm951_vm7, %v944_v46, %v642_v57  ;;  %v953_v60 = vsel %vm951_vm7, %v936_v48, %v634_v59  ;;  %v1877_v48 = vld [vmem:[%s1999_s24 + $0x40] sm:$0xff]  }
  0xba   : > { %647 = vrot.lane.b32.xlu1 %v2339_v55, %s1933_s30  ;;  %639 = vrot.lane.b32.xlu0 %v2343_v56, %s1933_s30 }
  0xbc   : > { %v644_v63 = vpop.permute.xlu1 %643  ;;  %v636_v1 = vpop.permute.xlu0 %635 }
  0xbd   : > { %v963_v0 = vsel %vm951_vm7, %v946_v52, %v644_v63  ;;  %v955_v2 = vsel %vm951_vm7, %v938_v54, %v636_v1 }
  0xbe   : > { %701 = vrot.lane.b32.xlu1 %v1872_v61, %s1933_s30  ;;  %693 = vrot.lane.b32.xlu0 %v1873_v62, %s1933_s30 }
  0xc0   : > { %v698_v5 = vpop.permute.xlu1 %697  ;;  %v690_v7 = vpop.permute.xlu0 %689 }
  0xc1   : > { %v978_v6 = vsel %vm968_vm8, %v961_v58, %v698_v5  ;;  %v970_v8 = vsel %vm968_vm8, %v953_v60, %v690_v7 }
  0xc2   : > { %703 = vrot.lane.b32.xlu1 %v1874_v3, %s1933_s30  ;;  %695 = vrot.lane.b32.xlu0 %v1875_v4, %s1933_s30  ;;  %s1477_s30 = sshll.u32 %s2613_s13, 5 }
  0xc4   : > { %v430_v9 = vpop.permute.xlu1 %429  ;;  %v422_v10 = vpop.permute.xlu0 %421 }
  0xc5   : > { %v850_v12 = vsel %vm841_vm1, %v2193_v37, %v422_v10 }
  0xc6   : > { %717 = vrot.lane.b32.xlu1 %v2160_v32, %s1934_s4  ;;  %709 = vrot.lane.b32.xlu0 %v2165_v33, %s1934_s4 }
  0xc8   : > { %v700_v11 = vpop.permute.xlu1 %699  ;;  %v692_v15 = vpop.permute.xlu0 %691 }
  0xc9   : > { %v980_v14 = vsel %vm968_vm8, %v963_v0, %v700_v11  ;;  %v972_v16 = vsel %vm968_vm8, %v955_v2, %v692_v15 }
  0xca   : > { %719 = vrot.lane.b32.xlu1 %v2178_v34, %s1934_s4  ;;  %711 = vrot.lane.b32.xlu0 %v2183_v35, %s1934_s4  ;;  %v862_v35 = vsel %vm841_vm1, %v2188_v36, %v430_v9 }
  0xcc   : > { %v714_v17 = vpop.permute.xlu1 %713  ;;  %v706_v32 = vpop.permute.xlu0 %705 }
  0xcd   : > { %v2374_v18 = vsel %vm985_vm9, %v978_v6, %v714_v17  ;;  %v2377_v33 = vsel %vm985_vm9, %v970_v8, %v706_v32 }
  0xce   : > { %733 = vrot.lane.b32.xlu1 %v2188_v36, %s1935_s5  ;;  %725 = vrot.lane.b32.xlu0 %v2193_v37, %s1935_s5 }
  0xd0   : > { %v432_v19 = vpop.permute.xlu1 %431  ;;  %v424_v34 = vpop.permute.xlu0 %423 }
  0xd2   : > { %735 = vrot.lane.b32.xlu1 %v2213_v41, %s1935_s5  ;;  %727 = vrot.lane.b32.xlu0 %v2218_v42, %s1935_s5 }
  0xd4   : > { %v486_v20 = vpop.permute.xlu1 %485  ;;  %v478_v24 = vpop.permute.xlu0 %477 }
  0xd5   : > { %v880_v21 = vsel %vm866_vm2, %v862_v35, %v486_v20  ;;  %v872_v25 = vsel %vm866_vm2, %v850_v12, %v478_v24 }
  0xd6   : > { %749 = vrot.lane.b32.xlu1 %v2109_v22, %s1936_s6  ;;  %741 = vrot.lane.b32.xlu0 %v2113_v23, %s1936_s6  ;;  %v865_v23 = vsel %vm841_vm1, %v2213_v41, %v432_v19 }
  0xd8   : > { %v716_v38 = vpop.permute.xlu1 %715  ;;  %v708_v36 = vpop.permute.xlu0 %707 }
  0xd9   : > { %v2398_v40 = vsel %vm985_vm9, %v980_v14, %v716_v38  ;;  %v2401_v43 = vsel %vm985_vm9, %v972_v16, %v708_v36 }
  0xda   : > { %751 = vrot.lane.b32.xlu1 %v2125_v26, %s1936_s6  ;;  %743 = vrot.lane.b32.xlu0 %v2129_v27, %s1936_s6  ;;  %v853_v26 = vsel %vm841_vm1, %v2218_v42, %v424_v34 }
  0xdc   : > { %v2407_v37 = vpop.permute.xlu1 %729  ;;  %v2409_v22 = vpop.permute.xlu0 %721 }
  0xdd   : > { %v1012_v20 = vsel %vm1002_vm10, %v2374_v18, %v2407_v37 }
  0xde   : > { %765 = vrot.lane.b32.xlu1 %v2134_v28, %s1937_s9  ;;  %757 = vrot.lane.b32.xlu0 %v2139_v29, %s1937_s9 }
  0xe0   : > { %v488_v44 = vpop.permute.xlu1 %487  ;;  %v480_v45 = vpop.permute.xlu0 %479 }
  0xe1   : > { %v882_v27 = vsel %vm866_vm2, %v865_v23, %v488_v44  ;;  %v874_v46 = vsel %vm866_vm2, %v853_v26, %v480_v45 }
  0xe2   : > { %767 = vrot.lane.b32.xlu1 %v2150_v30, %s1937_s9  ;;  %759 = vrot.lane.b32.xlu0 %v2155_v31, %s1937_s9  ;;  %v1876_v31 = vld [vmem:[%s1999_s24 + $0x60] sm:$0xff]  }
  0xe4   : > { %v542_v28 = vpop.permute.xlu1 %541  ;;  %v534_v41 = vpop.permute.xlu0 %533 }
  0xe5   : > { %v897_v29 = vsel %vm883_vm3, %v880_v21, %v542_v28  ;;  %v889_v42 = vsel %vm883_vm3, %v872_v25, %v534_v41  ;;  %v1004_v21 = vsel %vm1002_vm10, %v2377_v33, %v2409_v22 }
  0xe6   : > { %781 = vrot.lane.b32.xlu1 %v2314_v13, %s1938_s26  ;;  %773 = vrot.lane.b32.xlu0 %v2322_v39, %s1938_s26  ;;  %v1878_v13 = vld [vmem:[%s1999_s24 + $0x68] sm:$0xff]  }
  0xe7   : > { %v1879_v39 = vld [vmem:[%s1999_s24 + $0x48] sm:$0xff]   ;;  %s1475_s24 = sshll.u32 %s1910_s12, 3 }
  0xe8   : > { %v2431_v47 = vpop.permute.xlu1 %731  ;;  %v2433_v30 = vpop.permute.xlu0 %723  ;;  %p188_p6 = scmp.lt.s32.totalorder %s1475_s24, 15 }
  0xea   : > { %783 = vrot.lane.b32.xlu1 %v2339_v55, %s1938_s26  ;;  %775 = vrot.lane.b32.xlu0 %v2343_v56, %s1938_s26  ;;  %s2615_s24 = smov (!%p188_p6, %s1475_s24), 15 }
  0xeb   : > { %s1476_s29 = sshll.u32 %s2615_s24, 1 }
  0xec   : > { %v746_v49 = vpop.permute.xlu1 %745  ;;  %v738_v50 = vpop.permute.xlu0 %737  ;;  %s192_s4 = sadd.s32 %s1477_s30, %s1476_s29 }
  0xed   : > { %v1029_v24 = vsel %vm1019_vm11, %v1012_v20, %v746_v49  ;;  %v1021_v25 = vsel %vm1019_vm11, %v1004_v21, %v738_v50  ;;  %s1478_s9 = sshll.u32 %s192_s4, 2 }
  0xee   : > { %837 = vrot.lane.b32.xlu1 %v1876_v31, %s1939_s19  ;;  %829 = vrot.lane.b32.xlu0 %v1877_v48, %s1939_s19  ;;  %s2549_s22 = scalar_lea.vmem %s2601_s3, %s1478_s9 }
  0xf0   : > { %v544_v51 = vpop.permute.xlu1 %543  ;;  %v536_v53 = vpop.permute.xlu0 %535 }
  0xf1   : > { %v899_v52 = vsel %vm883_vm3, %v882_v27, %v544_v51  ;;  %v891_v54 = vsel %vm883_vm3, %v874_v46, %v536_v53  ;;  %v1014_v46 = vsel %vm1002_vm10, %v2398_v40, %v2431_v47 }
  0xf2   : > { %839 = vrot.lane.b32.xlu1 %v1878_v13, %s1939_s19  ;;  %831 = vrot.lane.b32.xlu0 %v1879_v39, %s1939_s19 }
  0xf4   : > { %v558_v55 = vpop.permute.xlu1 %557  ;;  %v550_v57 = vpop.permute.xlu0 %549 }
  0xf5   : > { %v914_v56 = vsel %vm900_vm4, %v897_v29, %v558_v55  ;;  %v906_v58 = vsel %vm900_vm4, %v889_v42, %v550_v57  ;;  %v1006_v29 = vsel %vm1002_vm10, %v2401_v43, %v2433_v30 }
  0xf8   : > { %v748_v59 = vpop.permute.xlu1 %747  ;;  %v740_v60 = vpop.permute.xlu0 %739 }
  0xf9   : > { %v1031_v41 = vsel %vm1019_vm11, %v1014_v46, %v748_v59  ;;  %v1023_v42 = vsel %vm1019_vm11, %v1006_v29, %v740_v60 }
  0xfc   : > { %v762_v61 = vpop.permute.xlu1 %761  ;;  %v754_v62 = vpop.permute.xlu0 %753 }
  0xfd   : > { %v1046_v38 = vsel %vm1036_vm12, %v1029_v24, %v762_v61  ;;  %v1038_v36 = vsel %vm1036_vm12, %v1021_v25, %v754_v62 }
 0x100   : > { %v560_v63 = vpop.permute.xlu1 %559  ;;  %v552_v1 = vpop.permute.xlu0 %551 }
 0x101   : > { %v916_v0 = vsel %vm900_vm4, %v899_v52, %v560_v63  ;;  %v908_v2 = vsel %vm900_vm4, %v891_v54, %v552_v1 }
 0x104   : > { %v574_v3 = vpop.permute.xlu1 %573  ;;  %v566_v5 = vpop.permute.xlu0 %565 }
 0x105   : > { %v931_v4 = vsel %vm917_vm5, %v914_v56, %v574_v3  ;;  %v923_v6 = vsel %vm917_vm5, %v906_v58, %v566_v5 }
 0x108   : > { %v764_v7 = vpop.permute.xlu1 %763  ;;  %v756_v8 = vpop.permute.xlu0 %755 }
 0x109   : > { %v1048_v31 = vsel %vm1036_vm12, %v1031_v41, %v764_v7  ;;  %v1040_v48 = vsel %vm1036_vm12, %v1023_v42, %v756_v8 }
 0x10c   : > { %v778_v9 = vpop.permute.xlu1 %777  ;;  %v770_v10 = vpop.permute.xlu0 %769 }
 0x10d   : > { %v1063_v23 = vsel %vm1053_vm13, %v1046_v38, %v778_v9  ;;  %v1055_v18 = vsel %vm1053_vm13, %v1038_v36, %v770_v10 }
 0x110   : > { %v576_v11 = vpop.permute.xlu1 %575  ;;  %v568_v15 = vpop.permute.xlu0 %567 }
 0x111   : > { %v2456_v14 = vsel %vm917_vm5, %v916_v0, %v576_v11  ;;  %v2459_v16 = vsel %vm917_vm5, %v908_v2, %v568_v15 }
 0x114   : > { %v590_v17 = vpop.permute.xlu1 %589  ;;  %v582_v19 = vpop.permute.xlu0 %581 }
 0x115   : > { %v2462_v32 = vsel %vm934_vm6, %v931_v4, %v590_v17  ;;  %v2465_v34 = vsel %vm934_vm6, %v923_v6, %v582_v19 }
 0x118   : > { %v780_v35 = vpop.permute.xlu1 %779  ;;  %v772_v12 = vpop.permute.xlu0 %771 }
 0x119   : > { %v1065_v49 = vsel %vm1053_vm13, %v1048_v31, %v780_v35  ;;  %v1057_v13 = vsel %vm1053_vm13, %v1040_v48, %v772_v12 }
 0x11c   : > { %v834_v44 = vpop.permute.xlu1 %833  ;;  %v826_v37 = vpop.permute.xlu0 %825 }
 0x11d   : > { %v1080_v26 = vsel %vm1070_vm14, %v1063_v23, %v834_v44  ;;  %v1072_v33 = vsel %vm1070_vm14, %v1055_v18, %v826_v37 }
 0x11e   : > { %1745 = vmatprep.mubr.msk.bf16.mxu1 %vm1154_vm15, %v1080_v26  ;;  %1737 = vmatprep.mubr.msk.bf16.mxu0 %vm1154_vm15, %v1072_v33 }
 0x120   : > { %v592_v22 = vpop.permute.xlu1 %591  ;;  %v584_v27 = vpop.permute.xlu0 %583 }
 0x121   : > { %v950_v35 = vsel %vm934_vm6, %v2456_v14, %v592_v22 }
 0x124   : > { %v646_v45 = vpop.permute.xlu1 %645  ;;  %v638_v28 = vpop.permute.xlu0 %637 }
 0x125   : > { %v965_v9 = vsel %vm951_vm7, %v2462_v32, %v646_v45  ;;  %v957_v10 = vsel %vm951_vm7, %v2465_v34, %v638_v28  ;;  %v942_v32 = vsel %vm934_vm6, %v2459_v16, %v584_v27 }
 0x128   : > { %v836_v50 = vpop.permute.xlu1 %835  ;;  %v828_v47 = vpop.permute.xlu0 %827 }
 0x129   : > { %v1082_v40 = vsel %vm1070_vm14, %v1065_v49, %v836_v50  ;;  %v1074_v39 = vsel %vm1070_vm14, %v1057_v13, %v828_v47 }
 0x12a   : > { %1746 = vmatmul.mubr.msk.bf16.vlgmr.msra.gmra.mrb[0].mxu1 %vm1154_vm15, %v1082_v40  ;;  %1738 = vmatmul.mubr.msk.bf16.vlgmr.msra.gmra.mrb[0].mxu0 %vm1154_vm15, %v1074_v39 }
 0x12c   : > { %v648_v43 = vpop.permute.xlu1 %647  ;;  %v640_v30 = vpop.permute.xlu0 %639 }
 0x12d   : > { %v967_v34 = vsel %vm951_vm7, %v950_v35, %v648_v43  ;;  %v959_v38 = vsel %vm951_vm7, %v942_v32, %v640_v30  ;;  %v1646_v43 = vld [vmem:[%s2600_s2] ss:$0 sm:$0xff] }
 0x130   : > { %v702_v51 = vpop.permute.xlu1 %701  ;;  %v694_v52 = vpop.permute.xlu0 %693 }
 0x131   : > { %v982_v11 = vsel %vm968_vm8, %v965_v9, %v702_v51  ;;  %v974_v15 = vsel %vm968_vm8, %v957_v10, %v694_v52 }
 0x134   : > { %v704_v53 = vpop.permute.xlu1 %703  ;;  %v696_v54 = vpop.permute.xlu0 %695 }
 0x135   : > { %v984_v36 = vsel %vm968_vm8, %v967_v34, %v704_v53  ;;  %v976_v44 = vsel %vm968_vm8, %v959_v38, %v696_v54 }
 0x138   : > { %v718_v55 = vpop.permute.xlu1 %717  ;;  %v710_v56 = vpop.permute.xlu0 %709 }
 0x139   : > { %v999_v17 = vsel %vm985_vm9, %v982_v11, %v718_v55  ;;  %v991_v20 = vsel %vm985_vm9, %v974_v15, %v710_v56 }
 0x13c   : > { %v720_v57 = vpop.permute.xlu1 %719  ;;  %v712_v58 = vpop.permute.xlu0 %711 }
 0x13d   : > { %v1001_v18 = vsel %vm985_vm9, %v984_v36, %v720_v57  ;;  %v993_v33 = vsel %vm985_vm9, %v976_v44, %v712_v58 }
 0x140   : > { %v734_v59 = vpop.permute.xlu1 %733  ;;  %v726_v60 = vpop.permute.xlu0 %725 }
 0x141   : > { %v1016_v12 = vsel %vm1002_vm10, %v999_v17, %v734_v59  ;;  %v1008_v24 = vsel %vm1002_vm10, %v991_v20, %v726_v60 }
 0x144   : > { %v736_v61 = vpop.permute.xlu1 %735  ;;  %v728_v62 = vpop.permute.xlu0 %727 }
 0x145   : > { %v1018_v22 = vsel %vm1002_vm10, %v1001_v18, %v736_v61  ;;  %v1010_v28 = vsel %vm1002_vm10, %v993_v33, %v728_v62 }
 0x148   : > { %v750_v63 = vpop.permute.xlu1 %749  ;;  %v742_v0 = vpop.permute.xlu0 %741 }
 0x149   : > { %v1033_v25 = vsel %vm1019_vm11, %v1016_v12, %v750_v63  ;;  %v1025_v14 = vsel %vm1019_vm11, %v1008_v24, %v742_v0 }
 0x14c   : > { %v752_v1 = vpop.permute.xlu1 %751  ;;  %v744_v2 = vpop.permute.xlu0 %743 }
 0x14d   : > { %v1035_v29 = vsel %vm1019_vm11, %v1018_v22, %v752_v1  ;;  %v1027_v42 = vsel %vm1019_vm11, %v1010_v28, %v744_v2 }
 0x150   : > { %v766_v3 = vpop.permute.xlu1 %765  ;;  %v758_v4 = vpop.permute.xlu0 %757 }
 0x151   : > { %v1050_v23 = vsel %vm1036_vm12, %v1033_v25, %v766_v3  ;;  %v1042_v16 = vsel %vm1036_vm12, %v1025_v14, %v758_v4 }
 0x154   : > { %v768_v5 = vpop.permute.xlu1 %767  ;;  %v760_v6 = vpop.permute.xlu0 %759 }
 0x155   : > { %v1052_v31 = vsel %vm1036_vm12, %v1035_v29, %v768_v5  ;;  %v1044_v48 = vsel %vm1036_vm12, %v1027_v42, %v760_v6 }
 0x158   : > { %v782_v7 = vpop.permute.xlu1 %781  ;;  %v774_v8 = vpop.permute.xlu0 %773 }
 0x159   : > { %v1067_v37 = vsel %vm1053_vm13, %v1050_v23, %v782_v7  ;;  %v1059_v27 = vsel %vm1053_vm13, %v1042_v16, %v774_v8 }
 0x15c   : > { %v784_v19 = vpop.permute.xlu1 %783  ;;  %v776_v21 = vpop.permute.xlu0 %775 }
 0x15d   : > { %v1069_v49 = vsel %vm1053_vm13, %v1052_v31, %v784_v19  ;;  %v1061_v13 = vsel %vm1053_vm13, %v1044_v48, %v776_v21 }
 0x160   : > { %v838_v26 = vpop.permute.xlu1 %837  ;;  %v830_v46 = vpop.permute.xlu0 %829 }
 0x161   : > { %v1084_v45 = vsel %vm1070_vm14, %v1067_v37, %v838_v26  ;;  %v1076_v41 = vsel %vm1070_vm14, %v1059_v27, %v830_v46 }
 0x162   : > { %1749 = vmatprep.mubr.msk.bf16.mxu1 %vm1154_vm15, %v1084_v45  ;;  %1741 = vmatprep.mubr.msk.bf16.mxu0 %vm1154_vm15, %v1076_v41 }
 0x164   : > { %v840_v50 = vpop.permute.xlu1 %839  ;;  %v832_v47 = vpop.permute.xlu0 %831 }
 0x165   : > { %v1086_v40 = vsel %vm1070_vm14, %v1069_v49, %v840_v50  ;;  %v1078_v39 = vsel %vm1070_vm14, %v1061_v13, %v832_v47 }
 0x166   : > { %1750 = vmatmul.mubr.msk.bf16.gmra.mrb[4].mxu1 %vm1154_vm15, %v1086_v40  ;;  %1742 = vmatmul.mubr.msk.bf16.gmra.mrb[4].mxu0 %vm1154_vm15, %v1078_v39 }
 0x1fd   : > { %v1747_v30 = vpop.f32.mrb[0].mxu1  ;;  %v1739_v51 = vpop.f32.mrb[0].mxu0 }
 0x1fe   : > { %v1250_v52 = vadd.f32 %v1747_v30, %v1646_v43  ;;  %v1241_v53 = vpop.f32.mrb[1].mxu1  ;;  %v1218_v54 = vadd.f32 %v1739_v51, %v1646_v43  ;;  %v1209_v55 = vpop.f32.mrb[1].mxu0 }
 0x1ff   : > { %v1242_v56 = vadd.f32 %v1646_v43, %v1241_v53  ;;  %v1748_v57 = vpop.f32.mrb[2].mxu1  ;;  %v1210_v59 = vadd.f32 %v1646_v43, %v1209_v55  ;;  %v1740_v60 = vpop.f32.mrb[2].mxu0 }
 0x200   : > { %v1699_v58 = vpack.c.bf16 %v1250_v52, %v1250_v52  ;;  %v1253_v61 = vadd.f32 %v1748_v57, %v1646_v43  ;;  %v1244_v62 = vpop.f32.mrb[3].mxu1  ;;  %v1691_v63 = vpack.c.bf16 %v1218_v54, %v1218_v54  ;;  %v1221_v1 = vadd.f32 %v1740_v60, %v1646_v43  ;;  %v1212_v2 = vpop.f32.mrb[3].mxu0 }
 0x201   : > { %v1697_v0 = vpack.c.bf16 %v1242_v56, %v1242_v56  ;;  %v1245_v3 = vadd.f32 %v1646_v43, %v1244_v62  ;;  %v1689_v4 = vpack.c.bf16 %v1210_v59, %v1210_v59  ;;  %v1213_v6 = vadd.f32 %v1646_v43, %v1212_v2 }
 0x202   : > { %1347 = vst.msk [vmem:[%s2549_s22 + $0x28] sm:$0xf] %vm1336_vm0, %v1699_v58  ;;  %v1700_v5 = vpack.c.bf16 %v1253_v61, %v1253_v61  ;;  %1339 = vst.msk [vmem:[%s2549_s22 + $0x8] sm:$0xf] %vm1336_vm0, %v1691_v63  ;;  %v1692_v7 = vpack.c.bf16 %v1221_v1, %v1221_v1 }
 0x203   : > { %1345 = vst.msk [vmem:[%s2549_s22 + $0x20] sm:$0xf] %vm1336_vm0, %v1697_v0  ;;  %v1698_v8 = vpack.c.bf16 %v1245_v3, %v1245_v3  ;;  %1337 = vst.msk [vmem:[%s2549_s22] sm:$0xf] %vm1336_vm0, %v1689_v4  ;;  %v1690_v9 = vpack.c.bf16 %v1213_v6, %v1213_v6 }
 0x204   : > { %1348 = vst.msk [vmem:[%s2549_s22 + $0x2c] sm:$0xf] %vm1336_vm0, %v1700_v5  ;;  %1340 = vst.msk [vmem:[%s2549_s22 + $0xc] sm:$0xf] %vm1336_vm0, %v1692_v7 }
 0x205   : > { %1346 = vst.msk [vmem:[%s2549_s22 + $0x24] sm:$0xf] %vm1336_vm0, %v1698_v8  ;;  %1338 = vst.msk [vmem:[%s2549_s22 + $0x4] sm:$0xf] %vm1336_vm0, %v1690_v9 }
 0x239   : > { %v1751_v10 = vpop.f32.mrb[4].mxu1  ;;  %v1743_v11 = vpop.f32.mrb[4].mxu0 }
 0x23a   : > { %v1266_v15 = vadd.f32 %v1751_v10, %v1646_v43  ;;  %v1257_v17 = vpop.f32.mrb[5].mxu1  ;;  %v1234_v19 = vadd.f32 %v1743_v11, %v1646_v43  ;;  %v1225_v35 = vpop.f32.mrb[5].mxu0 }
 0x23b   : > { %v1258_v20 = vadd.f32 %v1646_v43, %v1257_v17  ;;  %v1752_v12 = vpop.f32.mrb[6].mxu1  ;;  %v1226_v32 = vadd.f32 %v1646_v43, %v1225_v35  ;;  %v1744_v34 = vpop.f32.mrb[6].mxu0 }
 0x23c   : > { %v1703_v21 = vpack.c.bf16 %v1266_v15, %v1266_v15  ;;  %v1269_v24 = vadd.f32 %v1752_v12, %v1646_v43  ;;  %v1260_v25 = vpop.f32.mrb[7].mxu1  ;;  %v1695_v38 = vpack.c.bf16 %v1234_v19, %v1234_v19  ;;  %v1237_v14 = vadd.f32 %v1744_v34, %v1646_v43  ;;  %v1228_v23 = vpop.f32.mrb[7].mxu0 }
 0x23d   : > { %v1701_v36 = vpack.c.bf16 %v1258_v20, %v1258_v20  ;;  %v1261_v44 = vadd.f32 %v1646_v43, %v1260_v25  ;;  %v1693_v18 = vpack.c.bf16 %v1226_v32, %v1226_v32  ;;  %v1229_v37 = vadd.f32 %v1646_v43, %v1228_v23 }
 0x23e   : > { %1351 = vst.msk [vmem:[%s2549_s22 + $0x38] sm:$0xf] %vm1336_vm0, %v1703_v21  ;;  %v1704_v16 = vpack.c.bf16 %v1269_v24, %v1269_v24  ;;  %1343 = vst.msk [vmem:[%s2549_s22 + $0x18] sm:$0xf] %vm1336_vm0, %v1695_v38  ;;  %v1696_v26 = vpack.c.bf16 %v1237_v14, %v1237_v14 }
 0x23f   : > { %1349 = vst.msk [vmem:[%s2549_s22 + $0x30] sm:$0xf] %vm1336_vm0, %v1701_v36  ;;  %v1702_v33 = vpack.c.bf16 %v1261_v44, %v1261_v44  ;;  %1341 = vst.msk [vmem:[%s2549_s22 + $0x10] sm:$0xf] %vm1336_vm0, %v1693_v18  ;;  %v1694_v22 = vpack.c.bf16 %v1229_v37, %v1229_v37 }
 0x240   : > { %1352 = vst.msk [vmem:[%s2549_s22 + $0x3c] sm:$0xf] %vm1336_vm0, %v1704_v16  ;;  %1344 = vst.msk [vmem:[%s2549_s22 + $0x1c] sm:$0xf] %vm1336_vm0, %v1696_v26 }
 0x241   : > { %1350 = vst.msk [vmem:[%s2549_s22 + $0x34] sm:$0xf] %vm1336_vm0, %v1702_v33  ;;  %1342 = vst.msk [vmem:[%s2549_s22 + $0x14] sm:$0xf] %vm1336_vm0, %v1694_v22 }
 0x242 PF: > { %s13_s16 = sadd.s32 1, %s1926_s16   ;;  %s2602_s12 = smov %s1918_s14 }
 0x243   : > { %p10_p7 = scmp.ge.s32.totalorder %s13_s16, 6   ;;  %s2603_s13 = smov %s1922_s15 }
 0x244   : > { %s2604_s14 = smov %s2607_s17  ;;  %s2605_s15 = smov %s2611_s18 }
 0x245   :  { %12 = sbr.rel (!%p10_p7) target bundleno = 3 (0x3), region = 69 }

// kernel: _lambda_.6
= control target key start
LH: loop header
LB: loop body
LE: loop exit
PB: predicated region body
PF: predicated region fallthrough
CT: control target
= control target key end

     0   :  { %s2433_s12 = smov 0   ;;  %s2435_s13 = smov 0   ;;  %s3729_s0 = inlined_call_operand.vmem [shape: bf16[2,16,22,24], index: 0, kind: input, shape index: {}]   ;;  %s3730_s1 = inlined_call_operand.vmem [shape: bf16[120,24], index: 1, kind: input, shape index: {}]   ;;  %s3731_s2 = inlined_call_operand.vmem [shape: f32[1,24], index: 2, kind: input, shape index: {}]   ;;  %s3732_s3 = inlined_call_operand.vmem [shape: bf16[2,16,16,24], index: 3, kind: output, shape index: {}]  }
   0x1   :  { %s2437_s14 = smov 0   ;;  %s2439_s15 = smov 0  }
   0x2   :  { %s2441_s16 = smov 0  }
   0x3 LB: > { %s22_s17 = sadd.s32 1, %s2391_s14  ;;  %s25_s18 = sadd.s32 1, %s2395_s15  ;;  %s2399_s16 = sphi %s2441_s16, %s13_s16   ;;  %s2395_s15 = sphi %s2439_s15, %s3823_s15   ;;  %s2391_s14 = sphi %s2437_s14, %s3822_s14   ;;  %s2387_s13 = sphi %s2435_s13, %s3821_s13   ;;  %s2383_s12 = sphi %s2433_s12, %s3820_s12  }
   0x4   : > { %p23_p0 = scmp.ge.s32.totalorder %s22_s17, 2  ;;  %p2075_p1 = scmp.ge.s32.totalorder %s2399_s16, 1 }
   0x5   : > { %p151_p2 = scmp.lt.s32.totalorder %s2399_s16, 5 }
   0x6   : > { %s3825_s17 = smov (%p23_p0, %s22_s17), 0  ;;  %s3827_s18 = smov (!%p23_p0, %s25_s18), %s2395_s15 }
   0x7   : > { %p152_p3 = pnand %p2075_p1, %p151_p2  ;;  %p27_p4 = scmp.ge.s32.totalorder %s3827_s18, 2 }
   0x9   : > { %s3829_s18 = smov (%p27_p4, %s3827_s18), 0  ;;  %155 = sbr.rel (%p152_p3) target bundleno = 608 (0x260), region = 32 }
  0x10   : > { %p180_p5 = scmp.lt.s32.totalorder %s2387_s13, 1  ;;  %s2199_s19 = smul.u32 96, %s2383_s12  ;;  %vm567_vm0 = vcmask 1041408   ;;  %vm568_vm1 = vcmask 1045508   ;;  %vm316_vm3 = vsmask.f32 2304 }
  0x11   : > { %vm2474_vm2 = vmor %vm567_vm0, %vm568_vm1  ;;  %vm317_vm4 = vsmask.f32 6416  ;;  %s2401_s25 = smov 16   ;;  %s2402_s26 = smov 8   ;;  %vm634_vm6 = vsmask.f32 3328 }
  0x12   : > { %s3831_s13 = smov (!%p180_p5, %s2387_s13), 1  ;;  %vm2581_vm5 = vmor %vm316_vm3, %vm317_vm4  ;;  %vm635_vm7 = vsmask.f32 7440  ;;  %vm249_vm8 = vcmask 1042432   ;;  %vm250_vm9 = vcmask 1046532   ;;  %s2403_s27 = smov 24  }
  0x13   : > { %s2282_s20 = smul.u32 192, %s3831_s13  ;;  %vm2669_vm10 = vmor %vm634_vm6, %vm635_vm7  ;;  %vm797_vm12 = vsmask.f32 1280  ;;  %vm798_vm13 = vsmask.f32 5392  ;;  %s2404_s28 = smov 32  }
  0x14   : > { %vm2717_vm11 = vmor %vm249_vm8, %vm250_vm9  ;;  %s2405_s29 = smov 40   ;;  %s2406_s30 = smov 48   ;;  %vm1008_vm15 = vcmask 1040384   ;;  %vm1009_vm0 = vcmask 1044484   ;;  %vm1492_vm3 = vcmask 130048   ;;  %vm1797_vm4 = vcmask 1043456  }
  0x15   : > { %s184_s23 = scalar_lea.vmem %s3729_s0, %s2282_s20  ;;  %vm2799_vm14 = vmor %vm797_vm12, %vm798_vm13  ;;  %s2407_s4 = smov 56   ;;  %vm1526_vm6 = vcmask 261120   ;;  %vm1543_vm7 = vcmask 326656   ;;  %vm1560_vm8 = vcmask 392192   ;;  %vm1577_vm9 = vcmask 457728  }
  0x16   : > { %s2472_s24 = scalar_lea.vmem %s184_s23, %s2199_s19  ;;  %s2408_s5 = smov 64   ;;  %vm3290_vm1 = vmor %vm1008_vm15, %vm1009_vm0  ;;  %vm1628_vm12 = vcmask 654336   ;;  %vm1645_vm13 = vcmask 719872   ;;  %vm1679_vm15 = vcmask 850944   ;;  %vm1696_vm0 = vcmask 916480  }
  0x17   : > { %v2479_v1 = vld [vmem:[%s2472_s24 + $0x34] sm:$0xf]  ;;  %v2482_v2 = vld [vmem:[%s2472_s24 + $0x38] sm:$0x3]  ;;  %v2485_v3 = vld [vmem:[%s2472_s24 + $0x30] sm:$0xc] }
  0x18   : > { %v2096_v4 = vrot.slane %v2485_v3, 10  ;;  %v600_v5 = vrot.slane %v2479_v1, 6  ;;  %v603_v6 = vrot.slane %v2482_v2, 6  ;;  %v2491_v7 = vld [vmem:[%s2472_s24 + $0x4] sm:$0xf]  ;;  %v2494_v8 = vshrl.u32 %v2479_v1, 16 }
  0x19   : > { %v2497_v9 = vld [vmem:[%s2472_s24 + $0x8] sm:$0x3]  ;;  %v2500_v10 = vld [vmem:[%s2472_s24] sm:$0xc]  ;;  %v572_v11 = vrot.slane %v2491_v7, 6  ;;  %v2504_v12 = vshrl.u32 %v2491_v7, 16 }
  0x1a   : > { %v601_v13 = vsel %vm2474_vm2, %v2096_v4, %v600_v5  ;;  %v602_v14 = vrot.slane %v600_v5, 4  ;;  %v2092_v15 = vrot.slane %v2500_v10, 10  ;;  %v575_v16 = vrot.slane %v2497_v9, 6  ;;  %v2511_v17 = vld [vmem:[%s2472_s24 + $0x40] sm:$0xf]  ;;  %s2409_s6 = smov 72  }
  0x1b   : > { %v574_v18 = vrot.slane %v572_v11, 4  ;;  %v2514_v19 = vld [vmem:[%s2472_s24 + $0x44] sm:$0x3]  ;;  %v2517_v20 = vld [vmem:[%s2472_s24 + $0x3c] sm:$0xc]  ;;  %v607_v21 = vrot.slane %v2511_v17, 6 }
  0x1c   : > { %v604_v22 = vsel %vm2474_vm2, %v602_v14, %v603_v6  ;;  %v573_v23 = vsel %vm2474_vm2, %v2092_v15, %v572_v11  ;;  %v2097_v24 = vrot.slane %v2517_v20, 10  ;;  %v610_v25 = vrot.slane %v2514_v19, 6  ;;  %v2527_v26 = vld [vmem:[%s2472_s24 + $0x10] sm:$0xf]  ;;  %v309_v27 = vld [vmem:[%s2472_s24 + $0x14] sm:$0x3] }
  0x1d   : > { %v2530_v28 = vcombine.low %v601_v13, %v604_v22  ;;  %v576_v29 = vsel %vm2474_vm2, %v574_v18, %v575_v16  ;;  %v609_v30 = vrot.slane %v607_v21, 4  ;;  %v2535_v31 = vld [vmem:[%s2472_s24 + $0xc] sm:$0xc]  ;;  %v579_v32 = vrot.slane %v2527_v26, 6  ;;  %v2565_v46 = vld [vmem:[%s2472_s24] sm:$0xe] }
  0x1e   : > { %v2539_v33 = vld [vmem:[%s2472_s24 + $0xc] sm:$0xe]  ;;  %v2541_v34 = vcombine.low %v573_v23, %v576_v29  ;;  %v608_v35 = vsel %vm2474_vm2, %v2097_v24, %v607_v21  ;;  %v2093_v36 = vrot.slane %v2535_v31, 10  ;;  %v582_v37 = vrot.slane %v309_v27, 6  ;;  %v2590_v4 = vld [vmem:[%s2472_s24 + $0x3c] sm:$0xe] }
  0x1f   : > { %3763 = vst [vmem:[#allocation2_spill] sm:$0xff] %v2530_v28  ;;  %1163 = vrot.lane.b32.xlu1 %v2530_v28, %s2401_s25  ;;  %v611_v38 = vsel %vm2474_vm2, %v609_v30, %v610_v25  ;;  %v581_v39 = vrot.slane %v579_v32, 4  ;;  %v348_v40 = vshrl.u32 %v2539_v33, 16  ;;  %v351_v41 = vshll.u32 %v2539_v33, 16  ;;  %v3024_v59 = vld [vmem:[%s2472_s24 + $0x50] sm:$0x1] }
  0x20   : > { %3764 = vst [vmem:[#allocation3_spill] sm:$0xff] %v2541_v34  ;;  %1155 = vrot.lane.b32.xlu0 %v2541_v34, %s2401_s25  ;;  %v2554_v42 = vcombine.low %v608_v35, %v611_v38  ;;  %v580_v43 = vsel %vm2474_vm2, %v2093_v36, %v579_v32  ;;  %v2559_v44 = vshrl.u32 %v2527_v26, 16  ;;  %v2562_v45 = vshll.u32 %v2527_v26, 16  ;;  %s2410_s7 = smov 80   ;;  %s2411_s23 = smov 88  }
  0x21   : > { %v583_v47 = vsel %vm2474_vm2, %v581_v39, %v582_v37  ;;  %v350_v48 = vrot.slane %v348_v40, 5  ;;  %v353_v49 = vrot.slane %v351_v41, 6  ;;  %v367_v50 = vshrl.u32 %v309_v27, 16  ;;  %v2607_v37 = vld [vmem:[%s2472_s24 + $0x30] sm:$0xe]  ;;  %s2412_s19 = smov 96  }
  0x22   : > { %3765 = vst [vmem:[#allocation4_spill] sm:$0xff] %v2554_v42  ;;  %v2569_v51 = vcombine.low %v580_v43, %v583_v47  ;;  %v359_v52 = vrot.slane %v2559_v44, 5  ;;  %v362_v53 = vrot.slane %v2562_v45, 6  ;;  %v370_v54 = vshll.u32 %v309_v27, 16 }
  0x23   : > { %1165 = vrot.lane.b32.xlu1 %v2554_v42, %s2401_s25  ;;  %v354_v55 = vor.u32 %v353_v49, %v350_v48  ;;  %v369_v56 = vrot.slane %v367_v50, 5  ;;  %v320_v57 = vshrl.u32 %v2565_v46, 16  ;;  %v323_v58 = vshll.u32 %v2565_v46, 16 }
  0x24   : > { %3766 = vst [vmem:[#allocation5_spill] sm:$0xff] %v2569_v51  ;;  %1157 = vrot.lane.b32.xlu0 %v2569_v51, %s2401_s25  ;;  %v363_v60 = vor.u32 %v362_v53, %v359_v52  ;;  %v372_v61 = vrot.slane %v370_v54, 6  ;;  %v331_v62 = vrot.slane %v2504_v12, 5  ;;  %v2587_v63 = vshll.u32 %v2491_v7, 16 }
  0x25   : > { %v355_v5 = vrot.slane %v354_v55, 4  ;;  %v322_v6 = vrot.slane %v320_v57, 5  ;;  %v325_v11 = vrot.slane %v323_v58, 6  ;;  %v339_v13 = vshrl.u32 %v2497_v9, 16 }
  0x26   : > { %v365_v14 = vrot.slane %v363_v60, 4  ;;  %v373_v15 = vor.u32 %v372_v61, %v369_v56  ;;  %v334_v16 = vrot.slane %v2587_v63, 6  ;;  %v342_v18 = vshll.u32 %v2497_v9, 16 }
  0x27   : > { %v364_v21 = vsel %vm2581_vm5, %v355_v5, %v363_v60  ;;  %v326_v22 = vor.u32 %v325_v11, %v322_v6  ;;  %v341_v23 = vrot.slane %v339_v13, 5  ;;  %v460_v24 = vshrl.u32 %v2590_v4, 16  ;;  %v2627_v60 = vld [vmem:[%s2472_s24 + $0x30] sm:$0xf] }
  0x28   : > { %v374_v25 = vsel %vm2581_vm5, %v365_v14, %v373_v15  ;;  %v335_v27 = vor.u32 %v334_v16, %v331_v62  ;;  %v344_v29 = vrot.slane %v342_v18, 6  ;;  %v463_v30 = vshll.u32 %v2590_v4, 16 }
  0x29   : > { %v2601_v32 = vcombine.low %v364_v21, %v374_v25  ;;  %v327_v35 = vrot.slane %v326_v22, 4  ;;  %v462_v36 = vrot.slane %v460_v24, 5  ;;  %v2604_v9 = vshrl.u32 %v2511_v17, 16  ;;  %v2640_v21 = vld [vmem:[%s2472_s24 + $0x38] sm:$0x1] }
  0x2a   : > { %v337_v38 = vrot.slane %v335_v27, 4  ;;  %v345_v39 = vor.u32 %v344_v29, %v341_v23  ;;  %v465_v40 = vrot.slane %v463_v30, 6  ;;  %v2610_v41 = vshll.u32 %v2511_v17, 16  ;;  %v2646_v29 = vld [vmem:[%s2472_s24] sm:$0xf] }
  0x2b   : > { %3769 = vst [vmem:[#allocation6_spill] sm:$0xff] %v2601_v32  ;;  %1117 = vrot.lane.b32.xlu1 %v2601_v32, %s2402_s26  ;;  %v336_v43 = vsel %vm2581_vm5, %v327_v35, %v335_v27  ;;  %v471_v47 = vrot.slane %v2604_v9, 5  ;;  %v479_v48 = vshrl.u32 %v2514_v19, 16  ;;  %v482_v49 = vshll.u32 %v2514_v19, 16 }
  0x2c   : > { %v346_v50 = vsel %vm2581_vm5, %v337_v38, %v345_v39  ;;  %v466_v52 = vor.u32 %v465_v40, %v462_v36  ;;  %v474_v53 = vrot.slane %v2610_v41, 6  ;;  %v432_v54 = vshrl.u32 %v2607_v37, 16 }
  0x2d   : > { %v2623_v55 = vcombine.low %v336_v43, %v346_v50  ;;  %v481_v56 = vrot.slane %v479_v48, 5  ;;  %v484_v57 = vrot.slane %v482_v49, 6  ;;  %v435_v58 = vshll.u32 %v2607_v37, 16 }
  0x2e   : > { %v467_v19 = vrot.slane %v466_v52, 4  ;;  %v475_v61 = vor.u32 %v474_v53, %v471_v47  ;;  %v434_v62 = vrot.slane %v432_v54, 5  ;;  %v443_v5 = vrot.slane %v2494_v8, 5 }
  0x2f   : > { %1115 = vrot.lane.b32.xlu0 %v2623_v55, %s2402_s26  ;;  %v485_v6 = vor.u32 %v484_v57, %v481_v56  ;;  %v437_v11 = vrot.slane %v435_v58, 6  ;;  %v2633_v13 = vshll.u32 %v2479_v1, 16  ;;  %v451_v14 = vshrl.u32 %v2482_v2, 16  ;;  %v2661_v56 = vld [vmem:[%s2472_s24 + $0x8] sm:$0x1] }
  0x30   : > { %v476_v15 = vsel %vm2581_vm5, %v467_v19, %v475_v61  ;;  %v477_v16 = vrot.slane %v475_v61, 4  ;;  %v454_v18 = vshll.u32 %v2482_v2, 16  ;;  %v714_v22 = vshrl.u32 %v2627_v60, 16  ;;  %v2665_v58 = vld [vmem:[%s2472_s24 + $0x3c] sm:$0xf] }
  0x31   : > { %v438_v23 = vor.u32 %v437_v11, %v434_v62  ;;  %v446_v24 = vrot.slane %v2633_v13, 6  ;;  %v453_v25 = vrot.slane %v451_v14, 5  ;;  %v717_v27 = vshll.u32 %v2627_v60, 16 }
  0x32   : > { %v486_v30 = vsel %vm2581_vm5, %v477_v16, %v485_v6  ;;  %v456_v35 = vrot.slane %v454_v18, 6  ;;  %v716_v36 = vrot.slane %v714_v22, 4  ;;  %v722_v2 = vrot.slane %v2633_v13, 5 }
  0x33   : > { %v2651_v38 = vcombine.low %v476_v15, %v486_v30  ;;  %v439_v39 = vrot.slane %v438_v23, 4  ;;  %v447_v40 = vor.u32 %v446_v24, %v443_v5  ;;  %v719_v43 = vrot.slane %v717_v27, 5 }
  0x34   : > { %v457_v47 = vor.u32 %v456_v35, %v453_v25  ;;  %v724_v48 = vrot.slane %v2494_v8, 4  ;;  %v728_v49 = vshll.u32 %v2640_v21, 16  ;;  %v638_v50 = vshrl.u32 %v2646_v29, 16  ;;  %v2684_v35 = vld [vmem:[%s2472_s24 + $0x44] sm:$0x1] }
  0x35   : > { %1125 = vrot.lane.b32.xlu1 %v2651_v38, %s2402_s26  ;;  %v448_v52 = vsel %vm2581_vm5, %v439_v39, %v447_v40  ;;  %v449_v53 = vrot.slane %v447_v40, 4  ;;  %v720_v54 = vor.u32 %v719_v43, %v716_v36  ;;  %v641_v57 = vshll.u32 %v2646_v29, 16  ;;  %v2688_v39 = vld [vmem:[%s2472_s24 + $0xc] sm:$0xf] }
  0x36   : > { %v725_v61 = vor.u32 %v724_v48, %v722_v2  ;;  %v730_v62 = vrot.slane %v728_v49, 5  ;;  %v640_v5 = vrot.slane %v638_v50, 4  ;;  %v646_v6 = vrot.slane %v2587_v63, 5 }
  0x37   : > { %v458_v11 = vsel %vm2581_vm5, %v449_v53, %v457_v47  ;;  %v721_v14 = vrot.slane %v720_v54, 4  ;;  %v643_v15 = vrot.slane %v641_v57, 5  ;;  %v648_v16 = vrot.slane %v2504_v12, 4  ;;  %v2700_v57 = vld [vmem:[%s2472_s24 + $0x14] sm:$0x1] }
  0x38   : > { %v2677_v18 = vcombine.low %v448_v52, %v458_v11  ;;  %v726_v22 = vrot.slane %v725_v61, 4  ;;  %v652_v23 = vshll.u32 %v2661_v56, 16  ;;  %v733_v24 = vshrl.u32 %v2665_v58, 16 }
  0x39   : > { %v723_v25 = vsel %vm2669_vm10, %v721_v14, %v722_v2  ;;  %v644_v27 = vor.u32 %v643_v15, %v640_v5  ;;  %v649_v30 = vor.u32 %v648_v16, %v646_v6  ;;  %v736_v36 = vshll.u32 %v2665_v58, 16 }
  0x3a   : > { %1123 = vrot.lane.b32.xlu0 %v2677_v18, %s2402_s26  ;;  %v731_v40 = vsel %vm2669_vm10, %v726_v22, %v730_v62  ;;  %v654_v43 = vrot.slane %v652_v23, 5  ;;  %v735_v47 = vrot.slane %v733_v24, 4  ;;  %v741_v48 = vrot.slane %v2610_v41, 5 }
  0x3b   : > { %v2695_v2 = vcombine.low %v723_v25, %v731_v40  ;;  %v645_v49 = vrot.slane %v644_v27, 4  ;;  %v650_v50 = vrot.slane %v649_v30, 4  ;;  %v738_v52 = vrot.slane %v736_v36, 5 }
  0x3c   : > { %v743_v53 = vrot.slane %v2604_v9, 4  ;;  %v747_v54 = vshll.u32 %v2684_v35, 16  ;;  %v657_v61 = vshrl.u32 %v2688_v39, 16  ;;  %v660_v5 = vshll.u32 %v2688_v39, 16 }
  0x3d   : > { %1203 = vrot.lane.b32.xlu1 %v2695_v2, %s2401_s25  ;;  %v647_v62 = vsel %vm2669_vm10, %v645_v49, %v646_v6  ;;  %v655_v11 = vsel %vm2669_vm10, %v650_v50, %v654_v43  ;;  %v739_v14 = vor.u32 %v738_v52, %v735_v47  ;;  %v665_v15 = vrot.slane %v2562_v45, 5 }
  0x3e   : > { %v2711_v16 = vcombine.low %v647_v62, %v655_v11  ;;  %v744_v22 = vor.u32 %v743_v53, %v741_v48  ;;  %v749_v23 = vrot.slane %v747_v54, 5  ;;  %v659_v24 = vrot.slane %v657_v61, 4 }
  0x3f   : > { %v740_v25 = vrot.slane %v739_v14, 4  ;;  %v662_v27 = vrot.slane %v660_v5, 5  ;;  %v667_v30 = vrot.slane %v2559_v44, 4  ;;  %v671_v36 = vshll.u32 %v2700_v57, 16 }
  0x40   : > { %1195 = vrot.lane.b32.xlu0 %v2711_v16, %s2401_s25  ;;  %v745_v40 = vrot.slane %v744_v22, 4  ;;  %v2088_v43 = vrot.slane %v2607_v37, 9  ;;  %v282_v47 = vrot.slane %v2479_v1, 5  ;;  %v285_v49 = vrot.slane %v2640_v21, 5 }
  0x41   : > { %v742_v50 = vsel %vm2669_vm10, %v740_v25, %v741_v48  ;;  %v663_v52 = vor.u32 %v662_v27, %v659_v24  ;;  %v668_v53 = vor.u32 %v667_v30, %v665_v15  ;;  %v673_v54 = vrot.slane %v671_v36, 5 }
  0x42   : > { %v750_v61 = vsel %vm2669_vm10, %v745_v40, %v749_v23  ;;  %v283_v5 = vsel %vm2717_vm11, %v2088_v43, %v282_v47  ;;  %v284_v62 = vrot.slane %v282_v47, 4  ;;  %v2084_v11 = vrot.slane %v2565_v46, 9 }
  0x43   : > { %v2733_v37 = vcombine.low %v742_v50, %v750_v61  ;;  %v664_v14 = vrot.slane %v663_v52, 4  ;;  %v669_v22 = vrot.slane %v668_v53, 4  ;;  %v254_v21 = vrot.slane %v2491_v7, 5  ;;  %v2764_v53 = vld [vmem:[%s2472_s24 + $0x38] sm:$0x7] }
  0x44   : > { %v286_v48 = vsel %vm2717_vm11, %v284_v62, %v285_v49  ;;  %v257_v24 = vrot.slane %v2661_v56, 5  ;;  %v2089_v25 = vrot.slane %v2590_v4, 9  ;;  %v289_v23 = vrot.slane %v2511_v17, 5  ;;  %3774 = vst [vmem:[#allocation7_spill] sm:$0xff] %v2764_v53 }
  0x45   : > { %1205 = vrot.lane.b32.xlu1 %v2733_v37, %s2401_s25  ;;  %v666_v46 = vsel %vm2669_vm10, %v664_v14, %v665_v15  ;;  %v674_v27 = vsel %vm2669_vm10, %v669_v22, %v673_v54  ;;  %v2747_v30 = vcombine.low %v283_v5, %v286_v48  ;;  %v255_v56 = vsel %vm2717_vm11, %v2084_v11, %v254_v21 }
  0x46   : > { %v2751_v4 = vcombine.low %v666_v46, %v674_v27  ;;  %v256_v36 = vrot.slane %v254_v21, 4  ;;  %v290_v40 = vsel %vm2717_vm11, %v2089_v25, %v289_v23  ;;  %v291_v43 = vrot.slane %v289_v23, 4  ;;  %v2790_v27 = vld [vmem:[%s2472_s24 + $0x8] sm:$0x7] }
  0x47   : > { %v292_v47 = vrot.slane %v2684_v35, 5  ;;  %v2085_v49 = vrot.slane %v2539_v33, 9  ;;  %v261_v15 = vrot.slane %v2527_v26, 5  ;;  %v264_v50 = vrot.slane %v2700_v57, 5  ;;  %3775 = vst [vmem:[#allocation8_spill] sm:$0xff] %v2790_v27 }
  0x48   : > { %1197 = vrot.lane.b32.xlu0 %v2751_v4, %s2401_s25  ;;  %v258_v52 = vsel %vm2717_vm11, %v256_v36, %v257_v24  ;;  %v893_v54 = vshrl.u32 %v2485_v3, 16  ;;  %v896_v61 = vshll.u32 %v2485_v3, 16  ;;  %v901_v35 = vrot.slane %v2494_v8, 6 }
  0x49   : > { %1219 = vrot.lane.b32.xlu1 %v2747_v30, %s2403_s27  ;;  %v2771_v33 = vcombine.low %v255_v56, %v258_v52  ;;  %v293_v57 = vsel %vm2717_vm11, %v291_v43, %v292_v47  ;;  %v262_v5 = vsel %vm2717_vm11, %v2085_v49, %v261_v15  ;;  %v263_v62 = vrot.slane %v261_v15, 4 }
  0x4a   : > { %v2777_v11 = vcombine.low %v290_v40, %v293_v57  ;;  %v895_v14 = vrot.slane %v893_v54, 6  ;;  %v898_v3 = vrot.slane %v896_v61, 7  ;;  %v902_v8 = vrot.slane %v2633_v13, 7 }
  0x4b   : > { %v265_v22 = vsel %vm2717_vm11, %v263_v62, %v264_v50  ;;  %v907_v21 = vshrl.u32 %v2764_v53, 16  ;;  %v910_v48 = vshll.u32 %v2764_v53, 16  ;;  %v801_v24 = vshrl.u32 %v2500_v10, 16 }
  0x4c   : > { %1211 = vrot.lane.b32.xlu0 %v2771_v33, %s2403_s27  ;;  %v2787_v25 = vcombine.low %v262_v5, %v265_v22  ;;  %v899_v23 = vor.u32 %v898_v3, %v895_v14  ;;  %v903_v46 = vor.u32 %v902_v8, %v901_v35  ;;  %v804_v13 = vshll.u32 %v2500_v10, 16 }
  0x4d   : > { %1221 = vrot.lane.b32.xlu1 %v2777_v11, %s2403_s27  ;;  %v909_v56 = vrot.slane %v907_v21, 6  ;;  %v912_v36 = vrot.slane %v910_v48, 7  ;;  %v803_v40 = vrot.slane %v801_v24, 6  ;;  %v809_v43 = vrot.slane %v2504_v12, 6 }
  0x4e   : > { %v900_v47 = vrot.slane %v899_v23, 4  ;;  %v806_v49 = vrot.slane %v804_v13, 7  ;;  %v810_v15 = vrot.slane %v2587_v63, 7  ;;  %v905_v10 = vrot.slane %v903_v46, 4  ;;  %v794_v63 = vld [vmem:[%s2472_s24 + $0x44] sm:$0x7] }
  0x4f   : > { %v815_v52 = vshrl.u32 %v2790_v27, 16  ;;  %v818_v54 = vshll.u32 %v2790_v27, 16  ;;  %v916_v61 = vshrl.u32 %v2517_v20, 16  ;;  %v913_v12 = vor.u32 %v912_v36, %v909_v56 }
  0x50   : > { %1213 = vrot.lane.b32.xlu0 %v2787_v25, %s2403_s27  ;;  %v807_v35 = vor.u32 %v806_v49, %v803_v40  ;;  %v811_v57 = vor.u32 %v810_v15, %v809_v43  ;;  %v919_v5 = vshll.u32 %v2517_v20, 16  ;;  %v904_v8 = vsel %vm2799_vm14, %v900_v47, %v903_v46  ;;  %v790_v47 = vld [vmem:[%s2472_s24 + $0x14] sm:$0x7] }
  0x51   : > { %1235 = vrot.lane.b32.xlu1 %v2677_v18, %s2404_s28  ;;  %v817_v62 = vrot.slane %v815_v52, 6  ;;  %v820_v14 = vrot.slane %v818_v54, 7  ;;  %v918_v3 = vrot.slane %v916_v61, 6  ;;  %v924_v23 = vrot.slane %v2604_v9, 6 }
  0x52   : > { %v808_v22 = vrot.slane %v807_v35, 4  ;;  %v813_v21 = vrot.slane %v811_v57, 4  ;;  %v921_v48 = vrot.slane %v919_v5, 7  ;;  %v925_v13 = vrot.slane %v2610_v41, 7  ;;  %v2832_v5 = vld [vmem:[%s2472_s24 + $0x48] sm:$0xe] }
  0x53   : > { %v821_v24 = vor.u32 %v820_v14, %v817_v62  ;;  %v930_v20 = vshrl.u32 %v794_v63, 16  ;;  %v914_v56 = vsel %vm2799_vm14, %v905_v10, %v913_v12  ;;  %v933_v40 = vshll.u32 %v794_v63, 16 }
  0x54   : > { %1227 = vrot.lane.b32.xlu0 %v2623_v55, %s2404_s28  ;;  %v922_v36 = vor.u32 %v921_v48, %v918_v3  ;;  %v824_v46 = vshrl.u32 %v2535_v31, 16  ;;  %v812_v9 = vsel %vm2799_vm14, %v808_v22, %v811_v57  ;;  %v926_v43 = vor.u32 %v925_v13, %v924_v23  ;;  %v2850_v23 = vld [vmem:[%s2472_s24 + $0x50] sm:$0x3] }
  0x55   : > { %1237 = vrot.lane.b32.xlu1 %v2651_v38, %s2404_s28  ;;  %v932_v41 = vrot.slane %v930_v20, 6  ;;  %v827_v49 = vshll.u32 %v2535_v31, 16  ;;  %v822_v15 = vsel %vm2799_vm14, %v813_v21, %v821_v24  ;;  %v935_v52 = vrot.slane %v933_v40, 7  ;;  %v2845_v21 = vld [vmem:[%s2472_s24 + $0x4c] sm:$0xf] }
  0x56   : > { %v923_v10 = vrot.slane %v922_v36, 4  ;;  %v826_v54 = vrot.slane %v824_v46, 6  ;;  %v928_v61 = vrot.slane %v926_v43, 4  ;;  %v832_v35 = vrot.slane %v2559_v44, 6  ;;  %v2857_v46 = vld [vmem:[%s2472_s24 + $0x18] sm:$0xe] }
  0x57   : > { %v829_v12 = vrot.slane %v827_v49, 7  ;;  %v833_v63 = vrot.slane %v2562_v45, 7  ;;  %v2836_v31 = vcombine.low %v904_v8, %v914_v56  ;;  %v936_v57 = vor.u32 %v935_v52, %v932_v41 }
  0x58   : > { %1229 = vrot.lane.b32.xlu0 %v2601_v32, %s2404_s28  ;;  %v838_v62 = vshrl.u32 %v790_v47, 16  ;;  %v841_v14 = vshll.u32 %v790_v47, 16  ;;  %v2840_v3 = vcombine.low %v812_v9, %v822_v15  ;;  %v927_v44 = vsel %vm2799_vm14, %v923_v10, %v926_v43 }
  0x59   : > { %3778 = vst [vmem:[#allocation9_spill] sm:$0xff] %v2836_v31  ;;  %1251 = vrot.lane.b32.xlu1 %v2530_v28, %s2405_s29  ;;  %v830_v45 = vor.u32 %v829_v12, %v826_v54  ;;  %v834_v22 = vor.u32 %v833_v63, %v832_v35  ;;  %v937_v8 = vsel %vm2799_vm14, %v928_v61, %v936_v57  ;;  %v488_v13 = vshrl.u32 %v2832_v5, 16  ;;  %v2874_v54 = vld [vmem:[%s2472_s24 + $0x1c] sm:$0xf]  ;;  %v2881_v63 = vld [vmem:[%s2472_s24 + $0x20] sm:$0x3] }
  0x5a   : > { %3779 = vst [vmem:[#allocation10_spill] sm:$0xff] %v2840_v3  ;;  %v840_v48 = vrot.slane %v838_v62, 6  ;;  %v843_v24 = vrot.slane %v841_v14, 7  ;;  %v491_v40 = vshll.u32 %v2832_v5, 16  ;;  %v2862_v41 = vshrl.u32 %v2845_v21, 16 }
  0x5b   : > { %v831_v20 = vrot.slane %v830_v45, 4  ;;  %v836_v56 = vrot.slane %v834_v22, 4  ;;  %v490_v43 = vrot.slane %v488_v13, 5  ;;  %v2865_v47 = vshll.u32 %v2845_v21, 16 }
  0x5c   : > { %1243 = vrot.lane.b32.xlu0 %v2541_v34, %s2405_s29  ;;  %v844_v9 = vor.u32 %v843_v24, %v840_v48  ;;  %v2869_v49 = vcombine.low %v927_v44, %v937_v8  ;;  %v493_v15 = vrot.slane %v491_v40, 6  ;;  %v507_v10 = vshrl.u32 %v2850_v23, 16 }
  0x5d   : > { %1253 = vrot.lane.b32.xlu1 %v2554_v42, %s2405_s29  ;;  %v510_v52 = vshll.u32 %v2850_v23, 16  ;;  %v835_v61 = vsel %vm2799_vm14, %v831_v20, %v834_v22  ;;  %v499_v12 = vrot.slane %v2862_v41, 5  ;;  %v502_v35 = vrot.slane %v2865_v47, 6 }
  0x5e   : > { %3780 = vst [vmem:[#allocation11_spill] sm:$0xff] %v2869_v49  ;;  %v376_v57 = vshrl.u32 %v2857_v46, 16  ;;  %v845_v62 = vsel %vm2799_vm14, %v836_v56, %v844_v9  ;;  %v494_v14 = vor.u32 %v493_v15, %v490_v43  ;;  %v509_v44 = vrot.slane %v507_v10, 5 }
  0x5f   : > { %v512_v45 = vrot.slane %v510_v52, 6  ;;  %v503_v8 = vor.u32 %v502_v35, %v499_v12  ;;  %v379_v48 = vshll.u32 %v2857_v46, 16  ;;  %v2890_v24 = vshrl.u32 %v2874_v54, 16  ;;  %v2901_v52 = vld [vmem:[%s2472_s24 + $0x54] sm:$0xe] }
  0x60   : > { %1245 = vrot.lane.b32.xlu0 %v2569_v51, %s2405_s29  ;;  %v378_v22 = vrot.slane %v376_v57, 5  ;;  %v495_v13 = vrot.slane %v494_v14, 4  ;;  %v2895_v56 = vshll.u32 %v2874_v54, 16  ;;  %v395_v40 = vshrl.u32 %v2881_v63, 16 }
  0x61   : > { %1291 = vrot.lane.b32.xlu1 %v2836_v31, %s2406_s30  ;;  %v513_v20 = vor.u32 %v512_v45, %v509_v44  ;;  %v505_v9 = vrot.slane %v503_v8, 4  ;;  %v381_v43 = vrot.slane %v379_v48, 6  ;;  %v387_v15 = vrot.slane %v2890_v24, 5  ;;  %v2909_v44 = vld [vmem:[%s2472_s24 + $0x58] sm:$0xf] }
  0x62   : > { %v398_v10 = vshll.u32 %v2881_v63, 16  ;;  %v2148_v12 = vcombine.low %v2646_v29, %v2491_v7  ;;  %v504_v35 = vsel %vm2581_vm5, %v495_v13, %v503_v8  ;;  %v390_v57 = vrot.slane %v2895_v56, 6  ;;  %v2918_v7 = vld [vmem:[%s2472_s24 + $0x5c] sm:$0x3] }
  0x63   : > { %v397_v14 = vrot.slane %v395_v40, 5  ;;  %v2913_v45 = vcombine.low %v835_v61, %v845_v62  ;;  %v514_v48 = vsel %vm2581_vm5, %v505_v9, %v513_v20  ;;  %v382_v36 = vor.u32 %v381_v43, %v378_v22  ;;  %v2933_v20 = vld [vmem:[%s2472_s24 + $0x24] sm:$0xe] }
  0x64   : > { %1283 = vrot.lane.b32.xlu0 %v2840_v3, %s2406_s30  ;;  %v400_v27 = vrot.slane %v398_v10, 6  ;;  %v2922_v29 = vcombine.low %v504_v35, %v514_v48  ;;  %v391_v8 = vor.u32 %v390_v57, %v387_v15  ;;  %v516_v13 = vshrl.u32 %v2901_v52, 16 }
  0x65   : > { %3781 = vst [vmem:[#allocation12_spill] sm:$0xff] %v2913_v45  ;;  %1293 = vrot.lane.b32.xlu1 %v2869_v49, %s2406_s30  ;;  %v519_v40 = vshll.u32 %v2901_v52, 16  ;;  %v383_v61 = vrot.slane %v382_v36, 4  ;;  %v2927_v53 = vshrl.u32 %v2909_v44, 16  ;;  %v2930_v22 = vshll.u32 %v2909_v44, 16 }
  0x66   : > { %3782 = vst [vmem:[#allocation13_spill] sm:$0xff] %v2922_v29  ;;  %v401_v62 = vor.u32 %v400_v27, %v397_v14  ;;  %v393_v9 = vrot.slane %v391_v8, 4  ;;  %v518_v43 = vrot.slane %v516_v13, 5  ;;  %v535_v15 = vshrl.u32 %v2918_v7, 16  ;;  %v2944_v14 = vld [vmem:[%s2472_s24 + $0x28] sm:$0xf] }
  0x67   : > { %v521_v10 = vrot.slane %v519_v40, 6  ;;  %v392_v27 = vsel %vm2581_vm5, %v383_v61, %v391_v8  ;;  %v527_v36 = vrot.slane %v2927_v53, 5  ;;  %v530_v35 = vrot.slane %v2930_v22, 6  ;;  %v2953_v49 = vld [vmem:[%s2472_s24 + $0x2c] sm:$0x3] }
  0x68   : > { %1285 = vrot.lane.b32.xlu0 %v2913_v45, %s2406_s30  ;;  %v538_v57 = vshll.u32 %v2918_v7, 16  ;;  %v3783_v48 = vcombine.low %v2627_v60, %v2479_v1  ;;  %v402_v13 = vsel %vm2581_vm5, %v393_v9, %v401_v62  ;;  %v537_v45 = vrot.slane %v535_v15, 5 }
  0x69   : > { %v522_v40 = vor.u32 %v521_v10, %v518_v43  ;;  %v404_v8 = vshrl.u32 %v2933_v20, 16  ;;  %v2956_v61 = vcombine.low %v392_v27, %v402_v13  ;;  %v531_v3 = vor.u32 %v530_v35, %v527_v36 }
  0x6a   : > { %1339 = vrot.lane.b32.xlu1 %v3783_v48, %s2406_s30  ;;  %v540_v31 = vrot.slane %v538_v57, 6  ;;  %v407_v51 = vshll.u32 %v2933_v20, 16  ;;  %v2960_v1 = vshrl.u32 %v2944_v14, 16  ;;  %v2963_v60 = vshll.u32 %v2944_v14, 16  ;;  %v2975_v57 = vld [vmem:[%s2472_s24 + $0x48] sm:$0xc] }
  0x6b   : > { %3784 = vst [vmem:[#allocation14_spill] sm:$0xff] %v2956_v61  ;;  %v523_v42 = vrot.slane %v522_v40, 4  ;;  %v406_v34 = vrot.slane %v404_v8, 5  ;;  %v533_v62 = vrot.slane %v531_v3, 4  ;;  %v423_v10 = vshrl.u32 %v2953_v49, 16 }
  0x6c   : > { %1331 = vrot.lane.b32.xlu0 %v2148_v12, %s2406_s30  ;;  %v541_v9 = vor.u32 %v540_v31, %v537_v45  ;;  %v409_v43 = vrot.slane %v407_v51, 6  ;;  %v2153_v15 = vcombine.low %v2665_v58, %v2511_v17  ;;  %v415_v27 = vrot.slane %v2960_v1, 5 }
  0x6d   : > { %v418_v36 = vrot.slane %v2963_v60, 6  ;;  %v426_v35 = vshll.u32 %v2953_v49, 16  ;;  %v2149_v51 = vcombine.low %v2688_v39, %v2527_v26  ;;  %v425_v12 = vrot.slane %v423_v10, 5 }
  0x6e   : > { %1127 = vrot.lane.b32.xlu1 %v2922_v29, %s2402_s26  ;;  %v410_v31 = vor.u32 %v409_v43, %v406_v34  ;;  %v532_v45 = vsel %vm2581_vm5, %v523_v42, %v531_v3  ;;  %v614_v58 = vrot.slane %v2845_v21, 6  ;;  %v542_v13 = vsel %vm2581_vm5, %v533_v62, %v541_v9  ;;  %v2988_v34 = vld [vmem:[%s2472_s24 + $0x18] sm:$0xc]  ;;  %v3069_v29 = vld [vmem:[%s2472_s24 + $0x24] sm:$0xf] }
  0x6f   : > { %v419_v48 = vor.u32 %v418_v36, %v415_v27  ;;  %v428_v17 = vrot.slane %v426_v35, 6  ;;  %v2098_v26 = vrot.slane %v2975_v57, 10  ;;  %v586_v39 = vrot.slane %v2874_v54, 6  ;;  %v2995_v27 = vld [vmem:[%s2472_s24 + $0x48] sm:$0xf] }
  0x70   : > { %1119 = vrot.lane.b32.xlu0 %v2956_v61, %s2402_s26  ;;  %v411_v40 = vrot.slane %v410_v31, 4  ;;  %v616_v8 = vrot.slane %v614_v58, 4  ;;  %v617_v43 = vrot.slane %v2850_v23, 6  ;;  %v2094_v10 = vrot.slane %v2988_v34, 10  ;;  %3785 = vst [vmem:[#allocation15_spill] sm:$0xff] %v2995_v27 }
  0x71   : > { %v421_v42 = vrot.slane %v419_v48, 4  ;;  %v429_v3 = vor.u32 %v428_v17, %v425_v12  ;;  %v2998_v62 = vcombine.low %v532_v45, %v542_v13  ;;  %v615_v9 = vsel %vm2474_vm2, %v2098_v26, %v614_v58  ;;  %v3004_v35 = vld [vmem:[%s2472_s24 + $0x54] sm:$0xc]  ;;  %v3018_v17 = vld [vmem:[%s2472_s24 + $0x18] sm:$0xf] }
  0x72   : > { %1341 = vrot.lane.b32.xlu1 %v2153_v15, %s2406_s30  ;;  %v588_v36 = vrot.slane %v586_v39, 4  ;;  %v589_v15 = vrot.slane %v2881_v63, 6  ;;  %v420_v23 = vsel %vm2581_vm5, %v411_v40, %v419_v48  ;;  %v618_v31 = vsel %vm2474_vm2, %v616_v8, %v617_v43  ;;  %3787 = vst [vmem:[#allocation17_spill] sm:$0xff] %v3018_v17 }
  0x73   : > { %3786 = vst [vmem:[#allocation16_spill] sm:$0xff] %v2998_v62  ;;  %v621_v12 = vrot.slane %v2909_v44, 6  ;;  %v752_v45 = vshrl.u32 %v2995_v27, 16  ;;  %v755_v63 = vshll.u32 %v2995_v27, 16  ;;  %v2099_v48 = vrot.slane %v3004_v35, 10 }
  0x74   : > { %1333 = vrot.lane.b32.xlu0 %v2149_v51, %s2406_s30  ;;  %v430_v51 = vsel %vm2581_vm5, %v421_v42, %v429_v3  ;;  %v760_v58 = vrot.slane %v2865_v47, 5  ;;  %v762_v13 = vrot.slane %v2862_v41, 4  ;;  %v3032_v26 = vcombine.low %v615_v9, %v618_v31  ;;  %v3041_v27 = vld [vmem:[%s2472_s24 + $0x54] sm:$0xf] }
  0x75   : > { %v3030_v40 = vcombine.low %v420_v23, %v430_v51  ;;  %v590_v42 = vsel %vm2474_vm2, %v588_v36, %v589_v15  ;;  %v623_v3 = vrot.slane %v621_v12, 4  ;;  %v624_v8 = vrot.slane %v2918_v7, 6  ;;  %3790 = vst [vmem:[#allocation20_spill] sm:$0xff] %v3041_v27 }
  0x76   : > { %1355 = vrot.lane.b32.xlu1 %v2695_v2, %s2407_s4  ;;  %v587_v2 = vsel %vm2474_vm2, %v2094_v10, %v586_v39  ;;  %3789 = vst [vmem:[#allocation19_spill] sm:$0xff] %v3032_v26  ;;  %v754_v39 = vrot.slane %v752_v45, 4  ;;  %v757_v43 = vrot.slane %v755_v63, 5  ;;  %v676_v10 = vshrl.u32 %v3018_v17, 16  ;;  %v3056_v63 = vld [vmem:[%s2472_s24 + $0x20] sm:$0x1] }
  0x77   : > { %3788 = vst [vmem:[#allocation18_spill] sm:$0xff] %v3030_v40  ;;  %v593_v9 = vrot.slane %v2944_v14, 6  ;;  %v763_v23 = vor.u32 %v762_v13, %v760_v58  ;;  %v766_v36 = vshll.u32 %v3024_v59, 16  ;;  %v679_v15 = vshll.u32 %v3018_v17, 16 }
  0x78   : > { %1347 = vrot.lane.b32.xlu0 %v2711_v16, %s2407_s4  ;;  %v3044_v16 = vld [vmem:[%s2472_s24 + $0x24] sm:$0xc]  ;;  %v758_v51 = vor.u32 %v757_v43, %v754_v39  ;;  %v684_v31 = vrot.slane %v2895_v56, 5  ;;  %v686_v45 = vrot.slane %v2890_v24, 4  ;;  %v3053_v7 = vcombine.low %v587_v2, %v590_v42 }
  0x79   : > { %3791 = vst [vmem:[#allocation21_spill] sm:$0xff] %v3044_v16  ;;  %v681_v61 = vrot.slane %v679_v15, 5  ;;  %v771_v13 = vshrl.u32 %v3041_v27, 16  ;;  %v622_v39 = vsel %vm2474_vm2, %v2099_v48, %v621_v12  ;;  %v2095_v43 = vrot.slane %v3044_v16, 10 }
  0x7a   : > { %1129 = vrot.lane.b32.xlu1 %v2998_v62, %s2402_s26  ;;  %v678_v62 = vrot.slane %v676_v10, 4  ;;  %v596_v17 = vrot.slane %v2953_v49, 6  ;;  %v625_v2 = vsel %vm2474_vm2, %v623_v3, %v624_v8  ;;  %v595_v42 = vrot.slane %v593_v9, 4  ;;  %v3079_v3 = vld [vmem:[%s2472_s24 + $0x5c] sm:$0x1] }
  0x7b   : > { %v764_v10 = vrot.slane %v763_v23, 4  ;;  %v768_v15 = vrot.slane %v766_v36, 5  ;;  %v759_v28 = vrot.slane %v758_v51, 4  ;;  %v690_v32 = vshll.u32 %v3056_v63, 16 }
  0x7c   : > { %1121 = vrot.lane.b32.xlu0 %v3030_v40, %s2402_s26  ;;  %v774_v40 = vshll.u32 %v3041_v27, 16  ;;  %v779_v12 = vrot.slane %v2930_v22, 5  ;;  %v682_v49 = vor.u32 %v681_v61, %v678_v62  ;;  %v773_v48 = vrot.slane %v771_v13, 4 }
  0x7d   : > { %v781_v16 = vrot.slane %v2927_v53, 4  ;;  %v695_v8 = vshrl.u32 %v3069_v29, 16  ;;  %v698_v23 = vshll.u32 %v3069_v29, 16  ;;  %v3083_v36 = vcombine.low %v622_v39, %v625_v2 }
  0x7e   : > { %1167 = vrot.lane.b32.xlu1 %v3032_v26, %s2401_s25  ;;  %v687_v26 = vor.u32 %v686_v45, %v684_v31  ;;  %v776_v27 = vrot.slane %v774_v40, 5  ;;  %v594_v51 = vsel %vm2474_vm2, %v2095_v43, %v593_v9  ;;  %v597_v61 = vsel %vm2474_vm2, %v595_v42, %v596_v17 }
  0x7f   : > { %v761_v62 = vsel %vm2669_vm10, %v759_v28, %v760_v58  ;;  %v692_v45 = vrot.slane %v690_v32, 5  ;;  %v683_v13 = vrot.slane %v682_v49, 4  ;;  %v782_v2 = vor.u32 %v781_v16, %v779_v12 }
  0x80   : > { %1159 = vrot.lane.b32.xlu0 %v3053_v7, %s2401_s25  ;;  %v688_v40 = vrot.slane %v687_v26, 4  ;;  %v777_v39 = vor.u32 %v776_v27, %v773_v48  ;;  %v785_v9 = vshll.u32 %v3079_v3, 16  ;;  %v697_v0 = vrot.slane %v695_v8, 4  ;;  %v3101_v26 = vld [vmem:[%s2472_s24 + $0x2c] sm:$0x1] }
  0x81   : > { %v700_v17 = vrot.slane %v698_v23, 5  ;;  %v703_v28 = vrot.slane %v2963_v60, 5  ;;  %v705_v58 = vrot.slane %v2960_v1, 4  ;;  %v3103_v32 = vcombine.low %v594_v51, %v597_v61 }
  0x82   : > { %1357 = vrot.lane.b32.xlu1 %v2733_v37, %s2407_s4  ;;  %v769_v37 = vsel %vm2669_vm10, %v764_v10, %v768_v15  ;;  %v685_v27 = vsel %vm2669_vm10, %v683_v13, %v684_v31  ;;  %v693_v16 = vsel %vm2669_vm10, %v688_v40, %v692_v45  ;;  %v778_v43 = vrot.slane %v777_v39, 4 }
  0x83   : > { %v787_v42 = vrot.slane %v785_v9, 5  ;;  %v783_v10 = vrot.slane %v782_v2, 4  ;;  %v701_v15 = vor.u32 %v700_v17, %v697_v0  ;;  %v706_v49 = vor.u32 %v705_v58, %v703_v28  ;;  %v3138_v9 = vld [vmem:[%s2472_s24 + $0x50] sm:$0x7] }
  0x84   : > { %1349 = vrot.lane.b32.xlu0 %v2751_v4, %s2407_s4  ;;  %v3105_v4 = vcombine.low %v761_v62, %v769_v37  ;;  %v709_v48 = vshll.u32 %v3101_v26, 16  ;;  %v296_v8 = vrot.slane %v2845_v21, 5  ;;  %v3119_v31 = vcombine.low %v685_v27, %v693_v16 }
  0x85   : > { %v780_v23 = vsel %vm2669_vm10, %v778_v43, %v779_v12  ;;  %v2090_v51 = vrot.slane %v2832_v5, 9  ;;  %v788_v61 = vsel %vm2669_vm10, %v783_v10, %v787_v42  ;;  %v702_v62 = vrot.slane %v701_v15, 4 }
  0x86   : > { %1371 = vrot.lane.b32.xlu1 %v2747_v30, %s2408_s5  ;;  %v707_v37 = vrot.slane %v706_v49, 4  ;;  %v711_v40 = vrot.slane %v709_v48, 5  ;;  %v298_v45 = vrot.slane %v296_v8, 4  ;;  %v299_v13 = vrot.slane %v3024_v59, 5 }
  0x87   : > { %v2086_v39 = vrot.slane %v2857_v46, 9  ;;  %v3132_v12 = vcombine.low %v780_v23, %v788_v61  ;;  %v297_v5 = vsel %vm2717_vm11, %v2090_v51, %v296_v8  ;;  %v268_v2 = vrot.slane %v2874_v54, 5  ;;  %v3163_v8 = vld [vmem:[%s2472_s24 + $0x20] sm:$0x7] }
  0x88   : > { %1363 = vrot.lane.b32.xlu0 %v2771_v33, %s2408_s5  ;;  %v704_v59 = vsel %vm2669_vm10, %v702_v62, %v703_v28  ;;  %v712_v46 = vsel %vm2669_vm10, %v707_v37, %v711_v40  ;;  %v271_v0 = vrot.slane %v3056_v63, 5  ;;  %v2091_v17 = vrot.slane %v2901_v52, 9 }
  0x89   : > { %v300_v58 = vsel %vm2717_vm11, %v298_v45, %v299_v13  ;;  %v303_v27 = vrot.slane %v2909_v44, 5  ;;  %v939_v16 = vshrl.u32 %v2975_v57, 16  ;;  %v942_v43 = vshll.u32 %v2975_v57, 16 }
  0x8a   : > { %1169 = vrot.lane.b32.xlu1 %v3083_v36, %s2401_s25  ;;  %v269_v28 = vsel %vm2717_vm11, %v2086_v39, %v268_v2  ;;  %v947_v19 = vrot.slane %v2862_v41, 6  ;;  %v948_v42 = vrot.slane %v2865_v47, 7  ;;  %v953_v63 = vshrl.u32 %v3138_v9, 16 }
  0x8b   : > { %v3160_v10 = vcombine.low %v704_v59, %v712_v46  ;;  %v270_v15 = vrot.slane %v268_v2, 4  ;;  %v941_v49 = vrot.slane %v939_v16, 6  ;;  %v944_v48 = vrot.slane %v942_v43, 7 }
  0x8c   : > { %1161 = vrot.lane.b32.xlu0 %v3103_v32, %s2401_s25  ;;  %v3167_v57 = vcombine.low %v297_v5, %v300_v58  ;;  %v949_v41 = vor.u32 %v948_v42, %v947_v19  ;;  %v955_v47 = vrot.slane %v953_v63, 6  ;;  %v956_v23 = vshll.u32 %v3138_v9, 16 }
  0x8d   : > { %v945_v51 = vor.u32 %v944_v48, %v941_v49  ;;  %v847_v61 = vshrl.u32 %v2988_v34, 16  ;;  %v850_v62 = vshll.u32 %v2988_v34, 16  ;;  %v855_v37 = vrot.slane %v2890_v24, 6 }
  0x8e   : > { %1207 = vrot.lane.b32.xlu1 %v3105_v4, %s2401_s25  ;;  %v951_v40 = vrot.slane %v949_v41, 4  ;;  %v958_v45 = vrot.slane %v956_v23, 7  ;;  %v856_v13 = vrot.slane %v2895_v56, 7  ;;  %v861_v39 = vshrl.u32 %v3163_v8, 16 }
  0x8f   : > { %v849_v5 = vrot.slane %v847_v61, 6  ;;  %v852_v2 = vrot.slane %v850_v62, 7  ;;  %v864_v59 = vshll.u32 %v3163_v8, 16  ;;  %v272_v24 = vsel %vm2717_vm11, %v270_v15, %v271_v0  ;;  %v3208_v62 = vld [vmem:[%s2472_s24 + $0x5c] sm:$0x7] }
  0x90   : > { %1199 = vrot.lane.b32.xlu0 %v3119_v31, %s2401_s25  ;;  %v959_v46 = vor.u32 %v958_v45, %v955_v47  ;;  %v857_v56 = vor.u32 %v856_v13, %v855_v37  ;;  %v863_v58 = vrot.slane %v861_v39, 6  ;;  %v305_v16 = vrot.slane %v303_v27, 4 }
  0x91   : > { %v3182_v34 = vpop.permute.xlu1 %1163  ;;  %v853_v43 = vor.u32 %v852_v2, %v849_v5  ;;  %v866_v19 = vrot.slane %v864_v59, 7  ;;  %v306_v42 = vrot.slane %v3079_v3, 5  ;;  %v275_v63 = vrot.slane %v2944_v14, 5 }
  0x92   : > { %1373 = vrot.lane.b32.xlu1 %v2777_v11, %s2408_s5  ;;  %v960_v0 = vsel %vm2799_vm14, %v951_v40, %v959_v46  ;;  %v859_v15 = vrot.slane %v857_v56, 4  ;;  %v3194_v49 = vcombine.low %v269_v28, %v272_v24  ;;  %v3196_v48 = vpop.permute.xlu0 %1155  ;;  %v2087_v3 = vrot.slane %v2933_v20, 9  ;;  %v3238_v46 = vld [vmem:[%s2472_s24 + $0x2c] sm:$0x7] }
  0x93   : > { %v867_v23 = vor.u32 %v866_v19, %v863_v58  ;;  %v962_v28 = vshrl.u32 %v3004_v35, 16  ;;  %v277_v40 = vrot.slane %v275_v63, 4  ;;  %v278_v45 = vrot.slane %v3101_v26, 5 }
  0x94   : > { %1365 = vrot.lane.b32.xlu0 %v2787_v25, %s2408_s5  ;;  %v304_v20 = vsel %vm2717_vm11, %v2091_v17, %v303_v27  ;;  %v307_v39 = vsel %vm2717_vm11, %v305_v16, %v306_v42  ;;  %v965_v5 = vshll.u32 %v3004_v35, 16  ;;  %v970_v26 = vrot.slane %v2927_v53, 6  ;;  %v3792_v35 = vld [vmem:[#allocation21_spill] sm:$0xff]  ;;  %v3793_v16 = vld [vmem:[#allocation6_spill] sm:$0xff] }
  0x95   : > { %v868_v61 = vsel %vm2799_vm14, %v859_v15, %v867_v23  ;;  %v3211_v37 = vpop.permute.xlu1 %1165  ;;  %v971_v2 = vrot.slane %v2930_v22, 7  ;;  %v976_v59 = vshrl.u32 %v3208_v62, 16  ;;  %v979_v52 = vshll.u32 %v3208_v62, 16 }
  0x96   : > { %1387 = vrot.lane.b32.xlu1 %v2677_v18, %s2409_s6  ;;  %v946_v18 = vrot.slane %v945_v51, 4  ;;  %v3233_v24 = vpop.permute.xlu0 %1157  ;;  %v276_v17 = vsel %vm2717_vm11, %v2087_v3, %v275_v63  ;;  %v967_v27 = vrot.slane %v965_v5, 7  ;;  %v3241_v58 = vcombine.low %v304_v20, %v307_v39  ;;  %v3794_v63 = vld [vmem:[#allocation2_spill] sm:$0xff]  ;;  %v3795_v39 = vld [vmem:[#allocation3_spill] sm:$0xff] }
  0x97   : > { %v972_v53 = vor.u32 %v971_v2, %v970_v26  ;;  %v978_v22 = vrot.slane %v976_v59, 6  ;;  %v873_v42 = vshll.u32 %v3792_v35, 16  ;;  %v878_v6 = vrot.slane %v2960_v1, 6 }
  0x98   : > { %1379 = vrot.lane.b32.xlu0 %v2623_v55, %s2409_s6  ;;  %v950_v55 = vsel %vm2799_vm14, %v946_v18, %v949_v41  ;;  %v854_v41 = vrot.slane %v853_v43, 4  ;;  %v964_v18 = vrot.slane %v962_v28, 6  ;;  %v981_v43 = vrot.slane %v979_v52, 7 }
  0x99   : > { %v3198_v47 = vcombine.low %v950_v55, %v960_v0  ;;  %v974_v15 = vrot.slane %v972_v53, 4  ;;  %v884_v23 = vshrl.u32 %v3238_v46, 16  ;;  %v887_v28 = vshll.u32 %v3238_v46, 16 }
  0x9a   : > { %1209 = vrot.lane.b32.xlu1 %v3132_v12, %s2401_s25  ;;  %v858_v51 = vsel %vm2799_vm14, %v854_v41, %v857_v56  ;;  %v870_v56 = vshrl.u32 %v3792_v35, 16  ;;  %v968_v55 = vor.u32 %v967_v27, %v964_v18  ;;  %v879_v41 = vrot.slane %v2963_v60, 7  ;;  %v990_v27 = vld [vmem:[%s2472_s24 + $0x48] sm:$0x8]  ;;  %v986_v35 = vld [vmem:[%s2472_s24 + $0x18] sm:$0x8] }
  0x9b   : > { %v3214_v13 = vcombine.low %v858_v51, %v868_v61  ;;  %v982_v51 = vor.u32 %v981_v43, %v978_v22  ;;  %v875_v61 = vrot.slane %v873_v42, 7  ;;  %v886_v20 = vrot.slane %v884_v23, 6 }
  0x9c   : > { %1201 = vrot.lane.b32.xlu0 %v3160_v10, %s2401_s25  ;;  %v872_v19 = vrot.slane %v870_v56, 6  ;;  %v969_v3 = vrot.slane %v968_v55, 4  ;;  %v889_v52 = vrot.slane %v887_v28, 7  ;;  %v2344_v56 = vld [vmem:[%s3730_s1 + $0x8] sm:$0xff]   ;;  %v1055_v55 = vrot.slane %v2845_v21, 7 }
  0x9d   : > { %v3250_v0 = vpop.permute.xlu1 %1117  ;;  %v983_v5 = vsel %vm2799_vm14, %v974_v15, %v982_v51  ;;  %v1058_v43 = vrot.slane %v3138_v9, 7  ;;  %v2102_v15 = vrot.slane %v986_v35, 11  ;;  %v1030_v51 = vrot.slane %v3163_v8, 7 }
  0x9e   : > { %1223 = vrot.lane.b32.xlu1 %v3167_v57, %s2403_s27  ;;  %v973_v18 = vsel %vm2799_vm14, %v969_v3, %v972_v53  ;;  %v876_v26 = vor.u32 %v875_v61, %v872_v19  ;;  %v890_v53 = vor.u32 %v889_v52, %v886_v20  ;;  %v3796_v19 = vld [vmem:[#allocation13_spill] sm:$0xff]  ;;  %v1057_v23 = vrot.slane %v1055_v55, 4  ;;  %v2345_v3 = vld [vmem:[%s3730_s1 + $0x10] sm:$0xff]   ;;  %v3800_v61 = vld [vmem:[#allocation14_spill] sm:$0xff] }
  0x9f   : > { %v3271_v2 = vcombine.low %v973_v18, %v983_v5  ;;  %v2346_v18 = vld [vmem:[%s3730_s1 + $0x18] sm:$0xff]   ;;  %v2351_v52 = vld [vmem:[%s2472_s24 + $0x34] sm:$0xf]  ;;  %vm1467_vm2 = vcmask 64512   ;;  %vm1509_vm5 = vcmask 195584   ;;  %vm1594_vm10 = vcmask 523264  }
  0xa0   : > { %1215 = vrot.lane.b32.xlu0 %v3194_v49, %s2403_s27  ;;  %v3317_v28 = vsel %vm3290_vm1, %v1057_v23, %v1058_v43  ;;  %v3803_v5 = vld [vmem:[#allocation5_spill] sm:$0xff] }
  0xa1   : > { %v3263_v60 = vpop.permute.xlu0 %1115 }
  0xa2   : > { %1389 = vrot.lane.b32.xlu1 %v2651_v38, %s2409_s6  ;;  %v279_v38 = vsel %vm2717_vm11, %v277_v40, %v278_v45  ;;  %v2343_v40 = vld [vmem:[%s3730_s1] sm:$0xff]   ;;  %v880_v45 = vor.u32 %v879_v41, %v878_v6  ;;  %v1027_v6 = vrot.slane %v2874_v54, 7  ;;  %vm1611_vm11 = vcmask 588800  }
  0xa3   : > { %v3261_v1 = vcombine.low %v276_v17, %v279_v38  ;;  %2232 = vmatprep.subr.bf16.mxu0 %v2343_v40  ;;  %v877_v17 = vrot.slane %v876_v26, 4  ;;  %2264 = vmatprep.subr.bf16.mxu1 %v2343_v40 }
  0xa4   : > { %1381 = vrot.lane.b32.xlu0 %v3793_v16, %s2409_s6  ;;  %v882_v59 = vrot.slane %v880_v45, 4  ;;  %2233 = vmatpush3.bf16.msra.mxu0 %v2343_v40  ;;  %v2106_v16 = vrot.slane %v990_v27, 11  ;;  %v3310_v50 = vsel %vm3290_vm1, %v2102_v15, %v1027_v6  ;;  %v1029_v54 = vrot.slane %v1027_v6, 4  ;;  %v3807_v6 = vld [vmem:[#allocation7_spill] sm:$0xff] }
  0xa5   : > { %2272 = vmatpush3.bf16.msra.mxu1 %v2343_v40  ;;  %v881_v22 = vsel %vm2799_vm14, %v877_v17, %v880_v45  ;;  %2234 = vmatprep.subr.bf16.mxu0 %v2344_v56  ;;  %3799 = vst [vmem:[#allocation21_spill] sm:$0xff] %v3310_v50  ;;  %v3801_v40 = vld [vmem:[#allocation4_spill] sm:$0xff]  ;;  %v1041_v27 = vrot.slane %v2351_v52, 7  ;;  %v2347_v17 = vld [vmem:[%s3730_s1 + $0x20] sm:$0xff]   ;;  %v1044_v23 = vrot.slane %v3807_v6, 7 }
  0xa6   : > { %1403 = vrot.lane.b32.xlu1 %v3794_v63, %s2410_s7  ;;  %v891_v63 = vsel %vm2799_vm14, %v882_v59, %v890_v53  ;;  %2265 = vmatprep.subr.bf16.mxu1 %v2344_v56  ;;  %v3303_v41 = vsel %vm3290_vm1, %v2106_v16, %v1055_v55  ;;  %v3327_v8 = vsel %vm3290_vm1, %v1029_v54, %v1030_v51  ;;  %v3804_v59 = vld [vmem:[#allocation9_spill] sm:$0xff]  ;;  %v3805_v53 = vld [vmem:[#allocation10_spill] sm:$0xff]  ;;  %v2348_v54 = vld [vmem:[%s3730_s1 + $0x28] sm:$0xff]   ;;  %vm1662_vm14 = vcmask 785408  }
  0xa7   : > { %v3278_v38 = vpop.permute.xlu1 %1125  ;;  %v3299_v9 = vcombine.low %v881_v22, %v891_v63  ;;  %3802 = vst [vmem:[#allocation6_spill] sm:$0xff] %v3327_v8  ;;  %v3806_v22 = vld [vmem:[#allocation16_spill] sm:$0xff]  ;;  %v2352_v16 = vld [vmem:[%s2472_s24 + $0x4] sm:$0xf]  ;;  %v1043_v15 = vrot.slane %v1041_v27, 4 }
  0xa8   : > { %1395 = vrot.lane.b32.xlu0 %v3795_v39, %s2410_s7  ;;  %2235 = vmatpush3.bf16.msra.mxu0 %v2344_v56  ;;  %v1013_v55 = vrot.slane %v2352_v16, 7  ;;  %v3810_v52 = vld [vmem:[#allocation8_spill] sm:$0xff] }
  0xa9   : > { %2273 = vmatpush3.bf16.msra.mxu1 %v2344_v56  ;;  %2236 = vmatprep.subr.bf16.mxu0 %v2345_v3  ;;  %v988_v56 = vld [vmem:[%s2472_s24 + $0x30] sm:$0x8] }
  0xaa   : > { %1225 = vrot.lane.b32.xlu1 %v3241_v58, %s2403_s27  ;;  %2266 = vmatprep.subr.bf16.mxu1 %v2345_v3  ;;  %v2104_v63 = vrot.slane %v988_v56, 11  ;;  %v1016_v56 = vrot.slane %v3810_v52, 7  ;;  %v2349_v6 = vld [vmem:[%s3730_s1 + $0x30] sm:$0xff]   ;;  %v2353_v52 = vld [vmem:[%s2472_s24 + $0x40] sm:$0xf] }
  0xab   : > { %v1048_v20 = vrot.slane %v2353_v52, 7  ;;  %v2354_v52 = vld [vmem:[%s2472_s24 + $0x10] sm:$0xf] }
  0xac   : > { %1217 = vrot.lane.b32.xlu0 %v3261_v1, %s2403_s27  ;;  %v3297_v21 = vpop.permute.xlu0 %1123  ;;  %2237 = vmatpush3.bf16.msra.mxu0 %v2345_v3  ;;  %v1042_v16 = vsel %vm3290_vm1, %v2104_v63, %v1041_v27 }
  0xad   : > { %2274 = vmatpush3.bf16.msra.mxu1 %v2345_v3  ;;  %2238 = vmatprep.subr.bf16.mxu0 %v2346_v18  ;;  %v984_v3 = vld [vmem:[%s2472_s24] sm:$0x8]  ;;  %v1050_v50 = vrot.slane %v1048_v20, 4 }
  0xae   : > { %1239 = vrot.lane.b32.xlu1 %v3796_v19, %s2404_s28  ;;  %2267 = vmatprep.subr.bf16.mxu1 %v2346_v18 }
  0xaf   : > { %v3321_v45 = vpop.permute.xlu1 %1203 }
  0xb0   : > { %1231 = vrot.lane.b32.xlu0 %v3800_v61, %s2404_s28  ;;  %2239 = vmatpush3.bf16.msra.mxu0 %v2346_v18 }
  0xb1   : > { %2275 = vmatpush3.bf16.msra.mxu1 %v2346_v18  ;;  %2240 = vmatprep.subr.bf16.mxu0 %v2347_v17  ;;  %v3809_v18 = vld [vmem:[#allocation19_spill] sm:$0xff] }
  0xb2   : > { %1405 = vrot.lane.b32.xlu1 %v3801_v40, %s2410_s7  ;;  %v3336_v26 = vpop.permute.xlu0 %1195  ;;  %2268 = vmatprep.subr.bf16.mxu1 %v2347_v17  ;;  %v3808_v40 = vld [vmem:[#allocation18_spill] sm:$0xff] }
  0xb4   : > { %1397 = vrot.lane.b32.xlu0 %v3803_v5, %s2410_s7  ;;  %2241 = vmatpush3.bf16.msra.mxu0 %v2347_v17  ;;  %v2100_v5 = vrot.slane %v984_v3, 11  ;;  %v3811_v3 = vld [vmem:[#allocation11_spill] sm:$0xff] }
  0xb5   : > { %2276 = vmatpush3.bf16.msra.mxu1 %v2347_v17  ;;  %2242 = vmatprep.subr.bf16.mxu0 %v2348_v54  ;;  %v1045_v17 = vsel %vm3290_vm1, %v1043_v15, %v1044_v23  ;;  %v1485_v23 = vsel %vm1467_vm2, %v2777_v11, %v3278_v38  ;;  %v985_v38 = vld [vmem:[%s2472_s24 + $0xc] sm:$0x8] }
  0xb6   : > { %1419 = vrot.lane.b32.xlu1 %v3804_v59, %s2411_s23  ;;  %v1015_v59 = vrot.slane %v1013_v55, 4  ;;  %2269 = vmatprep.subr.bf16.mxu1 %v2348_v54  ;;  %v2160_v27 = vcombine.low %v1042_v16, %v1045_v17  ;;  %v1014_v63 = vsel %vm3290_vm1, %v2100_v5, %v1013_v55  ;;  %v2350_v16 = vld [vmem:[%s3730_s1 + $0x38] ss:$0 sps:$4 sm:$0xff]   ;;  %v989_v55 = vld [vmem:[%s2472_s24 + $0x3c] sm:$0x8]  ;;  %v3812_v5 = vld [vmem:[#allocation12_spill] sm:$0xff] }
  0xb7   : > { %v3344_v35 = vpop.permute.xlu1 %1205  ;;  %v2105_v8 = vrot.slane %v989_v55, 11 }
  0xb8   : > { %1411 = vrot.lane.b32.xlu0 %v3805_v53, %s2411_s23  ;;  %2243 = vmatpush3.bf16.msra.mxu0 %v2348_v54  ;;  %v1017_v15 = vsel %vm3290_vm1, %v1015_v59, %v1016_v56  ;;  %v1799_v59 = vsel %vm1797_vm4, %v2350_v16, 0  ;;  %v1473_v56 = vsel %vm1467_vm2, %v2787_v25, %v3250_v0  ;;  %v2355_v25 = vld [vmem:[%s2472_s24 + $0x44] sm:$0x7] }
  0xb9   : > { %2277 = vmatpush3.bf16.msra.mxu1 %v2348_v54  ;;  %2244 = vmatprep.subr.bf16.mxu0 %v2349_v6  ;;  %v2156_v11 = vcombine.low %v1014_v63, %v1017_v15  ;;  %v1020_v63 = vrot.slane %v2354_v52, 7  ;;  %v1051_v0 = vrot.slane %v2355_v25, 7 }
  0xba   : > { %1241 = vrot.lane.b32.xlu1 %v3806_v22, %s2404_s28  ;;  %v3352_v43 = vpop.permute.xlu0 %1197  ;;  %2270 = vmatprep.subr.bf16.mxu1 %v2349_v6 }
  0xbb   : > { %v3359_v51 = vpop.permute.xlu1 %1219 }
  0xbc   : > { %1233 = vrot.lane.b32.xlu0 %v3808_v40, %s2404_s28  ;;  %2245 = vmatpush3.bf16.msra.mxu0 %v2349_v6 }
  0xbd   : > { %2278 = vmatpush3.bf16.msra.mxu1 %v2349_v6  ;;  %2280 = vmatprep.subr.msk.bf16.mxu0 %vm1797_vm4, %v2350_v16  ;;  %v1504_v6 = vsel %vm1492_vm3, %v1485_v23, %v3211_v37  ;;  %v1496_v23 = vsel %vm1492_vm3, %v1473_v56, %v3233_v24 }
  0xbe   : > { %1255 = vrot.lane.b32.xlu1 %v3809_v18, %s2405_s29  ;;  %v3366_v53 = vpop.permute.xlu0 %1211  ;;  %2281 = vmatprep.subr.msk.bf16.mxu1 %vm1797_vm4, %v2350_v16  ;;  %v1521_v15 = vsel %vm1509_vm5, %v1504_v6, %v3344_v35  ;;  %v1513_v55 = vsel %vm1509_vm5, %v1496_v23, %v3352_v43 }
  0xbf   : > { %v1222_v39 = vpop.permute.xlu1 %1221 }
  0xc0   : > { %1247 = vrot.lane.b32.xlu0 %v3053_v7, %s2405_s29  ;;  %2247 = vmatpush3.bf16.msra.mxu0 %v1799_v59 }
  0xc1   : > { %2279 = vmatpush3.bf16.msra.mxu1 %v1799_v59  ;;  %v1049_v59 = vsel %vm3290_vm1, %v2105_v8, %v1048_v20 }
  0xc2   : > { %1421 = vrot.lane.b32.xlu1 %v3811_v3, %s2411_s23  ;;  %v1214_v54 = vpop.permute.xlu0 %1213  ;;  %v1482_v3 = vsel %vm1467_vm2, %v2747_v30, %v3297_v21  ;;  %v1538_v30 = vsel %vm1526_vm6, %v1521_v15, %v1222_v39  ;;  %v2101_v21 = vrot.slane %v985_v38, 11 }
  0xc3   : > { %v1236_v17 = vpop.permute.xlu1 %1235  ;;  %v1502_v35 = vsel %vm1492_vm3, %v1482_v3, %v3182_v34  ;;  %v1530_v24 = vsel %vm1526_vm6, %v1513_v55, %v1214_v54  ;;  %v2358_v55 = vld [vmem:[%s2472_s24 + $0x1c] sm:$0xf] }
  0xc4   : > { %1413 = vrot.lane.b32.xlu0 %v3812_v5, %s2411_s23  ;;  %v1519_v39 = vsel %vm1509_vm5, %v1502_v35, %v3321_v45  ;;  %v1052_v45 = vsel %vm3290_vm1, %v1050_v50, %v1051_v0  ;;  %v1021_v50 = vsel %vm3290_vm1, %v2101_v21, %v1020_v63  ;;  %v3813_v21 = vld [vmem:[#allocation15_spill] sm:$0xff] }
  0xc5   : > { %v1536_v34 = vsel %vm1526_vm6, %v1519_v39, %v3359_v51 }
  0xc6   : > { %1459 = vrot.lane.b32.xlu1 %v2160_v27, %s2412_s19  ;;  %v1228_v5 = vpop.permute.xlu0 %1227  ;;  %v1470_v27 = vsel %vm1467_vm2, %v2771_v33, %v3263_v60  ;;  %v1022_v33 = vrot.slane %v1020_v63, 4  ;;  %v2356_v60 = vld [vmem:[%s2472_s24 + $0x14] sm:$0x7]  ;;  %v1553_v56 = vsel %vm1543_vm7, %v1536_v34, %v1236_v17 }
  0xc7   : > { %v1238_v37 = vpop.permute.xlu1 %1237  ;;  %v1023_v38 = vrot.slane %v2356_v60, 7  ;;  %v1494_v43 = vsel %vm1492_vm3, %v1470_v27, %v3196_v48  ;;  %v2161_v48 = vcombine.low %v1049_v59, %v1052_v45 }
  0xc8   : > { %1451 = vrot.lane.b32.xlu0 %v2156_v11, %s2412_s19  ;;  %v1555_v16 = vsel %vm1543_vm7, %v1538_v30, %v1238_v37  ;;  %v1511_v51 = vsel %vm1509_vm5, %v1494_v43, %v3336_v26  ;;  %v2357_v37 = vld [vmem:[%s2472_s24 + $0x4c] sm:$0xf]  ;;  %v2151_v43 = vcombine.low %v3069_v29, %v2944_v14 }
  0xc9   : > { %v1528_v20 = vsel %vm1526_vm6, %v1511_v51, %v3366_v53  ;;  %v1024_v8 = vsel %vm3290_vm1, %v1022_v33, %v1023_v38  ;;  %v2154_v27 = vcombine.low %v3813_v21, %v2357_v37  ;;  %v3814_v33 = vld [vmem:[#allocation17_spill] sm:$0xff]  ;;  %v3815_v38 = vld [vmem:[#allocation20_spill] sm:$0xff] }
  0xca   : > { %1257 = vrot.lane.b32.xlu1 %v3083_v36, %s2405_s29  ;;  %v1230_v11 = vpop.permute.xlu0 %1229  ;;  %v1545_v26 = vsel %vm1543_vm7, %v1528_v20, %v1228_v5  ;;  %v2157_v25 = vcombine.low %v1021_v50, %v1024_v8  ;;  %v2150_v60 = vcombine.low %v3814_v33, %v2358_v55  ;;  %v2155_v34 = vcombine.low %v3815_v38, %v2909_v44 }
  0xcb   : > { %v1547_v3 = vsel %vm1543_vm7, %v1530_v24, %v1230_v11  ;;  %v1252_v6 = vpop.permute.xlu1 %1251 }
  0xcc   : > { %1249 = vrot.lane.b32.xlu0 %v3103_v32, %s2405_s29  ;;  %v1570_v54 = vsel %vm1560_vm8, %v1553_v56, %v1252_v6 }
  0xce   : > { %1295 = vrot.lane.b32.xlu1 %v3198_v47, %s2406_s30  ;;  %v1244_v17 = vpop.permute.xlu0 %1243 }
  0xcf   : > { %v1562_v52 = vsel %vm1560_vm8, %v1545_v26, %v1244_v17  ;;  %v1254_v15 = vpop.permute.xlu1 %1253 }
  0xd0   : > { %1287 = vrot.lane.b32.xlu0 %v3214_v13, %s2406_s30  ;;  %v1572_v53 = vsel %vm1560_vm8, %v1555_v16, %v1254_v15 }
  0xd2   : > { %1461 = vrot.lane.b32.xlu1 %v2161_v48, %s2412_s19  ;;  %v1246_v63 = vpop.permute.xlu0 %1245 }
  0xd3   : > { %v1564_v0 = vsel %vm1560_vm8, %v1547_v3, %v1246_v63  ;;  %v1292_v30 = vpop.permute.xlu1 %1291 }
  0xd4   : > { %1453 = vrot.lane.b32.xlu0 %v2157_v25, %s2412_s19  ;;  %v1587_v5 = vsel %vm1577_vm9, %v1570_v54, %v1292_v30  ;;  %v2359_v30 = vld [vmem:[%s2472_s24 + $0x58] sm:$0xf] }
  0xd6   : > { %1297 = vrot.lane.b32.xlu1 %v3271_v2, %s2406_s30  ;;  %v1284_v35 = vpop.permute.xlu0 %1283 }
  0xd7   : > { %v1579_v23 = vsel %vm1577_vm9, %v1562_v52, %v1284_v35  ;;  %v1294_v16 = vpop.permute.xlu1 %1293 }
  0xd8   : > { %1289 = vrot.lane.b32.xlu0 %v3299_v9, %s2406_s30  ;;  %v1589_v39 = vsel %vm1577_vm9, %v1572_v53, %v1294_v16  ;;  %v1065_v16 = vrot.slane %v3208_v62, 7 }
  0xda   : > { %1343 = vrot.lane.b32.xlu1 %v2154_v27, %s2406_s30  ;;  %v1286_v24 = vpop.permute.xlu0 %1285 }
  0xdb   : > { %v1581_v11 = vsel %vm1577_vm9, %v1564_v0, %v1286_v24 }
  0xdc   : > { %v1340_v59 = vpop.permute.xlu1 %1339  ;;  %1335 = vrot.lane.b32.xlu0 %v2150_v60, %s2406_s30  ;;  %v1037_v60 = vrot.slane %v3238_v46, 7 }
  0xdd   : > { %v1604_v45 = vsel %vm1594_vm10, %v1587_v5, %v1340_v59  ;;  %v1062_v5 = vrot.slane %v2359_v30, 7 }
  0xde   : > { %1345 = vrot.lane.b32.xlu1 %v2155_v34, %s2406_s30  ;;  %v1332_v56 = vpop.permute.xlu0 %1331 }
  0xdf   : > { %v1596_v3 = vsel %vm1594_vm10, %v1579_v23, %v1332_v56  ;;  %v1064_v23 = vrot.slane %v1062_v5, 4  ;;  %v3818_v56 = vld [vmem:[#allocation6_spill] sm:$0xff] }
  0xe0   : > { %v1128_v6 = vpop.permute.xlu1 %1127  ;;  %1337 = vrot.lane.b32.xlu0 %v2151_v43, %s2406_s30  ;;  %v3817_v43 = vld [vmem:[#allocation21_spill] sm:$0xff]  ;;  %s2079_s30 = sshll.u32 %s3831_s13, 5 }
  0xe1   : > { %v1066_v34 = vsel %vm3290_vm1, %v1064_v23, %v1065_v16 }
  0xe2   : > { %1359 = vrot.lane.b32.xlu1 %v3105_v4, %s2407_s4  ;;  %v1120_v44 = vpop.permute.xlu0 %1119 }
  0xe3   : > { %v1476_v17 = vsel %vm1467_vm2, %v3194_v49, %v1120_v44 }
  0xe4   : > { %v1342_v51 = vpop.permute.xlu1 %1341  ;;  %1351 = vrot.lane.b32.xlu0 %v3119_v31, %s2407_s4 }
  0xe5   : > { %v1606_v54 = vsel %vm1594_vm10, %v1589_v39, %v1342_v51  ;;  %v987_v39 = vld [vmem:[%s2472_s24 + $0x24] sm:$0x8] }
  0xe6   : > { %1361 = vrot.lane.b32.xlu1 %v3132_v12, %s2407_s4  ;;  %v1334_v29 = vpop.permute.xlu0 %1333 }
  0xe7   : > { %v1598_v14 = vsel %vm1594_vm10, %v1581_v11, %v1334_v29 }
  0xe8   : > { %v1356_v20 = vpop.permute.xlu1 %1355  ;;  %1353 = vrot.lane.b32.xlu0 %v3160_v10, %s2407_s4  ;;  %v1488_v10 = vsel %vm1467_vm2, %v3167_v57, %v1128_v6 }
  0xe9   : > { %v3489_v4 = vsel %vm1611_vm11, %v1604_v45, %v1356_v20 }
  0xea   : > { %1375 = vrot.lane.b32.xlu1 %v3167_v57, %s2408_s5  ;;  %v1348_v31 = vpop.permute.xlu0 %1347 }
  0xeb   : > { %v3494_v48 = vsel %vm1611_vm11, %v1596_v3, %v1348_v31  ;;  %v3819_v3 = vcombine.low %v3817_v43, %v3818_v56 }
  0xec   : > { %v1130_v50 = vpop.permute.xlu1 %1129  ;;  %1367 = vrot.lane.b32.xlu0 %v3194_v49, %s2408_s5 }
  0xed   : > { %v1491_v63 = vsel %vm1467_vm2, %v3241_v58, %v1130_v50 }
  0xee   : > { %1377 = vrot.lane.b32.xlu1 %v3241_v58, %s2408_s5  ;;  %v1122_v12 = vpop.permute.xlu0 %1121  ;;  %v991_v58 = vld [vmem:[%s2472_s24 + $0x54] sm:$0x8] }
  0xf0   : > { %v1168_v8 = vpop.permute.xlu1 %1167  ;;  %1369 = vrot.lane.b32.xlu0 %v3261_v1, %s2408_s5 }
  0xf1   : > { %v1506_v26 = vsel %vm1492_vm3, %v1488_v10, %v1168_v8 }
  0xf2   : > { %1391 = vrot.lane.b32.xlu1 %v3796_v19, %s2409_s6  ;;  %v1160_v52 = vpop.permute.xlu0 %1159 }
  0xf3   : > { %v1498_v15 = vsel %vm1492_vm3, %v1476_v17, %v1160_v52 }
  0xf4   : > { %v1358_v53 = vpop.permute.xlu1 %1357  ;;  %1383 = vrot.lane.b32.xlu0 %v3800_v61, %s2409_s6 }
  0xf5   : > { %v3513_v57 = vsel %vm1611_vm11, %v1606_v54, %v1358_v53 }
  0xf6   : > { %1393 = vrot.lane.b32.xlu1 %v3806_v22, %s2409_s6  ;;  %v1350_v25 = vpop.permute.xlu0 %1349 }
  0xf7   : > { %v3518_v19 = vsel %vm1611_vm11, %v1598_v14, %v1350_v25 }
  0xf8   : > { %v3520_v49 = vpop.permute.xlu1 %1371  ;;  %1385 = vrot.lane.b32.xlu0 %v3808_v40, %s2409_s6  ;;  %v1479_v40 = vsel %vm1467_vm2, %v3261_v1, %v1122_v12  ;;  %v2107_v1 = vrot.slane %v991_v58, 11  ;;  %vm1962_vm2 = vcmask 191488  }
  0xfa   : > { %1407 = vrot.lane.b32.xlu1 %v3809_v18, %s2410_s7  ;;  %v3526_v61 = vpop.permute.xlu0 %1363  ;;  %v1063_v62 = vsel %vm3290_vm1, %v2107_v1, %v1062_v5 }
  0xfb   : > { %v1630_v23 = vsel %vm1628_vm12, %v3494_v48, %v3526_v61 }
  0xfc   : > { %v1170_v22 = vpop.permute.xlu1 %1169  ;;  %1399 = vrot.lane.b32.xlu0 %v3053_v7, %s2410_s7 }
  0xfd   : > { %v1508_v0 = vsel %vm1492_vm3, %v1491_v63, %v1170_v22 }
  0xfe   : > { %1409 = vrot.lane.b32.xlu1 %v3083_v36, %s2410_s7  ;;  %v1162_v18 = vpop.permute.xlu0 %1161  ;;  %v2360_v36 = vld [vmem:[%s2472_s24 + $0x28] sm:$0xf]  ;;  %s2077_s24 = sshll.u32 %s2383_s12, 3 }
  0xff   : > { %v1500_v37 = vsel %vm1492_vm3, %v1479_v40, %v1162_v18  ;;  %v1034_v27 = vrot.slane %v2360_v36, 7  ;;  %v1638_v36 = vsel %vm1628_vm12, %v3489_v4, %v3520_v49  ;;  %p188_p6 = scmp.lt.s32.totalorder %s2077_s24, 15 }
 0x100   : > { %v1208_v21 = vpop.permute.xlu1 %1207  ;;  %1401 = vrot.lane.b32.xlu0 %v3103_v32, %s2410_s7  ;;  %v2103_v32 = vrot.slane %v987_v39, 11 }
 0x101   : > { %v1523_v7 = vsel %vm1509_vm5, %v1506_v26, %v1208_v21  ;;  %s3833_s24 = smov (!%p188_p6, %s2077_s24), 15 }
 0x102   : > { %1423 = vrot.lane.b32.xlu1 %v3198_v47, %s2411_s23  ;;  %v1200_v35 = vpop.permute.xlu0 %1199  ;;  %v1036_v47 = vrot.slane %v1034_v27, 4  ;;  %v1035_v46 = vsel %vm3290_vm1, %v2103_v32, %v1034_v27  ;;  %s2078_s29 = sshll.u32 %s3833_s24, 1 }
 0x103   : > { %v1515_v55 = vsel %vm1509_vm5, %v1498_v15, %v1200_v35  ;;  %s192_s4 = sadd.s32 %s2079_s30, %s2078_s29 }
 0x104   : > { %v3549_v33 = vpop.permute.xlu1 %1373  ;;  %1415 = vrot.lane.b32.xlu0 %v3214_v13, %s2411_s23  ;;  %v3816_v13 = vcombine.low %v3303_v41, %v3317_v28  ;;  %v1038_v11 = vsel %vm3290_vm1, %v1036_v47, %v1037_v60  ;;  %vm1780_vm1 = vcmask 982016   ;;  %s2080_s7 = sshll.u32 %s192_s4, 2 }
 0x105   : > { %v2159_v6 = vcombine.low %v1035_v46, %v1038_v11  ;;  %s3680_s22 = scalar_lea.vmem %s3732_s3, %s2080_s7 }
 0x106   : > { %1425 = vrot.lane.b32.xlu1 %v3271_v2, %s2411_s23  ;;  %v3556_v38 = vpop.permute.xlu0 %1365  ;;  %v2163_v2 = vcombine.low %v1063_v62, %v1066_v34  ;;  %v1640_v34 = vsel %vm1628_vm12, %v3513_v57, %v3549_v33 }
 0x107   : > { %v1632_v46 = vsel %vm1628_vm12, %v3518_v19, %v3556_v38 }
 0x108   : > { %v1388_v24 = vpop.permute.xlu1 %1387  ;;  %1417 = vrot.lane.b32.xlu0 %v3299_v9, %s2411_s23 }
 0x109   : > { %v1655_v27 = vsel %vm1645_vm13, %v1638_v36, %v1388_v24 }
 0x10a   : > { %1463 = vrot.lane.b32.xlu1 %v3816_v13, %s2412_s19  ;;  %v1380_v59 = vpop.permute.xlu0 %1379 }
 0x10c   : > { %v1210_v45 = vpop.permute.xlu1 %1209  ;;  %1455 = vrot.lane.b32.xlu0 %v3819_v3, %s2412_s19 }
 0x10d   : > { %v1525_v9 = vsel %vm1509_vm5, %v1508_v0, %v1210_v45 }
 0x10e   : > { %1465 = vrot.lane.b32.xlu1 %v2163_v2, %s2412_s19  ;;  %v1202_v41 = vpop.permute.xlu0 %1201 }
 0x10f   : > { %v1517_v28 = vsel %vm1509_vm5, %v1500_v37, %v1202_v41 }
 0x110   : > { %v1224_v44 = vpop.permute.xlu1 %1223  ;;  %1457 = vrot.lane.b32.xlu0 %v2159_v6, %s2412_s19 }
 0x111   : > { %v1540_v42 = vsel %vm1526_vm6, %v1523_v7, %v1224_v44 }
 0x112   : > { %v1216_v51 = vpop.permute.xlu0 %1215 }
 0x113   : > { %v1532_v54 = vsel %vm1526_vm6, %v1515_v55, %v1216_v51  ;;  %v1647_v55 = vsel %vm1645_vm13, %v1630_v23, %v1380_v59 }
 0x114   : > { %v1390_v29 = vpop.permute.xlu1 %1389 }
 0x115   : > { %v1657_v24 = vsel %vm1645_vm13, %v1640_v34, %v1390_v29 }
 0x116   : > { %v1382_v14 = vpop.permute.xlu0 %1381 }
 0x117   : > { %v1649_v45 = vsel %vm1645_vm13, %v1632_v46, %v1382_v14 }
 0x118   : > { %v1404_v20 = vpop.permute.xlu1 %1403 }
 0x119   : > { %v1672_v35 = vsel %vm1662_vm14, %v1655_v27, %v1404_v20 }
 0x11a   : > { %v1396_v31 = vpop.permute.xlu0 %1395 }
 0x11b   : > { %v1664_v4 = vsel %vm1662_vm14, %v1647_v55, %v1396_v31 }
 0x11c   : > { %v1226_v50 = vpop.permute.xlu1 %1225 }
 0x11d   : > { %v1542_v12 = vsel %vm1526_vm6, %v1525_v9, %v1226_v50 }
 0x11e   : > { %v1218_v10 = vpop.permute.xlu0 %1217 }
 0x11f   : > { %v1534_v8 = vsel %vm1526_vm6, %v1517_v28, %v1218_v10 }
 0x120   : > { %v1240_v26 = vpop.permute.xlu1 %1239 }
 0x121   : > { %v1557_v17 = vsel %vm1543_vm7, %v1540_v42, %v1240_v26 }
 0x122   : > { %v1232_v52 = vpop.permute.xlu0 %1231 }
 0x123   : > { %v1549_v15 = vsel %vm1543_vm7, %v1532_v54, %v1232_v52 }
 0x124   : > { %v1406_v53 = vpop.permute.xlu1 %1405 }
 0x125   : > { %v1674_v13 = vsel %vm1662_vm14, %v1657_v24, %v1406_v53 }
 0x126   : > { %v1398_v25 = vpop.permute.xlu0 %1397 }
 0x127   : > { %v1666_v56 = vsel %vm1662_vm14, %v1649_v45, %v1398_v25 }
 0x128   : > { %v1420_v63 = vpop.permute.xlu1 %1419 }
 0x129   : > { %v1689_v16 = vsel %vm1679_vm15, %v1672_v35, %v1420_v63 }
 0x12a   : > { %v1412_v22 = vpop.permute.xlu0 %1411 }
 0x12b   : > { %v1681_v49 = vsel %vm1679_vm15, %v1664_v4, %v1412_v22 }
 0x12c   : > { %v1242_v0 = vpop.permute.xlu1 %1241 }
 0x12d   : > { %v3587_v40 = vsel %vm1543_vm7, %v1542_v12, %v1242_v0 }
 0x12e   : > { %v1234_v18 = vpop.permute.xlu0 %1233 }
 0x12f   : > { %v3590_v30 = vsel %vm1543_vm7, %v1534_v8, %v1234_v18 }
 0x130   : > { %v1256_v5 = vpop.permute.xlu1 %1255 }
 0x131   : > { %v3593_v37 = vsel %vm1560_vm8, %v1557_v17, %v1256_v5 }
 0x132   : > { %v1248_v21 = vpop.permute.xlu0 %1247 }
 0x133   : > { %v3596_v58 = vsel %vm1560_vm8, %v1549_v15, %v1248_v21 }
 0x134   : > { %v1422_v7 = vpop.permute.xlu1 %1421 }
 0x135   : > { %v1691_v11 = vsel %vm1679_vm15, %v1674_v13, %v1422_v7 }
 0x136   : > { %v1414_v1 = vpop.permute.xlu0 %1413 }
 0x137   : > { %v1683_v57 = vsel %vm1679_vm15, %v1666_v56, %v1414_v1 }
 0x138   : > { %v1460_v39 = vpop.permute.xlu1 %1459 }
 0x139   : > { %v1706_v32 = vsel %vm1696_vm0, %v1689_v16, %v1460_v39 }
 0x13a   : > { %2256 = vmatprep.mubr.msk.bf16.mxu1 %vm1780_vm1, %v1706_v32  ;;  %v1452_v47 = vpop.permute.xlu0 %1451 }
 0x13b   : > { %v1698_v60 = vsel %vm1696_vm0, %v1681_v49, %v1452_v47 }
 0x13c   : > { %v1258_v62 = vpop.permute.xlu1 %1257  ;;  %2248 = vmatprep.mubr.msk.bf16.mxu0 %vm1780_vm1, %v1698_v60 }
 0x13d   : > { %v1576_v5 = vsel %vm1560_vm8, %v3587_v40, %v1258_v62 }
 0x13e   : > { %v1250_v48 = vpop.permute.xlu0 %1249 }
 0x13f   : > { %v1568_v40 = vsel %vm1560_vm8, %v3590_v30, %v1250_v48 }
 0x140   : > { %v1296_v61 = vpop.permute.xlu1 %1295 }
 0x141   : > { %v1591_v25 = vsel %vm1577_vm9, %v3593_v37, %v1296_v61 }
 0x142   : > { %v1288_v2 = vpop.permute.xlu0 %1287 }
 0x143   : > { %v1583_v21 = vsel %vm1577_vm9, %v3596_v58, %v1288_v2 }
 0x144   : > { %v1462_v59 = vpop.permute.xlu1 %1461 }
 0x145   : > { %v1708_v43 = vsel %vm1696_vm0, %v1691_v11, %v1462_v59 }
 0x146   : > { %2257 = vmatmul.mubr.msk.bf16.vlgmr.msra.gmra.mrb[0].mxu1 %vm1780_vm1, %v1708_v43  ;;  %v1454_v33 = vpop.permute.xlu0 %1453 }
 0x147   : > { %v1700_v3 = vsel %vm1696_vm0, %v1683_v57, %v1454_v33 }
 0x148   : > { %v1298_v9 = vpop.permute.xlu1 %1297  ;;  %2249 = vmatmul.mubr.msk.bf16.vlgmr.msra.gmra.mrb[0].mxu0 %vm1780_vm1, %v1700_v3 }
 0x149   : > { %v1593_v36 = vsel %vm1577_vm9, %v1576_v5, %v1298_v9  ;;  %v2164_v9 = vld [vmem:[%s3731_s2] ss:$0 sm:$0xff] }
 0x14a   : > { %v1290_v19 = vpop.permute.xlu0 %1289 }
 0x14b   : > { %v1585_v4 = vsel %vm1577_vm9, %v1568_v40, %v1290_v19 }
 0x14c   : > { %v1344_v38 = vpop.permute.xlu1 %1343 }
 0x14d   : > { %v1608_v63 = vsel %vm1594_vm10, %v1591_v25, %v1344_v38 }
 0x14e   : > { %v1336_v6 = vpop.permute.xlu0 %1335 }
 0x14f   : > { %v1600_v27 = vsel %vm1594_vm10, %v1583_v21, %v1336_v6 }
 0x150   : > { %v1346_v41 = vpop.permute.xlu1 %1345 }
 0x151   : > { %v1610_v35 = vsel %vm1594_vm10, %v1593_v36, %v1346_v41 }
 0x152   : > { %v1338_v28 = vpop.permute.xlu0 %1337 }
 0x153   : > { %v1602_v62 = vsel %vm1594_vm10, %v1585_v4, %v1338_v28 }
 0x154   : > { %v1360_v44 = vpop.permute.xlu1 %1359 }
 0x155   : > { %v1625_v0 = vsel %vm1611_vm11, %v1608_v63, %v1360_v44 }
 0x156   : > { %v1352_v42 = vpop.permute.xlu0 %1351 }
 0x157   : > { %v1617_v1 = vsel %vm1611_vm11, %v1600_v27, %v1352_v42 }
 0x158   : > { %v1362_v51 = vpop.permute.xlu1 %1361 }
 0x159   : > { %v1627_v58 = vsel %vm1611_vm11, %v1610_v35, %v1362_v51 }
 0x15a   : > { %v1354_v54 = vpop.permute.xlu0 %1353 }
 0x15b   : > { %v1619_v48 = vsel %vm1611_vm11, %v1602_v62, %v1354_v54 }
 0x15c   : > { %v1376_v29 = vpop.permute.xlu1 %1375 }
 0x15d   : > { %v1642_v7 = vsel %vm1628_vm12, %v1625_v0, %v1376_v29 }
 0x15e   : > { %v1368_v14 = vpop.permute.xlu0 %1367 }
 0x15f   : > { %v1634_v39 = vsel %vm1628_vm12, %v1617_v1, %v1368_v14 }
 0x160   : > { %v1378_v20 = vpop.permute.xlu1 %1377 }
 0x161   : > { %v1644_v49 = vsel %vm1628_vm12, %v1627_v58, %v1378_v20 }
 0x162   : > { %v1370_v31 = vpop.permute.xlu0 %1369 }
 0x163   : > { %v1636_v2 = vsel %vm1628_vm12, %v1619_v48, %v1370_v31 }
 0x164   : > { %v1392_v50 = vpop.permute.xlu1 %1391 }
 0x165   : > { %v1659_v37 = vsel %vm1645_vm13, %v1642_v7, %v1392_v50 }
 0x166   : > { %v1384_v12 = vpop.permute.xlu0 %1383 }
 0x167   : > { %v1651_v47 = vsel %vm1645_vm13, %v1634_v39, %v1384_v12 }
 0x168   : > { %v1394_v10 = vpop.permute.xlu1 %1393 }
 0x169   : > { %v1661_v61 = vsel %vm1645_vm13, %v1644_v49, %v1394_v10 }
 0x16a   : > { %v1386_v8 = vpop.permute.xlu0 %1385 }
 0x16b   : > { %v1653_v45 = vsel %vm1645_vm13, %v1636_v2, %v1386_v8 }
 0x16c   : > { %v1408_v26 = vpop.permute.xlu1 %1407 }
 0x16d   : > { %v1676_v23 = vsel %vm1662_vm14, %v1659_v37, %v1408_v26 }
 0x16e   : > { %v1400_v17 = vpop.permute.xlu0 %1399 }
 0x16f   : > { %v1668_v30 = vsel %vm1662_vm14, %v1651_v47, %v1400_v17 }
 0x170   : > { %v1410_v52 = vpop.permute.xlu1 %1409 }
 0x171   : > { %v1678_v34 = vsel %vm1662_vm14, %v1661_v61, %v1410_v52 }
 0x172   : > { %v1402_v15 = vpop.permute.xlu0 %1401 }
 0x173   : > { %v1670_v56 = vsel %vm1662_vm14, %v1653_v45, %v1402_v15 }
 0x174   : > { %v1424_v53 = vpop.permute.xlu1 %1423 }
 0x175   : > { %v1693_v55 = vsel %vm1679_vm15, %v1676_v23, %v1424_v53 }
 0x176   : > { %v1416_v22 = vpop.permute.xlu0 %1415 }
 0x177   : > { %v1685_v24 = vsel %vm1679_vm15, %v1668_v30, %v1416_v22 }
 0x178   : > { %v1426_v18 = vpop.permute.xlu1 %1425 }
 0x179   : > { %v1695_v46 = vsel %vm1679_vm15, %v1678_v34, %v1426_v18 }
 0x17a   : > { %v1418_v16 = vpop.permute.xlu0 %1417 }
 0x17b   : > { %v1687_v57 = vsel %vm1679_vm15, %v1670_v56, %v1418_v16 }
 0x17c   : > { %v1464_v32 = vpop.permute.xlu1 %1463 }
 0x17d   : > { %v1710_v60 = vsel %vm1696_vm0, %v1693_v55, %v1464_v32 }
 0x17e   : > { %2260 = vmatprep.mubr.msk.bf16.mxu1 %vm1780_vm1, %v1710_v60  ;;  %v1456_v13 = vpop.permute.xlu0 %1455 }
 0x17f   : > { %v1702_v11 = vsel %vm1696_vm0, %v1685_v24, %v1456_v13 }
 0x180   : > { %v1466_v59 = vpop.permute.xlu1 %1465  ;;  %2252 = vmatprep.mubr.msk.bf16.mxu0 %vm1780_vm1, %v1702_v11 }
 0x181   : > { %v1712_v43 = vsel %vm1696_vm0, %v1695_v46, %v1466_v59 }
 0x182   : > { %2261 = vmatmul.mubr.msk.bf16.gmra.mrb[4].mxu1 %vm1780_vm1, %v1712_v43  ;;  %v1458_v33 = vpop.permute.xlu0 %1457 }
 0x183   : > { %v1704_v3 = vsel %vm1696_vm0, %v1687_v57, %v1458_v33 }
 0x184   : > { %2253 = vmatmul.mubr.msk.bf16.gmra.mrb[4].mxu0 %vm1780_vm1, %v1704_v3 }
 0x219   : > { %v2258_v19 = vpop.f32.mrb[0].mxu1 }
 0x21a   : > { %v1876_v38 = vadd.f32 %v2258_v19, %v2164_v9  ;;  %v1867_v6 = vpop.f32.mrb[1].mxu1 }
 0x21b   : > { %v1868_v41 = vadd.f32 %v2164_v9, %v1867_v6  ;;  %v2259_v28 = vpop.f32.mrb[2].mxu1  ;;  %v2250_v44 = vpop.f32.mrb[0].mxu0 }
 0x21c   : > { %v2210_v42 = vpack.c.bf16 %v1876_v38, %v1876_v38  ;;  %v1879_v51 = vadd.f32 %v2259_v28, %v2164_v9  ;;  %v1870_v54 = vpop.f32.mrb[3].mxu1  ;;  %v1844_v29 = vadd.f32 %v2250_v44, %v2164_v9  ;;  %v1835_v14 = vpop.f32.mrb[1].mxu0 }
 0x21d   : > { %v2208_v20 = vpack.c.bf16 %v1868_v41, %v1868_v41  ;;  %v1871_v31 = vadd.f32 %v2164_v9, %v1870_v54  ;;  %v1836_v50 = vadd.f32 %v2164_v9, %v1835_v14  ;;  %v2251_v12 = vpop.f32.mrb[2].mxu0 }
 0x21e   : > { %1973 = vst.msk [vmem:[%s3680_s22 + $0x28] sm:$0xf] %vm1962_vm2, %v2210_v42  ;;  %v2211_v10 = vpack.c.bf16 %v1879_v51, %v1879_v51  ;;  %v2202_v8 = vpack.c.bf16 %v1844_v29, %v1844_v29  ;;  %v1847_v26 = vadd.f32 %v2251_v12, %v2164_v9  ;;  %v1838_v17 = vpop.f32.mrb[3].mxu0 }
 0x21f   : > { %1971 = vst.msk [vmem:[%s3680_s22 + $0x20] sm:$0xf] %vm1962_vm2, %v2208_v20  ;;  %v2209_v52 = vpack.c.bf16 %v1871_v31, %v1871_v31  ;;  %v2200_v15 = vpack.c.bf16 %v1836_v50, %v1836_v50  ;;  %v1839_v53 = vadd.f32 %v2164_v9, %v1838_v17 }
 0x220   : > { %1974 = vst.msk [vmem:[%s3680_s22 + $0x2c] sm:$0xf] %vm1962_vm2, %v2211_v10  ;;  %1965 = vst.msk [vmem:[%s3680_s22 + $0x8] sm:$0xf] %vm1962_vm2, %v2202_v8  ;;  %v2203_v25 = vpack.c.bf16 %v1847_v26, %v1847_v26 }
 0x221   : > { %1972 = vst.msk [vmem:[%s3680_s22 + $0x24] sm:$0xf] %vm1962_vm2, %v2209_v52  ;;  %1963 = vst.msk [vmem:[%s3680_s22] sm:$0xf] %vm1962_vm2, %v2200_v15  ;;  %v2201_v63 = vpack.c.bf16 %v1839_v53, %v1839_v53 }
 0x222   : > { %1966 = vst.msk [vmem:[%s3680_s22 + $0xc] sm:$0xf] %vm1962_vm2, %v2203_v25 }
 0x223   : > { %1964 = vst.msk [vmem:[%s3680_s22 + $0x4] sm:$0xf] %vm1962_vm2, %v2201_v63 }
 0x255   : > { %v2262_v22 = vpop.f32.mrb[4].mxu1 }
 0x256   : > { %v1892_v0 = vadd.f32 %v2262_v22, %v2164_v9  ;;  %v1883_v18 = vpop.f32.mrb[5].mxu1 }
 0x257   : > { %v1884_v5 = vadd.f32 %v2164_v9, %v1883_v18  ;;  %v2263_v21 = vpop.f32.mrb[6].mxu1  ;;  %v2254_v7 = vpop.f32.mrb[4].mxu0 }
 0x258   : > { %v2214_v36 = vpack.c.bf16 %v1892_v0, %v1892_v0  ;;  %v1895_v27 = vadd.f32 %v2263_v21, %v2164_v9  ;;  %v1886_v37 = vpop.f32.mrb[7].mxu1  ;;  %v1860_v35 = vadd.f32 %v2254_v7, %v2164_v9  ;;  %v1851_v1 = vpop.f32.mrb[5].mxu0 }
 0x259   : > { %v2212_v23 = vpack.c.bf16 %v1884_v5, %v1884_v5  ;;  %v1887_v16 = vadd.f32 %v2164_v9, %v1886_v37  ;;  %v1852_v40 = vadd.f32 %v2164_v9, %v1851_v1  ;;  %v2255_v58 = vpop.f32.mrb[6].mxu0 }
 0x25a   : > { %1977 = vst.msk [vmem:[%s3680_s22 + $0x38] sm:$0xf] %vm1962_vm2, %v2214_v36  ;;  %v2215_v39 = vpack.c.bf16 %v1895_v27, %v1895_v27  ;;  %v2206_v55 = vpack.c.bf16 %v1860_v35, %v1860_v35  ;;  %v1863_v32 = vadd.f32 %v2255_v58, %v2164_v9  ;;  %v1854_v4 = vpop.f32.mrb[7].mxu0 }
 0x25b   : > { %1975 = vst.msk [vmem:[%s3680_s22 + $0x30] sm:$0xf] %vm1962_vm2, %v2212_v23  ;;  %v2213_v49 = vpack.c.bf16 %v1887_v16, %v1887_v16  ;;  %v2204_v47 = vpack.c.bf16 %v1852_v40, %v1852_v40  ;;  %v1855_v60 = vadd.f32 %v2164_v9, %v1854_v4 }
 0x25c   : > { %1978 = vst.msk [vmem:[%s3680_s22 + $0x3c] sm:$0xf] %vm1962_vm2, %v2215_v39  ;;  %1969 = vst.msk [vmem:[%s3680_s22 + $0x18] sm:$0xf] %vm1962_vm2, %v2206_v55  ;;  %v2207_v62 = vpack.c.bf16 %v1863_v32, %v1863_v32 }
 0x25d   : > { %1976 = vst.msk [vmem:[%s3680_s22 + $0x34] sm:$0xf] %vm1962_vm2, %v2213_v49  ;;  %1967 = vst.msk [vmem:[%s3680_s22 + $0x10] sm:$0xf] %vm1962_vm2, %v2204_v47  ;;  %v2205_v61 = vpack.c.bf16 %v1855_v60, %v1855_v60 }
 0x25e   : > { %1970 = vst.msk [vmem:[%s3680_s22 + $0x1c] sm:$0xf] %vm1962_vm2, %v2207_v62 }
 0x25f   : > { %1968 = vst.msk [vmem:[%s3680_s22 + $0x14] sm:$0xf] %vm1962_vm2, %v2205_v61 }
 0x260 PF: > { %s13_s16 = sadd.s32 1, %s2399_s16   ;;  %s3820_s12 = smov %s2391_s14 }
 0x261   : > { %p10_p7 = scmp.ge.s32.totalorder %s13_s16, 6   ;;  %s3821_s13 = smov %s2395_s15 }
 0x262   : > { %s3822_s14 = smov %s3825_s17  ;;  %s3823_s15 = smov %s3829_s18 }
 0x263   :  { %12 = sbr.rel (!%p10_p7) target bundleno = 3 (0x3), region = 63 }

// kernel: _lambda_.9
= control target key start
LH: loop header
LB: loop body
LE: loop exit
PB: predicated region body
PF: predicated region fallthrough
CT: control target
= control target key end

     0   :  { %s4503_s18 = smov 0   ;;  %s4505_s19 = smov 0   ;;  %s6548_s0 = inlined_call_operand.vmem [shape: bf16[2,18,18,8], index: 0, kind: input, shape index: {}]   ;;  %s6549_s1 = inlined_call_operand.vmem [shape: bf16[2,18,18,24], index: 1, kind: input, shape index: {}]   ;;  %s6550_s2 = inlined_call_operand.vmem [shape: bf16[288,8], index: 2, kind: input, shape index: {}]   ;;  %s6551_s3 = inlined_call_operand.vmem [shape: f32[1,8], index: 3, kind: input, shape index: {}]   ;;  %s6552_s4 = inlined_call_operand.vmem [shape: bf16[2,16,16,8], index: 4, kind: input, shape index: {}]   ;;  %s6553_s5 = inlined_call_operand.vmem [shape: f32[2,16,16,8], index: 5, kind: output, shape index: {}]  }
   0x1   :  { %s4507_s20 = smov 0   ;;  %s4509_s21 = smov 0  }
   0x2   :  { %s4511_s22 = smov 0  }
   0x3 LB: > { %s24_s23 = sadd.s32 1, %s4456_s20  ;;  %s27_s24 = sadd.s32 1, %s4460_s21  ;;  %s4464_s22 = sphi %s4511_s22, %s15_s22   ;;  %s4460_s21 = sphi %s4509_s21, %s6588_s21   ;;  %s4456_s20 = sphi %s4507_s20, %s6587_s20   ;;  %s4452_s19 = sphi %s4505_s19, %s6586_s19   ;;  %s4448_s18 = sphi %s4503_s18, %s6585_s18  }
   0x4   : > { %p25_p0 = scmp.ge.s32.totalorder %s24_s23, 2  ;;  %p3753_p1 = scmp.ge.s32.totalorder %s4464_s22, 1 }
   0x5   : > { %p229_p2 = scmp.lt.s32.totalorder %s4464_s22, 5 }
   0x6   : > { %s6590_s23 = smov (%p25_p0, %s24_s23), 0  ;;  %s6592_s24 = smov (!%p25_p0, %s27_s24), %s4460_s21 }
   0x7   : > { %p230_p3 = pnand %p3753_p1, %p229_p2  ;;  %p29_p4 = scmp.ge.s32.totalorder %s6592_s24, 2 }
   0x9   : > { %s6594_s24 = smov (%p29_p4, %s6592_s24), 0  ;;  %233 = sbr.rel (%p230_p3) target bundleno = 661 (0x295), region = 40 }
  0x10   : > { %p277_p5 = scmp.lt.s32.totalorder %s4452_s19, 1  ;;  %s4125_s25 = smul.u32 96, %s4448_s18  ;;  %vm783_vm0 = vcmask 1042432   ;;  %vm784_vm1 = vcmask 1046532   ;;  %vm356_vm3 = vsmask.f32 3328 }
  0x11   : > { %s4466_s10 = smov 8   ;;  %s4467_s11 = smov 72   ;;  %vm4580_vm2 = vmor %vm783_vm0, %vm784_vm1  ;;  %vm357_vm4 = vsmask.f32 7440  ;;  %vm2814_vm6 = vcmask 64512   ;;  %vm2839_vm7 = vcmask 261120  }
  0x12   : > { %s6596_s19 = smov (!%p277_p5, %s4452_s19), 1  ;;  %s4468_s12 = smov 64   ;;  %vm4673_vm5 = vmor %vm356_vm3, %vm357_vm4  ;;  %vm2856_vm8 = vcmask 326656   ;;  %vm2873_vm9 = vcmask 523264   ;;  %vm2890_vm10 = vcmask 588800   ;;  %vm2907_vm11 = vcmask 785408  }
  0x13   : > { %s4276_s26 = smul.u32 216, %s6596_s19  ;;  %s4469_s13 = smov 32   ;;  %vm2924_vm12 = vcmask 850944  }
  0x14   : > { %s4470_s14 = smov 40   ;;  %s4471_s16 = smov 96  }
  0x15   : > { %s286_s29 = scalar_lea.vmem %s6549_s1, %s4276_s26  ;;  %s281_s7 = scalar_lea.vmem %s6548_s0, %s4276_s26 }
  0x16   : > { %s4545_s8 = scalar_lea.vmem %s286_s29, %s4125_s25  ;;  %s4556_s9 = scalar_lea.vmem %s281_s7, %s4125_s25 }
  0x17   : > { %v332_v0 = vld [vmem:[%s4545_s8] sm:$0xf]  ;;  %v4549_v1 = vld [vmem:[%s4545_s8 + $0x4] sm:$0xf]  ;;  %v3888_v2 = vld [vmem:[%s4545_s8 + $0x18] sm:$0xf] }
  0x18   : > { %v3960_v3 = vcombine.low %v332_v0, %v4549_v1  ;;  %v560_v4 = vshrl.u32 %v332_v0, 16  ;;  %v4554_v5 = vld [vmem:[%s4545_s8 + $0x1c] sm:$0xf]  ;;  %v573_v6 = vshrl.u32 %v4549_v1, 16  ;;  %v563_v7 = vshll.u32 %v332_v0, 16  ;;  %s4472_s28 = smov 104  }
  0x19   : > { %v4056_v8 = vcombine.low %v3888_v2, %v4554_v5  ;;  %v3870_v9 = vld [vmem:[%s4556_s9 + $0x18] sm:$0xf]  ;;  %v1804_v11 = vshrl.u32 %v4554_v5, 16  ;;  %v1791_v12 = vshrl.u32 %v3888_v2, 16  ;;  %v1794_v13 = vshll.u32 %v3888_v2, 16 }
  0x1a   : > { %2222 = vrot.lane.b32.xlu0 %v3960_v3, %s4466_s10  ;;  %v562_v10 = vrot.slane %v560_v4, 4  ;;  %v4564_v14 = vld [vmem:[%s4556_s9 + $0x1c] sm:$0xf]  ;;  %v569_v15 = vshll.u32 %v4549_v1, 16  ;;  %v565_v16 = vrot.slane %v563_v7, 5  ;;  %v1800_v17 = vshll.u32 %v4554_v5, 16 }
  0x1b   : > { %2718 = vrot.lane.b32.xlu1 %v4056_v8, %s4467_s11  ;;  %v4048_v18 = vcombine.low %v3870_v9, %v4564_v14  ;;  %v4571_v19 = vld [vmem:[%s4556_s9 + $0x10] sm:$0xf]  ;;  %v1793_v20 = vrot.slane %v1791_v12, 4  ;;  %v1796_v21 = vrot.slane %v1794_v13, 5  ;;  %v1591_v22 = vshrl.u32 %v3870_v9, 16  ;;  %v4355_v5 = vld [vmem:[%s6550_s2 + $0x58] sm:$0xff]  }
  0x1c   : > { %v1594_v23 = vshll.u32 %v3870_v9, 16  ;;  %v4574_v24 = vld [vmem:[%s4556_s9 + $0x14] sm:$0x1]  ;;  %v4576_v25 = vrot.slane %v573_v6, 4  ;;  %v566_v26 = vor.u32 %v565_v16, %v562_v10  ;;  %v3836_v28 = vld [vmem:[%s4556_s9 + $0xc] sm:$0xe] }
  0x1d   : > { %v1402_v29 = vrot.slane %v4571_v19, 5  ;;  %v1405_v30 = vrot.slane %v4574_v24, 5  ;;  %v4587_v31 = vrot.slane %v1804_v11, 4  ;;  %v1797_v32 = vor.u32 %v1796_v21, %v1793_v20  ;;  %v4592_v35 = vld [vmem:[%s4545_s8 + $0x48] sm:$0xf] }
  0x1e   : > { %v1604_v33 = vshrl.u32 %v4564_v14, 16  ;;  %2670 = vrot.lane.b32.xlu0 %v4048_v18, %s4468_s12  ;;  %v3844_v34 = vrot.slane %v3836_v28, 9  ;;  %v4594_v36 = vrot.slane %v566_v26, 4  ;;  %v4596_v37 = vrot.slane %v1591_v22, 4  ;;  %v4601_v40 = vld [vmem:[%s4545_s8 + $0x4c] sm:$0xf] }
  0x1f   : > { %v4598_v38 = vrot.slane %v1594_v23, 5  ;;  %v1404_v39 = vrot.slane %v1402_v29, 4  ;;  %v704_v42 = vshrl.u32 %v4592_v35, 16  ;;  %v707_v43 = vshll.u32 %v4592_v35, 16  ;;  %v4610_v45 = vld [vmem:[%s4556_s9 + $0x4] sm:$0xf] }
  0x20   : > { %v1403_v41 = vsel %vm4580_vm2, %v3844_v34, %v1402_v29  ;;  %v3966_v44 = vcombine.low %v4592_v35, %v4601_v40  ;;  %v4613_v46 = vld [vmem:[%s4556_s9 + $0x8] sm:$0x1]  ;;  %v4615_v47 = vrot.slane %v1797_v32, 4  ;;  %v717_v49 = vshrl.u32 %v4601_v40, 16  ;;  %v751_v50 = vld [vmem:[%s4556_s9] sm:$0xe] }
  0x21   : > { %v1406_v48 = vsel %vm4580_vm2, %v1404_v39, %v1405_v30  ;;  %v788_v51 = vrot.slane %v4610_v45, 5  ;;  %v3768_v53 = vrot.slane %v751_v50, 9  ;;  %v791_v54 = vrot.slane %v4613_v46, 5  ;;  %v4625_v55 = vld [vmem:[%s4545_s8 + $0x10] sm:$0xf] }
  0x22   : > { %v4032_v52 = vcombine.low %v1403_v41, %v1406_v48  ;;  %2234 = vrot.lane.b32.xlu0 %v3966_v44, %s4466_s10  ;;  %v3828_v56 = vld [vmem:[%s4545_s8 + $0x14] sm:$0x1]  ;;  %v3852_v58 = vld [vmem:[%s4545_s8 + $0xc] sm:$0xe]  ;;  %v1490_v59 = vrot.slane %v4625_v55, 5  ;;  %v876_v61 = vrot.slane %v4549_v1, 5  ;;  %v1597_v4 = vor.u32 %v4598_v38, %v4596_v37 }
  0x23   : > { %v790_v57 = vrot.slane %v788_v51, 4  ;;  %v1493_v60 = vrot.slane %v3828_v56, 5  ;;  %v789_v62 = vsel %vm4580_vm2, %v3768_v53, %v788_v51  ;;  %v3860_v63 = vrot.slane %v3852_v58, 9  ;;  %v4635_v0 = vld [vmem:[%s4545_s8 + $0x8] sm:$0x1] }
  0x24   : > { %2582 = vrot.lane.b32.xlu1 %v4032_v52, %s4469_s13  ;;  %v842_v2 = vld [vmem:[%s4545_s8] sm:$0xe]  ;;  %v1186_v3 = vshll.u32 %v4625_v55, 16  ;;  %v1492_v7 = vrot.slane %v1490_v59, 4  ;;  %v878_v9 = vrot.slane %v876_v61, 4  ;;  %v879_v13 = vrot.slane %v4635_v0, 5 }
  0x25   : > { %v792_v6 = vsel %vm4580_vm2, %v790_v57, %v791_v54  ;;  %v3776_v8 = vrot.slane %v842_v2, 9  ;;  %v4644_v10 = vld [vmem:[%s4545_s8 + $0xc] sm:$0xf]  ;;  %v1491_v12 = vsel %vm4580_vm2, %v3860_v63, %v1490_v59  ;;  %v314_v18 = vld [vmem:[%s4556_s9] sm:$0xf]  ;;  %v1190_v30 = vshrl.u32 %v4625_v55, 16 }
  0x26   : > { %v3984_v11 = vcombine.low %v789_v62, %v792_v6  ;;  %v1177_v16 = vshrl.u32 %v4644_v10, 16  ;;  %v1494_v20 = vsel %vm4580_vm2, %v1492_v7, %v1493_v60  ;;  %v1180_v22 = vshll.u32 %v4644_v10, 16  ;;  %v4664_v52 = vld [vmem:[%s4545_s8 + $0x54] sm:$0xf]  ;;  %v4668_v59 = vld [vmem:[%s4545_s8 + $0x58] sm:$0xf] }
  0x27   : > { %v877_v21 = vsel %vm4580_vm2, %v3776_v8, %v876_v61  ;;  %v1188_v23 = vrot.slane %v1186_v3, 5  ;;  %v4040_v26 = vcombine.low %v1491_v12, %v1494_v20  ;;  %v880_v28 = vsel %vm4580_vm2, %v878_v9, %v879_v13  ;;  %v4680_v9 = vld [vmem:[%s4545_s8 + $0x5c] sm:$0x1]  ;;  %v4345_v20 = vld [vmem:[%s6550_s2 + $0x40] sm:$0xff]  }
  0x28   : > { %2342 = vrot.lane.b32.xlu1 %v3984_v11, %s4468_s12  ;;  %v1179_v29 = vrot.slane %v1177_v16, 4  ;;  %v3992_v32 = vcombine.low %v877_v21, %v880_v28  ;;  %v1182_v34 = vrot.slane %v1180_v22, 5  ;;  %v1196_v39 = vshll.u32 %v3828_v56, 16  ;;  %4166 = vmatprep.subr.bf16.mxu0 %v4345_v20 }
  0x29   : > { %v360_v41 = vshrl.u32 %v314_v18, 16  ;;  %2622 = vrot.lane.b32.xlu0 %v4040_v26, %s4470_s14  ;;  %v1192_v44 = vrot.slane %v1190_v30, 4  ;;  %v363_v48 = vshll.u32 %v314_v18, 16  ;;  %v369_v50 = vshll.u32 %v4610_v45, 16  ;;  %4260 = vmatprep.subr.bf16.mxu1 %v4345_v20 }
  0x2a   : > { %v373_v51 = vshrl.u32 %v4610_v45, 16  ;;  %v1183_v53 = vor.u32 %v1182_v34, %v1179_v29  ;;  %v1198_v54 = vrot.slane %v1196_v39, 5  ;;  %v379_v58 = vshll.u32 %v4613_v46, 16 }
  0x2b   : > { %v362_v57 = vrot.slane %v360_v41, 4  ;;  %v1193_v60 = vor.u32 %v1192_v44, %v1188_v23  ;;  %v365_v45 = vrot.slane %v363_v48, 5  ;;  %v371_v61 = vrot.slane %v369_v50, 5  ;;  %v4703_v50 = vld [vmem:[%s4556_s9 + $0x58] sm:$0xf] }
  0x2c   : > { %2382 = vrot.lane.b32.xlu1 %v3992_v32, %s4467_s11  ;;  %v375_v62 = vrot.slane %v373_v51, 4  ;;  %v1184_v63 = vrot.slane %v1183_v53, 4  ;;  %v381_v2 = vrot.slane %v379_v58, 5  ;;  %v1321_v3 = vshrl.u32 %v4664_v52, 16  ;;  %v3842_v51 = vld [vmem:[%s4556_s9 + $0x54] sm:$0xe] }
  0x2d   : > { %v1324_v46 = vshll.u32 %v4664_v52, 16  ;;  %v1194_v6 = vrot.slane %v1193_v60, 4  ;;  %v366_v7 = vor.u32 %v365_v45, %v362_v57  ;;  %v1330_v11 = vshll.u32 %v4668_v59, 16  ;;  %v4708_v60 = vld [vmem:[%s4556_s9 + $0x5c] sm:$0x1] }
  0x2e   : > { %v376_v8 = vor.u32 %v375_v62, %v371_v61  ;;  %v1189_v12 = vsel %vm4673_vm5, %v1184_v63, %v1188_v23  ;;  %v1323_v13 = vrot.slane %v1321_v3, 4  ;;  %v1334_v18 = vshrl.u32 %v4668_v59, 16  ;;  %v4347_v23 = vld [vmem:[%s6550_s2] sm:$0xff]  }
  0x2f   : > { %v1326_v16 = vrot.slane %v1324_v46, 5  ;;  %v1199_v21 = vsel %vm4673_vm5, %v1194_v6, %v1198_v54  ;;  %v367_v22 = vrot.slane %v366_v7, 4  ;;  %v1332_v28 = vrot.slane %v1330_v11, 5  ;;  %4167 = vmatpush3.bf16.msra.mxu0 %v4347_v23  ;;  %4268 = vmatpush3.bf16.msra.mxu1 %v4347_v23  ;;  %v3904_v3 = vld [vmem:[%s4556_s9 + $0x20] sm:$0x1] }
  0x30   : > { %v377_v26 = vrot.slane %v376_v8, 4  ;;  %v4024_v29 = vcombine.low %v1189_v12, %v1199_v21  ;;  %v1336_v32 = vrot.slane %v1334_v18, 4  ;;  %v1340_v34 = vshll.u32 %v4680_v9, 16  ;;  %v326_v7 = vld [vmem:[%s4556_s9 + $0x48] sm:$0xf] }
  0x31   : > { %v1327_v30 = vor.u32 %v1326_v16, %v1323_v13  ;;  %v372_v39 = vsel %vm4673_vm5, %v367_v22, %v371_v61  ;;  %v571_v44 = vrot.slane %v569_v15, 5  ;;  %v579_v48 = vshll.u32 %v4635_v0, 16  ;;  %v4741_v18 = vld [vmem:[%s4556_s9 + $0x4c] sm:$0xf]  ;;  %v4746_v22 = vld [vmem:[%s4556_s9 + $0x50] sm:$0x1] }
  0x32   : > { %v382_v41 = vsel %vm4673_vm5, %v377_v26, %v381_v2  ;;  %2542 = vrot.lane.b32.xlu0 %v4024_v29, %s4466_s10  ;;  %v1337_v57 = vor.u32 %v1336_v32, %v1332_v28  ;;  %v1342_v58 = vrot.slane %v1340_v34, 5  ;;  %v4712_v1 = vrot.slane %v704_v42, 4  ;;  %v4350_v42 = vld [vmem:[%s6550_s2 + $0x48] sm:$0xff]  }
  0x33   : > { %v3968_v53 = vcombine.low %v372_v39, %v382_v41  ;;  %v1328_v54 = vrot.slane %v1327_v30, 4  ;;  %v572_v15 = vsel %vm4673_vm5, %v4594_v36, %v571_v44  ;;  %v576_v0 = vor.u32 %v4576_v25, %v571_v44  ;;  %4168 = vmatprep.subr.bf16.mxu0 %v4350_v42  ;;  %4261 = vmatprep.subr.bf16.mxu1 %v4350_v42  ;;  %v4351_v30 = vld [vmem:[%s6550_s2 + $0x8] sm:$0xff]  }
  0x34   : > { %v581_v45 = vrot.slane %v579_v48, 5  ;;  %v1338_v62 = vrot.slane %v1337_v57, 4  ;;  %v3850_v63 = vrot.slane %v3842_v51, 9  ;;  %v1444_v2 = vrot.slane %v4703_v50, 5  ;;  %v3786_v48 = vld [vmem:[%s4556_s9 + $0xc] sm:$0xf]  ;;  %4169 = vmatpush3.bf16.msra.mxu0 %v4351_v30  ;;  %4269 = vmatpush3.bf16.msra.mxu1 %v4351_v30 }
  0x35   : > { %2262 = vrot.lane.b32.xlu1 %v3968_v53, %s4469_s13  ;;  %v1333_v61 = vsel %vm4673_vm5, %v1328_v54, %v1332_v28  ;;  %v577_v46 = vrot.slane %v576_v0, 4  ;;  %v1447_v36 = vrot.slane %v4708_v60, 5  ;;  %v1598_v25 = vrot.slane %v1597_v4, 4  ;;  %v3858_v51 = vld [vmem:[%s4545_s8 + $0x54] sm:$0xe] }
  0x36   : > { %v1600_v6 = vshll.u32 %v4564_v14, 16  ;;  %v1343_v8 = vsel %vm4673_vm5, %v1338_v62, %v1342_v58  ;;  %v1445_v11 = vsel %vm4580_vm2, %v3850_v63, %v1444_v2  ;;  %v1446_v12 = vrot.slane %v1444_v2, 4  ;;  %v4353_v63 = vld [vmem:[%s6550_s2 + $0x50] sm:$0xff]  }
  0x37   : > { %v1606_v13 = vrot.slane %v1604_v33, 4  ;;  %v4030_v16 = vcombine.low %v1333_v61, %v1343_v8  ;;  %v582_v37 = vsel %vm4673_vm5, %v577_v46, %v581_v45  ;;  %v1610_v4 = vshll.u32 %v3904_v3, 16  ;;  %v3912_v61 = vld [vmem:[%s4545_s8 + $0x20] sm:$0x1]  ;;  %4170 = vmatprep.subr.bf16.mxu0 %v4353_v63  ;;  %4262 = vmatprep.subr.bf16.mxu1 %v4353_v63  ;;  %v4841_v63 = vld [vmem:[%s4556_s9 + $0x64] sm:$0xf] }
  0x38   : > { %v1602_v38 = vrot.slane %v1600_v6, 5  ;;  %v3976_v20 = vcombine.low %v572_v15, %v582_v37  ;;  %v1448_v21 = vsel %vm4580_vm2, %v1446_v12, %v1447_v36  ;;  %v504_v26 = vshrl.u32 %v326_v7, 16 }
  0x39   : > { %v507_v14 = vshll.u32 %v326_v7, 16  ;;  %v709_v33 = vrot.slane %v707_v43, 5  ;;  %2554 = vrot.lane.b32.xlu0 %v4030_v16, %s4466_s10  ;;  %v4038_v28 = vcombine.low %v1445_v11, %v1448_v21  ;;  %v1612_v29 = vrot.slane %v1610_v4, 5 }
  0x3a   : > { %v1607_v23 = vor.u32 %v1606_v13, %v1602_v38  ;;  %2302 = vrot.lane.b32.xlu1 %v3976_v20, %s4470_s14  ;;  %v506_v32 = vrot.slane %v504_v26, 4  ;;  %v513_v39 = vshll.u32 %v4741_v18, 16  ;;  %v517_v41 = vshrl.u32 %v4741_v18, 16 }
  0x3b   : > { %v509_v34 = vrot.slane %v507_v14, 5  ;;  %v1603_v35 = vsel %vm4673_vm5, %v1598_v25, %v1602_v38  ;;  %v523_v44 = vshll.u32 %v4746_v22, 16  ;;  %v977_v58 = vshrl.u32 %v3786_v48, 16 }
  0x3c   : > { %v1608_v43 = vrot.slane %v1607_v23, 4  ;;  %v515_v54 = vrot.slane %v513_v39, 5  ;;  %v519_v57 = vrot.slane %v517_v41, 4  ;;  %v980_v45 = vshll.u32 %v3786_v48, 16 }
  0x3d   : > { %v510_v53 = vor.u32 %v509_v34, %v506_v32  ;;  %2594 = vrot.lane.b32.xlu0 %v4038_v28, %s4469_s13  ;;  %v525_v0 = vrot.slane %v523_v44, 5  ;;  %v710_v62 = vor.u32 %v709_v33, %v4712_v1  ;;  %v3866_v46 = vrot.slane %v3858_v51, 9  ;;  %v4354_v1 = vld [vmem:[%s6550_s2 + $0x10] sm:$0xff]   ;;  %v757_v32 = vld [vmem:[%s4556_s9 + $0x48] sm:$0xe] }
  0x3e   : > { %v1613_v15 = vsel %vm4673_vm5, %v1608_v43, %v1612_v29  ;;  %v520_v42 = vor.u32 %v519_v57, %v515_v54  ;;  %v4000_v36 = vcombine.low %v3786_v48, %v4571_v19  ;;  %v1532_v25 = vrot.slane %v4668_v59, 5  ;;  %4171 = vmatpush3.bf16.msra.mxu0 %v4354_v1  ;;  %4270 = vmatpush3.bf16.msra.mxu1 %v4354_v1  ;;  %v4818_v43 = vld [vmem:[%s4545_s8 + $0x18] sm:$0xf] }
  0x3f   : > { %v4064_v2 = vcombine.low %v1603_v35, %v1613_v15  ;;  %v511_v3 = vrot.slane %v510_v53, 4  ;;  %v1535_v6 = vrot.slane %v4680_v9, 5  ;;  %v1802_v7 = vrot.slane %v1800_v17, 5  ;;  %v4784_v9 = vld [vmem:[%s4545_s8 + $0x50] sm:$0x1]  ;;  %4172 = vmatprep.subr.bf16.mxu0 %v4355_v5  ;;  %4263 = vmatprep.subr.bf16.mxu1 %v4355_v5  ;;  %v4357_v15 = vld [vmem:[%s6550_s2 + $0x18] sm:$0xff]  }
  0x40   : > { %v521_v19 = vrot.slane %v520_v42, 4  ;;  %v4781_v11 = vrot.slane %v977_v58, 4  ;;  %v1810_v12 = vshll.u32 %v3912_v61, 16  ;;  %v4789_v17 = vrot.slane %v980_v45, 5  ;;  %v4815_v35 = vld [vmem:[%s4556_s9 + $0x60] sm:$0xf] }
  0x41   : > { %2758 = vrot.lane.b32.xlu1 %v4064_v2, %s4471_s16  ;;  %v516_v8 = vsel %vm4673_vm5, %v511_v3, %v515_v54  ;;  %v1533_v13 = vsel %vm4580_vm2, %v3866_v46, %v1532_v25  ;;  %v1534_v16 = vrot.slane %v1532_v25, 4  ;;  %v711_v37 = vrot.slane %v710_v62, 4  ;;  %v4824_v53 = vld [vmem:[%s4545_s8 + $0x1c] sm:$0xf]  ;;  %v4827_v54 = vld [vmem:[%s4545_s8 + $0x20] sm:$0x1] }
  0x42   : > { %v526_v38 = vsel %vm4673_vm5, %v521_v19, %v525_v0  ;;  %v1807_v4 = vor.u32 %v4587_v31, %v1802_v7  ;;  %v1812_v20 = vrot.slane %v1810_v12, 5  ;;  %v713_v21 = vshll.u32 %v4601_v40, 16  ;;  %4173 = vmatpush3.bf16.msra.mxu0 %v4357_v15  ;;  %4271 = vmatpush3.bf16.msra.mxu1 %v4357_v15  ;;  %v4852_v19 = vld [vmem:[%s4545_s8 + $0x60] sm:$0xf] }
  0x43   : > { %v3974_v26 = vcombine.low %v516_v8, %v526_v38  ;;  %v1536_v14 = vsel %vm4580_vm2, %v1534_v16, %v1535_v6  ;;  %v719_v33 = vrot.slane %v717_v49, 4  ;;  %v723_v28 = vshll.u32 %v4784_v9, 16  ;;  %v4360_v16 = vld [vmem:[%s6550_s2 + $0x20] sm:$0xff]  }
  0x44   : > { %v996_v23 = vshll.u32 %v4574_v24, 16  ;;  %v1803_v31 = vsel %vm4673_vm5, %v4615_v47, %v1802_v7  ;;  %v1808_v29 = vrot.slane %v1807_v4, 4  ;;  %v715_v30 = vrot.slane %v713_v21, 5  ;;  %v4869_v21 = vld [vmem:[%s4545_s8 + $0x64] sm:$0xf] }
  0x45   : > { %2430 = vrot.lane.b32.xlu1 %v4000_v36, %s4471_s16  ;;  %v1140_v34 = vshll.u32 %v4708_v60, 16  ;;  %2274 = vrot.lane.b32.xlu0 %v3974_v26, %s4469_s13  ;;  %v983_v49 = vor.u32 %v4789_v17, %v4781_v11  ;;  %v4046_v39 = vcombine.low %v1533_v13, %v1536_v14  ;;  %v4008_v41 = vcombine.low %v4644_v10, %v4625_v55  ;;  %v4358_v11 = vld [vmem:[%s6550_s2 + $0x60] sm:$0xff]   ;;  %v848_v26 = vld [vmem:[%s4545_s8 + $0x48] sm:$0xe] }
  0x46   : > { %v1813_v47 = vsel %vm4673_vm5, %v1808_v29, %v1812_v20  ;;  %v720_v44 = vor.u32 %v719_v33, %v715_v30  ;;  %v725_v48 = vrot.slane %v723_v28, 5  ;;  %v1735_v51 = vshrl.u32 %v4815_v35, 16  ;;  %v4876_v29 = vld [vmem:[%s4545_s8 + $0xc] sm:$0xf]  ;;  %4174 = vmatprep.subr.bf16.mxu0 %v4358_v11  ;;  %4264 = vmatprep.subr.bf16.mxu1 %v4358_v11 }
  0x47   : > { %v4072_v57 = vcombine.low %v1803_v31, %v1813_v47  ;;  %v716_v55 = vsel %vm4673_vm5, %v711_v37, %v715_v30  ;;  %v1738_v10 = vshll.u32 %v4815_v35, 16  ;;  %v3774_v58 = vrot.slane %v757_v32, 9  ;;  %v4879_v30 = vld [vmem:[%s4545_s8 + $0x10] sm:$0xf]  ;;  %v4882_v32 = vld [vmem:[%s4556_s9 + $0x1c] sm:$0xf]  ;;  %4175 = vmatpush3.bf16.msra.mxu0 %v4360_v16  ;;  %4272 = vmatpush3.bf16.msra.mxu1 %v4360_v16 }
  0x48   : > { %v721_v0 = vrot.slane %v720_v44, 4  ;;  %v830_v45 = vrot.slane %v4741_v18, 5  ;;  %v833_v61 = vrot.slane %v4746_v22, 5  ;;  %v1201_v62 = vshrl.u32 %v4818_v43, 16  ;;  %v4891_v44 = vld [vmem:[%s4556_s9 + $0x20] sm:$0x1] }
  0x49   : > { %2634 = vrot.lane.b32.xlu0 %v4046_v39, %s4470_s14  ;;  %2798 = vrot.lane.b32.xlu1 %v4072_v57, %s4472_s28  ;;  %v1204_v2 = vshll.u32 %v4818_v43, 16  ;;  %v1210_v3 = vshll.u32 %v4824_v53, 16  ;;  %v1214_v42 = vshrl.u32 %v4824_v53, 16  ;;  %v1220_v18 = vshll.u32 %v4827_v54, 16  ;;  %v4361_v39 = vld [vmem:[%s6550_s2 + $0x68] sm:$0xff]  }
  0x4a   : > { %v726_v22 = vsel %vm4673_vm5, %v721_v0, %v725_v48  ;;  %v831_v46 = vsel %vm4580_vm2, %v3774_v58, %v830_v45  ;;  %v832_v36 = vrot.slane %v830_v45, 4  ;;  %v1203_v25 = vrot.slane %v1201_v62, 4  ;;  %4176 = vmatprep.subr.bf16.mxu0 %v4361_v39  ;;  %v4363_v58 = vld [vmem:[%s6550_s2 + $0x28] sm:$0xff]   ;;  %4265 = vmatprep.subr.bf16.mxu1 %v4361_v39  ;;  %v4930_v16 = vld [vmem:[%s4556_s9 + $0x14] sm:$0x1] }
  0x4b   : > { %v3982_v6 = vcombine.low %v716_v55, %v726_v22  ;;  %v1206_v7 = vrot.slane %v1204_v2, 5  ;;  %v1212_v1 = vrot.slane %v1210_v3, 5  ;;  %v1216_v8 = vrot.slane %v1214_v42, 4  ;;  %v3910_v42 = vld [vmem:[%s4556_s9 + $0x68] sm:$0x1]  ;;  %4177 = vmatpush3.bf16.msra.mxu0 %v4363_v58  ;;  %4273 = vmatpush3.bf16.msra.mxu1 %v4363_v58 }
  0x4c   : > { %v4054_v12 = vcombine.low %v4815_v35, %v4841_v63  ;;  %v834_v5 = vsel %vm4580_vm2, %v832_v36, %v833_v61  ;;  %v1935_v17 = vshrl.u32 %v4852_v19, 16  ;;  %v1938_v13 = vshll.u32 %v4852_v19, 16 }
  0x4d   : > { %2314 = vrot.lane.b32.xlu0 %v3982_v6, %s4470_s14  ;;  %2478 = vrot.lane.b32.xlu1 %v4008_v41, %s4472_s28  ;;  %v3990_v37 = vcombine.low %v831_v46, %v834_v5  ;;  %v1207_v38 = vor.u32 %v1206_v7, %v1203_v25  ;;  %v1217_v4 = vor.u32 %v1216_v8, %v1212_v1  ;;  %v1222_v20 = vrot.slane %v1220_v18, 5  ;;  %v316_v25 = vld [vmem:[%s4556_s9 + $0xc] sm:$0xf]  ;;  %v4923_v8 = vld [vmem:[%s4556_s9 + $0x10] sm:$0xf] }
  0x4e   : > { %v4872_v14 = vrot.slane %v983_v49, 4  ;;  %v1737_v33 = vrot.slane %v1735_v51, 4  ;;  %v1740_v28 = vrot.slane %v1738_v10, 5  ;;  %v1748_v31 = vshrl.u32 %v4841_v63, 16  ;;  %v3837_v10 = vld [vmem:[%s4556_s9 + $0x18] sm:$0xe] }
  0x4f   : > { %v1208_v41 = vrot.slane %v1207_v38, 4  ;;  %v1218_v49 = vrot.slane %v1217_v4, 4  ;;  %v4887_v35 = vrot.slane %v1935_v17, 4  ;;  %v1948_v47 = vshrl.u32 %v4869_v21, 16 }
  0x50   : > { %v4893_v48 = vrot.slane %v1938_v13, 5  ;;  %v4062_v51 = vcombine.low %v4852_v19, %v4869_v21  ;;  %v3782_v57 = vrot.slane %v848_v26, 9  ;;  %v918_v55 = vrot.slane %v4601_v40, 5 }
  0x51   : > { %2682 = vrot.lane.b32.xlu0 %v4054_v12, %s4468_s12  ;;  %2354 = vrot.lane.b32.xlu1 %v3990_v37, %s4468_s12  ;;  %v1213_v15 = vsel %vm4673_vm5, %v1208_v41, %v1212_v1  ;;  %v1223_v0 = vsel %vm4673_vm5, %v1218_v49, %v1222_v20  ;;  %v584_v40 = vshrl.u32 %v4876_v29, 16  ;;  %v587_v45 = vshll.u32 %v4876_v29, 16  ;;  %v3853_v41 = vld [vmem:[%s4545_s8 + $0x18] sm:$0xe]  ;;  %v4365_v49 = vld [vmem:[%s6550_s2 + $0x30] sm:$0xff]  }
  0x52   : > { %v4025_v61 = vcombine.low %v1213_v15, %v1223_v0  ;;  %v919_v62 = vsel %vm4580_vm2, %v3782_v57, %v918_v55  ;;  %v920_v2 = vrot.slane %v918_v55, 4  ;;  %v921_v3 = vrot.slane %v4784_v9, 5 }
  0x53   : > { %v3961_v18 = vcombine.low %v4876_v29, %v4879_v30  ;;  %v3845_v22 = vrot.slane %v3837_v10, 9  ;;  %v1409_v46 = vrot.slane %v4882_v32, 5  ;;  %v1412_v36 = vrot.slane %v4891_v44, 5 }
  0x54   : > { %v922_v6 = vsel %vm4580_vm2, %v920_v2, %v921_v3  ;;  %v1741_v7 = vor.u32 %v1740_v28, %v1737_v33  ;;  %v1744_v1 = vshll.u32 %v4841_v63, 16  ;;  %v1750_v9 = vrot.slane %v1748_v31, 4  ;;  %v4364_v33 = vld [vmem:[%s6550_s2 + $0x70] sm:$0xff]  }
  0x55   : > { %2544 = vrot.lane.b32.xlu0 %v4025_v61, %s4466_s10  ;;  %2730 = vrot.lane.b32.xlu1 %v4062_v51, %s4467_s11  ;;  %v3998_v19 = vcombine.low %v919_v62, %v922_v6  ;;  %v1410_v11 = vsel %vm4580_vm2, %v3845_v22, %v1409_v46  ;;  %v1411_v12 = vrot.slane %v1409_v46, 4  ;;  %v1754_v5 = vshll.u32 %v3910_v42, 16  ;;  %v4366_v62 = vld [vmem:[%s6550_s2 + $0x78] sm:$0xff]  }
  0x56   : > { %v1742_v17 = vrot.slane %v1741_v7, 4  ;;  %v1746_v13 = vrot.slane %v1744_v1, 5  ;;  %v384_v37 = vshrl.u32 %v316_v25, 16  ;;  %v387_v63 = vshll.u32 %v316_v25, 16  ;;  %4178 = vmatprep.subr.bf16.mxu0 %v4364_v33  ;;  %4266 = vmatprep.subr.bf16.mxu1 %v4364_v33  ;;  %v4367_v25 = vld [vmem:[%s6550_s2 + $0x38] sm:$0xff]  }
  0x57   : > { %v597_v38 = vshrl.u32 %v4879_v30, 16  ;;  %v1413_v4 = vsel %vm4580_vm2, %v1411_v12, %v1412_v36  ;;  %v393_v20 = vshll.u32 %v4923_v8, 16  ;;  %v397_v26 = vshrl.u32 %v4923_v8, 16  ;;  %4179 = vmatpush3.bf16.msra.mxu0 %v4365_v49  ;;  %4274 = vmatpush3.bf16.msra.mxu1 %v4365_v49 }
  0x58   : > { %v4033_v28 = vcombine.low %v1410_v11, %v1413_v4  ;;  %v1751_v31 = vor.u32 %v1750_v9, %v1746_v13  ;;  %v1756_v29 = vrot.slane %v1754_v5, 5  ;;  %v386_v39 = vrot.slane %v384_v37, 4  ;;  %4180 = vmatprep.subr.bf16.mxu0 %v4366_v62  ;;  %4267 = vmatprep.subr.bf16.mxu1 %v4366_v62  ;;  %v4965_v5 = vld [vmem:[%s4545_s8 + $0x68] sm:$0x1] }
  0x59   : > { %2224 = vrot.lane.b32.xlu0 %v3961_v18, %s4466_s10  ;;  %2394 = vrot.lane.b32.xlu1 %v3998_v19, %s4467_s11  ;;  %v389_v51 = vrot.slane %v387_v63, 5  ;;  %v395_v57 = vrot.slane %v393_v20, 5  ;;  %v399_v55 = vrot.slane %v397_v26, 4  ;;  %v403_v10 = vshll.u32 %v4930_v16, 16  ;;  %v3798_v18 = vld [vmem:[%s4556_s9 + $0x54] sm:$0xf] }
  0x5a   : > { %v586_v58 = vrot.slane %v584_v40, 4  ;;  %v589_v15 = vrot.slane %v587_v45, 5  ;;  %v1747_v0 = vsel %vm4673_vm5, %v1742_v17, %v1746_v13  ;;  %v1752_v61 = vrot.slane %v1751_v31, 4  ;;  %6563 = vst [vmem:[#allocation2_spill] sm:$0xff] %v4965_v5  ;;  %v4978_v63 = vld [vmem:[%s4545_s8 + $0x14] sm:$0x1] }
  0x5b   : > { %v390_v2 = vor.u32 %v389_v51, %v386_v39  ;;  %v400_v3 = vor.u32 %v399_v55, %v395_v57  ;;  %v405_v42 = vrot.slane %v403_v10, 5  ;;  %v3861_v22 = vrot.slane %v3853_v41, 9  ;;  %4181 = vmatpush3.bf16.msra.mxu0 %v4367_v25  ;;  %4275 = vmatpush3.bf16.msra.mxu1 %v4367_v25  ;;  %v5361_v10 = vld [vmem:[%s4545_s8 + $0x34] sm:$0xf] }
  0x5c   : > { %v1757_v40 = vsel %vm4673_vm5, %v1752_v61, %v1756_v29  ;;  %v1121_v45 = vshrl.u32 %v3798_v18, 16  ;;  %v1124_v46 = vshll.u32 %v3798_v18, 16  ;;  %v1497_v36 = vrot.slane %v4824_v53, 5  ;;  %v752_v29 = vld [vmem:[%s4556_s9 + $0xc] sm:$0xe] }
  0x5d   : > { %2584 = vrot.lane.b32.xlu0 %v4033_v28, %s4469_s13  ;;  %v4070_v6 = vcombine.low %v1747_v0, %v1757_v40  ;;  %v391_v7 = vrot.slane %v390_v2, 4  ;;  %v401_v1 = vrot.slane %v400_v3, 4  ;;  %v1500_v9 = vrot.slane %v4827_v54, 5  ;;  %v4999_v61 = vld [vmem:[%s4556_s9 + $0x24] sm:$0xf] }
  0x5e   : > { %v4006_v19 = vcombine.low %v3798_v18, %v4703_v50  ;;  %v1498_v11 = vsel %vm4580_vm2, %v3861_v22, %v1497_v36  ;;  %v1499_v12 = vrot.slane %v1497_v36, 4  ;;  %v1941_v17 = vor.u32 %v4893_v48, %v4887_v35  ;;  %v5009_v18 = vld [vmem:[%s4545_s8 + $0x64] sm:$0xf] }
  0x5f   : > { %2770 = vrot.lane.b32.xlu1 %v4070_v6, %s4471_s16  ;;  %v396_v13 = vsel %vm4673_vm5, %v391_v7, %v395_v57  ;;  %v406_v54 = vsel %vm4673_vm5, %v401_v1, %v405_v42  ;;  %v1944_v50 = vshll.u32 %v4869_v21, 16  ;;  %v1950_v37 = vrot.slane %v1948_v47, 4  ;;  %v5006_v42 = vld [vmem:[%s4545_s8 + $0x60] sm:$0xf]  ;;  %v5021_v6 = vld [vmem:[%s4545_s8 + $0x68] sm:$0x1] }
  0x60   : > { %v3969_v4 = vcombine.low %v396_v13, %v406_v54  ;;  %v4980_v20 = vrot.slane %v1121_v45, 4  ;;  %v4982_v35 = vrot.slane %v1124_v46, 5  ;;  %v1501_v48 = vsel %vm4580_vm2, %v1499_v12, %v1500_v9  ;;  %v5024_v9 = vld [vmem:[%s4556_s9 + $0x28] sm:$0xf] }
  0x61   : > { %v4041_v26 = vcombine.low %v1498_v11, %v1501_v48  ;;  %v1942_v33 = vrot.slane %v1941_v17, 4  ;;  %v1946_v28 = vrot.slane %v1944_v50, 5  ;;  %v1954_v31 = vshll.u32 %v4965_v5, 16  ;;  %v4396_v5 = vld [vmem:[%s4545_s8 + $0x1c] sm:$0xf] }
  0x62   : > { %2264 = vrot.lane.b32.xlu0 %v3969_v4, %s4469_s13  ;;  %v590_v47 = vor.u32 %v589_v15, %v586_v58  ;;  %v593_v39 = vshll.u32 %v4879_v30, 16  ;;  %v599_v41 = vrot.slane %v597_v38, 4  ;;  %v603_v49 = vshll.u32 %v4978_v63, 16 }
  0x63   : > { %2442 = vrot.lane.b32.xlu1 %v4006_v19, %s4471_s16  ;;  %v1951_v57 = vor.u32 %v1950_v37, %v1946_v28  ;;  %v1956_v55 = vrot.slane %v1954_v31, 5  ;;  %v1127_v58 = vor.u32 %v4982_v35, %v4980_v20  ;;  %v1947_v38 = vsel %vm4673_vm5, %v1942_v33, %v1946_v28  ;;  %v5042_v31 = vld [vmem:[%s4545_s8 + $0x28] sm:$0xf]  ;;  %v5176_v20 = vld [vmem:[%s4545_s8 + $0x2c] sm:$0x1] }
  0x64   : > { %v591_v15 = vrot.slane %v590_v47, 4  ;;  %v595_v0 = vrot.slane %v593_v39, 5  ;;  %v605_v2 = vrot.slane %v603_v49, 5  ;;  %v4014_v3 = vcombine.low %v4664_v52, %v4668_v59  ;;  %v5047_v49 = vld [vmem:[%s4545_s8 + $0x54] sm:$0xf] }
  0x65   : > { %v1952_v62 = vrot.slane %v1951_v57, 4  ;;  %v1615_v40 = vshrl.u32 %v4999_v61, 16  ;;  %v1618_v45 = vshll.u32 %v4999_v61, 16  ;;  %v3769_v46 = vrot.slane %v752_v29, 9  ;;  %v843_v57 = vld [vmem:[%s4545_s8 + $0xc] sm:$0xe] }
  0x66   : > { %2624 = vrot.lane.b32.xlu0 %v4041_v26, %s4470_s14  ;;  %v600_v22 = vor.u32 %v599_v41, %v595_v0  ;;  %v596_v25 = vsel %vm4673_vm5, %v591_v15, %v595_v0  ;;  %v795_v52 = vrot.slane %v4923_v8, 5  ;;  %v798_v59 = vrot.slane %v4930_v16, 5  ;;  %v5033_v16 = vld [vmem:[%s4545_s8 + $0x24] sm:$0xf] }
  0x67   : > { %v1957_v36 = vsel %vm4673_vm5, %v1952_v62, %v1956_v55  ;;  %v1345_v19 = vshrl.u32 %v5006_v42, 16  ;;  %v1348_v11 = vshll.u32 %v5006_v42, 16  ;;  %v1354_v13 = vshll.u32 %v5009_v18, 16  ;;  %v5055_v62 = vld [vmem:[%s4556_s9 + $0x64] sm:$0xf] }
  0x68   : > { %v4078_v7 = vcombine.low %v1947_v38, %v1957_v36  ;;  %v601_v1 = vrot.slane %v600_v22, 4  ;;  %v796_v12 = vsel %vm4580_vm2, %v3769_v46, %v795_v52  ;;  %v797_v17 = vrot.slane %v795_v52, 4 }
  0x69   : > { %v1358_v8 = vshrl.u32 %v5009_v18, 16  ;;  %v1347_v50 = vrot.slane %v1345_v19, 4  ;;  %v1350_v37 = vrot.slane %v1348_v11, 5  ;;  %v1364_v4 = vshll.u32 %v5021_v6, 16  ;;  %v3905_v19 = vld [vmem:[%s4556_s9 + $0x2c] sm:$0x1] }
  0x6a   : > { %2810 = vrot.lane.b32.xlu1 %v4078_v7, %s4472_s28  ;;  %v606_v54 = vsel %vm4673_vm5, %v601_v1, %v605_v2  ;;  %v799_v26 = vsel %vm4580_vm2, %v797_v17, %v798_v59  ;;  %v1356_v33 = vrot.slane %v1354_v13, 5  ;;  %v1617_v29 = vrot.slane %v1615_v40, 4  ;;  %v5058_v2 = vld [vmem:[%s4556_s9 + $0x68] sm:$0x1]  ;;  %v328_v17 = vld [vmem:[%s4556_s9 + $0x54] sm:$0xf] }
  0x6b   : > { %v3977_v48 = vcombine.low %v596_v25, %v606_v54  ;;  %v1360_v28 = vrot.slane %v1358_v8, 4  ;;  %v1628_v47 = vshrl.u32 %v5024_v9, 16  ;;  %v1351_v39 = vor.u32 %v1350_v37, %v1347_v50  ;;  %v5063_v25 = vld [vmem:[%s4545_s8 + $0x58] sm:$0xf] }
  0x6c   : > { %v1815_v41 = vshrl.u32 %v5033_v16, 16  ;;  %v4049_v55 = vcombine.low %v4999_v61, %v5024_v9  ;;  %v1366_v0 = vrot.slane %v1364_v4, 5  ;;  %v1818_v38 = vshll.u32 %v5033_v16, 16  ;;  %v3843_v61 = vld [vmem:[%s4556_s9 + $0x60] sm:$0xe] }
  0x6d   : > { %2304 = vrot.lane.b32.xlu0 %v3977_v48, %s4470_s14  ;;  %v1361_v15 = vor.u32 %v1360_v28, %v1356_v33  ;;  %v1620_v22 = vrot.slane %v1618_v45, 5  ;;  %v3985_v40 = vcombine.low %v796_v12, %v799_v26  ;;  %v1352_v46 = vrot.slane %v1351_v39, 4 }
  0x6e   : > { %2490 = vrot.lane.b32.xlu1 %v4014_v3, %s4472_s28  ;;  %v1828_v36 = vshrl.u32 %v5042_v31, 16  ;;  %v5066_v59 = vrot.slane %v1815_v41, 4  ;;  %v4057_v7 = vcombine.low %v5033_v16, %v5042_v31  ;;  %v728_v1 = vshrl.u32 %v5047_v49, 16  ;;  %v5091_v41 = vld [vmem:[%s4556_s9 + $0x58] sm:$0xf] }
  0x6f   : > { %v1362_v52 = vrot.slane %v1361_v15, 4  ;;  %v1357_v3 = vsel %vm4673_vm5, %v1352_v46, %v1356_v33  ;;  %v5074_v45 = vrot.slane %v1818_v38, 5  ;;  %v731_v11 = vshll.u32 %v5047_v49, 16 }
  0x70   : > { %v3777_v12 = vrot.slane %v843_v57, 9  ;;  %v741_v8 = vshrl.u32 %v5063_v25, 16  ;;  %v883_v16 = vrot.slane %v4879_v30, 5  ;;  %v886_v54 = vrot.slane %v4978_v63, 5 }
  0x71   : > { %2672 = vrot.lane.b32.xlu0 %v4049_v55, %s4468_s12  ;;  %v1367_v13 = vsel %vm4673_vm5, %v1362_v52, %v1366_v0  ;;  %v3851_v37 = vrot.slane %v3843_v61, 9  ;;  %v1451_v4 = vrot.slane %v5055_v62, 5  ;;  %v1454_v48 = vrot.slane %v5058_v2, 5 }
  0x72   : > { %2344 = vrot.lane.b32.xlu1 %v3985_v40, %s4468_s12  ;;  %v4031_v50 = vcombine.low %v1357_v3, %v1367_v13  ;;  %v884_v26 = vsel %vm4580_vm2, %v3777_v12, %v883_v16  ;;  %v885_v33 = vrot.slane %v883_v16, 4  ;;  %v1621_v28 = vor.u32 %v1620_v22, %v1617_v29  ;;  %v5099_v40 = vld [vmem:[%s4556_s9 + $0x5c] sm:$0x1]  ;;  %v3859_v16 = vld [vmem:[%s4545_s8 + $0x60] sm:$0xe] }
  0x73   : > { %v1624_v39 = vshll.u32 %v5024_v9, 16  ;;  %v3967_v30 = vcombine.low %v5047_v49, %v5063_v25  ;;  %v1453_v63 = vrot.slane %v1451_v4, 4  ;;  %v1630_v57 = vrot.slane %v1628_v47, 4 }
  0x74   : > { %v1634_v55 = vshll.u32 %v3905_v19, 16  ;;  %v887_v15 = vsel %vm4580_vm2, %v885_v33, %v886_v54  ;;  %v1622_v0 = vrot.slane %v1621_v28, 4  ;;  %v528_v29 = vshrl.u32 %v328_v17, 16 }
  0x75   : > { %2556 = vrot.lane.b32.xlu0 %v4031_v50, %s4466_s10  ;;  %v1626_v38 = vrot.slane %v1624_v39, 5  ;;  %v3993_v9 = vcombine.low %v884_v26, %v887_v15  ;;  %v1452_v49 = vsel %vm4580_vm2, %v3851_v37, %v1451_v4  ;;  %v1455_v47 = vsel %vm4580_vm2, %v1453_v63, %v1454_v48 }
  0x76   : > { %2720 = vrot.lane.b32.xlu1 %v4057_v7, %s4467_s11  ;;  %v531_v22 = vshll.u32 %v328_v17, 16  ;;  %v730_v46 = vrot.slane %v728_v1, 4  ;;  %v1636_v52 = vrot.slane %v1634_v55, 5  ;;  %v530_v19 = vrot.slane %v528_v29, 4  ;;  %v3788_v1 = vld [vmem:[%s4556_s9 + $0x18] sm:$0xf] }
  0x77   : > { %v1631_v61 = vor.u32 %v1630_v57, %v1626_v38  ;;  %v537_v12 = vshll.u32 %v5091_v41, 16  ;;  %v541_v13 = vshrl.u32 %v5091_v41, 16  ;;  %v547_v7 = vshll.u32 %v5099_v40, 16  ;;  %v5122_v29 = vld [vmem:[%s4545_s8 + $0x2c] sm:$0x1] }
  0x78   : > { %v533_v3 = vrot.slane %v531_v22, 5  ;;  %v733_v54 = vrot.slane %v731_v11, 5  ;;  %v4039_v50 = vcombine.low %v1452_v49, %v1455_v47  ;;  %v1627_v37 = vsel %vm4673_vm5, %v1622_v0, %v1626_v38 }
  0x79   : > { %2236 = vrot.lane.b32.xlu0 %v3967_v30, %s4466_s10  ;;  %v1632_v17 = vrot.slane %v1631_v61, 4  ;;  %v539_v48 = vrot.slane %v537_v12, 5  ;;  %v543_v26 = vrot.slane %v541_v13, 4  ;;  %v1001_v33 = vshrl.u32 %v3788_v1, 16  ;;  %v5142_v13 = vld [vmem:[%s4545_s8 + $0x5c] sm:$0x1] }
  0x7a   : > { %2384 = vrot.lane.b32.xlu1 %v3993_v9, %s4467_s11  ;;  %v534_v4 = vor.u32 %v533_v3, %v530_v19  ;;  %v549_v39 = vrot.slane %v547_v7, 5  ;;  %v1004_v11 = vshll.u32 %v3788_v1, 16  ;;  %v3867_v63 = vrot.slane %v3859_v16, 9 }
  0x7b   : > { %v1637_v28 = vsel %vm4673_vm5, %v1632_v17, %v1636_v52  ;;  %v544_v55 = vor.u32 %v543_v26, %v539_v48  ;;  %v1539_v15 = vrot.slane %v5009_v18, 5  ;;  %v4001_v0 = vcombine.low %v3788_v1, %v4882_v32 }
  0x7c   : > { %v4065_v30 = vcombine.low %v1627_v37, %v1637_v28  ;;  %v535_v57 = vrot.slane %v534_v4, 4  ;;  %v1542_v38 = vrot.slane %v5021_v6, 5  ;;  %v1821_v9 = vor.u32 %v5074_v45, %v5066_v59  ;;  %v5156_v28 = vld [vmem:[%s4556_s9 + $0x6c] sm:$0xf] }
  0x7d   : > { %2596 = vrot.lane.b32.xlu0 %v4039_v50, %s4469_s13  ;;  %v1824_v49 = vshll.u32 %v5042_v31, 16  ;;  %v545_v22 = vrot.slane %v544_v55, 4  ;;  %v1540_v61 = vsel %vm4580_vm2, %v3867_v63, %v1539_v15  ;;  %v1541_v32 = vrot.slane %v1539_v15, 4  ;;  %v5173_v15 = vld [vmem:[%s4545_s8 + $0x28] sm:$0xf] }
  0x7e   : > { %2760 = vrot.lane.b32.xlu1 %v4065_v30, %s4471_s16  ;;  %v540_v47 = vsel %vm4673_vm5, %v535_v57, %v539_v48  ;;  %v5132_v52 = vrot.slane %v1001_v33, 4  ;;  %v1822_v6 = vrot.slane %v1821_v9, 4  ;;  %v1830_v59 = vrot.slane %v1828_v36, 4  ;;  %v758_v48 = vld [vmem:[%s4556_s9 + $0x54] sm:$0xe] }
  0x7f   : > { %v1826_v19 = vrot.slane %v1824_v49, 5  ;;  %v550_v45 = vsel %vm4673_vm5, %v545_v22, %v549_v39  ;;  %v1543_v3 = vsel %vm4580_vm2, %v1541_v32, %v1542_v38  ;;  %v1834_v12 = vshll.u32 %v5122_v29, 16  ;;  %v5166_v30 = vld [vmem:[%s4545_s8 + $0x24] sm:$0xf] }
  0x80   : > { %v734_v7 = vor.u32 %v733_v54, %v730_v46  ;;  %v3975_v16 = vcombine.low %v540_v47, %v550_v45  ;;  %v1006_v50 = vrot.slane %v1004_v11, 5  ;;  %v4047_v37 = vcombine.low %v1540_v61, %v1543_v3 }
  0x81   : > { %v1831_v17 = vor.u32 %v1830_v59, %v1826_v19  ;;  %v1836_v31 = vrot.slane %v1834_v12, 5  ;;  %v737_v1 = vshll.u32 %v5063_v25, 16  ;;  %v743_v4 = vrot.slane %v741_v8, 4 }
  0x82   : > { %2432 = vrot.lane.b32.xlu1 %v4001_v0, %s4471_s16  ;;  %v735_v36 = vrot.slane %v734_v7, 4  ;;  %2276 = vrot.lane.b32.xlu0 %v3975_v16, %s4469_s13  ;;  %v1827_v46 = vsel %vm4673_vm5, %v1822_v6, %v1826_v19  ;;  %v747_v26 = vshll.u32 %v5142_v13, 16  ;;  %v4009_v33 = vcombine.low %v4818_v43, %v4824_v53  ;;  %v5190_v19 = vld [vmem:[%s4556_s9 + $0x70] sm:$0xf] }
  0x83   : > { %v1832_v54 = vrot.slane %v1831_v17, 4  ;;  %v5161_v8 = vrot.slane %v1127_v58, 4  ;;  %v739_v63 = vrot.slane %v737_v1, 5  ;;  %v1007_v57 = vor.u32 %v1006_v50, %v5132_v52  ;;  %v3902_v50 = vld [vmem:[%s4545_s8 + $0x6c] sm:$0xf] }
  0x84   : > { %v1759_v43 = vshrl.u32 %v5156_v28, 16  ;;  %v3775_v53 = vrot.slane %v758_v48, 9  ;;  %v749_v38 = vrot.slane %v747_v26, 5  ;;  %v837_v9 = vrot.slane %v5091_v41, 5  ;;  %v849_v26 = vld [vmem:[%s4545_s8 + $0x54] sm:$0xe] }
  0x85   : > { %v1837_v55 = vsel %vm4673_vm5, %v1832_v54, %v1836_v31  ;;  %v740_v58 = vsel %vm4673_vm5, %v735_v36, %v739_v63  ;;  %v744_v0 = vor.u32 %v743_v4, %v739_v63  ;;  %v840_v49 = vrot.slane %v5099_v40, 5 }
  0x86   : > { %v4073_v35 = vcombine.low %v1827_v46, %v1837_v55  ;;  %2636 = vrot.lane.b32.xlu0 %v4047_v37, %s4470_s14  ;;  %v1225_v47 = vshrl.u32 %v5166_v30, 16  ;;  %v1228_v22 = vshll.u32 %v5166_v30, 16  ;;  %v1234_v32 = vshll.u32 %v5173_v15, 16  ;;  %v5202_v46 = vld [vmem:[%s4545_s8 + $0x70] sm:$0xf] }
  0x87   : > { %v745_v61 = vrot.slane %v744_v0, 4  ;;  %v1238_v52 = vshrl.u32 %v5173_v15, 16  ;;  %v1244_v6 = vshll.u32 %v5176_v20, 16  ;;  %v838_v41 = vsel %vm4580_vm2, %v3775_v53, %v837_v9  ;;  %6564 = vst [vmem:[#allocation3_spill] sm:$0xff] %v5202_v46 }
  0x88   : > { %2800 = vrot.lane.b32.xlu1 %v4073_v35, %s4472_s28  ;;  %v839_v40 = vrot.slane %v837_v9, 4  ;;  %v1227_v59 = vrot.slane %v1225_v47, 4  ;;  %v1230_v45 = vrot.slane %v1228_v22, 5  ;;  %v1762_v12 = vshll.u32 %v5156_v28, 16  ;;  %v5212_v35 = vld [vmem:[%s4545_s8 + $0x18] sm:$0xf] }
  0x89   : > { %v750_v3 = vsel %vm4673_vm5, %v745_v61, %v749_v38  ;;  %v1236_v7 = vrot.slane %v1234_v32, 5  ;;  %v1240_v16 = vrot.slane %v1238_v52, 4  ;;  %v1959_v36 = vshrl.u32 %v3902_v50, 16  ;;  %v3838_v47 = vld [vmem:[%s4556_s9 + $0x24] sm:$0xe] }
  0x8a   : > { %v3983_v37 = vcombine.low %v740_v58, %v750_v3  ;;  %v841_v17 = vsel %vm4580_vm2, %v839_v40, %v840_v49  ;;  %v1231_v31 = vor.u32 %v1230_v45, %v1227_v59  ;;  %v1246_v48 = vrot.slane %v1244_v6, 5  ;;  %v5215_v58 = vld [vmem:[%s4556_s9 + $0x28] sm:$0xf]  ;;  %v5227_v52 = vld [vmem:[%s4556_s9 + $0x2c] sm:$0x1] }
  0x8b   : > { %v3991_v1 = vcombine.low %v838_v41, %v841_v17  ;;  %v1241_v4 = vor.u32 %v1240_v16, %v1236_v7  ;;  %v1962_v54 = vshll.u32 %v3902_v50, 16  ;;  %v5205_v63 = vrot.slane %v1007_v57, 4  ;;  %v3911_v6 = vld [vmem:[%s4556_s9 + $0x74] sm:$0x1]  ;;  %v5238_v59 = vld [vmem:[%s4545_s8 + $0x1c] sm:$0xf] }
  0x8c   : > { %2480 = vrot.lane.b32.xlu1 %v4009_v33, %s4472_s28  ;;  %2316 = vrot.lane.b32.xlu0 %v3983_v37, %s4470_s14  ;;  %v1772_v55 = vshrl.u32 %v5190_v19, 16  ;;  %v4055_v53 = vcombine.low %v5156_v28, %v5190_v19  ;;  %v1232_v33 = vrot.slane %v1231_v31, 4  ;;  %v5217_v0 = vpop.permute.xlu0 %2222  ;;  %v1761_v38 = vrot.slane %v1759_v43, 4 }
  0x8d   : > { %v1764_v57 = vrot.slane %v1762_v12, 5  ;;  %v1242_v9 = vrot.slane %v1241_v4, 4  ;;  %v1972_v49 = vshrl.u32 %v5202_v46, 16  ;;  %v5223_v61 = vrot.slane %v1959_v36, 4  ;;  %v5230_v41 = vpop.permute.xlu1 %2718  ;;  %v318_v12 = vld [vmem:[%s4556_s9 + $0x18] sm:$0xf] }
  0x8e   : > { %v1237_v22 = vsel %vm4673_vm5, %v1232_v33, %v1236_v7  ;;  %v4063_v28 = vcombine.low %v3902_v50, %v5202_v46  ;;  %v3783_v32 = vrot.slane %v849_v26, 9  ;;  %v5235_v40 = vrot.slane %v1962_v54, 5  ;;  %v5251_v4 = vld [vmem:[%s4556_s9 + $0x1c] sm:$0xf] }
  0x8f   : > { %v1247_v43 = vsel %vm4673_vm5, %v1242_v9, %v1246_v48  ;;  %v608_v45 = vshrl.u32 %v5212_v35, 16  ;;  %v925_v3 = vrot.slane %v5063_v25, 5  ;;  %v611_v16 = vshll.u32 %v5212_v35, 16 }
  0x90   : > { %2356 = vrot.lane.b32.xlu1 %v3991_v1, %s4468_s12  ;;  %2684 = vrot.lane.b32.xlu0 %v4055_v53, %s4468_s12  ;;  %v4026_v7 = vcombine.low %v1237_v22, %v1247_v43  ;;  %v928_v50 = vrot.slane %v5142_v13, 5  ;;  %v3846_v37 = vrot.slane %v3838_v47, 9  ;;  %v1416_v36 = vrot.slane %v5215_v58, 5  ;;  %v5254_v53 = vpop.permute.xlu0 %2670  ;;  %v5265_v22 = vld [vmem:[%s4556_s9 + $0x20] sm:$0x1] }
  0x91   : > { %v926_v17 = vsel %vm4580_vm2, %v3783_v32, %v925_v3  ;;  %v927_v31 = vrot.slane %v925_v3, 4  ;;  %v1419_v1 = vrot.slane %v5227_v52, 5  ;;  %v1765_v25 = vor.u32 %v1764_v57, %v1761_v38 }
  0x92   : > { %v1768_v48 = vshll.u32 %v5190_v19, 16  ;;  %v1774_v54 = vrot.slane %v1772_v55, 4  ;;  %v1778_v26 = vshll.u32 %v3911_v6, 16  ;;  %v1417_v33 = vsel %vm4580_vm2, %v3846_v37, %v1416_v36 }
  0x93   : > { %v929_v13 = vsel %vm4580_vm2, %v927_v31, %v928_v50  ;;  %v1418_v9 = vrot.slane %v1416_v36, 4  ;;  %v408_v47 = vshrl.u32 %v318_v12, 16  ;;  %v3962_v38 = vcombine.low %v5212_v35, %v5238_v59 }
  0x94   : > { %2732 = vrot.lane.b32.xlu1 %v4063_v28, %s4467_s11  ;;  %2546 = vrot.lane.b32.xlu0 %v4026_v7, %s4466_s10  ;;  %v3999_v19 = vcombine.low %v926_v17, %v929_v13  ;;  %v1766_v55 = vrot.slane %v1765_v25, 4  ;;  %v1770_v57 = vrot.slane %v1768_v48, 5  ;;  %v411_v43 = vshll.u32 %v318_v12, 16 }
  0x95   : > { %v1420_v32 = vsel %vm4580_vm2, %v1418_v9, %v1419_v1  ;;  %v410_v6 = vrot.slane %v408_v47, 4  ;;  %v417_v3 = vshll.u32 %v5251_v4, 16  ;;  %v1780_v37 = vrot.slane %v1778_v26, 5  ;;  %v3800_v1 = vld [vmem:[%s4556_s9 + $0x60] sm:$0xf]  ;;  %v5280_v26 = vpop.permute.xlu0 %2234 }
  0x96   : > { %v5267_v28 = vpop.permute.xlu1 %2582  ;;  %v4034_v7 = vcombine.low %v1417_v33, %v1420_v32  ;;  %v1775_v50 = vor.u32 %v1774_v54, %v1770_v57  ;;  %v421_v35 = vshrl.u32 %v5251_v4, 16  ;;  %v1771_v17 = vsel %vm4673_vm5, %v1766_v55, %v1770_v57  ;;  %v3854_v54 = vld [vmem:[%s4545_s8 + $0x24] sm:$0xe] }
  0x97   : > { %v413_v31 = vrot.slane %v411_v43, 5  ;;  %v419_v36 = vrot.slane %v417_v3, 5  ;;  %v427_v25 = vshll.u32 %v5265_v22, 16  ;;  %v1145_v13 = vshrl.u32 %v3800_v1, 16 }
  0x98   : > { %2396 = vrot.lane.b32.xlu1 %v3999_v19, %s4467_s11  ;;  %2226 = vrot.lane.b32.xlu0 %v3962_v38, %s4466_s10  ;;  %v1776_v12 = vrot.slane %v1775_v50, 4  ;;  %v423_v48 = vrot.slane %v421_v35, 4  ;;  %v1148_v33 = vshll.u32 %v3800_v1, 16  ;;  %v610_v9 = vrot.slane %v608_v45, 4 }
  0x99   : > { %v613_v47 = vrot.slane %v611_v16, 5  ;;  %v621_v19 = vshrl.u32 %v5238_v59, 16  ;;  %v414_v55 = vor.u32 %v413_v31, %v410_v6  ;;  %v429_v38 = vrot.slane %v427_v25, 5 }
  0x9a   : > { %v5283_v57 = vpop.permute.xlu1 %2342  ;;  %v1781_v32 = vsel %vm4673_vm5, %v1776_v12, %v1780_v37  ;;  %v424_v43 = vor.u32 %v423_v48, %v419_v36  ;;  %v4007_v3 = vcombine.low %v3800_v1, %v5055_v62  ;;  %v3862_v39 = vrot.slane %v3854_v54, 9  ;;  %v5292_v37 = vld [vmem:[%s4545_s8 + $0x74] sm:$0x1]  ;;  %v5307_v48 = vld [vmem:[%s4545_s8 + $0x20] sm:$0x1] }
  0x9b   : > { %v4071_v50 = vcombine.low %v1771_v17, %v1781_v32  ;;  %v415_v35 = vrot.slane %v414_v55, 4  ;;  %v1504_v51 = vrot.slane %v5173_v15, 5  ;;  %v1147_v16 = vrot.slane %v1145_v13, 4  ;;  %6565 = vst [vmem:[#allocation4_spill] sm:$0xff] %v5292_v37  ;;  %v5309_v13 = vpop.permute.xlu0 %2622  ;;  %v4391_v54 = vld [vmem:[%s4556_s9] sm:$0xf] }
  0x9c   : > { %2586 = vrot.lane.b32.xlu0 %v4034_v7, %s4469_s13  ;;  %v425_v45 = vrot.slane %v424_v43, 4  ;;  %v1150_v6 = vrot.slane %v1148_v33, 5  ;;  %v1507_v31 = vrot.slane %v5176_v20, 5  ;;  %v1965_v25 = vor.u32 %v5235_v40, %v5223_v61  ;;  %v4390_v33 = vld [vmem:[%s4556_s9 + $0x4] sm:$0xf] }
  0x9d   : > { %2772 = vrot.lane.b32.xlu1 %v4071_v50, %s4471_s16  ;;  %v420_v62 = vsel %vm4673_vm5, %v415_v35, %v419_v36  ;;  %v1506_v17 = vrot.slane %v1504_v51, 4  ;;  %v1505_v1 = vsel %vm4580_vm2, %v3862_v39, %v1504_v51  ;;  %v1968_v20 = vshll.u32 %v5202_v46, 16 }
  0x9e   : > { %v430_v7 = vsel %vm4673_vm5, %v425_v45, %v429_v38  ;;  %v1974_v12 = vrot.slane %v1972_v49, 4  ;;  %v3952_v55 = vcombine.low %v4391_v54, %v4390_v33  ;;  %v1978_v40 = vshll.u32 %v5292_v37, 16  ;;  %v5316_v51 = vpop.permute.xlu1 %2382 }
  0x9f   : > { %v3970_v36 = vcombine.low %v420_v62, %v430_v7  ;;  %v1508_v61 = vsel %vm4580_vm2, %v1506_v17, %v1507_v31  ;;  %v1151_v39 = vor.u32 %v1150_v6, %v1147_v16  ;;  %v1966_v32 = vrot.slane %v1965_v25, 4  ;;  %v753_v25 = vld [vmem:[%s4556_s9 + $0x18] sm:$0xe] }
  0xa0   : > { %v1970_v43 = vrot.slane %v1968_v20, 5  ;;  %v614_v49 = vor.u32 %v613_v47, %v610_v9  ;;  %v4042_v38 = vcombine.low %v1505_v1, %v1508_v61  ;;  %v617_v50 = vshll.u32 %v5238_v59, 16  ;;  %v5326_v9 = vld [vmem:[%s4556_s9 + $0x30] sm:$0xf]  ;;  %v3875_v20 = vld [vmem:[%s4556_s9 + $0x34] sm:$0xf] }
  0xa1   : > { %2266 = vrot.lane.b32.xlu0 %v3970_v36, %s4469_s13  ;;  %2444 = vrot.lane.b32.xlu1 %v4007_v3, %s4471_s16  ;;  %v623_v35 = vrot.slane %v621_v19, 4  ;;  %v627_v45 = vshll.u32 %v5307_v48, 16  ;;  %v1980_v17 = vrot.slane %v1978_v40, 5  ;;  %v4015_v16 = vcombine.low %v5006_v42, %v5009_v18 }
  0xa2   : > { %v1975_v62 = vor.u32 %v1974_v12, %v1970_v43  ;;  %v5331_v3 = vsel %vm2814_vm6, %v3952_v55, %v5217_v0  ;;  %v615_v19 = vrot.slane %v614_v49, 4  ;;  %v619_v6 = vrot.slane %v617_v50, 5  ;;  %v5346_v55 = vld [vmem:[%s4545_s8 + $0x30] sm:$0xf]  ;;  %v844_v50 = vld [vmem:[%s4545_s8 + $0x18] sm:$0xe] }
  0xa3   : > { %v5334_v7 = vrot.slane %v1151_v39, 4  ;;  %v1971_v1 = vsel %vm4673_vm5, %v1966_v32, %v1970_v43  ;;  %v629_v36 = vrot.slane %v627_v45, 5  ;;  %v1639_v33 = vshrl.u32 %v5326_v9, 16  ;;  %v4392_v39 = vld [vmem:[%s4556_s9 + $0x48] sm:$0xf] }
  0xa4   : > { %v1976_v42 = vrot.slane %v1975_v62, 4  ;;  %v5340_v12 = vpop.permute.xlu0 %2542  ;;  %v624_v0 = vor.u32 %v623_v35, %v619_v6  ;;  %v1642_v54 = vshll.u32 %v5326_v9, 16  ;;  %v4393_v32 = vld [vmem:[%s4556_s9 + $0x4c] sm:$0xf]  ;;  %v3770_v49 = vrot.slane %v753_v25, 9 }
  0xa5   : > { %2626 = vrot.lane.b32.xlu0 %v4042_v38, %s4470_s14  ;;  %v3958_v43 = vcombine.low %v4392_v39, %v4393_v32  ;;  %v802_v38 = vrot.slane %v5251_v4, 5  ;;  %v620_v45 = vsel %vm4673_vm5, %v615_v19, %v619_v6  ;;  %v805_v18 = vrot.slane %v5265_v22, 5 }
  0xa6   : > { %v1981_v40 = vsel %vm4673_vm5, %v1976_v42, %v1980_v17  ;;  %v625_v62 = vrot.slane %v624_v0, 4  ;;  %v1652_v31 = vshrl.u32 %v3875_v20, 16  ;;  %v4050_v47 = vcombine.low %v5326_v9, %v3875_v20 }
  0xa7   : > { %v5348_v61 = vpop.permute.xlu1 %2262  ;;  %v4079_v35 = vcombine.low %v1971_v1, %v1981_v40  ;;  %v804_v11 = vrot.slane %v802_v38, 4  ;;  %v1839_v17 = vshrl.u32 %v5346_v55, 16  ;;  %v1641_v25 = vrot.slane %v1639_v33, 4 }
  0xa8   : > { %v630_v4 = vsel %vm4673_vm5, %v625_v62, %v629_v36  ;;  %v1644_v1 = vrot.slane %v1642_v54, 5  ;;  %v3778_v19 = vrot.slane %v844_v50, 9  ;;  %v803_v22 = vsel %vm4580_vm2, %v3770_v49, %v802_v38  ;;  %v3906_v38 = vld [vmem:[%s4556_s9 + $0x38] sm:$0x1] }
  0xa9   : > { %2812 = vrot.lane.b32.xlu1 %v4079_v35, %s4472_s28  ;;  %v3978_v6 = vcombine.low %v620_v45, %v630_v4  ;;  %v806_v9 = vsel %vm4580_vm2, %v804_v11, %v805_v18  ;;  %v890_v42 = vrot.slane %v5238_v59, 5  ;;  %v5376_v40 = vsel %vm2814_vm6, %v3958_v43, %v5280_v26  ;;  %v4394_v59 = vld [vmem:[%s4556_s9 + $0x10] sm:$0xf] }
  0xaa   : > { %v1842_v36 = vshll.u32 %v5346_v55, 16  ;;  %v893_v54 = vrot.slane %v5307_v48, 5  ;;  %v5384_v32 = vrot.slane %v1839_v17, 4  ;;  %v986_v18 = vshll.u32 %v4394_v59, 16 }
  0xab   : > { %v5372_v0 = vpop.permute.xlu0 %2554  ;;  %2306 = vrot.lane.b32.xlu0 %v3978_v6, %s4470_s14  ;;  %v892_v11 = vrot.slane %v890_v42, 4  ;;  %v990_v49 = vshrl.u32 %v4394_v59, 16  ;;  %v3986_v26 = vcombine.low %v803_v22, %v806_v9  ;;  %v891_v43 = vsel %vm4580_vm2, %v3778_v19, %v890_v42 }
  0xac   : > { %v5381_v39 = vpop.permute.xlu1 %2302  ;;  %v1645_v50 = vor.u32 %v1644_v1, %v1641_v25  ;;  %v1648_v48 = vshll.u32 %v3875_v20, 16  ;;  %v988_v45 = vrot.slane %v986_v18, 5  ;;  %v1654_v17 = vrot.slane %v1652_v31, 4  ;;  %v3790_v25 = vld [vmem:[%s4556_s9 + $0x24] sm:$0xf] }
  0xad   : > { %2492 = vrot.lane.b32.xlu1 %v4015_v16, %s4472_s28  ;;  %v894_v35 = vsel %vm4580_vm2, %v892_v11, %v893_v54  ;;  %v992_v62 = vrot.slane %v990_v49, 4  ;;  %v4058_v4 = vcombine.low %v5346_v55, %v5361_v10  ;;  %v1658_v33 = vshll.u32 %v3906_v38, 16  ;;  %v4395_v54 = vld [vmem:[%s4556_s9 + $0x58] sm:$0xf] }
  0xae   : > { %v1646_v6 = vrot.slane %v1645_v50, 4  ;;  %v1650_v59 = vrot.slane %v1648_v48, 5  ;;  %v1844_v16 = vrot.slane %v1842_v36, 5  ;;  %v998_v20 = vrot.slane %v996_v23, 5  ;;  %v5423_v48 = vld [vmem:[%s4545_s8 + $0x38] sm:$0x1] }
  0xaf   : > { %2674 = vrot.lane.b32.xlu0 %v4050_v47, %s4468_s12  ;;  %v993_v19 = vor.u32 %v992_v62, %v988_v45  ;;  %v5399_v1 = vpop.permute.xlu0 %2594  ;;  %v3994_v31 = vcombine.low %v891_v43, %v894_v35  ;;  %v1660_v55 = vrot.slane %v1658_v33, 5  ;;  %v1025_v9 = vshrl.u32 %v3790_v25, 16 }
  0xb0   : > { %v1655_v22 = vor.u32 %v1654_v17, %v1650_v59  ;;  %v989_v47 = vsel %vm4673_vm5, %v4872_v14, %v988_v45  ;;  %v1130_v24 = vshll.u32 %v4395_v54, 16  ;;  %v2841_v23 = vsel %vm2839_vm7, %v5331_v3, %v5348_v61 }
  0xb1   : > { %2346 = vrot.lane.b32.xlu1 %v3986_v26, %s4468_s12  ;;  %v994_v36 = vrot.slane %v993_v19, 4  ;;  %v1651_v11 = vsel %vm4673_vm5, %v1646_v6, %v1650_v59  ;;  %v1134_v18 = vshrl.u32 %v4395_v54, 16  ;;  %v1028_v38 = vshll.u32 %v3790_v25, 16 }
  0xb2   : > { %v1656_v33 = vrot.slane %v1655_v22, 4  ;;  %v4002_v14 = vcombine.low %v3790_v25, %v5215_v58  ;;  %v1132_v26 = vrot.slane %v1130_v24, 5  ;;  %v5420_v61 = vrot.slane %v1025_v9, 4  ;;  %v5438_v25 = vld [vmem:[%s4545_s8 + $0x30] sm:$0xf] }
  0xb3   : > { %v5402_v42 = vpop.permute.xlu1 %2758  ;;  %2722 = vrot.lane.b32.xlu0 %v4058_v4, %s4467_s11  ;;  %v999_v49 = vsel %vm4673_vm5, %v994_v36, %v998_v20  ;;  %v1136_v50 = vrot.slane %v1134_v18, 4  ;;  %v1142_v62 = vrot.slane %v1140_v34, 5  ;;  %v1845_v58 = vor.u32 %v1844_v16, %v5384_v32 }
  0xb4   : > { %v4016_v43 = vcombine.low %v989_v47, %v999_v49  ;;  %v1661_v3 = vsel %vm4673_vm5, %v1656_v33, %v1660_v55  ;;  %v1848_v59 = vshll.u32 %v5361_v10, 16  ;;  %v6566_v19 = vshrl.u32 %v5361_v10, 16  ;;  %v5460_v47 = vld [vmem:[%s4545_s8 + $0x38] sm:$0x1] }
  0xb5   : > { %2386 = vrot.lane.b32.xlu1 %v3994_v31, %s4467_s11  ;;  %v4066_v45 = vcombine.low %v1651_v11, %v1661_v3  ;;  %v1137_v6 = vor.u32 %v1136_v50, %v1132_v26  ;;  %v1133_v34 = vsel %vm4673_vm5, %v5161_v8, %v1132_v26  ;;  %v1846_v32 = vrot.slane %v1845_v58, 4  ;;  %v5482_v50 = vld [vmem:[%s4545_s8 + $0x28] sm:$0xf] }
  0xb6   : > { %v2951_v4 = vsel %vm2814_vm6, %v4016_v43, %v5340_v12  ;;  %v1854_v20 = vrot.slane %v6566_v19, 4  ;;  %v1858_v12 = vshll.u32 %v5423_v48, 16  ;;  %v1850_v22 = vrot.slane %v1848_v59, 5  ;;  %v338_v43 = vld [vmem:[%s4545_s8 + $0x24] sm:$0xf] }
  0xb7   : > { %v5425_v35 = vpop.permute.xlu1 %2430  ;;  %v5430_v17 = vpop.permute.xlu0 %2274  ;;  %v2974_v60 = vsel %vm2839_vm7, %v2951_v4, %v5267_v28  ;;  %2762 = vrot.lane.b32.xlu0 %v4066_v45, %s4471_s16  ;;  %v1138_v31 = vrot.slane %v1137_v6, 4  ;;  %v4010_v55 = vcombine.low %v5166_v30, %v5173_v15  ;;  %v5453_v28 = vld [vmem:[%s4545_s8 + $0x34] sm:$0xf]  ;;  %v5455_v9 = vrot.slane %v1028_v38, 5 }
  0xb8   : > { %v2990_v16 = vsel %vm2856_vm8, %v2974_v60, %v5309_v13  ;;  %v2858_v8 = vsel %vm2856_vm8, %v2841_v23, %v5381_v39  ;;  %v1249_v36 = vshrl.u32 %v5438_v25, 16  ;;  %v1855_v15 = vor.u32 %v1854_v20, %v1850_v22 }
  0xb9   : > { %2434 = vrot.lane.b32.xlu1 %v4002_v14, %s4471_s16  ;;  %v1143_v30 = vsel %vm4673_vm5, %v1138_v31, %v1142_v62  ;;  %v1860_v24 = vrot.slane %v1858_v12, 5  ;;  %v3006_v11 = vsel %vm2873_vm9, %v2990_v16, %v5254_v53  ;;  %v1851_v23 = vsel %vm4673_vm5, %v1846_v32, %v1850_v22  ;;  %v5497_v12 = vld [vmem:[%s4556_s9 + $0x34] sm:$0xf]  ;;  %v3839_v16 = vld [vmem:[%s4556_s9 + $0x30] sm:$0xe] }
  0xba   : > { %v4022_v39 = vcombine.low %v1133_v34, %v1143_v30  ;;  %v1251_v33 = vrot.slane %v1249_v36, 4  ;;  %v1252_v18 = vshll.u32 %v5438_v25, 16  ;;  %v1856_v49 = vrot.slane %v1855_v15, 4  ;;  %v5504_v30 = vld [vmem:[%s4556_s9 + $0x38] sm:$0x1] }
  0xbb   : > { %v5463_v13 = vpop.permute.xlu0 %2634  ;;  %v5465_v54 = vpop.permute.xlu1 %2798  ;;  %v1258_v38 = vshll.u32 %v5453_v28, 16  ;;  %v1262_v14 = vshrl.u32 %v5453_v28, 16  ;;  %v1268_v26 = vshll.u32 %v5460_v47, 16  ;;  %v632_v45 = vshrl.u32 %v338_v43, 16 }
  0xbc   : > { %v1254_v3 = vrot.slane %v1252_v18, 5  ;;  %v1861_v4 = vsel %vm4673_vm5, %v1856_v49, %v1860_v24  ;;  %v635_v19 = vshll.u32 %v338_v43, 16  ;;  %v5492_v20 = vsel %vm2873_vm9, %v2858_v8, %v5283_v57  ;;  %v320_v57 = vld [vmem:[%s4556_s9 + $0x24] sm:$0xf] }
  0xbd   : > { %2482 = vrot.lane.b32.xlu1 %v4010_v55, %s4472_s28  ;;  %v1260_v6 = vrot.slane %v1258_v38, 5  ;;  %v1264_v59 = vrot.slane %v1262_v14, 4  ;;  %v4074_v60 = vcombine.low %v1851_v23, %v1861_v4  ;;  %v3022_v34 = vsel %vm2890_vm10, %v3006_v11, %v5230_v41  ;;  %v5531_v38 = vld [vmem:[%s4556_s9 + $0x2c] sm:$0x1] }
  0xbe   : > { %v1255_v32 = vor.u32 %v1254_v3, %v1251_v33  ;;  %v2969_v31 = vsel %vm2814_vm6, %v4022_v39, %v5372_v0  ;;  %v1270_v55 = vrot.slane %v1268_v26, 5  ;;  %v3963_v36 = vcombine.low %v338_v43, %v5482_v50  ;;  %v5517_v0 = vld [vmem:[%s4556_s9 + $0x28] sm:$0xf] }
  0xbf   : > { %v5484_v62 = vpop.permute.xlu0 %2314  ;;  %v5486_v58 = vpop.permute.xlu1 %2478  ;;  %v1265_v22 = vor.u32 %v1264_v59, %v1260_v6  ;;  %2802 = vrot.lane.b32.xlu0 %v4074_v60, %s4472_s28  ;;  %v5510_v41 = vsel %vm2839_vm7, %v2969_v31, %v5399_v1  ;;  %v3038_v8 = vsel %vm2907_vm11, %v3022_v34, %v5402_v42  ;;  %v5514_v24 = vrot.slane %v632_v45, 4  ;;  %v3855_v59 = vld [vmem:[%s4545_s8 + $0x30] sm:$0xe] }
  0xc0   : > { %v1256_v15 = vrot.slane %v1255_v32, 4  ;;  %v5523_v33 = vrot.slane %v635_v19, 5  ;;  %v3847_v1 = vrot.slane %v3839_v16, 9  ;;  %v1423_v18 = vrot.slane %v5497_v12, 5  ;;  %v3936_v32 = vld [vmem:[%s4545_s8 + $0x18] sm:$0xe] }
  0xc1   : > { %v1266_v23 = vrot.slane %v1265_v22, 4  ;;  %2228 = vrot.lane.b32.xlu1 %v3963_v36, %s4466_s10  ;;  %v1426_v49 = vrot.slane %v5504_v30, 5  ;;  %v432_v14 = vshrl.u32 %v320_v57, 16  ;;  %v435_v26 = vshll.u32 %v320_v57, 16 }
  0xc2   : > { %v1261_v42 = vsel %vm4673_vm5, %v1256_v15, %v1260_v6  ;;  %v1424_v3 = vsel %vm4580_vm2, %v3847_v1, %v1423_v18  ;;  %v1425_v45 = vrot.slane %v1423_v18, 4  ;;  %v441_v4 = vshll.u32 %v5517_v0, 16 }
  0xc3   : > { %v5519_v11 = vpop.permute.xlu0 %2682  ;;  %v5521_v39 = vpop.permute.xlu1 %2354  ;;  %v1271_v43 = vsel %vm4673_vm5, %v1266_v23, %v1270_v55  ;;  %v434_v60 = vrot.slane %v432_v14, 4  ;;  %v437_v34 = vrot.slane %v435_v26, 5  ;;  %v445_v6 = vshrl.u32 %v5517_v0, 16 }
  0xc4   : > { %v4027_v19 = vcombine.low %v1261_v42, %v1271_v43  ;;  %v645_v22 = vshrl.u32 %v5482_v50, 16  ;;  %v1427_v55 = vsel %vm4580_vm2, %v1425_v45, %v1426_v49  ;;  %v443_v36 = vrot.slane %v441_v4, 5  ;;  %v4397_v45 = vld [vmem:[%s4545_s8 + $0x20] sm:$0x1] }
  0xc5   : > { %v451_v57 = vshll.u32 %v5531_v38, 16  ;;  %v4035_v15 = vcombine.low %v1424_v3, %v1427_v55  ;;  %v438_v23 = vor.u32 %v437_v34, %v434_v60  ;;  %v447_v1 = vrot.slane %v445_v6, 4  ;;  %v5561_v3 = vld [vmem:[%s6550_s2 + $0x80] sm:$0xff]   ;;  %v5579_v55 = vld [vmem:[%s4545_s8 + $0x2c] sm:$0x1] }
  0xc6   : > { %2548 = vrot.lane.b32.xlu0 %v4027_v19, %s4466_s10  ;;  %v3863_v18 = vrot.slane %v3855_v59, 9  ;;  %v1511_v14 = vrot.slane %v5453_v28, 5  ;;  %v1514_v26 = vrot.slane %v5460_v47, 5  ;;  %v3944_v43 = vrot.slane %v3936_v32, 9  ;;  %4240 = vmatprep.subr.bf16.mxu1 %v5561_v3 }
  0xc7   : > { %v5541_v16 = vpop.permute.xlu0 %2544  ;;  %v5543_v31 = vpop.permute.xlu1 %2730  ;;  %v453_v42 = vrot.slane %v451_v57, 5  ;;  %v439_v53 = vrot.slane %v438_v23, 4  ;;  %v448_v37 = vor.u32 %v447_v1, %v443_v36  ;;  %v2104_v49 = vrot.slane %v4396_v5, 5 }
  0xc8   : > { %v2107_v4 = vrot.slane %v4397_v45, 5  ;;  %v2853_v47 = vsel %vm2839_vm7, %v5376_v40, %v5430_v17  ;;  %v1512_v59 = vsel %vm4580_vm2, %v3863_v18, %v1511_v14  ;;  %v1513_v5 = vrot.slane %v1511_v14, 4  ;;  %v3876_v18 = vld [vmem:[%s4556_s9 + $0x3c] sm:$0xf] }
  0xc9   : > { %v444_v60 = vsel %vm4673_vm5, %v439_v53, %v443_v36  ;;  %v449_v34 = vrot.slane %v448_v37, 4  ;;  %v2105_v6 = vsel %vm4580_vm2, %v3944_v43, %v2104_v49  ;;  %v2106_v32 = vrot.slane %v2104_v49, 4 }
  0xca   : > { %2588 = vrot.lane.b32.xlu0 %v4035_v15, %s4469_s13  ;;  %v1515_v40 = vsel %vm4580_vm2, %v1513_v5, %v1514_v26  ;;  %v3054_v17 = vsel %vm2924_vm12, %v3038_v8, %v5465_v54  ;;  %v638_v57 = vor.u32 %v5523_v33, %v5514_v24  ;;  %v641_v37 = vshll.u32 %v5482_v50, 16 }
  0xcb   : > { %v5554_v46 = vpop.permute.xlu0 %2224  ;;  %v5556_v19 = vpop.permute.xlu1 %2394  ;;  %v454_v53 = vsel %vm4673_vm5, %v449_v34, %v453_v42  ;;  %v4043_v36 = vcombine.low %v1512_v59, %v1515_v40  ;;  %v2108_v15 = vsel %vm4580_vm2, %v2106_v32, %v2107_v4  ;;  %3364 = vmatprep.mubr.bf16.mxu0 %v3054_v17  ;;  %v647_v23 = vrot.slane %v645_v22, 4 }
  0xcc   : > { %v2892_v54 = vsel %vm2890_vm10, %v5492_v20, %v5316_v51  ;;  %v3971_v8 = vcombine.low %v444_v60, %v454_v53  ;;  %v639_v24 = vrot.slane %v638_v57, 4  ;;  %v643_v33 = vrot.slane %v641_v37, 5  ;;  %v5604_v51 = vld [vmem:[%s4556_s9 + $0x40] sm:$0xf]  ;;  %v3937_v20 = vld [vmem:[%s4545_s8 + $0x24] sm:$0xe] }
  0xcd   : > { %v2909_v42 = vsel %vm2907_vm11, %v2892_v54, %v5425_v35  ;;  %v3002_v14 = vsel %vm2856_vm8, %v5510_v41, %v5463_v13  ;;  %v2870_v22 = vsel %vm2856_vm8, %v2853_v47, %v5484_v62  ;;  %v651_v26 = vshll.u32 %v5579_v55, 16  ;;  %v754_v41 = vld [vmem:[%s4556_s9 + $0x24] sm:$0xe] }
  0xce   : > { %2628 = vrot.lane.b32.xlu0 %v4043_v36, %s4470_s14  ;;  %2268 = vrot.lane.b32.xlu1 %v3971_v8, %s4469_s13  ;;  %v4088_v35 = vcombine.low %v2105_v6, %v2108_v15  ;;  %v648_v49 = vor.u32 %v647_v23, %v643_v33  ;;  %v1663_v45 = vshrl.u32 %v3876_v18, 16  ;;  %v2926_v13 = vsel %vm2924_vm12, %v2909_v42, %v5486_v58  ;;  %v4398_v6 = vld [vmem:[%s4545_s8 + $0x28] sm:$0xf]  ;;  %v4399_v23 = vld [vmem:[%s4556_s9 + $0x1c] sm:$0xf] }
  0xcf   : > { %v5588_v1 = vpop.permute.xlu0 %2584  ;;  %v644_v62 = vsel %vm4673_vm5, %v639_v24, %v643_v33  ;;  %v653_v4 = vrot.slane %v651_v26, 5  ;;  %v1666_v47 = vshll.u32 %v3876_v18, 16  ;;  %v1676_v59 = vshrl.u32 %v5604_v51, 16  ;;  %3365 = vmatmul.mubr.bf16.vlgmr.msra.gmra.mrb[0].mxu0 %v2926_v13  ;;  %v3894_v8 = vld [vmem:[%s4545_s8 + $0x3c] sm:$0xf] }
  0xd0   : > { %v649_v5 = vrot.slane %v648_v49, 4  ;;  %v4051_v60 = vcombine.low %v3876_v18, %v5604_v51  ;;  %v3945_v34 = vrot.slane %v3937_v20, 9  ;;  %v2111_v32 = vrot.slane %v4398_v6, 5 }
  0xd1   : > { %v5607_v43 = vpop.permute.xlu1 %2770  ;;  %v2114_v58 = vrot.slane %v5122_v29, 5  ;;  %v3771_v17 = vrot.slane %v754_v41, 9  ;;  %v809_v57 = vrot.slane %v5517_v0, 5  ;;  %v812_v37 = vrot.slane %v5531_v38, 5 }
  0xd2   : > { %3125 = vrot.lane.b32.xlu1 %v4088_v35, %s4466_s10  ;;  %v654_v53 = vsel %vm4673_vm5, %v649_v5, %v653_v4  ;;  %v2112_v36 = vsel %vm4580_vm2, %v3945_v34, %v2111_v32  ;;  %v2113_v15 = vrot.slane %v2111_v32, 4  ;;  %v1010_v54 = vshll.u32 %v4399_v23, 16  ;;  %v845_v35 = vld [vmem:[%s4545_s8 + $0x24] sm:$0xe] }
  0xd3   : > { %v3979_v24 = vcombine.low %v644_v62, %v654_v53  ;;  %v810_v0 = vsel %vm4580_vm2, %v3771_v17, %v809_v57  ;;  %v811_v38 = vrot.slane %v809_v57, 4  ;;  %v1014_v33 = vshrl.u32 %v4399_v23, 16  ;;  %v5641_v62 = vld [vmem:[%s4545_s8 + $0x40] sm:$0xf] }
  0xd4   : > { %v5618_v40 = vpop.permute.xlu0 %2264  ;;  %v1665_v18 = vrot.slane %v1663_v45, 4  ;;  %v1668_v42 = vrot.slane %v1666_v47, 5  ;;  %v2115_v26 = vsel %vm4580_vm2, %v2113_v15, %v2114_v58  ;;  %v1012_v20 = vrot.slane %v1010_v54, 5 }
  0xd5   : > { %v5630_v29 = vpop.permute.xlu1 %2442  ;;  %2308 = vrot.lane.b32.xlu0 %v3979_v24, %s4470_s14  ;;  %v4089_v49 = vcombine.low %v2112_v36, %v2115_v26  ;;  %v813_v13 = vsel %vm4580_vm2, %v811_v38, %v812_v37  ;;  %v1016_v41 = vrot.slane %v1014_v33, 4  ;;  %v1863_v4 = vshrl.u32 %v3894_v8, 16  ;;  %v3792_v33 = vld [vmem:[%s4556_s9 + $0x30] sm:$0xf]  ;;  %v4400_v26 = vld [vmem:[%s4556_s9 + $0xc] sm:$0xf] }
  0xd6   : > { %2676 = vrot.lane.b32.xlu1 %v4051_v60, %s4468_s12  ;;  %v3018_v45 = vsel %vm2873_vm9, %v3002_v14, %v5519_v11  ;;  %v2887_v47 = vsel %vm2873_vm9, %v2870_v22, %v5521_v39  ;;  %v3987_v34 = vcombine.low %v810_v0, %v813_v13  ;;  %v1866_v6 = vshll.u32 %v3894_v8, 16  ;;  %v3907_v14 = vld [vmem:[%s4556_s9 + $0x44] sm:$0x1] }
  0xd7   : > { %v1013_v32 = vsel %vm4673_vm5, %v5205_v63, %v1012_v20  ;;  %v1017_v58 = vor.u32 %v1016_v41, %v1012_v20  ;;  %v6567_v17 = vshll.u32 %v4891_v44, 16  ;;  %v3779_v37 = vrot.slane %v845_v35, 9  ;;  %v4401_v20 = vld [vmem:[%s4556_s9 + $0x10] sm:$0xf] }
  0xd8   : > { %v5643_v5 = vpop.permute.xlu0 %2624  ;;  %v1865_v53 = vrot.slane %v1863_v4, 4  ;;  %v1876_v60 = vshrl.u32 %v5641_v62, 16  ;;  %v897_v36 = vrot.slane %v5482_v50, 5  ;;  %v900_v11 = vrot.slane %v5579_v55, 5 }
  0xd9   : > { %v1022_v57 = vrot.slane %v6567_v17, 5  ;;  %3127 = vrot.lane.b32.xlu0 %v4089_v49, %s4466_s10  ;;  %v1018_v22 = vrot.slane %v1017_v58, 4  ;;  %v4059_v63 = vcombine.low %v3894_v8, %v5641_v62  ;;  %v1669_v44 = vor.u32 %v1668_v42, %v1665_v18 }
  0xda   : > { %v1672_v15 = vshll.u32 %v5604_v51, 16  ;;  %2348 = vrot.lane.b32.xlu1 %v3987_v34, %s4468_s12  ;;  %v1868_v23 = vrot.slane %v1866_v6, 5  ;;  %v898_v50 = vsel %vm4580_vm2, %v3779_v37, %v897_v36  ;;  %v899_v55 = vrot.slane %v897_v36, 4  ;;  %v5680_v6 = vld [vmem:[%s4545_s8 + $0x44] sm:$0x1] }
  0xdb   : > { %v1678_v54 = vrot.slane %v1676_v59, 4  ;;  %v1023_v24 = vsel %vm4673_vm5, %v1018_v22, %v1022_v57  ;;  %v1670_v0 = vrot.slane %v1669_v44, 4  ;;  %v1682_v8 = vshll.u32 %v3907_v14, 16  ;;  %v5697_v14 = vld [vmem:[%s4545_s8 + $0x3c] sm:$0xf] }
  0xdc   : > { %v5659_v39 = vpop.permute.xlu1 %2810  ;;  %v1674_v38 = vrot.slane %v1672_v15, 5  ;;  %v4017_v42 = vcombine.low %v1013_v32, %v1023_v24  ;;  %v901_v51 = vsel %vm4580_vm2, %v899_v55, %v900_v11  ;;  %v3953_v35 = vcombine.low %v4400_v26, %v4401_v20 }
  0xdd   : > { %v1049_v49 = vshrl.u32 %v3792_v33, 16  ;;  %2724 = vrot.lane.b32.xlu0 %v4059_v63, %s4467_s11  ;;  %v3995_v59 = vcombine.low %v898_v50, %v901_v51  ;;  %v1684_v4 = vrot.slane %v1682_v8, 5  ;;  %v1052_v34 = vshll.u32 %v3792_v33, 16  ;;  %v5708_v63 = vld [vmem:[%s4545_s8 + $0x40] sm:$0xf] }
  0xde   : > { %v1679_v41 = vor.u32 %v1678_v54, %v1674_v38  ;;  %v6568_v32 = vor.u32 %v5455_v9, %v5420_v61  ;;  %v3034_v57 = vsel %vm2890_vm10, %v3018_v45, %v5543_v31  ;;  %v2904_v37 = vsel %vm2890_vm10, %v2887_v47, %v5556_v19  ;;  %v340_v8 = vld [vmem:[%s4545_s8 + $0x30] sm:$0xf] }
  0xdf   : > { %v5670_v18 = vpop.permute.xlu0 %2304  ;;  %2388 = vrot.lane.b32.xlu1 %v3995_v59, %s4467_s11  ;;  %v1675_v36 = vsel %vm4673_vm5, %v1670_v0, %v1674_v38  ;;  %v4003_v61 = vcombine.low %v3792_v33, %v5497_v12  ;;  %v1869_v9 = vor.u32 %v1868_v23, %v1865_v53  ;;  %v5703_v31 = vsel %vm2814_vm6, %v3953_v35, %v5554_v46  ;;  %v5721_v23 = vld [vmem:[%s4545_s8 + $0x44] sm:$0x1] }
  0xe0   : > { %v5676_v13 = vpop.permute.xlu1 %2490  ;;  %v5685_v58 = vrot.slane %v6568_v32, 4  ;;  %v1680_v11 = vrot.slane %v1679_v41, 4  ;;  %v1872_v19 = vshll.u32 %v5641_v62, 16  ;;  %v1878_v45 = vrot.slane %v1876_v60, 4 }
  0xe1   : > { %v1882_v47 = vshll.u32 %v5680_v6, 16  ;;  %v2954_v12 = vsel %vm2814_vm6, %v4017_v42, %v5541_v16  ;;  %v5716_v15 = vrot.slane %v1049_v49, 4  ;;  %v5718_v46 = vrot.slane %v1052_v34, 5 }
  0xe2   : > { %v1685_v53 = vsel %vm4673_vm5, %v1680_v11, %v1684_v4  ;;  %v5725_v50 = vsel %vm2839_vm7, %v2954_v12, %v5588_v1  ;;  %v1870_v55 = vrot.slane %v1869_v9, 4  ;;  %v1874_v54 = vrot.slane %v1872_v19, 5  ;;  %v3840_v11 = vld [vmem:[%s4556_s9 + $0x3c] sm:$0xe] }
  0xe3   : > { %v5699_v22 = vpop.permute.xlu0 %2672  ;;  %v4067_v60 = vcombine.low %v1675_v36, %v1685_v53  ;;  %2436 = vrot.lane.b32.xlu1 %v4003_v61, %s4471_s16  ;;  %v4011_v16 = vcombine.low %v5438_v25, %v5453_v28  ;;  %v1273_v24 = vshrl.u32 %v5697_v14, 16  ;;  %v1276_v0 = vshll.u32 %v5697_v14, 16  ;;  %v5740_v25 = vld [vmem:[%s4545_s8 + $0x34] sm:$0xf]  ;;  %v5749_v36 = vld [vmem:[%s4556_s9 + $0x40] sm:$0xf] }
  0xe4   : > { %v5710_v44 = vpop.permute.xlu1 %2344  ;;  %v1282_v38 = vshll.u32 %v5708_v63, 16  ;;  %v1879_v1 = vor.u32 %v1878_v45, %v1874_v54  ;;  %v1884_v42 = vrot.slane %v1882_v47, 5  ;;  %v1286_v51 = vshrl.u32 %v5708_v63, 16 }
  0xe5   : > { %2764 = vrot.lane.b32.xlu0 %v4067_v60, %s4471_s16  ;;  %v1292_v26 = vshll.u32 %v5721_v23, 16  ;;  %v1275_v20 = vrot.slane %v1273_v24, 4  ;;  %v1278_v35 = vrot.slane %v1276_v0, 5  ;;  %v656_v59 = vshrl.u32 %v340_v8, 16 }
  0xe6   : > { %v1284_v49 = vrot.slane %v1282_v38, 5  ;;  %v3050_v41 = vsel %vm2907_vm11, %v3034_v57, %v5607_v43  ;;  %v1875_v4 = vsel %vm4673_vm5, %v1870_v55, %v1874_v54  ;;  %v1880_v34 = vrot.slane %v1879_v1, 4  ;;  %v5759_v43 = vld [vmem:[%s4556_s9 + $0x44] sm:$0x1]  ;;  %v322_v57 = vld [vmem:[%s4556_s9 + $0x30] sm:$0xf] }
  0xe7   : > { %v5734_v33 = vpop.permute.xlu0 %2556  ;;  %v1288_v32 = vrot.slane %v1286_v51, 4  ;;  %2484 = vrot.lane.b32.xlu1 %v4011_v16, %s4472_s28  ;;  %v5755_v61 = vsel %vm2907_vm11, %v2904_v37, %v5630_v29  ;;  %v1279_v9 = vor.u32 %v1278_v35, %v1275_v20  ;;  %v1294_v19 = vrot.slane %v1292_v26, 5  ;;  %6569 = vst [vmem:[#allocation5_spill] sm:$0xff] %v5759_v43  ;;  %v5769_v54 = vld [vmem:[%s4556_s9 + $0x34] sm:$0xf] }
  0xe8   : > { %v5742_v28 = vpop.permute.xlu1 %2720  ;;  %v3964_v45 = vcombine.low %v340_v8, %v5740_v25  ;;  %v1885_v12 = vsel %vm4673_vm5, %v1880_v34, %v1884_v42  ;;  %v5766_v60 = vrot.slane %v656_v59, 4  ;;  %v659_v55 = vshll.u32 %v340_v8, 16  ;;  %v5781_v26 = vld [vmem:[%s4556_s9 + $0x38] sm:$0x1] }
  0xe9   : > { %v1289_v53 = vor.u32 %v1288_v32, %v1284_v49  ;;  %v4075_v37 = vcombine.low %v1875_v4, %v1885_v12  ;;  %v1280_v16 = vrot.slane %v1279_v9, 4  ;;  %v3848_v0 = vrot.slane %v3840_v11, 9  ;;  %v3856_v9 = vld [vmem:[%s4545_s8 + $0x3c] sm:$0xe] }
  0xea   : > { %v1430_v1 = vrot.slane %v5749_v36, 5  ;;  %v1433_v42 = vrot.slane %v5759_v43, 5  ;;  %v456_v51 = vshrl.u32 %v322_v57, 16  ;;  %v459_v20 = vshll.u32 %v322_v57, 16 }
  0xeb   : > { %v5762_v47 = vpop.permute.xlu0 %2236  ;;  %v1290_v38 = vrot.slane %v1289_v53, 4  ;;  %2804 = vrot.lane.b32.xlu0 %v4075_v37, %s4472_s28  ;;  %v1285_v8 = vsel %vm4673_vm5, %v1280_v16, %v1284_v49  ;;  %2230 = vrot.lane.b32.xlu1 %v3964_v45, %s4466_s10  ;;  %v465_v35 = vshll.u32 %v5769_v54, 16  ;;  %v469_v59 = vshrl.u32 %v5769_v54, 16  ;;  %v3938_v16 = vld [vmem:[%s4545_s8 + $0x30] sm:$0xe] }
  0xec   : > { %v5771_v29 = vpop.permute.xlu1 %2384  ;;  %v1431_v32 = vsel %vm4580_vm2, %v3848_v0, %v1430_v1  ;;  %v1432_v11 = vrot.slane %v1430_v1, 4  ;;  %v458_v49 = vrot.slane %v456_v51, 4  ;;  %v461_v53 = vrot.slane %v459_v20, 5 }
  0xed   : > { %v1295_v34 = vsel %vm4673_vm5, %v1290_v38, %v1294_v19  ;;  %v467_v57 = vrot.slane %v465_v35, 5  ;;  %v471_v37 = vrot.slane %v469_v59, 4  ;;  %v661_v17 = vrot.slane %v659_v55, 5 }
  0xee   : > { %v4028_v12 = vcombine.low %v1285_v8, %v1295_v34  ;;  %v1434_v24 = vsel %vm4580_vm2, %v1432_v11, %v1433_v42  ;;  %v475_v43 = vshll.u32 %v5781_v26, 16  ;;  %v3072_v19 = vsel %vm2924_vm12, %v3050_v41, %v5659_v39 }
  0xef   : > { %v5785_v4 = vpop.permute.xlu0 %2596  ;;  %v4036_v0 = vcombine.low %v1431_v32, %v1434_v24  ;;  %v462_v38 = vor.u32 %v461_v53, %v458_v49  ;;  %v472_v1 = vor.u32 %v471_v37, %v467_v57  ;;  %3412 = vmatprep.mubr.bf16.mxu1 %v3072_v19  ;;  %v3864_v51 = vrot.slane %v3856_v9, 9  ;;  %v5827_v9 = vld [vmem:[%s4545_s8 + $0x38] sm:$0x1] }
  0xf0   : > { %v5792_v45 = vpop.permute.xlu1 %2760  ;;  %2550 = vrot.lane.b32.xlu0 %v4028_v12, %s4466_s10  ;;  %v477_v8 = vrot.slane %v475_v43, 5  ;;  %v1518_v20 = vrot.slane %v5708_v63, 5  ;;  %v1521_v55 = vrot.slane %v5721_v23, 5  ;;  %v3946_v35 = vrot.slane %v3938_v16, 9  ;;  %v4387_v43 = vld [vmem:[%s6550_s2 + $0x88] sm:$0xff]  }
  0xf1   : > { %v463_v42 = vrot.slane %v462_v38, 4  ;;  %v473_v34 = vrot.slane %v472_v1, 4  ;;  %v2118_v39 = vrot.slane %v5361_v10, 5  ;;  %v2121_v41 = vrot.slane %v5423_v48, 5  ;;  %v3878_v38 = vld [vmem:[%s4556_s9 + $0x48] sm:$0xf] }
  0xf2   : > { %v1055_v32 = vor.u32 %v5718_v46, %v5716_v15  ;;  %v1519_v23 = vsel %vm4580_vm2, %v3864_v51, %v1518_v20  ;;  %v1520_v11 = vrot.slane %v1518_v20, 4  ;;  %v2944_v49 = vsel %vm2924_vm12, %v5755_v61, %v5676_v13 }
  0xf3   : > { %v468_v10 = vsel %vm4673_vm5, %v463_v42, %v467_v57  ;;  %v478_v48 = vsel %vm4673_vm5, %v473_v34, %v477_v8  ;;  %v2119_v15 = vsel %vm4580_vm2, %v3946_v35, %v2118_v39  ;;  %v2120_v46 = vrot.slane %v2118_v39, 4  ;;  %3413 = vmatmul.mubr.bf16.vlgmr.msra.gmra.mrb[0].mxu1 %v2944_v49 }
  0xf4   : > { %v5803_v59 = vpop.permute.xlu1 %2432  ;;  %v5807_v24 = vpop.permute.xlu0 %2276  ;;  %2590 = vrot.lane.b32.xlu0 %v4036_v0, %s4469_s13  ;;  %v2843_v13 = vsel %vm2839_vm7, %v5703_v31, %v5618_v40  ;;  %v3972_v61 = vcombine.low %v468_v10, %v478_v48  ;;  %v1522_v12 = vsel %vm4580_vm2, %v1520_v11, %v1521_v55  ;;  %v662_v53 = vor.u32 %v661_v17, %v5766_v60  ;;  %v5855_v55 = vld [vmem:[%s4556_s9 + $0x4c] sm:$0xf] }
  0xf5   : > { %4241 = vmatpush3.bf16.msra.mxu1 %v5561_v3  ;;  %v4044_v57 = vcombine.low %v1519_v23, %v1522_v12  ;;  %v2122_v37 = vsel %vm4580_vm2, %v2120_v46, %v2121_v41  ;;  %v665_v16 = vshll.u32 %v5740_v25, 16  ;;  %v6570_v19 = vshrl.u32 %v5740_v25, 16  ;;  %v4402_v41 = vld [vmem:[%s4556_s9 + $0x64] sm:$0xf] }
  0xf6   : > { %4242 = vmatprep.subr.bf16.mxu1 %v4387_v43  ;;  %v5844_v31 = vrot.slane %v1055_v32, 4  ;;  %2270 = vrot.lane.b32.xlu1 %v3972_v61, %s4469_s13  ;;  %v4090_v3 = vcombine.low %v2119_v15, %v2122_v37  ;;  %v675_v17 = vshll.u32 %v5827_v9, 16  ;;  %v1687_v60 = vshrl.u32 %v3878_v38, 16  ;;  %v755_v15 = vld [vmem:[%s4556_s9 + $0x30] sm:$0xe] }
  0xf7   : > { %v671_v0 = vrot.slane %v6570_v19, 4  ;;  %v2992_v51 = vsel %vm2856_vm8, %v5725_v50, %v5643_v5  ;;  %v663_v8 = vrot.slane %v662_v53, 4  ;;  %v667_v20 = vrot.slane %v665_v16, 5  ;;  %v3939_v5 = vld [vmem:[%s4545_s8 + $0x3c] sm:$0xe] }
  0xf8   : > { %v5842_v40 = vpop.permute.xlu0 %2636  ;;  %2630 = vrot.lane.b32.xlu0 %v4044_v57, %s4470_s14  ;;  %v1690_v35 = vshll.u32 %v3878_v38, 16  ;;  %v2860_v42 = vsel %vm2856_vm8, %v2843_v13, %v5670_v18  ;;  %v5861_v34 = vsel %vm2873_vm9, %v2992_v51, %v5699_v22  ;;  %v1696_v39 = vshll.u32 %v5855_v55, 16 }
  0xf9   : > { %v1154_v32 = vshll.u32 %v4402_v41, 16  ;;  %4243 = vmatpush3.bf16.msra.mxu1 %v4387_v43  ;;  %v5868_v50 = vsel %vm2873_vm9, %v2860_v42, %v5710_v44  ;;  %v672_v23 = vor.u32 %v671_v0, %v667_v20  ;;  %v677_v11 = vrot.slane %v675_v17, 5  ;;  %v5899_v42 = vld [vmem:[%s4545_s8 + $0x4c] sm:$0xf] }
  0xfa   : > { %v5848_v1 = vpop.permute.xlu1 %2800  ;;  %v1700_v49 = vshrl.u32 %v5855_v55, 16  ;;  %3129 = vrot.lane.b32.xlu1 %v4090_v3, %s4466_s10  ;;  %v1689_v18 = vrot.slane %v1687_v60, 4  ;;  %v4052_v22 = vcombine.low %v3878_v38, %v5855_v55  ;;  %v1158_v48 = vshrl.u32 %v4402_v41, 16  ;;  %v3896_v60 = vld [vmem:[%s4545_s8 + $0x48] sm:$0xf] }
  0xfb   : > { %v1156_v10 = vrot.slane %v1154_v32, 5  ;;  %v668_v43 = vsel %vm4673_vm5, %v663_v8, %v667_v20  ;;  %v673_v44 = vrot.slane %v672_v23, 4  ;;  %v1692_v13 = vrot.slane %v1690_v35, 5 }
  0xfc   : > { %v3947_v61 = vrot.slane %v3939_v5, 9  ;;  %v5880_v53 = vrot.slane %v1696_v39, 5  ;;  %v1160_v57 = vrot.slane %v1158_v48, 4  ;;  %v2125_v37 = vrot.slane %v5641_v62, 5 }
  0xfd   : > { %v2128_v16 = vrot.slane %v5680_v6, 5  ;;  %v678_v19 = vsel %vm4673_vm5, %v673_v44, %v677_v11  ;;  %v6571_v0 = vshll.u32 %v5058_v2, 16  ;;  %v3772_v3 = vrot.slane %v755_v15, 9 }
  0xfe   : > { %v5874_v46 = vpop.permute.xlu1 %2480  ;;  %v5878_v12 = vpop.permute.xlu0 %2316  ;;  %v816_v17 = vrot.slane %v5769_v54, 5  ;;  %v3980_v51 = vcombine.low %v668_v43, %v678_v19  ;;  %2678 = vrot.lane.b32.xlu1 %v4052_v22, %s4468_s12  ;;  %v1161_v8 = vor.u32 %v1160_v57, %v1156_v10  ;;  %v2126_v62 = vsel %vm4580_vm2, %v3947_v61, %v2125_v37  ;;  %v4404_v22 = vld [vmem:[%s4556_s9 + $0x58] sm:$0xf]  ;;  %v846_v43 = vld [vmem:[%s4545_s8 + $0x30] sm:$0xe] }
  0xff   : > { %v1166_v38 = vrot.slane %v6571_v0, 5  ;;  %v2127_v6 = vrot.slane %v2125_v37, 4  ;;  %v1693_v55 = vor.u32 %v1692_v13, %v1689_v18  ;;  %v819_v54 = vrot.slane %v5781_v26, 5  ;;  %v4403_v26 = vld [vmem:[%s4556_s9 + $0x54] sm:$0xf] }
 0x100   : > { %v817_v2 = vsel %vm4580_vm2, %v3772_v3, %v816_v17  ;;  %v818_v35 = vrot.slane %v816_v17, 4  ;;  %2310 = vrot.lane.b32.xlu0 %v3980_v51, %s4470_s14  ;;  %v1157_v41 = vsel %vm4673_vm5, %v5334_v7, %v1156_v10  ;;  %v1162_v32 = vrot.slane %v1161_v8, 4  ;;  %v5930_v51 = vld [vmem:[%s4556_s9 + $0x50] sm:$0x1] }
 0x101   : > { %v2129_v5 = vsel %vm4580_vm2, %v2127_v6, %v2128_v16  ;;  %v1887_v23 = vshrl.u32 %v3896_v60, 16  ;;  %v3959_v48 = vcombine.low %v4403_v26, %v4404_v22  ;;  %v1890_v15 = vshll.u32 %v3896_v60, 16 }
 0x102   : > { %v5893_v20 = vpop.permute.xlu1 %2356  ;;  %v5901_v39 = vpop.permute.xlu0 %2684  ;;  %v4091_v11 = vcombine.low %v2126_v62, %v2129_v5  ;;  %v820_v18 = vsel %vm4580_vm2, %v818_v35, %v819_v54  ;;  %v1167_v44 = vsel %vm4673_vm5, %v1162_v32, %v1166_v38  ;;  %v1896_v10 = vshll.u32 %v5899_v42, 16 }
 0x103   : > { %v3988_v13 = vcombine.low %v817_v2, %v820_v18  ;;  %v1889_v7 = vrot.slane %v1887_v23, 4  ;;  %v1702_v57 = vrot.slane %v1700_v49, 4  ;;  %v4023_v37 = vcombine.low %v1157_v41, %v1167_v44  ;;  %v5960_v23 = vld [vmem:[%s4545_s8 + $0x50] sm:$0x1] }
 0x104   : > { %v1892_v16 = vrot.slane %v1890_v15, 5  ;;  %v1900_v19 = vshrl.u32 %v5899_v42, 16  ;;  %v3024_v3 = vsel %vm2890_vm10, %v5861_v34, %v5742_v28  ;;  %3131 = vrot.lane.b32.xlu0 %v4091_v11, %s4466_s10  ;;  %v4060_v38 = vcombine.low %v3896_v60, %v5899_v42 }
 0x105   : > { %2350 = vrot.lane.b32.xlu1 %v3988_v13, %s4468_s12  ;;  %v3780_v17 = vrot.slane %v846_v43, 9  ;;  %v904_v49 = vrot.slane %v5740_v25, 5  ;;  %v1694_v8 = vrot.slane %v1693_v55, 4  ;;  %v2894_v62 = vsel %vm2890_vm10, %v5868_v50, %v5771_v29  ;;  %v5947_v50 = vld [vmem:[%s4556_s9 + $0x3c] sm:$0xf] }
 0x106   : > { %v5917_v61 = vpop.permute.xlu1 %2732  ;;  %v5920_v0 = vpop.permute.xlu0 %2546  ;;  %v1893_v6 = vor.u32 %v1892_v16, %v1889_v7  ;;  %v907_v28 = vrot.slane %v5827_v9, 5  ;;  %v2838_v34 = vsel %vm2814_vm6, %v3959_v48, %v5762_v47  ;;  %v1898_v2 = vrot.slane %v1896_v10, 5  ;;  %v5966_v48 = vld [vmem:[%s4545_s8 + $0x48] sm:$0xf]  ;;  %v5975_v13 = vld [vmem:[%s4545_s8 + $0x4c] sm:$0xf] }
 0x107   : > { %v905_v60 = vsel %vm4580_vm2, %v3780_v17, %v904_v49  ;;  %v906_v35 = vrot.slane %v904_v49, 4  ;;  %v2972_v55 = vsel %vm2814_vm6, %v4023_v37, %v5734_v33  ;;  %v1902_v54 = vrot.slane %v1900_v19, 4 }
 0x108   : > { %v1703_v29 = vor.u32 %v1702_v57, %v5880_v53  ;;  %v1706_v9 = vshll.u32 %v5930_v51, 16  ;;  %v1894_v41 = vrot.slane %v1893_v6, 4  ;;  %v2132_v32 = vrot.slane %v5899_v42, 5  ;;  %2726 = vrot.lane.b32.xlu0 %v4060_v38, %s4467_s11  ;;  %v5986_v57 = vld [vmem:[%s4545_s8 + $0x50] sm:$0x1] }
 0x109   : > { %v908_v5 = vsel %vm4580_vm2, %v906_v35, %v907_v28  ;;  %v5957_v33 = vsel %vm2839_vm7, %v2972_v55, %v5785_v4  ;;  %v1699_v18 = vsel %vm4673_vm5, %v1694_v8, %v5880_v53  ;;  %v3040_v15 = vsel %vm2907_vm11, %v3024_v3, %v5792_v45  ;;  %v342_v28 = vld [vmem:[%s4545_s8 + $0x3c] sm:$0xf] }
 0x10a   : > { %v5940_v25 = vpop.permute.xlu1 %2396  ;;  %v5949_v47 = vpop.permute.xlu0 %2226  ;;  %v3996_v11 = vcombine.low %v905_v60, %v908_v5  ;;  %v1704_v26 = vrot.slane %v1703_v29, 4  ;;  %v1708_v22 = vrot.slane %v1706_v9, 5  ;;  %v1073_v43 = vshrl.u32 %v5947_v50, 16  ;;  %v6002_v55 = vld [vmem:[%s4556_s9 + $0x3c] sm:$0xf] }
 0x10b   : > { %v4004_v44 = vcombine.low %v5947_v50, %v5749_v36  ;;  %v5982_v7 = vsel %vm2839_vm7, %v2838_v34, %v5807_v24  ;;  %v1903_v45 = vor.u32 %v1902_v54, %v1898_v2  ;;  %v1906_v10 = vshll.u32 %v5960_v23, 16  ;;  %v6010_v5 = vld [vmem:[%s4545_s8 + $0x40] sm:$0xf] }
 0x10c   : > { %2390 = vrot.lane.b32.xlu1 %v3996_v11, %s4467_s11  ;;  %v1709_v53 = vsel %vm4673_vm5, %v1704_v26, %v1708_v22  ;;  %v1899_v19 = vsel %vm4673_vm5, %v1894_v41, %v1898_v2  ;;  %v1297_v3 = vshrl.u32 %v5966_v48, 16  ;;  %v1300_v38 = vshll.u32 %v5966_v48, 16  ;;  %v3841_v11 = vld [vmem:[%s4556_s9 + $0x48] sm:$0xe] }
 0x10d   : > { %v4068_v16 = vcombine.low %v1699_v18, %v1709_v53  ;;  %v1904_v24 = vrot.slane %v1903_v45, 4  ;;  %v1908_v49 = vrot.slane %v1906_v10, 5  ;;  %v1306_v8 = vshll.u32 %v5975_v13, 16  ;;  %v6021_v45 = vld [vmem:[%s4556_s9 + $0x50] sm:$0x1] }
 0x10e   : > { %v5988_v37 = vpop.permute.xlu0 %2586  ;;  %v1310_v6 = vshrl.u32 %v5975_v13, 16  ;;  %v1299_v34 = vrot.slane %v1297_v3, 4  ;;  %v1302_v2 = vrot.slane %v1300_v38, 5  ;;  %v1316_v60 = vshll.u32 %v5986_v57, 16  ;;  %v6028_v38 = vld [vmem:[%s4556_s9 + $0x40] sm:$0xf] }
 0x10f   : > { %v5994_v17 = vpop.permute.xlu1 %2772  ;;  %2766 = vrot.lane.b32.xlu0 %v4068_v16, %s4471_s16  ;;  %v680_v35 = vshrl.u32 %v342_v28, 16  ;;  %v1909_v54 = vsel %vm4673_vm5, %v1904_v24, %v1908_v49  ;;  %v4012_v29 = vcombine.low %v5697_v14, %v5708_v63  ;;  %v1308_v9 = vrot.slane %v1306_v8, 5 }
 0x110   : > { %2438 = vrot.lane.b32.xlu1 %v4004_v44, %s4471_s16  ;;  %v1312_v41 = vrot.slane %v1310_v6, 4  ;;  %v6013_v18 = vrot.slane %v1073_v43, 4  ;;  %v2911_v26 = vsel %vm2907_vm11, %v2894_v62, %v5803_v59  ;;  %v4076_v22 = vcombine.low %v1899_v19, %v1909_v54  ;;  %v6018_v44 = vld [vmem:[%s4556_s9 + $0x4c] sm:$0xf] }
 0x111   : > { %v1303_v53 = vor.u32 %v1302_v2, %v1299_v34  ;;  %v1318_v63 = vrot.slane %v1316_v60, 5  ;;  %v6025_v16 = vrot.slane %v680_v35, 4  ;;  %v683_v3 = vshll.u32 %v342_v28, 16  ;;  %v6043_v2 = vld [vmem:[%s4556_s9 + $0x44] sm:$0x1] }
 0x112   : > { %v1313_v14 = vor.u32 %v1312_v41, %v1308_v9  ;;  %v3965_v59 = vcombine.low %v342_v28, %v6010_v5  ;;  %v3057_v62 = vsel %vm2924_vm12, %v3040_v15, %v5848_v1  ;;  %v3849_v19 = vrot.slane %v3841_v11, 9  ;;  %v3857_v11 = vld [vmem:[%s4545_s8 + $0x48] sm:$0xe] }
 0x113   : > { %v6023_v10 = vpop.permute.xlu0 %2266  ;;  %2806 = vrot.lane.b32.xlu0 %v4076_v22, %s4472_s28  ;;  %v1304_v43 = vrot.slane %v1303_v53, 4  ;;  %v6034_v24 = vpop.permute.xlu1 %2444  ;;  %3372 = vmatprep.mubr.bf16.mxu0 %v3057_v62  ;;  %v1437_v8 = vrot.slane %v6018_v44, 5  ;;  %v1440_v6 = vrot.slane %v6021_v45, 5  ;;  %v480_v34 = vshrl.u32 %v6002_v55, 16 }
 0x114   : > { %2486 = vrot.lane.b32.xlu1 %v4012_v29, %s4472_s28  ;;  %v1314_v49 = vrot.slane %v1313_v14, 4  ;;  %v483_v1 = vshll.u32 %v6002_v55, 16  ;;  %v489_v15 = vshll.u32 %v6028_v38, 16  ;;  %v493_v60 = vshrl.u32 %v6028_v38, 16 }
 0x115   : > { %v1309_v28 = vsel %vm4673_vm5, %v1304_v43, %v1308_v9  ;;  %v1438_v54 = vsel %vm4580_vm2, %v3849_v19, %v1437_v8  ;;  %v1439_v29 = vrot.slane %v1437_v8, 4  ;;  %v482_v41 = vrot.slane %v480_v34, 4 }
 0x116   : > { %v1319_v35 = vsel %vm4673_vm5, %v1314_v49, %v1318_v63  ;;  %v485_v53 = vrot.slane %v483_v1, 5  ;;  %v491_v14 = vrot.slane %v489_v15, 5  ;;  %v495_v43 = vrot.slane %v493_v60, 4  ;;  %v3940_v49 = vld [vmem:[%s4545_s8 + $0x48] sm:$0xe] }
 0x117   : > { %v6053_v22 = vpop.permute.xlu0 %2626  ;;  %v4029_v9 = vcombine.low %v1309_v28, %v1319_v35  ;;  %v685_v62 = vrot.slane %v683_v3, 5  ;;  %v1441_v4 = vsel %vm4580_vm2, %v1439_v29, %v1440_v6  ;;  %v499_v63 = vshll.u32 %v6043_v2, 16 }
 0x118   : > { %2232 = vrot.lane.b32.xlu1 %v3965_v59, %s4466_s10  ;;  %v2929_v19 = vsel %vm2924_vm12, %v2911_v26, %v5874_v46  ;;  %v4037_v8 = vcombine.low %v1438_v54, %v1441_v4  ;;  %v486_v34 = vor.u32 %v485_v53, %v482_v41  ;;  %v496_v28 = vor.u32 %v495_v43, %v491_v14 }
 0x119   : > { %2552 = vrot.lane.b32.xlu0 %v4029_v9, %s4466_s10  ;;  %3373 = vmatmul.mubr.bf16.gmra.mrb[4].mxu0 %v2929_v19  ;;  %v3865_v1 = vrot.slane %v3857_v11, 9  ;;  %v693_v59 = vshrl.u32 %v6010_v5, 16  ;;  %v501_v15 = vrot.slane %v499_v63, 5  ;;  %v1525_v6 = vrot.slane %v5975_v13, 5  ;;  %v4405_v11 = vld [vmem:[%s4556_s9 + $0x28] sm:$0xf] }
 0x11a   : > { %v1528_v60 = vrot.slane %v5986_v57, 5  ;;  %v487_v35 = vrot.slane %v486_v34, 4  ;;  %v497_v46 = vrot.slane %v496_v28, 4  ;;  %v3948_v26 = vrot.slane %v3940_v49, 9  ;;  %v6092_v28 = vld [vmem:[%s4545_s8 + $0x44] sm:$0x1] }
 0x11b   : > { %v6063_v3 = vpop.permute.xlu1 %2812  ;;  %v2134_v4 = vrot.slane %v2132_v32, 4  ;;  %v1526_v54 = vsel %vm4580_vm2, %v3865_v1, %v1525_v6  ;;  %v1527_v29 = vrot.slane %v1525_v6, 4  ;;  %v2135_v41 = vrot.slane %v5960_v23, 5 }
 0x11c   : > { %v1034_v9 = vshll.u32 %v4405_v11, 16  ;;  %v492_v57 = vsel %vm4673_vm5, %v487_v35, %v491_v14  ;;  %v502_v43 = vsel %vm4673_vm5, %v497_v46, %v501_v15  ;;  %v2133_v63 = vsel %vm4580_vm2, %v3948_v26, %v2132_v32 }
 0x11d   : > { %v6074_v53 = vpop.permute.xlu0 %2306  ;;  %2592 = vrot.lane.b32.xlu0 %v4037_v8, %s4469_s13  ;;  %v1038_v19 = vshrl.u32 %v4405_v11, 16  ;;  %v3973_v49 = vcombine.low %v492_v57, %v502_v43  ;;  %v1529_v34 = vsel %vm4580_vm2, %v1527_v29, %v1528_v60  ;;  %v2136_v8 = vsel %vm4580_vm2, %v2134_v4, %v2135_v41  ;;  %v6121_v11 = vld [vmem:[%s4545_s8 + $0x58] sm:$0xf] }
 0x11e   : > { %v1036_v14 = vrot.slane %v1034_v9, 5  ;;  %v3004_v42 = vsel %vm2856_vm8, %v5957_v33, %v5842_v40  ;;  %v2872_v32 = vsel %vm2856_vm8, %v5982_v7, %v5878_v12  ;;  %v4045_v1 = vcombine.low %v1526_v54, %v1529_v34  ;;  %v3880_v40 = vld [vmem:[%s4556_s9 + $0x54] sm:$0xf]  ;;  %v6113_v54 = vld [vmem:[%s4556_s9 + $0x58] sm:$0xf] }
 0x11f   : > { %v6085_v23 = vpop.permute.xlu1 %2492  ;;  %v1040_v15 = vrot.slane %v1038_v19, 4  ;;  %2272 = vrot.lane.b32.xlu1 %v3973_v49, %s4469_s13  ;;  %v3020_v6 = vsel %vm2873_vm9, %v3004_v42, %v5901_v39  ;;  %v4092_v60 = vcombine.low %v2133_v63, %v2136_v8  ;;  %v686_v35 = vor.u32 %v685_v62, %v6025_v16  ;;  %v3941_v9 = vld [vmem:[%s4545_s8 + $0x54] sm:$0xe]  ;;  %v6127_v63 = vld [vmem:[%s4545_s8 + $0x5c] sm:$0x1] }
 0x120   : > { %v689_v46 = vshll.u32 %v6010_v5, 16  ;;  %v6572_v7 = vshll.u32 %v5227_v52, 16  ;;  %v695_v4 = vrot.slane %v693_v59, 4  ;;  %v699_v39 = vshll.u32 %v6092_v28, 16  ;;  %v756_v8 = vld [vmem:[%s4556_s9 + $0x3c] sm:$0xe] }
 0x121   : > { %v6106_v33 = vpop.permute.xlu0 %2674  ;;  %2632 = vrot.lane.b32.xlu0 %v4045_v1, %s4470_s14  ;;  %v1041_v12 = vor.u32 %v1040_v15, %v1036_v14  ;;  %v2889_v16 = vsel %vm2873_vm9, %v2872_v32, %v5893_v20  ;;  %v1037_v62 = vsel %vm4673_vm5, %v5685_v58, %v1036_v14  ;;  %v687_v29 = vrot.slane %v686_v35, 4 }
 0x122   : > { %v1046_v26 = vrot.slane %v6572_v7, 5  ;;  %v691_v41 = vrot.slane %v689_v46, 5  ;;  %v3036_v59 = vsel %vm2890_vm10, %v3020_v6, %v5917_v61  ;;  %v1711_v57 = vshrl.u32 %v3880_v40, 16  ;;  %v4406_v6 = vld [vmem:[%s4556_s9 + $0x18] sm:$0xf] }
 0x123   : > { %v1042_v52 = vrot.slane %v1041_v12, 4  ;;  %v1714_v43 = vshll.u32 %v3880_v40, 16  ;;  %v6129_v20 = vpop.permute.xlu1 %2346  ;;  %3133 = vrot.lane.b32.xlu1 %v4092_v60, %s4466_s10  ;;  %v701_v19 = vrot.slane %v699_v39, 5  ;;  %v1724_v49 = vshrl.u32 %v6113_v54, 16  ;;  %v4407_v60 = vld [vmem:[%s4556_s9 + $0x1c] sm:$0xf] }
 0x124   : > { %v696_v58 = vor.u32 %v695_v4, %v691_v41  ;;  %v4053_v34 = vcombine.low %v3880_v40, %v6113_v54  ;;  %v692_v14 = vsel %vm4673_vm5, %v687_v29, %v691_v41  ;;  %v3949_v42 = vrot.slane %v3941_v9, 9  ;;  %v3898_v39 = vld [vmem:[%s4545_s8 + $0x54] sm:$0xf] }
 0x125   : > { %v1047_v61 = vsel %vm4673_vm5, %v1042_v52, %v1046_v26  ;;  %v2139_v32 = vrot.slane %v6121_v11, 5  ;;  %v3954_v35 = vcombine.low %v4406_v6, %v4407_v60  ;;  %v2142_v46 = vrot.slane %v6127_v63, 5  ;;  %v6143_v40 = vpop.permute.xlu0 %2722  ;;  %v847_v52 = vld [vmem:[%s4545_s8 + $0x3c] sm:$0xe]  ;;  %v6169_v60 = vld [vmem:[%s4556_s9 + $0x5c] sm:$0x1] }
 0x126   : > { %v4018_v1 = vcombine.low %v1037_v62, %v1047_v61  ;;  %v697_v15 = vrot.slane %v696_v58, 4  ;;  %v1713_v12 = vrot.slane %v1711_v57, 4  ;;  %v3773_v4 = vrot.slane %v756_v8, 9 }
 0x127   : > { %v2141_v7 = vrot.slane %v2139_v32, 4  ;;  %v823_v26 = vrot.slane %v6028_v38, 5  ;;  %v1716_v41 = vrot.slane %v1714_v43, 5  ;;  %2680 = vrot.lane.b32.xlu1 %v4053_v34, %s4468_s12  ;;  %v2140_v62 = vsel %vm4580_vm2, %v3949_v42, %v2139_v32  ;;  %v6158_v6 = vpop.permute.xlu1 %2386 }
 0x128   : > { %v702_v29 = vsel %vm4673_vm5, %v697_v15, %v701_v19  ;;  %v826_v9 = vrot.slane %v6043_v2, 5  ;;  %v2823_v43 = vsel %vm2814_vm6, %v3954_v35, %v5949_v47  ;;  %v2906_v19 = vsel %vm2890_vm10, %v2889_v16, %v5940_v25 }
 0x129   : > { %v3981_v58 = vcombine.low %v692_v14, %v702_v29  ;;  %v2143_v57 = vsel %vm4580_vm2, %v2141_v7, %v2142_v46  ;;  %v824_v8 = vsel %vm4580_vm2, %v3773_v4, %v823_v26  ;;  %v825_v61 = vrot.slane %v823_v26, 4  ;;  %v6176_v46 = vpop.permute.xlu0 %2762 }
 0x12a   : > { %v1911_v34 = vshrl.u32 %v3898_v39, 16  ;;  %v1914_v2 = vshll.u32 %v3898_v39, 16  ;;  %v4093_v14 = vcombine.low %v2140_v62, %v2143_v57  ;;  %v3781_v32 = vrot.slane %v847_v52, 9 }
 0x12b   : > { %2312 = vrot.lane.b32.xlu0 %v3981_v58, %s4470_s14  ;;  %v827_v42 = vsel %vm4580_vm2, %v825_v61, %v826_v9  ;;  %v911_v15 = vrot.slane %v6010_v5, 5  ;;  %v2957_v47 = vsel %vm2814_vm6, %v4018_v1, %v5920_v0  ;;  %v3052_v25 = vsel %vm2907_vm11, %v3036_v59, %v5994_v17  ;;  %v6184_v9 = vld [vmem:[%s4556_s9 + $0x48] sm:$0xf] }
 0x12c   : > { %v3989_v35 = vcombine.low %v824_v8, %v827_v42  ;;  %v914_v16 = vrot.slane %v6092_v28, 5  ;;  %v1913_v7 = vrot.slane %v1911_v34, 4  ;;  %v1916_v4 = vrot.slane %v1914_v2, 5  ;;  %v3943_v2 = vld [vmem:[%s4545_s8 + $0x6c] sm:$0xe] }
 0x12d   : > { %v912_v26 = vsel %vm4580_vm2, %v3781_v32, %v911_v15  ;;  %v913_v5 = vrot.slane %v911_v15, 4  ;;  %v1717_v29 = vor.u32 %v1716_v41, %v1713_v12  ;;  %v1720_v62 = vshll.u32 %v6113_v54, 16 }
 0x12e   : > { %2352 = vrot.lane.b32.xlu1 %v3989_v35, %s4468_s12  ;;  %v1726_v0 = vrot.slane %v1724_v49, 4  ;;  %v1730_v1 = vshll.u32 %v6169_v60, 16  ;;  %v2978_v17 = vsel %vm2839_vm7, %v2957_v47, %v5988_v37  ;;  %v4061_v28 = vcombine.low %v3898_v39, %v6121_v11  ;;  %v2435_v49 = vpop.permute.xlu1 %2434 }
 0x12f   : > { %3135 = vrot.lane.b32.xlu0 %v4093_v14, %s4466_s10  ;;  %v915_v59 = vsel %vm4580_vm2, %v913_v5, %v914_v16  ;;  %v2845_v12 = vsel %vm2839_vm7, %v2823_v43, %v6023_v10  ;;  %v2923_v52 = vsel %vm2907_vm11, %v2906_v19, %v6034_v24  ;;  %v1718_v58 = vrot.slane %v1717_v29, 4  ;;  %v3942_v19 = vld [vmem:[%s4545_s8 + $0x60] sm:$0xe]  ;;  %s3756_s8 = sshll.u32 %s4448_s18, 3 }
 0x130   : > { %v3997_v41 = vcombine.low %v912_v26, %v915_v59  ;;  %v1722_v57 = vrot.slane %v1720_v62, 5  ;;  %v1732_v8 = vrot.slane %v1730_v1, 5  ;;  %v4005_v37 = vcombine.low %v6184_v9, %v6018_v44  ;;  %p290_p6 = scmp.lt.s32.totalorder %s3756_s8, 15 }
 0x131   : > { %v2994_v39 = vsel %vm2856_vm8, %v2978_v17, %v6053_v22  ;;  %v1917_v61 = vor.u32 %v1916_v4, %v1913_v7  ;;  %v1920_v34 = vshll.u32 %v6121_v11, 16  ;;  %v1924_v24 = vshrl.u32 %v6121_v11, 16  ;;  %v2803_v14 = vpop.permute.xlu0 %2802 }
 0x132   : > { %2392 = vrot.lane.b32.xlu1 %v3997_v41, %s4467_s11  ;;  %v1723_v10 = vsel %vm4673_vm5, %v1718_v58, %v1722_v57  ;;  %v1727_v43 = vor.u32 %v1726_v0, %v1722_v57  ;;  %v1930_v32 = vshll.u32 %v6127_v63, 16  ;;  %v4013_v22 = vcombine.low %v5966_v48, %v5975_v13  ;;  %v2483_v63 = vpop.permute.xlu1 %2482  ;;  %s6598_s8 = smov (!%p290_p6, %s3756_s8), 15 }
 0x133   : > { %2728 = vrot.lane.b32.xlu0 %v4061_v28, %s4467_s11  ;;  %v1918_v42 = vrot.slane %v1917_v61, 4  ;;  %v3075_v15 = vsel %vm2924_vm12, %v3052_v25, %v6063_v3  ;;  %v1922_v35 = vrot.slane %v1920_v34, 5  ;;  %v1926_v16 = vrot.slane %v1924_v24, 4  ;;  %v6574_v25 = vld [vmem:[#allocation3_spill] sm:$0xff]  ;;  %v6577_v28 = vld [vmem:[#allocation2_spill] sm:$0xff] }
 0x134   : > { %v1728_v47 = vrot.slane %v1727_v43, 4  ;;  %3420 = vmatprep.mubr.bf16.mxu1 %v3075_v15  ;;  %v2862_v11 = vsel %vm2856_vm8, %v2845_v12, %v6074_v53  ;;  %v1932_v7 = vrot.slane %v1930_v32, 5  ;;  %v3950_v4 = vrot.slane %v3942_v19, 9 }
 0x135   : > { %v6573_v26 = vrot.slane %v4869_v21, 5  ;;  %v3951_v29 = vrot.slane %v3943_v2, 9  ;;  %v1923_v13 = vsel %vm4673_vm5, %v1918_v42, %v1922_v35  ;;  %v1927_v3 = vor.u32 %v1926_v16, %v1922_v35  ;;  %v4408_v2 = vld [vmem:[%s4556_s9 + $0x34] sm:$0xf] }
 0x136   : > { %v1733_v48 = vsel %vm4673_vm5, %v1728_v47, %v1732_v8  ;;  %2440 = vrot.lane.b32.xlu1 %v4005_v37, %s4471_s16  ;;  %v6575_v62 = vrot.slane %v6574_v25, 5  ;;  %v6578_v59 = vrot.slane %v6577_v28, 5  ;;  %v6580_v37 = vld [vmem:[#allocation4_spill] sm:$0xff]  ;;  %v3010_v24 = vsel %vm2873_vm9, %v2994_v39, %v6106_v33  ;;  %v3920_v47 = vld [vmem:[%s4556_s9 + $0x18] sm:$0xe]  ;;  %v6261_v16 = vpop.permute.xlu1 %2228 }
 0x137   : > { %v2148_v5 = vrot.slane %v6573_v26, 4  ;;  %v4069_v0 = vcombine.low %v1723_v10, %v1733_v48  ;;  %v6576_v1 = vmov %v6573_v26  ;;  %v1928_v57 = vrot.slane %v1927_v3, 4  ;;  %v6584_v25 = vld [vmem:[#allocation5_spill] sm:$0xff] }
 0x138   : > { %v2155_v53 = vrot.slane %v6575_v62, 4  ;;  %v2147_v17 = vsel %vm4580_vm2, %v3950_v4, %v6576_v1  ;;  %v6579_v41 = vmov %v6575_v62  ;;  %v6581_v61 = vrot.slane %v6580_v37, 5  ;;  %v6242_v43 = vpop.permute.xlu0 %2548 }
 0x139   : > { %v2150_v12 = vsel %vm4580_vm2, %v2148_v5, %v6578_v59  ;;  %v2154_v58 = vsel %vm4580_vm2, %v3951_v29, %v6579_v41  ;;  %v2947_v10 = vsel %vm2924_vm12, %v2923_v52, %v6085_v23  ;;  %2768 = vrot.lane.b32.xlu0 %v4069_v0, %s4471_s16  ;;  %v2879_v19 = vsel %vm2873_vm9, %v2862_v11, %v6129_v20 }
 0x13a   : > { %v4094_v8 = vcombine.low %v2147_v17, %v2150_v12  ;;  %v2157_v21 = vsel %vm4580_vm2, %v2155_v53, %v6581_v61  ;;  %3421 = vmatmul.mubr.bf16.gmra.mrb[4].mxu1 %v2947_v10  ;;  %v1058_v42 = vshll.u32 %v4408_v2, 16  ;;  %v1933_v32 = vsel %vm4673_vm5, %v1928_v57, %v1932_v7  ;;  %2488 = vrot.lane.b32.xlu1 %v4013_v22, %s4472_s28 }
 0x13b   : > { %v4095_v34 = vcombine.low %v2154_v58, %v2157_v21  ;;  %v3026_v23 = vsel %vm2890_vm10, %v3010_v24, %v6143_v40  ;;  %v2896_v52 = vsel %vm2890_vm10, %v2879_v19, %v6158_v6  ;;  %v1062_v15 = vshrl.u32 %v4408_v2, 16 }
 0x13c   : > { %v4077_v33 = vcombine.low %v1923_v13, %v1933_v32  ;;  %v3042_v20 = vsel %vm2907_vm11, %v3026_v23, %v6176_v46  ;;  %v2913_v39 = vsel %vm2907_vm11, %v2896_v52, %v2435_v49  ;;  %v1060_v35 = vrot.slane %v1058_v42, 5  ;;  %v6267_v4 = vpop.permute.xlu0 %2588  ;;  %v4409_v49 = vld [vmem:[%s4556_s9 + $0x1c] sm:$0xf]  ;;  %v3921_v13 = vld [vmem:[%s4556_s9 + $0x24] sm:$0xe] }
 0x13d   : > { %v6582_v22 = vshll.u32 %v5947_v50, 16  ;;  %v3060_v40 = vsel %vm2924_vm12, %v3042_v20, %v2803_v14  ;;  %v2932_v6 = vsel %vm2924_vm12, %v2913_v39, %v2483_v63  ;;  %v1064_v7 = vrot.slane %v1062_v15, 4  ;;  %v4410_v14 = vld [vmem:[%s4556_s9 + $0x20] sm:$0x1]  ;;  %v4411_v63 = vld [vmem:[%s4556_s9 + $0x28] sm:$0xf] }
 0x13e   : > { %2808 = vrot.lane.b32.xlu0 %v4077_v33, %s4472_s28  ;;  %3380 = vmatprep.mubr.bf16.mxu0 %v3060_v40  ;;  %v3928_v46 = vrot.slane %v3920_v47, 9  ;;  %v2016_v26 = vrot.slane %v4409_v49, 5  ;;  %v6583_v5 = vshll.u32 %v5504_v30, 16  ;;  %v2019_v48 = vrot.slane %v4410_v14, 5 }
 0x13f   : > { %v1078_v11 = vrot.slane %v6582_v22, 5  ;;  %3139 = vrot.lane.b32.xlu1 %v4095_v34, %s4466_s10  ;;  %3381 = vmatmul.mubr.bf16.gmra.mrb[8].mxu0 %v2932_v6  ;;  %v1065_v50 = vor.u32 %v1064_v7, %v1060_v35  ;;  %v2023_v3 = vrot.slane %v4411_v63, 5  ;;  %v1092_v62 = vshll.u32 %v6584_v25, 16 }
 0x140   : > { %v1070_v29 = vrot.slane %v6583_v5, 5  ;;  %v1097_v53 = vshrl.u32 %v6184_v9, 16  ;;  %v2017_v0 = vsel %vm4580_vm2, %v3928_v46, %v2016_v26  ;;  %v2018_v1 = vrot.slane %v2016_v26, 4  ;;  %v6287_v12 = vpop.permute.xlu1 %2268  ;;  %v6295_v61 = vpop.permute.xlu0 %2628  ;;  %v3925_v5 = vld [vmem:[%s4556_s9 + $0x54] sm:$0xe] }
 0x141   : > { %v1100_v17 = vshll.u32 %v6184_v9, 16  ;;  %v1061_v30 = vsel %vm4673_vm5, %v5844_v31, %v1060_v35  ;;  %v1066_v28 = vrot.slane %v1065_v50, 4  ;;  %v1079_v59 = vor.u32 %v1078_v11, %v6013_v18  ;;  %v4412_v18 = vld [vmem:[%s4556_s9 + $0x2c] sm:$0x1] }
 0x142   : > { %3137 = vrot.lane.b32.xlu0 %v4094_v8, %s4466_s10  ;;  %v2020_v41 = vsel %vm4580_vm2, %v2018_v1, %v2019_v48  ;;  %v3929_v58 = vrot.slane %v3921_v13, 9  ;;  %v1082_v57 = vshll.u32 %v5749_v36, 16  ;;  %v1086_v37 = vshrl.u32 %v5749_v36, 16  ;;  %s3758_s10 = sshll.u32 %s6596_s19, 5 }
 0x143   : > { %v1071_v9 = vsel %vm4673_vm5, %v1066_v28, %v1070_v29  ;;  %v4080_v31 = vcombine.low %v2017_v0, %v2020_v41  ;;  %v2025_v21 = vrot.slane %v2023_v3, 4  ;;  %v2026_v10 = vrot.slane %v4412_v18, 5 }
 0x144   : > { %v4019_v8 = vcombine.low %v1061_v30, %v1071_v9  ;;  %v1080_v34 = vrot.slane %v1079_v59, 4  ;;  %v1084_v24 = vrot.slane %v1082_v57, 5  ;;  %v1099_v19 = vrot.slane %v1097_v53, 4  ;;  %v3126_v32 = vpop.permute.xlu1 %3125  ;;  %v4414_v57 = vld [vmem:[%s4556_s9 + $0x28] sm:$0xf] }
 0x145   : > { %v1102_v2 = vrot.slane %v1100_v17, 5  ;;  %v1088_v42 = vrot.slane %v1086_v37, 4  ;;  %v2024_v23 = vsel %vm4580_vm2, %v3929_v58, %v2023_v3  ;;  %v3143_v36 = vsel %vm2814_vm6, %v4080_v31, %v3126_v32  ;;  %v4413_v58 = vld [vmem:[%s4556_s9 + $0x24] sm:$0xf] }
 0x146   : > { %v2027_v52 = vsel %vm4580_vm2, %v2025_v21, %v2026_v10  ;;  %v1094_v47 = vrot.slane %v1092_v62, 5  ;;  %4244 = vmatprep.mubr.msk.bf16.mxu1 %vm2839_vm7, %v3143_v36  ;;  %v1085_v33 = vsel %vm4673_vm5, %v1080_v34, %v1084_v24  ;;  %v1106_v22 = vshll.u32 %v6018_v44, 16 }
 0x147   : > { %v1089_v15 = vor.u32 %v1088_v42, %v1084_v24  ;;  %v2309_v20 = vpop.permute.xlu0 %2308  ;;  %v1103_v35 = vor.u32 %v1102_v2, %v1099_v19  ;;  %v1110_v11 = vshrl.u32 %v6018_v44, 16  ;;  %v4081_v6 = vcombine.low %v2024_v23, %v2027_v52  ;;  %v3922_v52 = vld [vmem:[%s4556_s9 + $0x30] sm:$0xe] }
 0x148   : > { %v2677_v40 = vpop.permute.xlu1 %2676  ;;  %v1108_v26 = vrot.slane %v1106_v22, 5  ;;  %v1116_v14 = vshll.u32 %v6021_v45, 16  ;;  %v3957_v48 = vcombine.low %v6002_v55, %v6028_v38  ;;  %v3933_v62 = vrot.slane %v3925_v5, 9 }
 0x149   : > { %v1090_v39 = vrot.slane %v1089_v15, 4  ;;  %v1104_v46 = vrot.slane %v1103_v35, 4  ;;  %v1112_v50 = vrot.slane %v1110_v11, 4  ;;  %v2051_v0 = vrot.slane %v6113_v54, 5 }
 0x14a   : > { %v1118_v25 = vrot.slane %v1116_v14, 5  ;;  %v2054_v45 = vrot.slane %v6169_v60, 5  ;;  %v3955_v37 = vcombine.low %v4413_v58, %v4414_v57  ;;  %v2960_v21 = vsel %vm2814_vm6, %v4019_v8, %v6242_v43  ;;  %v4419_v58 = vld [vmem:[%s4556_s9 + $0x30] sm:$0xf]  ;;  %v4420_v57 = vld [vmem:[%s4556_s9 + $0x34] sm:$0xf] }
 0x14b   : > { %v1095_v7 = vsel %vm4673_vm5, %v1090_v39, %v1094_v47  ;;  %v3128_v29 = vpop.permute.xlu0 %3127  ;;  %v1109_v63 = vsel %vm4673_vm5, %v1104_v46, %v1108_v26  ;;  %v1113_v3 = vor.u32 %v1112_v50, %v1108_v26  ;;  %v6328_v59 = vsel %vm4580_vm2, %v3933_v62, %v2051_v0  ;;  %v4416_v39 = vld [vmem:[%s4556_s9 + $0x38] sm:$0x1]  ;;  %v3923_v50 = vld [vmem:[%s4556_s9 + $0x3c] sm:$0xe] }
 0x14c   : > { %v6310_v49 = vcombine.low %v1085_v33, %v1095_v7  ;;  %v3146_v13 = vsel %vm2814_vm6, %v4081_v6, %v3128_v29  ;;  %v2349_v44 = vpop.permute.xlu1 %2348  ;;  %v2053_v41 = vrot.slane %v2051_v0, 4  ;;  %v2826_v9 = vsel %vm2814_vm6, %v3955_v37, %v6261_v16  ;;  %v4417_v7 = vld [vmem:[%s4556_s9 + $0x40] sm:$0xf] }
 0x14d   : > { %4245 = vmatmul.mubr.msk.bf16.vlgmr.msra.gmra.mrb[8].mxu1 %vm2839_vm7, %v3146_v13  ;;  %v1114_v53 = vrot.slane %v1113_v3, 4  ;;  %v2847_v18 = vsel %vm2839_vm7, %v2826_v9, %v6287_v12  ;;  %v2980_v10 = vsel %vm2839_vm7, %v2960_v21, %v6267_v4  ;;  %v3930_v33 = vrot.slane %v3922_v52, 9  ;;  %v3924_v52 = vld [vmem:[%s4556_s9 + $0x48] sm:$0xe] }
 0x14e   : > { %v6334_v54 = vsel %vm4580_vm2, %v2053_v41, %v2054_v45  ;;  %v2864_v34 = vsel %vm2856_vm8, %v2847_v18, %v2309_v20  ;;  %v2996_v24 = vsel %vm2856_vm8, %v2980_v10, %v6295_v61  ;;  %v4415_v61 = vld [vmem:[%s4556_s9 + $0x34] sm:$0xf]  ;;  %v2033_v35 = vrot.slane %v4416_v39, 5 }
 0x14f   : > { %v1119_v1 = vsel %vm4673_vm5, %v1114_v53, %v1118_v25  ;;  %v2725_v17 = vpop.permute.xlu0 %2724  ;;  %v4085_v56 = vcombine.low %v6328_v59, %v6334_v54  ;;  %v2881_v19 = vsel %vm2873_vm9, %v2864_v34, %v2349_v44  ;;  %v3012_v2 = vsel %vm2873_vm9, %v2996_v24, %v2677_v40  ;;  %v4418_v44 = vld [vmem:[%s4556_s9 + $0x44] sm:$0x1] }
 0x150   : > { %v6324_v28 = vcombine.low %v1109_v63, %v1119_v1  ;;  %v3028_v43 = vsel %vm2890_vm10, %v3012_v2, %v2725_v17  ;;  %v2030_v36 = vrot.slane %v4415_v61, 5  ;;  %v2037_v46 = vrot.slane %v4417_v7, 5  ;;  %v4421_v61 = vld [vmem:[%s4556_s9 + $0x4c] sm:$0xf] }
 0x151   : > { %v2389_v30 = vpop.permute.xlu1 %2388  ;;  %v3931_v14 = vrot.slane %v3923_v50, 9  ;;  %v2040_v63 = vrot.slane %v4418_v44, 5  ;;  %v3956_v37 = vcombine.low %v4419_v58, %v4420_v57  ;;  %v2047_v39 = vrot.slane %v5930_v51, 5  ;;  %v4424_v57 = vld [vmem:[%s4556_s9 + $0x74] sm:$0x1] }
 0x152   : > { %v2898_v42 = vsel %vm2890_vm10, %v2881_v19, %v2389_v30  ;;  %v2032_v20 = vrot.slane %v2030_v36, 4  ;;  %v2031_v11 = vsel %vm4580_vm2, %v3930_v33, %v2030_v36  ;;  %v2039_v13 = vrot.slane %v2037_v46, 4 }
 0x153   : > { %v2038_v25 = vsel %vm4580_vm2, %v3931_v14, %v2037_v46  ;;  %v2044_v36 = vrot.slane %v4421_v61, 5  ;;  %v3932_v33 = vrot.slane %v3924_v52, 9 }
 0x154   : > { %v2034_v40 = vsel %vm4580_vm2, %v2032_v20, %v2033_v35  ;;  %v2041_v62 = vsel %vm4580_vm2, %v2039_v13, %v2040_v63  ;;  %v4422_v63 = vld [vmem:[%s4556_s9 + $0x70] sm:$0xf] }
 0x155   : > { %v2437_v60 = vpop.permute.xlu1 %2436  ;;  %v4082_v26 = vcombine.low %v2031_v11, %v2034_v40  ;;  %v4083_v45 = vcombine.low %v2038_v25, %v2041_v62  ;;  %v2046_v20 = vrot.slane %v2044_v36, 4  ;;  %v2045_v35 = vsel %vm4580_vm2, %v3932_v33, %v2044_v36 }
 0x156   : > { %v2915_v12 = vsel %vm2907_vm11, %v2898_v42, %v2437_v60 }
 0x157   : > { %v2765_v31 = vpop.permute.xlu0 %2764 }
 0x158   : > { %v3044_v4 = vsel %vm2907_vm11, %v3028_v43, %v2765_v31 }
 0x159   : > { %v2485_v16 = vpop.permute.xlu1 %2484 }
 0x15a   : > { %v2935_v32 = vsel %vm2924_vm12, %v2915_v12, %v2485_v16 }
 0x15d   : > { %v2805_v8 = vpop.permute.xlu0 %2804  ;;  %v2231_v47 = vpop.permute.xlu1 %2230 }
 0x15e   : > { %v3063_v23 = vsel %vm2924_vm12, %v3044_v4, %v2805_v8  ;;  %v2829_v31 = vsel %vm2814_vm6, %v3956_v37, %v2231_v47  ;;  %v2068_v37 = vrot.slane %v4424_v57, 5 }
 0x15f   : > { %3388 = vmatprep.mubr.bf16.mxu0 %v3063_v23 }
 0x160   : > { %3389 = vmatmul.mubr.bf16.gmra.mrb[12].mxu0 %v2935_v32 }
 0x162   : > { %v2551_v15 = vpop.permute.xlu0 %2550 }
 0x163   : > { %v2963_v9 = vsel %vm2814_vm6, %v6310_v49, %v2551_v15 }
 0x166   : > { %v2591_v22 = vpop.permute.xlu0 %2590 }
 0x167   : > { %v2982_v21 = vsel %vm2839_vm7, %v2963_v9, %v2591_v22  ;;  %v2048_v22 = vsel %vm4580_vm2, %v2046_v20, %v2047_v39 }
 0x168   : > { %v2271_v6 = vpop.permute.xlu1 %2270 }
 0x169   : > { %v2849_v10 = vsel %vm2839_vm7, %v2829_v31, %v2271_v6  ;;  %v4084_v6 = vcombine.low %v2045_v35, %v2048_v22 }
 0x16a   : > { %v2631_v5 = vpop.permute.xlu0 %2630 }
 0x16b   : > { %v2998_v34 = vsel %vm2856_vm8, %v2982_v21, %v2631_v5  ;;  %v4425_v21 = vld [vmem:[%s4556_s9 + $0x68] sm:$0x1] }
 0x16c   : > { %v3130_v29 = vpop.permute.xlu1 %3129 }
 0x16d   : > { %v3149_v3 = vsel %vm2814_vm6, %v4082_v26, %v3130_v29 }
 0x16e   : > { %4248 = vmatprep.mubr.msk.bf16.mxu1 %vm2839_vm7, %v3149_v3  ;;  %v2065_v3 = vrot.slane %v4422_v63, 5 }
 0x170   : > { %v2679_v53 = vpop.permute.xlu1 %2678  ;;  %v2067_v58 = vrot.slane %v2065_v3, 4 }
 0x171   : > { %v3014_v16 = vsel %vm2873_vm9, %v2998_v34, %v2679_v53  ;;  %v4423_v53 = vld [vmem:[%s4556_s9 + $0x64] sm:$0xf] }
 0x172   : > { %v2311_v0 = vpop.permute.xlu0 %2310 }
 0x173   : > { %v2866_v19 = vsel %vm2856_vm8, %v2849_v10, %v2311_v0  ;;  %v2058_v0 = vrot.slane %v4423_v53, 5 }
 0x175   : > { %v2060_v31 = vrot.slane %v2058_v0, 4 }
 0x176   : > { %v3132_v1 = vpop.permute.xlu0 %3131 }
 0x177   : > { %v3152_v17 = vsel %vm2814_vm6, %v4083_v45, %v3132_v1  ;;  %v2351_v30 = vpop.permute.xlu1 %2350  ;;  %v3927_v45 = vld [vmem:[%s4556_s9 + $0x6c] sm:$0xe] }
 0x178   : > { %4249 = vmatmul.mubr.msk.bf16.gmra.mrb[12].mxu1 %vm2839_vm7, %v3152_v17  ;;  %v2883_v2 = vsel %vm2873_vm9, %v2866_v19, %v2351_v30  ;;  %v3926_v30 = vld [vmem:[%s4556_s9 + $0x60] sm:$0xe]  ;;  %s3757_s9 = sshll.u32 %s6598_s8, 1 }
 0x179   : > { %v3934_v9 = vrot.slane %v3926_v30, 9  ;;  %s294_s11 = sadd.s32 %s3758_s10, %s3757_s9 }
 0x17a   : > { %v2727_v41 = vpop.permute.xlu0 %2726  ;;  %s3759_s18 = sshll.u32 %s294_s11, 2  ;;  %s3763_s19 = sshll.u32 %s294_s11, 3 }
 0x17b   : > { %v3030_v49 = vsel %vm2890_vm10, %v3014_v16, %v2727_v41  ;;  %v3935_v41 = vrot.slane %v3927_v45, 9  ;;  %s6459_s14 = scalar_lea.vmem %s6552_s4, %s3759_s18  ;;  %s6477_s15 = scalar_lea.vmem %s6553_s5, %s3763_s19 }
 0x17c   : > { %v4159_v30 = vld [vmem:[%s6459_s14 + $0x8] sm:$0xff]  }
 0x17e   : > { %v2391_v60 = vpop.permute.xlu1 %2390 }
 0x17f   : > { %v2900_v42 = vsel %vm2890_vm10, %v2883_v2, %v2391_v60 }
 0x181   : > { %v2767_v18 = vpop.permute.xlu0 %2766 }
 0x182   : > { %v2439_v24 = vpop.permute.xlu1 %2438  ;;  %v3046_v43 = vsel %vm2907_vm11, %v3030_v49, %v2767_v18  ;;  %v2061_v18 = vrot.slane %v4425_v21, 5  ;;  %v2069_v49 = vsel %vm4580_vm2, %v2067_v58, %v2068_v37  ;;  %v4133_v58 = vunpack.c.l.bf16 %v4159_v30 }
 0x183   : > { %v2917_v4 = vsel %vm2907_vm11, %v2900_v42, %v2439_v24 }
 0x185   : > { %v2807_v12 = vpop.permute.xlu0 %2806 }
 0x186   : > { %v2487_v8 = vpop.permute.xlu1 %2486  ;;  %v3066_v32 = vsel %vm2924_vm12, %v3046_v43, %v2807_v12  ;;  %v2059_v43 = vsel %vm4580_vm2, %v3934_v9, %v2058_v0  ;;  %v2062_v12 = vsel %vm4580_vm2, %v2060_v31, %v2061_v18  ;;  %v4134_v18 = vunpack.c.h.bf16 %v4159_v30 }
 0x187   : > { %3396 = vmatprep.mubr.bf16.mxu0 %v3066_v32  ;;  %v2938_v23 = vsel %vm2924_vm12, %v2917_v4, %v2487_v8 }
 0x188   : > { %3397 = vmatmul.mubr.bf16.gmra.mrb[16].mxu0 %v2938_v23 }
 0x18a   : > { %v2233_v47 = vpop.permute.xlu1 %2232 }
 0x18b   : > { %v2553_v15 = vpop.permute.xlu0 %2552  ;;  %v2832_v60 = vsel %vm2814_vm6, %v3957_v48, %v2233_v47  ;;  %v2066_v48 = vsel %vm4580_vm2, %v3935_v41, %v2065_v3 }
 0x18c   : > { %v2966_v10 = vsel %vm2814_vm6, %v6324_v28, %v2553_v15  ;;  %v4087_v36 = vcombine.low %v2066_v48, %v2069_v49  ;;  %v4086_v15 = vcombine.low %v2059_v43, %v2062_v12 }
 0x18f   : > { %v2593_v11 = vpop.permute.xlu0 %2592 }
 0x190   : > { %v2984_v24 = vsel %vm2839_vm7, %v2966_v10, %v2593_v11 }
 0x191   : > { %v2273_v40 = vpop.permute.xlu1 %2272 }
 0x192   : > { %v2851_v34 = vsel %vm2839_vm7, %v2832_v60, %v2273_v40 }
 0x193   : > { %v2633_v46 = vpop.permute.xlu0 %2632 }
 0x194   : > { %v3000_v2 = vsel %vm2856_vm8, %v2984_v24, %v2633_v46 }
 0x195   : > { %v3134_v7 = vpop.permute.xlu1 %3133 }
 0x196   : > { %v3155_v26 = vsel %vm2814_vm6, %v4084_v6, %v3134_v7 }
 0x197   : > { %4252 = vmatprep.mubr.msk.bf16.mxu1 %vm2839_vm7, %v3155_v26 }
 0x199   : > { %v2681_v50 = vpop.permute.xlu1 %2680 }
 0x19a   : > { %v3016_v28 = vsel %vm2873_vm9, %v3000_v2, %v2681_v50 }
 0x19d   : > { %v2313_v51 = vpop.permute.xlu0 %2312 }
 0x19e   : > { %v2868_v19 = vsel %vm2856_vm8, %v2851_v34, %v2313_v51 }
 0x1a0   : > { %v2353_v5 = vpop.permute.xlu1 %2352 }
 0x1a1   : > { %v3136_v29 = vpop.permute.xlu0 %3135  ;;  %v2885_v55 = vsel %vm2873_vm9, %v2868_v19, %v2353_v5 }
 0x1a2   : > { %v3158_v14 = vsel %vm2814_vm6, %v4085_v56, %v3136_v29  ;;  %v4182_v13 = vpop.f32.mrb[0].mxu0 }
 0x1a3   : > { %4253 = vmatmul.mubr.msk.bf16.gmra.mrb[16].mxu1 %vm2839_vm7, %v3158_v14  ;;  %v4183_v25 = vpop.f32.mrb[1].mxu0 }
 0x1a4   : > { %v2393_v44 = vpop.permute.xlu1 %2392  ;;  %v6409_v1 = vadd.f32 %v4183_v25, %v4182_v13  ;;  %v4185_v17 = vpop.f32.mrb[2].mxu0 }
 0x1a5   : > { %v2729_v62 = vpop.permute.xlu0 %2728  ;;  %v4186_v59 = vpop.f32.mrb[3].mxu0  ;;  %v2902_v42 = vsel %vm2890_vm10, %v2885_v55, %v2393_v44 }
 0x1a6   : > { %v6412_v54 = vadd.f32 %v4186_v59, %v4185_v17  ;;  %v3032_v4 = vsel %vm2890_vm10, %v3016_v28, %v2729_v62  ;;  %v6465_v59 = vld [vmem:[%s6551_s3] ss:$0 sm:$0xff] }
 0x1a7   : > { %v3367_v37 = vadd.f32 %v6409_v1, %v6465_v59 }
 0x1a8   : > { %v2441_v56 = vpop.permute.xlu1 %2440  ;;  %v3370_v24 = vadd.f32 %v6412_v54, %v6465_v59 }
 0x1a9   : > { %v2919_v8 = vsel %vm2907_vm11, %v2902_v42, %v2441_v56  ;;  %v4128_v56 = vld [vmem:[%s6459_s14] sm:$0xff]  }
 0x1aa   : > { %v4129_v60 = vunpack.c.l.bf16 %v4128_v56  ;;  %v4130_v19 = vunpack.c.h.bf16 %v4128_v56 }
 0x1ab   : > { %v2769_v16 = vpop.permute.xlu0 %2768 }
 0x1ac   : > { %v2489_v38 = vpop.permute.xlu1 %2488  ;;  %v3048_v32 = vsel %vm2907_vm11, %v3032_v4, %v2769_v16 }
 0x1ad   : > { %v2941_v61 = vsel %vm2924_vm12, %v2919_v8, %v2489_v38 }
 0x1b0   : > { %v2809_v23 = vpop.permute.xlu0 %2808 }
 0x1b1   : > { %v3069_v52 = vsel %vm2924_vm12, %v3048_v32, %v2809_v23  ;;  %v3140_v47 = vpop.permute.xlu1 %3139 }
 0x1b2   : > { %3404 = vmatprep.mubr.bf16.mxu0 %v3069_v52  ;;  %v3164_v27 = vsel %vm2814_vm6, %v4087_v36, %v3140_v47  ;;  %v4161_v36 = vld [vmem:[%s6459_s14 + $0x18] sm:$0xff]   ;;  %v4160_v52 = vld [vmem:[%s6459_s14 + $0x10] sm:$0xff]  }
 0x1b3   : > { %3405 = vmatmul.mubr.bf16.gmra.mrb[20].mxu0 %v2941_v61  ;;  %v4141_v47 = vunpack.c.l.bf16 %v4161_v36 }
 0x1b4   : > { %v3138_v33 = vpop.permute.xlu0 %3137 }
 0x1b5   : > { %v3161_v20 = vsel %vm2814_vm6, %v4086_v15, %v3138_v33 }
 0x1b6   : > { %4256 = vmatprep.mubr.msk.bf16.mxu1 %vm2839_vm7, %v3161_v20  ;;  %v4137_v20 = vunpack.c.l.bf16 %v4160_v52 }
 0x1b7   : > { %4257 = vmatmul.mubr.msk.bf16.gmra.mrb[20].mxu1 %vm2839_vm7, %v3164_v27 }
 0x1c6   : > { %v4218_v39 = vpop.f32.mrb[0].mxu1 }
 0x1c7   : > { %v4219_v35 = vpop.f32.mrb[1].mxu1 }
 0x1c8   : > { %v6446_v22 = vadd.f32 %v4219_v35, %v4218_v39  ;;  %v4221_v11 = vpop.f32.mrb[2].mxu1 }
 0x1c9   : > { %v4222_v40 = vpop.f32.mrb[3].mxu1 }
 0x1ca   : > { %v6448_v6 = vadd.f32 %v4222_v40, %v4221_v11  ;;  %v4142_v40 = vunpack.c.h.bf16 %v4161_v36 }
 0x1ec   : > { %v4188_v7 = vpop.f32.mrb[4].mxu0 }
 0x1ed   : > { %v4189_v46 = vpop.f32.mrb[5].mxu0 }
 0x1ee   : > { %v4190_v26 = vadd.f32 %v4189_v46, %v4188_v7  ;;  %v4191_v50 = vpop.f32.mrb[6].mxu0 }
 0x1ef   : > { %v4192_v51 = vpop.f32.mrb[7].mxu0 }
 0x1f0   : > { %v4193_v5 = vadd.f32 %v4192_v51, %v4191_v50  ;;  %v3375_v41 = vadd.f32 %v4190_v26, %v6465_v59  ;;  %v4138_v50 = vunpack.c.h.bf16 %v4160_v52 }
 0x1f2   : > { %v3378_v21 = vadd.f32 %v4193_v5, %v6465_v59 }
 0x20d   : > { %v4224_v29 = vpop.f32.mrb[4].mxu1 }
 0x20e   : > { %v4225_v14 = vpop.f32.mrb[5].mxu1 }
 0x20f   : > { %v6451_v13 = vadd.f32 %v4225_v14, %v4224_v29  ;;  %v4227_v44 = vpop.f32.mrb[6].mxu1 }
 0x210   : > { %v4228_v63 = vpop.f32.mrb[7].mxu1 }
 0x211   : > { %v6453_v3 = vadd.f32 %v4228_v63, %v4227_v44 }
 0x212   : > { %v4194_v25 = vpop.f32.mrb[8].mxu0 }
 0x213   : > { %v4195_v62 = vpop.f32.mrb[9].mxu0 }
 0x214   : > { %v4196_v53 = vadd.f32 %v4195_v62, %v4194_v25  ;;  %v4197_v0 = vpop.f32.mrb[10].mxu0 }
 0x215   : > { %v4198_v45 = vpop.f32.mrb[11].mxu0 }
 0x216   : > { %v4199_v17 = vadd.f32 %v4198_v45, %v4197_v0  ;;  %v3383_v27 = vadd.f32 %v4196_v53, %v6465_v59 }
 0x218   : > { %v3386_v26 = vadd.f32 %v4199_v17, %v6465_v59 }
 0x220   : > { %v4246_v57 = vpop.f32.mrb[8].mxu1 }
 0x221   : > { %v3472_v9 = vadd.f32 %v4246_v57, %v3375_v41  ;;  %v3463_v31 = vpop.f32.mrb[9].mxu1 }
 0x222   : > { %v3464_v10 = vadd.f32 %v3463_v31, %v3367_v37  ;;  %v4247_v34 = vpop.f32.mrb[10].mxu1  ;;  %v4162_v37 = vld [vmem:[%s6459_s14 + $0x20] sm:$0xff]  }
 0x223   : > { %v3560_v16 = vadd.f32 %v4133_v58, %v3472_v9  ;;  %v3475_v2 = vadd.f32 %v4247_v34, %v3378_v21  ;;  %v3466_v55 = vpop.f32.mrb[11].mxu1  ;;  %v4145_v31 = vunpack.c.l.bf16 %v4162_v37 }
 0x224   : > { %v3558_v1 = vadd.f32 %v4129_v60, %v3464_v10  ;;  %v3467_v38 = vadd.f32 %v3466_v55, %v3370_v24  ;;  %v4146_v24 = vunpack.c.h.bf16 %v4162_v37 }
 0x225   : > { %v3576_v48 = vmax.f32 %v3560_v16, 0.0  ;;  %v3561_v49 = vadd.f32 %v4134_v18, %v3475_v2 }
 0x226   : > { %v3574_v54 = vmax.f32 %v3558_v1, 0.0  ;;  %v3559_v28 = vadd.f32 %v4130_v19, %v3467_v38 }
 0x227   : > { %3592 = vst.msk [vmem:[%s6477_s15 + $0x10] sm:$0xff] %vm2814_vm6, %v3576_v48  ;;  %v3577_v42 = vmax.f32 %v3561_v49, 0.0  ;;  %v4165_v49 = vld [vmem:[%s6459_s14 + $0x38] sm:$0xff]  }
 0x228   : > { %3590 = vst.msk [vmem:[%s6477_s15] sm:$0xff] %vm2814_vm6, %v3574_v54  ;;  %v3575_v43 = vmax.f32 %v3559_v28, 0.0  ;;  %v4163_v28 = vld [vmem:[%s6459_s14 + $0x28] sm:$0xff]  }
 0x229   : > { %3593 = vst.msk [vmem:[%s6477_s15 + $0x18] sm:$0xff] %vm2814_vm6, %v3577_v42  ;;  %v4164_v42 = vld [vmem:[%s6459_s14 + $0x30] sm:$0xff]   ;;  %v4149_v52 = vunpack.c.l.bf16 %v4163_v28 }
 0x22a   : > { %3591 = vst.msk [vmem:[%s6477_s15 + $0x8] sm:$0xff] %vm2814_vm6, %v3575_v43 }
 0x233   : > { %v4200_v12 = vpop.f32.mrb[12].mxu0 }
 0x234   : > { %v4201_v4 = vpop.f32.mrb[13].mxu0 }
 0x235   : > { %v4202_v8 = vadd.f32 %v4201_v4, %v4200_v12  ;;  %v4203_v32 = vpop.f32.mrb[14].mxu0 }
 0x236   : > { %v4204_v23 = vpop.f32.mrb[15].mxu0 }
 0x237   : > { %v4205_v61 = vadd.f32 %v4204_v23, %v4203_v32  ;;  %v3391_v15 = vadd.f32 %v4202_v8, %v6465_v59  ;;  %v3423_v8 = vadd.f32 %v6451_v13, %v6465_v59  ;;  %v4157_v32 = vunpack.c.l.bf16 %v4165_v49 }
 0x238   : > { %v3415_v23 = vadd.f32 %v6446_v22, %v6465_v59  ;;  %v4158_v13 = vunpack.c.h.bf16 %v4165_v49 }
 0x239   : > { %v3394_v11 = vadd.f32 %v4205_v61, %v6465_v59  ;;  %v3418_v61 = vadd.f32 %v6448_v6, %v6465_v59  ;;  %v4154_v6 = vunpack.c.h.bf16 %v4164_v42 }
 0x24b   : > { %v4250_v33 = vpop.f32.mrb[12].mxu1 }
 0x24c   : > { %v3488_v39 = vadd.f32 %v4250_v33, %v3391_v15  ;;  %v3479_v35 = vpop.f32.mrb[13].mxu1  ;;  %v4153_v33 = vunpack.c.l.bf16 %v4164_v42 }
 0x24d   : > { %v3480_v7 = vadd.f32 %v3479_v35, %v3383_v27  ;;  %v4251_v46 = vpop.f32.mrb[14].mxu1  ;;  %v4150_v27 = vunpack.c.h.bf16 %v4163_v28  ;;  %v3426_v35 = vadd.f32 %v6453_v3, %v6465_v59 }
 0x24e   : > { %v3564_v51 = vadd.f32 %v4141_v47, %v3488_v39  ;;  %v3491_v5 = vadd.f32 %v4251_v46, %v3394_v11  ;;  %v3482_v29 = vpop.f32.mrb[15].mxu1 }
 0x24f   : > { %v3562_v14 = vadd.f32 %v4137_v20, %v3480_v7  ;;  %v3483_v44 = vadd.f32 %v3482_v29, %v3386_v26 }
 0x250   : > { %v3580_v63 = vmax.f32 %v3564_v51, 0.0  ;;  %v3565_v25 = vadd.f32 %v4142_v40, %v3491_v5 }
 0x251   : > { %v3578_v62 = vmax.f32 %v3562_v14, 0.0  ;;  %v3563_v53 = vadd.f32 %v4138_v50, %v3483_v44 }
 0x252   : > { %3596 = vst.msk [vmem:[%s6477_s15 + $0x30] sm:$0xff] %vm2814_vm6, %v3580_v63  ;;  %v3581_v0 = vmax.f32 %v3565_v25, 0.0 }
 0x253   : > { %3594 = vst.msk [vmem:[%s6477_s15 + $0x20] sm:$0xff] %vm2814_vm6, %v3578_v62  ;;  %v3579_v45 = vmax.f32 %v3563_v53, 0.0 }
 0x254   : > { %3597 = vst.msk [vmem:[%s6477_s15 + $0x38] sm:$0xff] %vm2814_vm6, %v3581_v0 }
 0x255   : > { %3595 = vst.msk [vmem:[%s6477_s15 + $0x28] sm:$0xff] %vm2814_vm6, %v3579_v45 }
 0x25b   : > { %v4206_v17 = vpop.f32.mrb[16].mxu0 }
 0x25c   : > { %v4207_v30 = vpop.f32.mrb[17].mxu0 }
 0x25d   : > { %v4208_v56 = vadd.f32 %v4207_v30, %v4206_v17  ;;  %v4209_v41 = vpop.f32.mrb[18].mxu0 }
 0x25e   : > { %v4210_v58 = vpop.f32.mrb[19].mxu0 }
 0x25f   : > { %v4211_v57 = vadd.f32 %v4210_v58, %v4209_v41  ;;  %v3399_v9 = vadd.f32 %v4208_v56, %v6465_v59 }
 0x261   : > { %v3402_v34 = vadd.f32 %v4211_v57, %v6465_v59 }
 0x276   : > { %v4254_v60 = vpop.f32.mrb[16].mxu1 }
 0x277   : > { %v3495_v21 = vpop.f32.mrb[17].mxu1 }
 0x278   : > { %v3496_v18 = vadd.f32 %v3495_v21, %v3399_v9  ;;  %v4255_v10 = vpop.f32.mrb[18].mxu1 }
 0x279   : > { %v3498_v19 = vpop.f32.mrb[19].mxu1 }
 0x27a   : > { %v3566_v16 = vadd.f32 %v4145_v31, %v3496_v18  ;;  %v3499_v2 = vadd.f32 %v3498_v19, %v3402_v34 }
 0x27c   : > { %v3582_v55 = vmax.f32 %v3566_v16, 0.0  ;;  %v3567_v1 = vadd.f32 %v4146_v24, %v3499_v2 }
 0x27e   : > { %3598 = vst.msk [vmem:[%s6477_s15 + $0x40] sm:$0xff] %vm2814_vm6, %v3582_v55  ;;  %v3583_v38 = vmax.f32 %v3567_v1, 0.0 }
 0x280   : > { %3599 = vst.msk [vmem:[%s6477_s15 + $0x48] sm:$0xff] %vm2814_vm6, %v3583_v38 }
 0x286   : > { %v4212_v48 = vpop.f32.mrb[20].mxu0 }
 0x287   : > { %v4213_v54 = vpop.f32.mrb[21].mxu0 }
 0x288   : > { %v4214_v43 = vadd.f32 %v4213_v54, %v4212_v48  ;;  %v4215_v12 = vpop.f32.mrb[22].mxu0 }
 0x289   : > { %v4216_v4 = vpop.f32.mrb[23].mxu0 }
 0x28a   : > { %v3407_v36 = vadd.f32 %v4214_v43, %v6465_v59  ;;  %v4217_v15 = vadd.f32 %v4216_v4, %v4215_v12  ;;  %v4258_v47 = vpop.f32.mrb[20].mxu1 }
 0x28b   : > { %v3520_v20 = vadd.f32 %v4258_v47, %v3423_v8  ;;  %v3511_v39 = vpop.f32.mrb[21].mxu1 }
 0x28c   : > { %v3504_v11 = vadd.f32 %v4254_v60, %v3407_v36  ;;  %v3410_v40 = vadd.f32 %v4217_v15, %v6465_v59  ;;  %v3512_v22 = vadd.f32 %v3511_v39, %v3415_v23  ;;  %v4259_v7 = vpop.f32.mrb[22].mxu1 }
 0x28d   : > { %v3572_v46 = vadd.f32 %v4157_v32, %v3520_v20  ;;  %v3523_v26 = vadd.f32 %v4259_v7, %v3426_v35  ;;  %v3514_v50 = vpop.f32.mrb[23].mxu1 }
 0x28e   : > { %v3568_v51 = vadd.f32 %v4149_v52, %v3504_v11  ;;  %v3507_v5 = vadd.f32 %v4255_v10, %v3410_v40  ;;  %v3570_v29 = vadd.f32 %v4153_v33, %v3512_v22  ;;  %v3515_v3 = vadd.f32 %v3514_v50, %v3418_v61 }
 0x28f   : > { %v3588_v14 = vmax.f32 %v3572_v46, 0.0  ;;  %v3573_v44 = vadd.f32 %v4158_v13, %v3523_v26 }
 0x290   : > { %v3584_v63 = vmax.f32 %v3568_v51, 0.0  ;;  %v3569_v59 = vadd.f32 %v4150_v27, %v3507_v5  ;;  %v3586_v25 = vmax.f32 %v3570_v29, 0.0  ;;  %v3571_v62 = vadd.f32 %v4154_v6, %v3515_v3 }
 0x291   : > { %3604 = vst.msk [vmem:[%s6477_s15 + $0x70] sm:$0xff] %vm2814_vm6, %v3588_v14  ;;  %v3589_v53 = vmax.f32 %v3573_v44, 0.0 }
 0x292   : > { %3600 = vst.msk [vmem:[%s6477_s15 + $0x50] sm:$0xff] %vm2814_vm6, %v3584_v63  ;;  %v3585_v0 = vmax.f32 %v3569_v59, 0.0  ;;  %3602 = vst.msk [vmem:[%s6477_s15 + $0x60] sm:$0xff] %vm2814_vm6, %v3586_v25  ;;  %v3587_v45 = vmax.f32 %v3571_v62, 0.0 }
 0x293   : > { %3605 = vst.msk [vmem:[%s6477_s15 + $0x78] sm:$0xff] %vm2814_vm6, %v3589_v53 }
 0x294   : > { %3601 = vst.msk [vmem:[%s6477_s15 + $0x58] sm:$0xff] %vm2814_vm6, %v3585_v0  ;;  %3603 = vst.msk [vmem:[%s6477_s15 + $0x68] sm:$0xff] %vm2814_vm6, %v3587_v45 }
 0x295 PF: > { %s15_s22 = sadd.s32 1, %s4464_s22   ;;  %s6585_s18 = smov %s4456_s20 }
 0x296   : > { %p12_p7 = scmp.ge.s32.totalorder %s15_s22, 6   ;;  %s6586_s19 = smov %s4460_s21 }
 0x297   : > { %s6587_s20 = smov %s6590_s23  ;;  %s6588_s21 = smov %s6594_s24 }
 0x298   :  { %14 = sbr.rel (!%p12_p7) target bundleno = 3 (0x3), region = 82 }

// kernel: _lambda_.8
= control target key start
LH: loop header
LB: loop body
LE: loop exit
PB: predicated region body
PF: predicated region fallthrough
CT: control target
= control target key end

     0   :  { %s6045_s12 = smov 0   ;;  %s6047_s13 = smov 0   ;;  %s8998_s0 = inlined_call_operand.vmem [shape: bf16[2,30,30,24], index: 0, kind: input, shape index: {}]   ;;  %s8999_s1 = inlined_call_operand.vmem [shape: bf16[216,24], index: 1, kind: input, shape index: {}]   ;;  %s9000_s2 = inlined_call_operand.vmem [shape: f32[1,24], index: 2, kind: input, shape index: {}]   ;;  %s9001_s3 = inlined_call_operand.vmem [shape: bf16[2,16,16,24], index: 3, kind: output, shape index: {}]  }
   0x1   :  { %s6049_s14 = smov 0   ;;  %s6051_s15 = smov 0  }
   0x2   :  { %s6053_s16 = smov 0  }
   0x3 LB: > { %s22_s17 = sadd.s32 1, %s5999_s14  ;;  %s25_s18 = sadd.s32 1, %s6003_s15  ;;  %s6007_s16 = sphi %s6053_s16, %s13_s16   ;;  %s6003_s15 = sphi %s6051_s15, %s9079_s15   ;;  %s5999_s14 = sphi %s6049_s14, %s9078_s14   ;;  %s5995_s13 = sphi %s6047_s13, %s9077_s13   ;;  %s5991_s12 = sphi %s6045_s12, %s9076_s12  }
   0x4   : > { %p23_p0 = scmp.ge.s32.totalorder %s22_s17, 2  ;;  %p4949_p1 = scmp.ge.s32.totalorder %s6007_s16, 1 }
   0x5   : > { %p151_p2 = scmp.lt.s32.totalorder %s6007_s16, 5 }
   0x6   : > { %s9081_s17 = smov (%p23_p0, %s22_s17), 0  ;;  %s9083_s18 = smov (!%p23_p0, %s25_s18), %s6003_s15 }
   0x7   : > { %p152_p3 = pnand %p4949_p1, %p151_p2  ;;  %p27_p4 = scmp.ge.s32.totalorder %s9083_s18, 2 }
   0x9   : > { %s9085_s18 = smov (%p27_p4, %s9083_s18), 0  ;;  %155 = sbr.rel (%p152_p3) target bundleno = 804 (0x324), region = 32 }
  0x10   : > { %p180_p5 = scmp.lt.s32.totalorder %s5995_s13, 1  ;;  %s5771_s19 = sshll.u32 %s5991_s12, 7  ;;  %vm544_vm0 = vcmask 1042432   ;;  %vm545_vm1 = vcmask 1046532   ;;  %vm325_vm2 = vsmask.f32 256 }
  0x11   : > { %vm6086_vm3 = vmor %vm544_vm0, %vm545_vm1  ;;  %vm326_vm4 = vsmask.f32 4368  ;;  %s6009_s25 = smov 16   ;;  %s6010_s26 = smov 8   ;;  %vm250_vm6 = vcmask 1041408   ;;  %vm251_vm7 = vcmask 1045508  }
  0x12   : > { %s9087_s13 = smov (!%p180_p5, %s5995_s13), 1  ;;  %vm6119_vm5 = vmor %vm325_vm2, %vm326_vm4  ;;  %s6011_s27 = smov 24   ;;  %vm2614_vm9 = vcmask 1040384   ;;  %vm2615_vm10 = vcmask 1044484   ;;  %vm3677_vm12 = vcmask 64512   ;;  %vm9008_vm13 = vcmask 130048  }
  0x13   : > { %s5823_s20 = smul.u32 480, %s9087_s13  ;;  %vm6252_vm8 = vmor %vm250_vm6, %vm251_vm7  ;;  %s6012_s28 = smov 32   ;;  %vm9007_vm14 = vcmask 195584   ;;  %vm3736_vm15 = vcmask 261120   ;;  %vm3753_vm0 = vcmask 326656   ;;  %vm3770_vm1 = vcmask 392192  }
  0x14   : > { %s6013_s29 = smov 40   ;;  %s6014_s30 = smov 120   ;;  %vm6524_vm11 = vmor %vm2614_vm9, %vm2615_vm10  ;;  %vm3787_vm2 = vcmask 457728   ;;  %vm3804_vm4 = vcmask 523264   ;;  %vm3821_vm6 = vcmask 588800   ;;  %vm3838_vm7 = vcmask 654336  }
  0x15   : > { %s184_s23 = scalar_lea.vmem %s8998_s0, %s5823_s20  ;;  %s6015_s4 = smov 48   ;;  %vm9006_vm9 = vcmask 719872   ;;  %vm9004_vm10 = vcmask 785408  }
  0x16   : > { %s6084_s24 = scalar_lea.vmem %s184_s23, %s5771_s19  ;;  %s6016_s5 = smov 56  }
  0x17   : > { %v6091_v1 = vld [vmem:[%s6084_s24 + $0x58] sm:$0xf]  ;;  %v5016_v2 = vld [vmem:[%s6084_s24 + $0x54] sm:$0xe]  ;;  %v5017_v3 = vld [vmem:[%s6084_s24 + $0x5c] sm:$0x1] }
  0x18   : > { %v5031_v4 = vrot.slane %v5016_v2, 9  ;;  %v556_v5 = vrot.slane %v6091_v1, 5  ;;  %v559_v6 = vrot.slane %v5017_v3, 5  ;;  %v365_v7 = vshrl.u32 %v6091_v1, 16  ;;  %v4991_v8 = vld [vmem:[%s6084_s24 + $0x48] sm:$0xf] }
  0x19   : > { %v5014_v9 = vld [vmem:[%s6084_s24 + $0x44] sm:$0xe]  ;;  %v5015_v10 = vld [vmem:[%s6084_s24 + $0x4c] sm:$0x1]  ;;  %v549_v11 = vrot.slane %v4991_v8, 5  ;;  %v343_v12 = vshrl.u32 %v4991_v8, 16 }
  0x1a   : > { %v557_v13 = vsel %vm6086_vm3, %v5031_v4, %v556_v5  ;;  %v558_v14 = vrot.slane %v556_v5, 4  ;;  %v5030_v15 = vrot.slane %v5014_v9, 9  ;;  %v552_v16 = vrot.slane %v5015_v10, 5  ;;  %v4965_v17 = vld [vmem:[%s6084_s24 + $0x64] sm:$0xf]  ;;  %s6017_s6 = smov 64  }
  0x1b   : > { %v551_v18 = vrot.slane %v549_v11, 4  ;;  %v4994_v19 = vld [vmem:[%s6084_s24 + $0x60] sm:$0x8]  ;;  %v6105_v20 = vld [vmem:[%s6084_s24 + $0x68] sm:$0xf]  ;;  %v378_v21 = vshrl.u32 %v4965_v17, 16 }
  0x1c   : > { %v560_v22 = vsel %vm6086_vm3, %v558_v14, %v559_v6  ;;  %v550_v23 = vsel %vm6086_vm3, %v5030_v15, %v549_v11  ;;  %v373_v24 = vshrl.u32 %v4994_v19, 16  ;;  %v381_v25 = vshll.u32 %v4965_v17, 16  ;;  %v4959_v26 = vld [vmem:[%s6084_s24 + $0x44] sm:$0xf]  ;;  %v4990_v27 = vld [vmem:[%s6084_s24 + $0x40] sm:$0x8] }
  0x1d   : > { %v5547_v28 = vcombine.low %v557_v13, %v560_v22  ;;  %v553_v29 = vsel %vm6086_vm3, %v551_v18, %v552_v16  ;;  %v380_v30 = vrot.slane %v378_v21, 7  ;;  %v387_v31 = vshrl.u32 %v6105_v20, 16  ;;  %v4968_v32 = vld [vmem:[%s6084_s24 + $0x74] sm:$0xf]  ;;  %v4996_v38 = vld [vmem:[%s6084_s24 + $0x70] sm:$0x8] }
  0x1e   : > { %v5546_v33 = vcombine.low %v550_v23, %v553_v29  ;;  %v5008_v35 = vrot.slane %v373_v24, 11  ;;  %v390_v36 = vshll.u32 %v6105_v20, 16  ;;  %v329_v37 = vshrl.u32 %v4990_v27, 16  ;;  %v6127_v43 = vld [vmem:[%s6084_s24 + $0x78] sm:$0xf]  ;;  %s6018_s7 = smov 72  }
  0x1f   : > { %3167 = vrot.lane.b32.xlu1 %v5547_v28, %s6009_s25  ;;  %v383_v39 = vor.u32 %v381_v25, %v380_v30  ;;  %v385_v40 = vrot.slane %v380_v30, 4  ;;  %v389_v41 = vrot.slane %v387_v31, 7  ;;  %v334_v42 = vshrl.u32 %v4959_v26, 16  ;;  %v4962_v52 = vld [vmem:[%s6084_s24 + $0x54] sm:$0xf]  ;;  %s6019_s8 = smov 80  }
  0x20   : > { %3165 = vrot.lane.b32.xlu0 %v5546_v33, %s6009_s25  ;;  %v5006_v44 = vrot.slane %v329_v37, 11  ;;  %v337_v45 = vshll.u32 %v4959_v26, 16  ;;  %v345_v46 = vrot.slane %v343_v12, 7  ;;  %v346_v47 = vshll.u32 %v4991_v8, 16  ;;  %v4992_v57 = vld [vmem:[%s6084_s24 + $0x50] sm:$0x8] }
  0x21   : > { %v384_v48 = vsel %vm6119_vm5, %v5008_v35, %v383_v39  ;;  %v392_v49 = vor.u32 %v390_v36, %v389_v41  ;;  %v336_v50 = vrot.slane %v334_v42, 7  ;;  %v395_v51 = vshrl.u32 %v4996_v38, 16  ;;  %v5000_v9 = vld [vmem:[%s6084_s24 + $0x90] sm:$0x8]  ;;  %v4974_v14 = vld [vmem:[%s6084_s24 + $0x94] sm:$0xf] }
  0x22   : > { %v348_v53 = vor.u32 %v346_v47, %v345_v46  ;;  %v400_v54 = vshrl.u32 %v4968_v32, 16  ;;  %v403_v55 = vshll.u32 %v4968_v32, 16  ;;  %v409_v56 = vshrl.u32 %v6127_v43, 16  ;;  %v6148_v19 = vld [vmem:[%s6084_s24 + $0x98] sm:$0xf]  ;;  %s6020_s9 = smov 88  }
  0x23   : > { %v393_v58 = vsel %vm6119_vm5, %v385_v40, %v392_v49  ;;  %v339_v59 = vor.u32 %v337_v45, %v336_v50  ;;  %v341_v60 = vrot.slane %v336_v50, 4  ;;  %v5009_v61 = vrot.slane %v395_v51, 11  ;;  %v4998_v25 = vld [vmem:[%s6084_s24 + $0x80] sm:$0x8]  ;;  %v4971_v29 = vld [vmem:[%s6084_s24 + $0x84] sm:$0xf] }
  0x24   : > { %v5540_v62 = vcombine.low %v384_v48, %v393_v58  ;;  %v402_v63 = vrot.slane %v400_v54, 7  ;;  %v411_v2 = vrot.slane %v409_v56, 7  ;;  %v412_v3 = vshll.u32 %v6127_v43, 16  ;;  %v6160_v35 = vld [vmem:[%s6084_s24 + $0x88] sm:$0xf]  ;;  %s6021_s10 = smov 96  }
  0x25   : > { %v340_v4 = vsel %vm6119_vm5, %v5006_v44, %v339_v59  ;;  %v349_v5 = vsel %vm6119_vm5, %v341_v60, %v348_v53  ;;  %v351_v6 = vshrl.u32 %v4992_v57, 16  ;;  %v356_v8 = vshrl.u32 %v4962_v52, 16  ;;  %v4980_v39 = vld [vmem:[%s6084_s24 + $0xb4] sm:$0xf]  ;;  %v5004_v45 = vld [vmem:[%s6084_s24 + $0xb0] sm:$0x8] }
  0x26   : > { %3129 = vrot.lane.b32.xlu1 %v5540_v62, %s6010_s26  ;;  %v5538_v10 = vcombine.low %v340_v4, %v349_v5  ;;  %v405_v11 = vor.u32 %v403_v55, %v402_v63  ;;  %v407_v12 = vrot.slane %v402_v63, 4  ;;  %v414_v13 = vor.u32 %v412_v3, %v411_v2  ;;  %v6173_v54 = vld [vmem:[%s6084_s24 + $0xb8] sm:$0xf]  ;;  %v5002_v59 = vld [vmem:[%s6084_s24 + $0xa0] sm:$0x8]  ;;  %s6022_s11 = smov 104  }
  0x27   : > { %v5007_v15 = vrot.slane %v351_v6, 11  ;;  %v358_v16 = vrot.slane %v356_v8, 7  ;;  %v359_v17 = vshll.u32 %v4962_v52, 16  ;;  %v367_v18 = vrot.slane %v365_v7, 7  ;;  %v4977_v2 = vld [vmem:[%s6084_s24 + $0xa4] sm:$0xf] }
  0x28   : > { %3125 = vrot.lane.b32.xlu0 %v5538_v10, %s6010_s26  ;;  %v406_v21 = vsel %vm6119_vm5, %v5009_v61, %v405_v11  ;;  %v415_v22 = vsel %vm6119_vm5, %v407_v12, %v414_v13  ;;  %v368_v23 = vshll.u32 %v6091_v1, 16  ;;  %v439_v24 = vshrl.u32 %v5000_v9, 16  ;;  %v6184_v8 = vld [vmem:[%s6084_s24 + $0xa8] sm:$0xf]  ;;  %s6023_s19 = smov 112  }
  0x29   : > { %v5541_v26 = vcombine.low %v406_v21, %v415_v22  ;;  %v361_v27 = vor.u32 %v359_v17, %v358_v16  ;;  %v363_v28 = vrot.slane %v358_v16, 4  ;;  %v444_v7 = vshrl.u32 %v4974_v14, 16  ;;  %v5020_v17 = vld [vmem:[%s6084_s24 + $0x74] sm:$0xe] }
  0x2a   : > { %v370_v30 = vor.u32 %v368_v23, %v367_v18  ;;  %v5011_v31 = vrot.slane %v439_v24, 11  ;;  %v447_v32 = vshll.u32 %v4974_v14, 16  ;;  %v453_v33 = vshrl.u32 %v6148_v19, 16  ;;  %v5021_v24 = vld [vmem:[%s6084_s24 + $0x7c] sm:$0x1] }
  0x2b   : > { %3131 = vrot.lane.b32.xlu1 %v5541_v26, %s6010_s26  ;;  %v362_v1 = vsel %vm6119_vm5, %v5007_v15, %v361_v27  ;;  %v446_v36 = vrot.slane %v444_v7, 7  ;;  %v456_v37 = vshll.u32 %v6148_v19, 16  ;;  %v417_v38 = vshrl.u32 %v4998_v25, 16  ;;  %v5018_v7 = vld [vmem:[%s6084_s24 + $0x64] sm:$0xe] }
  0x2c   : > { %v371_v40 = vsel %vm6119_vm5, %v363_v28, %v370_v30  ;;  %v455_v41 = vrot.slane %v453_v33, 7  ;;  %v422_v42 = vshrl.u32 %v4971_v29, 16  ;;  %v425_v44 = vshll.u32 %v4971_v29, 16  ;;  %v5019_v33 = vld [vmem:[%s6084_s24 + $0x6c] sm:$0x1] }
  0x2d   : > { %v5539_v46 = vcombine.low %v362_v1, %v371_v40  ;;  %v449_v47 = vor.u32 %v447_v32, %v446_v36  ;;  %v451_v48 = vrot.slane %v446_v36, 4  ;;  %v5010_v49 = vrot.slane %v417_v38, 11 }
  0x2e   : > { %v458_v50 = vor.u32 %v456_v37, %v455_v41  ;;  %v424_v51 = vrot.slane %v422_v42, 7  ;;  %v431_v52 = vshrl.u32 %v6160_v35, 16  ;;  %v434_v53 = vshll.u32 %v6160_v35, 16 }
  0x2f   : > { %3127 = vrot.lane.b32.xlu0 %v5539_v46, %s6010_s26  ;;  %v450_v55 = vsel %vm6119_vm5, %v5011_v31, %v449_v47  ;;  %v483_v56 = vshrl.u32 %v5004_v45, 16  ;;  %v488_v57 = vshrl.u32 %v4980_v39, 16  ;;  %v491_v58 = vshll.u32 %v4980_v39, 16  ;;  %v5024_v39 = vld [vmem:[%s6084_s24 + $0x94] sm:$0xe] }
  0x30   : > { %v459_v60 = vsel %vm6119_vm5, %v451_v48, %v458_v50  ;;  %v427_v61 = vor.u32 %v425_v44, %v424_v51  ;;  %v429_v62 = vrot.slane %v424_v51, 4  ;;  %v433_v63 = vrot.slane %v431_v52, 7  ;;  %v5022_v45 = vld [vmem:[%s6084_s24 + $0x84] sm:$0xe]  ;;  %v5023_v50 = vld [vmem:[%s6084_s24 + $0x8c] sm:$0x1] }
  0x31   : > { %v5543_v3 = vcombine.low %v450_v55, %v459_v60  ;;  %v5013_v4 = vrot.slane %v483_v56, 11  ;;  %v490_v5 = vrot.slane %v488_v57, 7  ;;  %v497_v6 = vshrl.u32 %v6173_v54, 16  ;;  %v5028_v56 = vld [vmem:[%s6084_s24 + $0xb4] sm:$0xe] }
  0x32   : > { %v428_v9 = vsel %vm6119_vm5, %v5010_v49, %v427_v61  ;;  %v436_v10 = vor.u32 %v434_v53, %v433_v63  ;;  %v500_v11 = vshll.u32 %v6173_v54, 16  ;;  %v461_v12 = vshrl.u32 %v5002_v59, 16  ;;  %v5029_v57 = vld [vmem:[%s6084_s24 + $0xbc] sm:$0x1]  ;;  %v5026_v61 = vld [vmem:[%s6084_s24 + $0xa4] sm:$0xe] }
  0x33   : > { %3135 = vrot.lane.b32.xlu1 %v5543_v3, %s6010_s26  ;;  %v493_v13 = vor.u32 %v491_v58, %v490_v5  ;;  %v495_v14 = vrot.slane %v490_v5, 4  ;;  %v499_v15 = vrot.slane %v497_v6, 7  ;;  %v466_v16 = vshrl.u32 %v4977_v2, 16 }
  0x34   : > { %v437_v18 = vsel %vm6119_vm5, %v429_v62, %v436_v10  ;;  %v5012_v21 = vrot.slane %v461_v12, 11  ;;  %v469_v22 = vshll.u32 %v4977_v2, 16  ;;  %v475_v23 = vshrl.u32 %v6184_v8, 16  ;;  %v5027_v62 = vld [vmem:[%s6084_s24 + $0xac] sm:$0x1] }
  0x35   : > { %v5542_v25 = vcombine.low %v428_v9, %v437_v18  ;;  %v494_v26 = vsel %vm6119_vm5, %v5013_v4, %v493_v13  ;;  %v502_v27 = vor.u32 %v500_v11, %v499_v15  ;;  %v468_v28 = vrot.slane %v466_v16, 7  ;;  %v6233_v11 = vld [vmem:[%s6084_s24 + $0x84] sm:$0xf]  ;;  %v5045_v16 = vld [vmem:[%s6084_s24 + $0x88] sm:$0x3] }
  0x36   : > { %v477_v29 = vrot.slane %v475_v23, 7  ;;  %v478_v30 = vshll.u32 %v6184_v8, 16  ;;  %v5033_v31 = vrot.slane %v5020_v17, 9  ;;  %v570_v32 = vrot.slane %v6127_v43, 5  ;;  %v5025_v43 = vld [vmem:[%s6084_s24 + $0x9c] sm:$0x1] }
  0x37   : > { %3133 = vrot.lane.b32.xlu0 %v5542_v25, %s6010_s26  ;;  %v503_v1 = vsel %vm6119_vm5, %v495_v14, %v502_v27  ;;  %v471_v36 = vor.u32 %v469_v22, %v468_v28  ;;  %v473_v37 = vrot.slane %v468_v28, 4  ;;  %v573_v38 = vrot.slane %v5021_v24, 5  ;;  %v5040_v17 = vld [vmem:[%s6084_s24 + $0x70] sm:$0xc]  ;;  %v6244_v23 = vld [vmem:[%s6084_s24 + $0x74] sm:$0xf] }
  0x38   : > { %v5545_v40 = vcombine.low %v494_v26, %v503_v1  ;;  %v480_v41 = vor.u32 %v478_v30, %v477_v29  ;;  %v571_v42 = vsel %vm6086_vm3, %v5033_v31, %v570_v32  ;;  %v572_v44 = vrot.slane %v570_v32, 4  ;;  %v5042_v24 = vld [vmem:[%s6084_s24 + $0x78] sm:$0x3]  ;;  %v6262_v32 = vld [vmem:[%s6084_s24 + $0xa4] sm:$0xf] }
  0x39   : > { %v472_v46 = vsel %vm6119_vm5, %v5012_v21, %v471_v36  ;;  %v5032_v47 = vrot.slane %v5018_v7, 9  ;;  %v563_v48 = vrot.slane %v6105_v20, 5  ;;  %v566_v49 = vrot.slane %v5019_v33, 5  ;;  %v5049_v7 = vld [vmem:[%s6084_s24 + $0xa0] sm:$0xc] }
  0x3a   : > { %3139 = vrot.lane.b32.xlu1 %v5545_v40, %s6010_s26  ;;  %v481_v51 = vsel %vm6119_vm5, %v473_v37, %v480_v41  ;;  %v574_v52 = vsel %vm6086_vm3, %v572_v44, %v573_v38  ;;  %v5035_v53 = vrot.slane %v5024_v39, 9  ;;  %v584_v55 = vrot.slane %v6148_v19, 5  ;;  %v5043_v19 = vld [vmem:[%s6084_s24 + $0x80] sm:$0xc]  ;;  %v5051_v38 = vld [vmem:[%s6084_s24 + $0xa8] sm:$0x3] }
  0x3b   : > { %v5544_v58 = vcombine.low %v472_v46, %v481_v51  ;;  %v5549_v59 = vcombine.low %v571_v42, %v574_v52  ;;  %v564_v20 = vsel %vm6086_vm3, %v5032_v47, %v563_v48  ;;  %v565_v60 = vrot.slane %v563_v48, 4  ;;  %v5046_v39 = vld [vmem:[%s6084_s24 + $0x90] sm:$0xc] }
  0x3c   : > { %v585_v63 = vsel %vm6086_vm3, %v5035_v53, %v584_v55  ;;  %v586_v2 = vrot.slane %v584_v55, 4  ;;  %v587_v3 = vrot.slane %v5025_v43, 5  ;;  %v5034_v4 = vrot.slane %v5022_v45, 9  ;;  %v6274_v43 = vld [vmem:[%s6084_s24 + $0x94] sm:$0xf] }
  0x3d   : > { %3137 = vrot.lane.b32.xlu0 %v5544_v58, %s6010_s26  ;;  %v567_v5 = vsel %vm6086_vm3, %v565_v60, %v566_v49  ;;  %v577_v6 = vrot.slane %v6160_v35, 5  ;;  %v580_v9 = vrot.slane %v5023_v50, 5  ;;  %v5037_v10 = vrot.slane %v5028_v56, 9  ;;  %v5048_v45 = vld [vmem:[%s6084_s24 + $0x98] sm:$0x3] }
  0x3e   : > { %3171 = vrot.lane.b32.xlu1 %v5549_v59, %s6009_s25  ;;  %v5548_v12 = vcombine.low %v564_v20, %v567_v5  ;;  %v588_v13 = vsel %vm6086_vm3, %v586_v2, %v587_v3  ;;  %v598_v14 = vrot.slane %v6173_v54, 5  ;;  %v601_v15 = vrot.slane %v5029_v57, 5  ;;  %v5055_v50 = vld [vmem:[%s6084_s24 + $0xc0] sm:$0xc]  ;;  %v6286_v56 = vld [vmem:[%s6084_s24 + $0xc4] sm:$0xf] }
  0x3f   : > { %v5551_v18 = vcombine.low %v585_v63, %v588_v13  ;;  %v578_v35 = vsel %vm6086_vm3, %v5034_v4, %v577_v6  ;;  %v579_v21 = vrot.slane %v577_v6, 4  ;;  %v5036_v22 = vrot.slane %v5026_v61, 9  ;;  %v5057_v57 = vld [vmem:[%s6084_s24 + $0xc8] sm:$0x3]  ;;  %v5052_v61 = vld [vmem:[%s6084_s24 + $0xb0] sm:$0xc] }
  0x40   : > { %v599_v25 = vsel %vm6086_vm3, %v5037_v10, %v598_v14  ;;  %v600_v26 = vrot.slane %v598_v14, 4  ;;  %v591_v54 = vrot.slane %v6184_v8, 5  ;;  %v594_v27 = vrot.slane %v5027_v62, 5  ;;  %v6294_v62 = vld [vmem:[%s6084_s24 + $0xb4] sm:$0xf] }
  0x41   : > { %3169 = vrot.lane.b32.xlu0 %v5548_v12, %s6009_s25  ;;  %v581_v29 = vsel %vm6086_vm3, %v579_v21, %v580_v9  ;;  %v5065_v30 = vrot.slane %v5043_v19, 10  ;;  %v664_v31 = vrot.slane %v6233_v11, 6  ;;  %v667_v8 = vrot.slane %v5045_v16, 6  ;;  %v5054_v19 = vld [vmem:[%s6084_s24 + $0xb8] sm:$0x3] }
  0x42   : > { %3175 = vrot.lane.b32.xlu1 %v5551_v18, %s6009_s25  ;;  %v5550_v33 = vcombine.low %v578_v35, %v581_v29  ;;  %v602_v1 = vsel %vm6086_vm3, %v600_v26, %v601_v15  ;;  %v592_v36 = vsel %vm6086_vm3, %v5036_v22, %v591_v54  ;;  %v593_v37 = vrot.slane %v591_v54, 4  ;;  %v5061_v12 = vld [vmem:[%s6084_s24 + $0xe0] sm:$0xc]  ;;  %v5063_v18 = vld [vmem:[%s6084_s24 + $0xe8] sm:$0x3] }
  0x43   : > { %v5553_v40 = vcombine.low %v599_v25, %v602_v1  ;;  %v665_v41 = vsel %vm6252_vm8, %v5065_v30, %v664_v31  ;;  %v666_v42 = vrot.slane %v664_v31, 4  ;;  %v5064_v44 = vrot.slane %v5040_v17, 10  ;;  %v5062_v17 = vld [vmem:[%s6084_s24 + $0xe4] sm:$0xf]  ;;  %v5058_v25 = vld [vmem:[%s6084_s24 + $0xd0] sm:$0xc] }
  0x44   : > { %v595_v46 = vsel %vm6086_vm3, %v593_v37, %v594_v27  ;;  %v657_v47 = vrot.slane %v6244_v23, 6  ;;  %v660_v48 = vrot.slane %v5042_v24, 6  ;;  %v5067_v49 = vrot.slane %v5049_v7, 10  ;;  %v5059_v26 = vld [vmem:[%s6084_s24 + $0xd4] sm:$0xf] }
  0x45   : > { %3173 = vrot.lane.b32.xlu0 %v5550_v33, %s6009_s25  ;;  %v5552_v51 = vcombine.low %v592_v36, %v595_v46  ;;  %v668_v52 = vsel %vm6252_vm8, %v666_v42, %v667_v8  ;;  %v678_v53 = vrot.slane %v6262_v32, 6  ;;  %v681_v55 = vrot.slane %v5051_v38, 6  ;;  %v5060_v30 = vld [vmem:[%s6084_s24 + $0xd8] sm:$0x3]  ;;  %v5074_v36 = vld [vmem:[%s6084_s24 + $0x80] sm:$0x8] }
  0x46   : > { %3179 = vrot.lane.b32.xlu1 %v5553_v40, %s6009_s25  ;;  %v5555_v58 = vcombine.low %v665_v41, %v668_v52  ;;  %v658_v59 = vsel %vm6252_vm8, %v5064_v44, %v657_v47  ;;  %v659_v20 = vrot.slane %v657_v47, 4  ;;  %v5066_v60 = vrot.slane %v5046_v39, 10  ;;  %v6330_v46 = vld [vmem:[%s6084_s24 + $0x88] sm:$0xf] }
  0x47   : > { %v679_v63 = vsel %vm6252_vm8, %v5067_v49, %v678_v53  ;;  %v680_v2 = vrot.slane %v678_v53, 4  ;;  %v671_v3 = vrot.slane %v6274_v43, 6  ;;  %v674_v4 = vrot.slane %v5048_v45, 6 }
  0x48   : > { %v661_v5 = vsel %vm6252_vm8, %v659_v20, %v660_v48  ;;  %v5069_v6 = vrot.slane %v5055_v50, 10  ;;  %v692_v9 = vrot.slane %v6286_v56, 6  ;;  %v695_v10 = vrot.slane %v5057_v57, 6 }
  0x49   : > { %3177 = vrot.lane.b32.xlu0 %v5552_v51, %s6009_s25  ;;  %v5554_v13 = vcombine.low %v658_v59, %v661_v5  ;;  %v682_v14 = vsel %vm6252_vm8, %v680_v2, %v681_v55  ;;  %v672_v15 = vsel %vm6252_vm8, %v5066_v60, %v671_v3  ;;  %v673_v16 = vrot.slane %v671_v3, 4  ;;  %v5072_v51 = vld [vmem:[%s6084_s24 + $0x70] sm:$0x8] }
  0x4a   : > { %3207 = vrot.lane.b32.xlu1 %v5555_v58, %s6011_s27  ;;  %v5557_v35 = vcombine.low %v679_v63, %v682_v14  ;;  %v693_v21 = vsel %vm6252_vm8, %v5069_v6, %v692_v9  ;;  %v694_v22 = vrot.slane %v692_v9, 4  ;;  %v5068_v24 = vrot.slane %v5052_v61, 10  ;;  %v6344_v61 = vld [vmem:[%s6084_s24 + $0x78] sm:$0xf] }
  0x4b   : > { %v675_v54 = vsel %vm6252_vm8, %v673_v16, %v674_v4  ;;  %v685_v27 = vrot.slane %v6294_v62, 6  ;;  %v688_v7 = vrot.slane %v5054_v19, 6  ;;  %v5071_v29 = vrot.slane %v5061_v12, 10  ;;  %v5078_v4 = vld [vmem:[%s6084_s24 + $0xa0] sm:$0x8] }
  0x4c   : > { %v5556_v31 = vcombine.low %v672_v15, %v675_v54  ;;  %v696_v8 = vsel %vm6252_vm8, %v694_v22, %v695_v10  ;;  %v706_v33 = vrot.slane %v5062_v17, 6  ;;  %v709_v1 = vrot.slane %v5063_v18, 6  ;;  %v5079_v15 = vld [vmem:[%s6084_s24 + $0xa8] sm:$0xf] }
  0x4d   : > { %3205 = vrot.lane.b32.xlu0 %v5554_v13, %s6011_s27  ;;  %v5559_v37 = vcombine.low %v693_v21, %v696_v8  ;;  %v686_v38 = vsel %vm6252_vm8, %v5068_v24, %v685_v27  ;;  %v687_v39 = vrot.slane %v685_v27, 4  ;;  %v5070_v40 = vrot.slane %v5058_v25, 10 }
  0x4e   : > { %3211 = vrot.lane.b32.xlu1 %v5557_v35, %s6011_s27  ;;  %v707_v41 = vsel %vm6252_vm8, %v5071_v29, %v706_v33  ;;  %v708_v42 = vrot.slane %v706_v33, 4  ;;  %v699_v44 = vrot.slane %v5059_v26, 6  ;;  %v702_v45 = vrot.slane %v5060_v30, 6  ;;  %v5076_v26 = vld [vmem:[%s6084_s24 + $0x90] sm:$0x8] }
  0x4f   : > { %v689_v47 = vsel %vm6252_vm8, %v687_v39, %v688_v7  ;;  %v750_v48 = vshrl.u32 %v5074_v36, 16  ;;  %v755_v49 = vshrl.u32 %v6233_v11, 16  ;;  %v758_v50 = vshll.u32 %v6233_v11, 16 }
  0x50   : > { %v5558_v52 = vcombine.low %v686_v38, %v689_v47  ;;  %v710_v53 = vsel %vm6252_vm8, %v708_v42, %v709_v1  ;;  %v700_v55 = vsel %vm6252_vm8, %v5070_v40, %v699_v44  ;;  %v701_v57 = vrot.slane %v699_v44, 4  ;;  %v5077_v1 = vld [vmem:[%s6084_s24 + $0x98] sm:$0xf]  ;;  %v5096_v40 = vld [vmem:[%s6084_s24 + $0x74] sm:$0xe] }
  0x51   : > { %3209 = vrot.lane.b32.xlu0 %v5556_v31, %s6011_s27  ;;  %v5561_v58 = vcombine.low %v707_v41, %v710_v53  ;;  %v5089_v59 = vrot.slane %v750_v48, 11  ;;  %v757_v20 = vrot.slane %v755_v49, 7  ;;  %v764_v60 = vshrl.u32 %v6330_v46, 16 }
  0x52   : > { %3215 = vrot.lane.b32.xlu1 %v5559_v37, %s6011_s27  ;;  %v703_v11 = vsel %vm6252_vm8, %v701_v57, %v702_v45  ;;  %v767_v63 = vshll.u32 %v6330_v46, 16  ;;  %v728_v2 = vshrl.u32 %v5072_v51, 16  ;;  %v733_v3 = vshrl.u32 %v6244_v23, 16  ;;  %v5080_v51 = vld [vmem:[%s6084_s24 + $0xb0] sm:$0x8] }
  0x53   : > { %v5560_v19 = vcombine.low %v700_v55, %v703_v11  ;;  %v760_v5 = vor.u32 %v758_v50, %v757_v20  ;;  %v762_v6 = vrot.slane %v757_v20, 4  ;;  %v766_v9 = vrot.slane %v764_v60, 7  ;;  %v5097_v50 = vld [vmem:[%s6084_s24 + $0x7c] sm:$0x1]  ;;  %v6390_v60 = vld [vmem:[%s6084_s24 + $0xb8] sm:$0xf] }
  0x54   : > { %v5088_v10 = vrot.slane %v728_v2, 11  ;;  %v735_v12 = vrot.slane %v733_v3, 7  ;;  %v736_v13 = vshll.u32 %v6244_v23, 16  ;;  %v742_v14 = vshrl.u32 %v6344_v61, 16 }
  0x55   : > { %3213 = vrot.lane.b32.xlu0 %v5558_v52, %s6011_s27  ;;  %v761_v16 = vsel %vm6119_vm5, %v5089_v59, %v760_v5  ;;  %v769_v17 = vor.u32 %v767_v63, %v766_v9  ;;  %v745_v18 = vshll.u32 %v6344_v61, 16  ;;  %v794_v35 = vshrl.u32 %v5078_v4, 16  ;;  %v5366_v4 = vld [vmem:[%s6084_s24 + $0xc0] sm:$0x8] }
  0x56   : > { %3219 = vrot.lane.b32.xlu1 %v5561_v58, %s6011_s27  ;;  %v738_v21 = vor.u32 %v736_v13, %v735_v12  ;;  %v740_v22 = vrot.slane %v735_v12, 4  ;;  %v744_v24 = vrot.slane %v742_v14, 7  ;;  %v799_v25 = vshrl.u32 %v6262_v32, 16 }
  0x57   : > { %v770_v54 = vsel %vm6119_vm5, %v762_v6, %v769_v17  ;;  %v5091_v27 = vrot.slane %v794_v35, 11  ;;  %v802_v7 = vshll.u32 %v6262_v32, 16  ;;  %v808_v29 = vshrl.u32 %v5079_v15, 16  ;;  %v5367_v35 = vld [vmem:[%s6084_s24 + $0xc8] sm:$0xf] }
  0x58   : > { %v6365_v30 = vcombine.low %v761_v16, %v770_v54  ;;  %v739_v31 = vsel %vm6119_vm5, %v5088_v10, %v738_v21  ;;  %v747_v8 = vor.u32 %v745_v18, %v744_v24  ;;  %v801_v33 = vrot.slane %v799_v25, 7  ;;  %v5335_v10 = vld [vmem:[%s6084_s24 + $0xc4] sm:$0xf]  ;;  %v5104_v54 = vld [vmem:[%s6084_s24 + $0xb4] sm:$0xe] }
  0x59   : > { %3217 = vrot.lane.b32.xlu0 %v5560_v19, %s6011_s27  ;;  %v810_v36 = vrot.slane %v808_v29, 7  ;;  %v811_v37 = vshll.u32 %v5079_v15, 16  ;;  %v772_v38 = vshrl.u32 %v5076_v26, 16  ;;  %v777_v39 = vshrl.u32 %v6274_v43, 16 }
  0x5a   : > { %3247 = vrot.lane.b32.xlu1 %v6365_v30, %s6012_s28  ;;  %v748_v32 = vsel %vm6119_vm5, %v740_v22, %v747_v8  ;;  %v804_v41 = vor.u32 %v802_v7, %v801_v33  ;;  %v806_v42 = vrot.slane %v801_v33, 4  ;;  %v780_v44 = vshll.u32 %v6274_v43, 16  ;;  %v5105_v8 = vld [vmem:[%s6084_s24 + $0xbc] sm:$0x1]  ;;  %v5122_v33 = vld [vmem:[%s6084_s24 + $0xa0] sm:$0xc] }
  0x5b   : > { %v6378_v45 = vcombine.low %v739_v31, %v748_v32  ;;  %v813_v47 = vor.u32 %v811_v37, %v810_v36  ;;  %v5090_v48 = vrot.slane %v772_v38, 11  ;;  %v779_v49 = vrot.slane %v777_v39, 7  ;;  %v6418_v39 = vld [vmem:[%s6084_s24 + $0xa4] sm:$0xf] }
  0x5c   : > { %v805_v52 = vsel %vm6119_vm5, %v5091_v27, %v804_v41  ;;  %v786_v53 = vshrl.u32 %v5077_v1, 16  ;;  %v789_v55 = vshll.u32 %v5077_v1, 16  ;;  %v5112_v57 = vrot.slane %v5096_v40, 9 }
  0x5d   : > { %3245 = vrot.lane.b32.xlu0 %v6378_v45, %s6012_s28  ;;  %v814_v43 = vsel %vm6119_vm5, %v806_v42, %v813_v47  ;;  %v782_v58 = vor.u32 %v780_v44, %v779_v49  ;;  %v784_v59 = vrot.slane %v779_v49, 4  ;;  %v945_v20 = vrot.slane %v6344_v61, 5  ;;  %v5124_v44 = vld [vmem:[%s6084_s24 + $0xa8] sm:$0x3] }
  0x5e   : > { %v6392_v11 = vcombine.low %v805_v52, %v814_v43  ;;  %v788_v63 = vrot.slane %v786_v53, 7  ;;  %v948_v2 = vrot.slane %v5097_v50, 5  ;;  %v816_v3 = vshrl.u32 %v5080_v51, 16  ;;  %v5347_v51 = vld [vmem:[%s6084_s24 + $0x104] sm:$0xf] }
  0x5f   : > { %v783_v19 = vsel %vm6119_vm5, %v5090_v48, %v782_v58  ;;  %v946_v5 = vsel %vm6086_vm3, %v5112_v57, %v945_v20  ;;  %v947_v6 = vrot.slane %v945_v20, 4  ;;  %v821_v9 = vshrl.u32 %v6294_v62, 16  ;;  %v5374_v52 = vld [vmem:[%s6084_s24 + $0x100] sm:$0x8] }
  0x60   : > { %9015 = vst [vmem:[#allocation2_spill] sm:$0xff] %v6392_v11  ;;  %3251 = vrot.lane.b32.xlu1 %v6392_v11, %s6012_s28  ;;  %v791_v12 = vor.u32 %v789_v55, %v788_v63  ;;  %v5092_v13 = vrot.slane %v816_v3, 11  ;;  %v824_v14 = vshll.u32 %v6294_v62, 16  ;;  %v830_v15 = vshrl.u32 %v6390_v60, 16 }
  0x61   : > { %v949_v16 = vsel %vm6086_vm3, %v947_v6, %v948_v2  ;;  %v823_v17 = vrot.slane %v821_v9, 7  ;;  %v833_v18 = vshll.u32 %v6390_v60, 16  ;;  %v2092_v21 = vshrl.u32 %v5366_v4, 16  ;;  %v5375_v2 = vld [vmem:[%s6084_s24 + $0x108] sm:$0xf] }
  0x62   : > { %v792_v22 = vsel %vm6119_vm5, %v784_v59, %v791_v12  ;;  %v5570_v24 = vcombine.low %v946_v5, %v949_v16  ;;  %v832_v25 = vrot.slane %v830_v15, 7  ;;  %v2097_v26 = vshrl.u32 %v5335_v10, 16  ;;  %v5154_v6 = vld [vmem:[%s6084_s24 + $0xa0] sm:$0x8] }
  0x63   : > { %v6412_v27 = vcombine.low %v783_v19, %v792_v22  ;;  %v826_v7 = vor.u32 %v824_v14, %v823_v17  ;;  %v828_v29 = vrot.slane %v823_v17, 4  ;;  %v5382_v31 = vrot.slane %v2092_v21, 11  ;;  %v6448_v14 = vld [vmem:[%s6084_s24 + $0xa8] sm:$0xf] }
  0x64   : > { %3285 = vrot.lane.b32.xlu1 %v5570_v24, %s6013_s29  ;;  %v835_v1 = vor.u32 %v833_v18, %v832_v25  ;;  %v2099_v36 = vrot.slane %v2097_v26, 7  ;;  %v2100_v37 = vshll.u32 %v5335_v10, 16  ;;  %v2106_v38 = vshrl.u32 %v5367_v35, 16  ;;  %v6454_v26 = vld [vmem:[%s6084_s24 + $0xe4] sm:$0xf] }
  0x65   : > { %3249 = vrot.lane.b32.xlu0 %v6412_v27, %s6012_s28  ;;  %v827_v40 = vsel %vm6119_vm5, %v5092_v13, %v826_v7  ;;  %v2109_v32 = vshll.u32 %v5367_v35, 16  ;;  %v5116_v41 = vrot.slane %v5104_v54, 9  ;;  %v973_v42 = vrot.slane %v6390_v60, 5  ;;  %v5134_v35 = vld [vmem:[%s6084_s24 + $0xe0] sm:$0xc] }
  0x66   : > { %v836_v47 = vsel %vm6119_vm5, %v828_v29, %v835_v1  ;;  %v2102_v48 = vor.u32 %v2100_v37, %v2099_v36  ;;  %v2104_v49 = vrot.slane %v2099_v36, 4  ;;  %v2108_v50 = vrot.slane %v2106_v38, 7 }
  0x67   : > { %v6430_v53 = vcombine.low %v827_v40, %v836_v47  ;;  %v974_v55 = vsel %vm6086_vm3, %v5116_v41, %v973_v42  ;;  %v975_v57 = vrot.slane %v973_v42, 4  ;;  %v976_v43 = vrot.slane %v5105_v8, 5  ;;  %v5136_v8 = vld [vmem:[%s6084_s24 + $0xe8] sm:$0x3]  ;;  %v2382_v40 = vld [vmem:[%s6084_s24] sm:$0x8] }
  0x68   : > { %v2103_v58 = vsel %vm6119_vm5, %v5382_v31, %v2102_v48  ;;  %v2111_v59 = vor.u32 %v2109_v32, %v2108_v50  ;;  %v5146_v20 = vrot.slane %v5122_v33, 10  ;;  %v1053_v63 = vrot.slane %v6418_v39, 6  ;;  %v2367_v33 = vld [vmem:[%s6084_s24 + $0x4] sm:$0xf] }
  0x69   : > { %3253 = vrot.lane.b32.xlu0 %v6430_v53, %s6012_s28  ;;  %v977_v3 = vsel %vm6086_vm3, %v975_v57, %v976_v43  ;;  %v1056_v4 = vrot.slane %v5124_v44, 6  ;;  %v2180_v19 = vshrl.u32 %v5374_v52, 16  ;;  %v2185_v5 = vshrl.u32 %v5347_v51, 16  ;;  %v6470_v52 = vld [vmem:[%s6084_s24 + $0x8] sm:$0xf] }
  0x6a   : > { %v2112_v9 = vsel %vm6119_vm5, %v2104_v49, %v2111_v59  ;;  %v5574_v10 = vcombine.low %v974_v55, %v977_v3  ;;  %v1054_v12 = vsel %vm6252_vm8, %v5146_v20, %v1053_v63  ;;  %v1055_v13 = vrot.slane %v1053_v63, 4 }
  0x6b   : > { %v5650_v15 = vcombine.low %v2103_v58, %v2112_v9  ;;  %v5386_v16 = vrot.slane %v2180_v19, 11  ;;  %v2187_v17 = vrot.slane %v2185_v5, 7  ;;  %v2188_v18 = vshll.u32 %v5347_v51, 16  ;;  %v5162_v19 = vld [vmem:[%s6084_s24 + $0xe0] sm:$0x8] }
  0x6c   : > { %v1057_v21 = vsel %vm6252_vm8, %v1055_v13, %v1056_v4  ;;  %v2194_v22 = vshrl.u32 %v5375_v2, 16  ;;  %v2197_v24 = vshll.u32 %v5375_v2, 16  ;;  %v1124_v25 = vshrl.u32 %v5154_v6, 16  ;;  %v5178_v13 = vld [vmem:[%s6084_s24 + $0xa4] sm:$0xe] }
  0x6d   : > { %3972 = vrot.lane.b32.xlu1 %v5650_v15, %s6014_s30  ;;  %3293 = vrot.lane.b32.xlu0 %v5574_v10, %s6013_s29  ;;  %v5578_v54 = vcombine.low %v1054_v12, %v1057_v21  ;;  %v2190_v7 = vor.u32 %v2188_v18, %v2187_v17  ;;  %v2192_v29 = vrot.slane %v2187_v17, 4  ;;  %v1129_v31 = vshrl.u32 %v6418_v39, 16  ;;  %v6485_v12 = vld [vmem:[%s6084_s24 + $0xe8] sm:$0xf] }
  0x6e   : > { %v2196_v1 = vrot.slane %v2194_v22, 7  ;;  %v5170_v36 = vrot.slane %v1124_v25, 11  ;;  %v1132_v37 = vshll.u32 %v6418_v39, 16  ;;  %v1138_v38 = vshrl.u32 %v6448_v14, 16 }
  0x6f   : > { %v2191_v32 = vsel %vm6119_vm5, %v5386_v16, %v2190_v7  ;;  %v1131_v41 = vrot.slane %v1129_v31, 7  ;;  %v1141_v42 = vshll.u32 %v6448_v14, 16  ;;  %v5150_v44 = vrot.slane %v5134_v35, 10  ;;  %v5179_v35 = vld [vmem:[%s6084_s24 + $0xac] sm:$0x1] }
  0x70   : > { %v2199_v47 = vor.u32 %v2197_v24, %v2196_v1  ;;  %v1140_v48 = vrot.slane %v1138_v38, 7  ;;  %v1081_v49 = vrot.slane %v6454_v26, 6  ;;  %v1084_v50 = vrot.slane %v5136_v8, 6 }
  0x71   : > { %3325 = vrot.lane.b32.xlu1 %v5578_v54, %s6015_s4  ;;  %v1134_v39 = vor.u32 %v1132_v37, %v1131_v41  ;;  %v1136_v51 = vrot.slane %v1131_v41, 4  ;;  %v2399_v55 = vshrl.u32 %v2382_v40, 16  ;;  %v2404_v57 = vshrl.u32 %v2367_v33, 16  ;;  %v2390_v54 = vld [vmem:[%s6084_s24 + $0x40] sm:$0x8] }
  0x72   : > { %v2200_v43 = vsel %vm6119_vm5, %v2192_v29, %v2199_v47  ;;  %v1143_v58 = vor.u32 %v1141_v42, %v1140_v48  ;;  %v1082_v59 = vsel %vm6252_vm8, %v5150_v44, %v1081_v49  ;;  %v1083_v20 = vrot.slane %v1081_v49, 4  ;;  %v6505_v48 = vld [vmem:[%s6084_s24 + $0x48] sm:$0xf] }
  0x73   : > { %v5654_v63 = vcombine.low %v2191_v32, %v2200_v43  ;;  %v1135_v2 = vsel %vm6119_vm5, %v5170_v36, %v1134_v39  ;;  %v5416_v3 = vrot.slane %v2399_v55, 11  ;;  %v2406_v4 = vrot.slane %v2404_v57, 7 }
  0x74   : > { %v1144_v5 = vsel %vm6119_vm5, %v1136_v51, %v1143_v58  ;;  %v1085_v6 = vsel %vm6252_vm8, %v1083_v20, %v1084_v50  ;;  %v2407_v9 = vshll.u32 %v2367_v33, 16  ;;  %v2413_v10 = vshrl.u32 %v6470_v52, 16  ;;  %v2375_v33 = vld [vmem:[%s6084_s24 + $0x44] sm:$0xf]  ;;  %v2575_v20 = vld [vmem:[%s6084_s24 + $0xc] sm:$0x7] }
  0x75   : > { %3980 = vrot.lane.b32.xlu0 %v5654_v63, %s6014_s30  ;;  %v5586_v15 = vcombine.low %v1135_v2, %v1144_v5  ;;  %v5582_v16 = vcombine.low %v1082_v59, %v1085_v6  ;;  %v2411_v17 = vrot.slane %v2406_v4, 4  ;;  %v2416_v18 = vshll.u32 %v6470_v52, 16  ;;  %v5187_v5 = vld [vmem:[%s6084_s24 + $0xec] sm:$0x1] }
  0x76   : > { %v2409_v21 = vor.u32 %v2407_v9, %v2406_v4  ;;  %v2415_v22 = vrot.slane %v2413_v10, 7  ;;  %v1212_v24 = vshrl.u32 %v5162_v19, 16  ;;  %v1217_v25 = vshrl.u32 %v6454_v26, 16  ;;  %v5186_v19 = vld [vmem:[%s6084_s24 + $0xe4] sm:$0xe] }
  0x77   : > { %3365 = vrot.lane.b32.xlu1 %v5586_v15, %s6016_s5  ;;  %v1220_v7 = vshll.u32 %v6454_v26, 16  ;;  %v1226_v29 = vshrl.u32 %v6485_v12, 16  ;;  %v1229_v31 = vshll.u32 %v6485_v12, 16  ;;  %v5194_v8 = vrot.slane %v5178_v13, 9 }
  0x78   : > { %v2410_v1 = vsel %vm6119_vm5, %v5416_v3, %v2409_v21  ;;  %v2418_v36 = vor.u32 %v2416_v18, %v2415_v22  ;;  %v5174_v37 = vrot.slane %v1212_v24, 11  ;;  %v1219_v38 = vrot.slane %v1217_v25, 7  ;;  %v5206_v24 = vld [vmem:[%s6084_s24 + $0x28] sm:$0x1] }
  0x79   : > { %3333 = vrot.lane.b32.xlu0 %v5582_v16, %s6015_s4  ;;  %v1228_v40 = vrot.slane %v1226_v29, 7  ;;  %v1341_v32 = vrot.slane %v6448_v14, 5  ;;  %v1344_v26 = vrot.slane %v5179_v35, 5  ;;  %v2487_v41 = vshrl.u32 %v2390_v54, 16  ;;  %v2574_v14 = vld [vmem:[%s6084_s24 + $0x4] sm:$0x8] }
  0x7a   : > { %v2419_v42 = vsel %vm6119_vm5, %v2411_v17, %v2418_v36  ;;  %v1222_v44 = vor.u32 %v1220_v7, %v1219_v38  ;;  %v1224_v47 = vrot.slane %v1219_v38, 4  ;;  %v2492_v49 = vshrl.u32 %v2375_v33, 16  ;;  %v5204_v16 = vld [vmem:[%s6084_s24 + $0x20] sm:$0xe]  ;;  %v6530_v17 = vld [vmem:[%s6084_s24 + $0x24] sm:$0xf] }
  0x7b   : > { %v5674_v50 = vcombine.low %v2410_v1, %v2419_v42  ;;  %v1231_v39 = vor.u32 %v1229_v31, %v1228_v40  ;;  %v1342_v51 = vsel %vm6086_vm3, %v5194_v8, %v1341_v32  ;;  %v1343_v55 = vrot.slane %v1341_v32, 4  ;;  %v2582_v31 = vld [vmem:[%s6084_s24 + $0x44] sm:$0x8]  ;;  %v2583_v36 = vld [vmem:[%s6084_s24 + $0x4c] sm:$0x7] }
  0x7c   : > { %v1223_v57 = vsel %vm6119_vm5, %v5174_v37, %v1222_v44  ;;  %v5420_v43 = vrot.slane %v2487_v41, 11  ;;  %v2494_v58 = vrot.slane %v2492_v49, 7  ;;  %v2495_v59 = vshll.u32 %v2375_v33, 16  ;;  %v5432_v32 = vld [vmem:[%s6084_s24 + $0x70] sm:$0xf] }
  0x7d   : > { %4076 = vrot.lane.b32.xlu1 %v5674_v50, %s6010_s26  ;;  %v1232_v63 = vsel %vm6119_vm5, %v1224_v47, %v1231_v39  ;;  %v1345_v2 = vsel %vm6086_vm3, %v1343_v55, %v1344_v26  ;;  %v2501_v3 = vshrl.u32 %v6505_v48, 16  ;;  %v2504_v4 = vshll.u32 %v6505_v48, 16  ;;  %v5216_v47 = vld [vmem:[%s6084_s24 + $0x60] sm:$0xe]  ;;  %v6554_v49 = vld [vmem:[%s6084_s24 + $0x64] sm:$0xf] }
  0x7e   : > { %v5590_v6 = vcombine.low %v1223_v57, %v1232_v63  ;;  %v5594_v9 = vcombine.low %v1342_v51, %v1345_v2  ;;  %v2497_v10 = vor.u32 %v2495_v59, %v2494_v58  ;;  %v2499_v13 = vrot.slane %v2494_v58, 4  ;;  %v5236_v57 = vld [vmem:[%s6084_s24 + $0x20] sm:$0x8] }
  0x7f   : > { %v2503_v18 = vrot.slane %v2501_v3, 7  ;;  %v5424_v35 = vrot.slane %v2574_v14, 11  ;;  %v2619_v21 = vrot.slane %v6470_v52, 7  ;;  %v2622_v22 = vrot.slane %v2575_v20, 7  ;;  %v5218_v14 = vld [vmem:[%s6084_s24 + $0x68] sm:$0x1] }
  0x80   : > { %3373 = vrot.lane.b32.xlu0 %v5590_v6, %s6016_s5  ;;  %v2498_v25 = vsel %vm6119_vm5, %v5420_v43, %v2497_v10  ;;  %v5198_v54 = vrot.slane %v5186_v19, 9  ;;  %v1369_v7 = vrot.slane %v6485_v12, 5  ;;  %v1372_v29 = vrot.slane %v5187_v5, 5  ;;  %v6573_v10 = vld [vmem:[%s6084_s24 + $0xb0] sm:$0xf] }
  0x81   : > { %3405 = vrot.lane.b32.xlu1 %v5594_v9, %s6017_s6  ;;  %v2506_v8 = vor.u32 %v2504_v4, %v2503_v18  ;;  %v2620_v52 = vsel %vm6524_vm11, %v5424_v35, %v2619_v21  ;;  %v2621_v33 = vrot.slane %v2619_v21, 4  ;;  %v5228_v1 = vrot.slane %v5204_v16, 9  ;;  %v5237_v4 = vld [vmem:[%s6084_s24 + $0x28] sm:$0xf]  ;;  %v5260_v35 = vld [vmem:[%s6084_s24 + $0x24] sm:$0xc] }
  0x82   : > { %v1370_v37 = vsel %vm6086_vm3, %v5198_v54, %v1369_v7  ;;  %v1371_v12 = vrot.slane %v1369_v7, 4  ;;  %v1449_v38 = vrot.slane %v6530_v17, 5  ;;  %v1452_v40 = vrot.slane %v5206_v24, 5  ;;  %v5261_v21 = vld [vmem:[%s6084_s24 + $0x2c] sm:$0x3] }
  0x83   : > { %v2507_v26 = vsel %vm6119_vm5, %v2499_v13, %v2506_v8  ;;  %v2623_v41 = vsel %vm6524_vm11, %v2621_v33, %v2622_v22  ;;  %v5428_v42 = vrot.slane %v2582_v31, 11  ;;  %v2647_v44 = vrot.slane %v6505_v48, 7  ;;  %v5244_v7 = vld [vmem:[%s6084_s24 + $0x60] sm:$0x8]  ;;  %v5245_v33 = vld [vmem:[%s6084_s24 + $0x68] sm:$0xf] }
  0x84   : > { %v5678_v50 = vcombine.low %v2498_v25, %v2507_v26  ;;  %v5682_v39 = vcombine.low %v2620_v52, %v2623_v41  ;;  %v1373_v51 = vsel %vm6086_vm3, %v1371_v12, %v1372_v29  ;;  %v1450_v55 = vsel %vm6086_vm3, %v5228_v1, %v1449_v38  ;;  %v5440_v26 = vld [vmem:[%s6084_s24 + $0x74] sm:$0x8] }
  0x85   : > { %v5598_v43 = vcombine.low %v1370_v37, %v1373_v51  ;;  %v1451_v58 = vrot.slane %v1449_v38, 4  ;;  %v2648_v48 = vsel %vm6524_vm11, %v5428_v42, %v2647_v44  ;;  %v2649_v59 = vrot.slane %v2647_v44, 4 }
  0x86   : > { %4084 = vrot.lane.b32.xlu0 %v5678_v50, %s6010_s26  ;;  %4116 = vrot.lane.b32.xlu1 %v5682_v39, %s6009_s25  ;;  %v2650_v20 = vrot.slane %v2583_v36, 7  ;;  %v5690_v63 = vcombine.low %v5432_v32, %v6244_v23  ;;  %v5232_v2 = vrot.slane %v5216_v47, 9  ;;  %v1477_v3 = vrot.slane %v6554_v49, 5  ;;  %v5441_v50 = vld [vmem:[%s6084_s24 + $0x7c] sm:$0x7] }
  0x87   : > { %v1453_v19 = vsel %vm6086_vm3, %v1451_v58, %v1452_v40  ;;  %v1480_v5 = vrot.slane %v5218_v14, 5  ;;  %v1520_v6 = vshrl.u32 %v5236_v57, 16  ;;  %v1525_v9 = vshrl.u32 %v6530_v17, 16 }
  0x88   : > { %v5602_v13 = vcombine.low %v1450_v55, %v1453_v19  ;;  %v2651_v16 = vsel %vm6524_vm11, %v2649_v59, %v2650_v20  ;;  %v1478_v23 = vsel %vm6086_vm3, %v5232_v2, %v1477_v3  ;;  %v1479_v18 = vrot.slane %v1477_v3, 4  ;;  %v5268_v59 = vld [vmem:[%s6084_s24 + $0x64] sm:$0xc]  ;;  %v5269_v3 = vld [vmem:[%s6084_s24 + $0x6c] sm:$0x3] }
  0x89   : > { %v5686_v22 = vcombine.low %v2648_v48, %v2651_v16  ;;  %v5252_v24 = vrot.slane %v1520_v6, 11  ;;  %v1527_v25 = vrot.slane %v1525_v9, 7  ;;  %v1528_v54 = vshll.u32 %v6530_v17, 16 }
  0x8a   : > { %3413 = vrot.lane.b32.xlu0 %v5598_v43, %s6017_s6  ;;  %3445 = vrot.lane.b32.xlu1 %v5602_v13, %s6017_s6  ;;  %v1481_v29 = vsel %vm6086_vm3, %v1479_v18, %v1480_v5  ;;  %v1534_v31 = vshrl.u32 %v5237_v4, 16  ;;  %v1537_v8 = vshll.u32 %v5237_v4, 16  ;;  %v5694_v52 = vcombine.low %v6573_v10, %v6294_v62 }
  0x8b   : > { %v5606_v1 = vcombine.low %v1478_v23, %v1481_v29  ;;  %v1530_v36 = vor.u32 %v1528_v54, %v1527_v25  ;;  %v1532_v37 = vrot.slane %v1527_v25, 4  ;;  %v5276_v17 = vrot.slane %v5260_v35, 10  ;;  %v5448_v29 = vld [vmem:[%s6084_s24 + $0xb4] sm:$0x8] }
  0x8c   : > { %v1536_v12 = vrot.slane %v1534_v31, 7  ;;  %v1737_v38 = vrot.slane %v5237_v4, 6  ;;  %v1740_v40 = vrot.slane %v5261_v21, 6  ;;  %v1608_v32 = vshrl.u32 %v5244_v7, 16  ;;  %v5082_v4 = vld [vmem:[%s6084_s24 + $0xc0] sm:$0x8] }
  0x8d   : > { %v1531_v41 = vsel %vm6119_vm5, %v5252_v24, %v1530_v36  ;;  %v1613_v42 = vshrl.u32 %v6554_v49, 16  ;;  %v1616_v44 = vshll.u32 %v6554_v49, 16  ;;  %v1622_v47 = vshrl.u32 %v5245_v33, 16  ;;  %v6615_v21 = vld [vmem:[%s6084_s24 + $0xc8] sm:$0xf] }
  0x8e   : > { %4124 = vrot.lane.b32.xlu0 %v5686_v22, %s6009_s25  ;;  %4164 = vrot.lane.b32.xlu1 %v5690_v63, %s6011_s27  ;;  %v1539_v39 = vor.u32 %v1537_v8, %v1536_v12  ;;  %v1738_v51 = vsel %vm6252_vm8, %v5276_v17, %v1737_v38  ;;  %v1739_v55 = vrot.slane %v1737_v38, 4  ;;  %v5256_v14 = vrot.slane %v1608_v32, 11  ;;  %v5449_v31 = vld [vmem:[%s6084_s24 + $0xbc] sm:$0x7] }
  0x8f   : > { %v1615_v57 = vrot.slane %v1613_v42, 7  ;;  %v1624_v43 = vrot.slane %v1622_v47, 7  ;;  %v1625_v58 = vshll.u32 %v5245_v33, 16  ;;  %v5456_v48 = vrot.slane %v5440_v26, 11 }
  0x90   : > { %v1540_v49 = vsel %vm6119_vm5, %v1532_v37, %v1539_v39  ;;  %v1741_v20 = vsel %vm6252_vm8, %v1739_v55, %v1740_v40  ;;  %v2715_v2 = vrot.slane %v6344_v61, 7  ;;  %v2718_v63 = vrot.slane %v5441_v50, 7  ;;  %v5292_v40 = vld [vmem:[%s6084_s24 + $0xb0] sm:$0xe] }
  0x91   : > { %v5610_v19 = vcombine.low %v1531_v41, %v1540_v49  ;;  %v5618_v5 = vcombine.low %v1738_v51, %v1741_v20  ;;  %v1618_v6 = vor.u32 %v1616_v44, %v1615_v57  ;;  %v1620_v9 = vrot.slane %v1615_v57, 4  ;;  %v6625_v8 = vpop.permute.xlu1 %3167  ;;  %v5284_v51 = vld [vmem:[%s6084_s24 + $0x70] sm:$0xe] }
  0x92   : > { %3453 = vrot.lane.b32.xlu0 %v5606_v1, %s6017_s6  ;;  %v1627_v10 = vor.u32 %v1625_v58, %v1624_v43  ;;  %v2716_v13 = vsel %vm6524_vm11, %v5456_v48, %v2715_v2  ;;  %v2717_v16 = vrot.slane %v2715_v2, 4  ;;  %v5280_v23 = vrot.slane %v5268_v59, 10  ;;  %v6638_v44 = vpop.permute.xlu0 %3165  ;;  %v5285_v58 = vld [vmem:[%s6084_s24 + $0x78] sm:$0x1] }
  0x93   : > { %3485 = vrot.lane.b32.xlu1 %v5610_v19, %s6018_s7  ;;  %v1619_v61 = vsel %vm6119_vm5, %v5256_v14, %v1618_v6  ;;  %v1765_v18 = vrot.slane %v5245_v33, 6  ;;  %v1768_v35 = vrot.slane %v5269_v3, 6  ;;  %v838_v22 = vshrl.u32 %v5082_v4, 16  ;;  %v5918_v3 = vld [vmem:[%s6084_s24 + $0x74] sm:$0xf] }
  0x94   : > { %v1628_v24 = vsel %vm6119_vm5, %v1620_v9, %v1627_v10  ;;  %v2719_v25 = vsel %vm6524_vm11, %v2717_v16, %v2718_v63  ;;  %v843_v54 = vshrl.u32 %v6286_v56, 16  ;;  %v846_v7 = vshll.u32 %v6286_v56, 16  ;;  %v5106_v16 = vld [vmem:[%s6084_s24 + $0xc4] sm:$0xe] }
  0x95   : > { %v5614_v33 = vcombine.low %v1619_v61, %v1628_v24  ;;  %v5698_v1 = vcombine.low %v2716_v13, %v2719_v25  ;;  %v1766_v36 = vsel %vm6252_vm8, %v5280_v23, %v1765_v18  ;;  %v1767_v37 = vrot.slane %v1765_v18, 4  ;;  %v5107_v23 = vld [vmem:[%s6084_s24 + $0xcc] sm:$0x1]  ;;  %v5474_v25 = vld [vmem:[%s6084_s24 + $0x120] sm:$0xf] }
  0x96   : > { %4172 = vrot.lane.b32.xlu0 %v5694_v52, %s6011_s27  ;;  %v5093_v17 = vrot.slane %v838_v22, 11  ;;  %v845_v12 = vrot.slane %v843_v54, 7  ;;  %v852_v38 = vshrl.u32 %v6615_v21, 16  ;;  %v855_v56 = vshll.u32 %v6615_v21, 16  ;;  %v5293_v52 = vld [vmem:[%s6084_s24 + $0xb8] sm:$0x1] }
  0x97   : > { %3525 = vrot.lane.b32.xlu1 %v5618_v5, %s6019_s8  ;;  %v1769_v32 = vsel %vm6252_vm8, %v1767_v37, %v1768_v35  ;;  %v5460_v26 = vrot.slane %v5448_v29, 11  ;;  %v2743_v41 = vrot.slane %v6390_v60, 7  ;;  %v2746_v42 = vrot.slane %v5449_v31, 7  ;;  %v6675_v54 = vld [vmem:[%s6084_s24 + $0x124] sm:$0xf] }
  0x98   : > { %v848_v47 = vor.u32 %v846_v7, %v845_v12  ;;  %v850_v50 = vrot.slane %v845_v12, 4  ;;  %v854_v39 = vrot.slane %v852_v38, 7  ;;  %v5622_v55 = vcombine.low %v1766_v36, %v1769_v32  ;;  %v6648_v20 = vpop.permute.xlu1 %3129  ;;  %v5098_v7 = vld [vmem:[%s6084_s24 + $0x84] sm:$0xe]  ;;  %v5466_v12 = vld [vmem:[%s6084_s24 + $0xe0] sm:$0xf] }
  0x99   : > { %v2745_v14 = vrot.slane %v2743_v41, 4  ;;  %v5304_v57 = vrot.slane %v5292_v40, 9  ;;  %v1853_v43 = vrot.slane %v6294_v62, 5  ;;  %v2744_v59 = vsel %vm6524_vm11, %v5460_v26, %v2743_v41  ;;  %v6688_v40 = vld [vmem:[%s6084_s24 + $0xe4] sm:$0xf] }
  0x9a   : > { %3493 = vrot.lane.b32.xlu0 %v5614_v33, %s6018_s7  ;;  %v849_v60 = vsel %vm6119_vm5, %v5093_v17, %v848_v47  ;;  %v857_v48 = vor.u32 %v855_v56, %v854_v39  ;;  %v1856_v49 = vrot.slane %v5293_v52, 5  ;;  %v5300_v63 = vrot.slane %v5284_v51, 9  ;;  %v6664_v61 = vpop.permute.xlu0 %3125 }
  0x9b   : > { %4204 = vrot.lane.b32.xlu1 %v5698_v1, %s6013_s29  ;;  %v2747_v62 = vsel %vm6524_vm11, %v2745_v14, %v2746_v42  ;;  %v1855_v2 = vrot.slane %v1853_v43, 4  ;;  %v1825_v4 = vrot.slane %v5918_v3, 5  ;;  %v1854_v5 = vsel %vm6086_vm3, %v5304_v57, %v1853_v43  ;;  %v5099_v1 = vld [vmem:[%s6084_s24 + $0x8c] sm:$0x1]  ;;  %v5350_v57 = vld [vmem:[%s6084_s24 + $0x114] sm:$0xf] }
  0x9c   : > { %v858_v19 = vsel %vm6119_vm5, %v850_v50, %v857_v48  ;;  %v1828_v6 = vrot.slane %v5285_v58, 5  ;;  %v5702_v18 = vcombine.low %v2744_v59, %v2747_v62  ;;  %v5117_v29 = vrot.slane %v5106_v16, 9  ;;  %v5376_v50 = vld [vmem:[%s6084_s24 + $0x110] sm:$0x8]  ;;  %v6709_v43 = vld [vmem:[%s6084_s24 + $0x68] sm:$0x3] }
  0x9d   : > { %v6658_v9 = vcombine.low %v849_v60, %v858_v19  ;;  %v1857_v10 = vsel %vm6086_vm3, %v1855_v2, %v1856_v49  ;;  %v1827_v13 = vrot.slane %v1825_v4, 4  ;;  %v1826_v22 = vsel %vm6086_vm3, %v5300_v63, %v1825_v4  ;;  %v6680_v36 = vpop.permute.xlu1 %3131  ;;  %v4964_v58 = vld [vmem:[%s6084_s24 + $0x60] sm:$0xc]  ;;  %v5377_v60 = vld [vmem:[%s6084_s24 + $0x118] sm:$0xf] }
  0x9e   : > { %3533 = vrot.lane.b32.xlu0 %v5622_v55, %s6019_s8  ;;  %v5630_v35 = vcombine.low %v1854_v5, %v1857_v10  ;;  %v980_v31 = vrot.slane %v6615_v21, 5  ;;  %v983_v33 = vrot.slane %v5107_v23, 5  ;;  %9018 = vst [vmem:[#allocation3_spill] sm:$0xff] %v6680_v36  ;;  %v952_v37 = vrot.slane %v6330_v46, 5  ;;  %v5338_v63 = vld [vmem:[%s6084_s24 + $0xd4] sm:$0xf] }
  0x9f   : > { %3255 = vrot.lane.b32.xlu1 %v6658_v9, %s6012_s28  ;;  %v1829_v24 = vsel %vm6086_vm3, %v1827_v13, %v1828_v6  ;;  %v5710_v56 = vcombine.low %v5474_v25, %v6675_v54  ;;  %v5113_v21 = vrot.slane %v5098_v7, 9  ;;  %v955_v26 = vrot.slane %v5099_v1, 5  ;;  %v5368_v3 = vld [vmem:[%s6084_s24 + $0xd0] sm:$0x8]  ;;  %v5919_v5 = vld [vmem:[%s6084_s24 + $0x64] sm:$0xf] }
  0xa0   : > { %v5626_v17 = vcombine.low %v1826_v22, %v1829_v24  ;;  %v982_v38 = vrot.slane %v980_v31, 4  ;;  %v954_v32 = vrot.slane %v952_v37, 4  ;;  %v981_v41 = vsel %vm6086_vm3, %v5117_v29, %v980_v31  ;;  %v5369_v25 = vld [vmem:[%s6084_s24 + $0xd8] sm:$0xf]  ;;  %v6730_v31 = vld [vmem:[%s6084_s24 + $0x48] sm:$0x3] }
  0xa1   : > { %v6690_v46 = vpop.permute.xlu0 %3127  ;;  %v2899_v52 = vshrl.u32 %v6675_v54, 16  ;;  %v5706_v47 = vcombine.low %v5466_v12, %v6688_v40  ;;  %v953_v55 = vsel %vm6086_vm3, %v5113_v21, %v952_v37  ;;  %v2202_v48 = vshrl.u32 %v5376_v50, 16 }
  0xa2   : > { %4212 = vrot.lane.b32.xlu0 %v5702_v18, %s6013_s29  ;;  %v984_v42 = vsel %vm6086_vm3, %v982_v38, %v983_v33  ;;  %v956_v14 = vsel %vm6086_vm3, %v954_v32, %v955_v26  ;;  %v2207_v2 = vshrl.u32 %v5350_v57, 16  ;;  %v2902_v4 = vshll.u32 %v6675_v54, 16  ;;  %v6733_v33 = vld [vmem:[%s6084_s24 + $0x44] sm:$0xf] }
  0xa3   : > { %3573 = vrot.lane.b32.xlu1 %v5630_v35, %s6020_s9  ;;  %v5575_v51 = vcombine.low %v981_v41, %v984_v42  ;;  %v6715_v49 = vrot.slane %v2899_v52, 7  ;;  %v5571_v62 = vcombine.low %v953_v55, %v956_v14  ;;  %v2811_v19 = vshrl.u32 %v6688_v40, 16  ;;  %v4961_v42 = vld [vmem:[%s6084_s24 + $0x50] sm:$0xc]  ;;  %v4963_v52 = vld [vmem:[%s6084_s24 + $0x58] sm:$0x3] }
  0xa4   : > { %v269_v6 = vrot.slane %v5919_v5, 6  ;;  %v2210_v10 = vshll.u32 %v5350_v57, 16  ;;  %v272_v13 = vrot.slane %v6709_v43, 6  ;;  %v5387_v16 = vrot.slane %v2202_v48, 11  ;;  %v5921_v48 = vld [vmem:[%s6084_s24 + $0x54] sm:$0xf] }
  0xa5   : > { %v6700_v39 = vpop.permute.xlu1 %3135  ;;  %v2209_v23 = vrot.slane %v2207_v2, 7  ;;  %v2216_v18 = vshrl.u32 %v5377_v60, 16  ;;  %v4984_v22 = vrot.slane %v4964_v58, 10  ;;  %v2219_v24 = vshll.u32 %v5377_v60, 16  ;;  %v5490_v60 = vld [vmem:[%s6084_s24 + $0x120] sm:$0x8] }
  0xa6   : > { %3565 = vrot.lane.b32.xlu0 %v5626_v17, %s6020_s9  ;;  %v2114_v7 = vshrl.u32 %v5368_v3, 16  ;;  %v2119_v29 = vshrl.u32 %v5338_v63, 16  ;;  %v255_v1 = vrot.slane %v6733_v33, 6  ;;  %v271_v38 = vrot.slane %v269_v6, 4  ;;  %v6758_v5 = vld [vmem:[%s6084_s24 + $0x128] sm:$0xf] }
  0xa7   : > { %4268 = vrot.lane.b32.xlu1 %v5710_v56, %s6015_s4  ;;  %v2212_v37 = vor.u32 %v2210_v10, %v2209_v23  ;;  %v2214_v17 = vrot.slane %v2209_v23, 4  ;;  %v2218_v12 = vrot.slane %v2216_v18, 7  ;;  %v4958_v56 = vld [vmem:[%s6084_s24 + $0x40] sm:$0xc]  ;;  %v2122_v26 = vshll.u32 %v5338_v63, 16 }
  0xa8   : > { %v5383_v21 = vrot.slane %v2114_v7, 11  ;;  %v2121_v32 = vrot.slane %v2119_v29, 7  ;;  %v2131_v55 = vshll.u32 %v5369_v25, 16  ;;  %v6747_v57 = vrot.slane %v2811_v19, 7 }
  0xa9   : > { %v6713_v59 = vpop.permute.xlu0 %3133  ;;  %v2221_v50 = vor.u32 %v2219_v24, %v2218_v12  ;;  %v258_v43 = vrot.slane %v6730_v31, 6  ;;  %v4982_v19 = vrot.slane %v4958_v56, 10  ;;  %v257_v10 = vrot.slane %v255_v1, 4 }
  0xaa   : > { %4260 = vrot.lane.b32.xlu0 %v5706_v47, %s6015_s4  ;;  %v2213_v47 = vsel %vm6119_vm5, %v5387_v16, %v2212_v37  ;;  %v2124_v58 = vor.u32 %v2122_v26, %v2121_v32  ;;  %v2126_v63 = vrot.slane %v2121_v32, 4  ;;  %v4983_v29 = vrot.slane %v4961_v42, 10 }
  0xab   : > { %3295 = vrot.lane.b32.xlu1 %v5575_v51, %s6013_s29  ;;  %v2128_v51 = vshrl.u32 %v5369_v25, 16  ;;  %v2222_v2 = vsel %vm6119_vm5, %v2214_v17, %v2221_v50  ;;  %v2894_v25 = vshrl.u32 %v5490_v60, 16  ;;  %v2908_v31 = vshrl.u32 %v6758_v5, 16  ;;  %v5922_v17 = vld [vmem:[%s6084_s24 + $0x94] sm:$0xf] }
  0xac   : > { %v6725_v35 = vpop.permute.xlu1 %3139  ;;  %v5655_v16 = vcombine.low %v2213_v47, %v2222_v2  ;;  %v2125_v18 = vsel %vm6119_vm5, %v5383_v21, %v2124_v58  ;;  %v290_v12 = vrot.slane %v5922_v17, 6  ;;  %v2911_v54 = vshll.u32 %v6758_v5, 16  ;;  %v4973_v47 = vld [vmem:[%s6084_s24 + $0x90] sm:$0xc]  ;;  %v4975_v50 = vld [vmem:[%s6084_s24 + $0x98] sm:$0x3] }
  0xad   : > { %9019 = vst [vmem:[#allocation4_spill] sm:$0xff] %v6725_v35  ;;  %v2130_v3 = vrot.slane %v2128_v51, 7  ;;  %v5502_v21 = vrot.slane %v2894_v25, 11  ;;  %v2910_v32 = vrot.slane %v2908_v31, 7  ;;  %v6804_v60 = vld [vmem:[%s6084_s24 + $0x80] sm:$0xc] }
  0xae   : > { %3287 = vrot.lane.b32.xlu0 %v5571_v62, %s6013_s29  ;;  %v262_v62 = vrot.slane %v5921_v48, 6  ;;  %v5137_v2 = vld [vmem:[%s6084_s24 + $0xf0] sm:$0xc]  ;;  %v2818_v31 = vrot.slane %v6747_v57, 4 }
  0xaf   : > { %3589 = vrot.lane.b32.xlu1 %v6430_v53, %s6021_s10  ;;  %v6739_v41 = vpop.permute.xlu0 %3137  ;;  %v2814_v53 = vshll.u32 %v6688_v40, 16  ;;  %v6762_v40 = vsel %vm6252_vm8, %v4984_v22, %v269_v6  ;;  %v2133_v24 = vor.u32 %v2131_v55, %v2130_v3  ;;  %v265_v6 = vrot.slane %v4963_v52, 6  ;;  %v4972_v3 = vld [vmem:[%s6084_s24 + $0x88] sm:$0x3] }
  0xb0   : > { %v6745_v14 = vpop.permute.xlu1 %3171  ;;  %v2904_v22 = vor.u32 %v2902_v4, %v6715_v49  ;;  %v264_v33 = vrot.slane %v262_v62, 4  ;;  %v6786_v4 = vld [vmem:[%s6084_s24 + $0xe8] sm:$0xf]  ;;  %v256_v52 = vsel %vm6252_vm8, %v4982_v19, %v255_v1  ;;  %v263_v58 = vsel %vm6252_vm8, %v4983_v29, %v262_v62  ;;  %v5923_v29 = vld [vmem:[%s6084_s24 + $0x84] sm:$0xf] }
  0xb1   : > { %9020 = vst [vmem:[#allocation5_spill] sm:$0xff] %v6745_v14  ;;  %v2134_v37 = vsel %vm6119_vm5, %v2126_v63, %v2133_v24  ;;  %v2913_v48 = vor.u32 %v2911_v54, %v2910_v32  ;;  %v2820_v62 = vshrl.u32 %v6786_v4, 16  ;;  %v2823_v19 = vshll.u32 %v6786_v4, 16  ;;  %v5139_v24 = vld [vmem:[%s6084_s24 + $0xf8] sm:$0x3] }
  0xb2   : > { %3581 = vrot.lane.b32.xlu0 %v6378_v45, %s6021_s10  ;;  %v6768_v45 = vsel %vm6252_vm8, %v271_v38, %v272_v13  ;;  %v5482_v13 = vld [vmem:[%s6084_s24 + $0xe0] sm:$0x8]  ;;  %v2906_v38 = vrot.slane %v6715_v49, 4  ;;  %v5651_v56 = vcombine.low %v2125_v18, %v2134_v37  ;;  %v259_v49 = vsel %vm6252_vm8, %v257_v10, %v258_v43  ;;  %v6816_v10 = vld [vmem:[%s6084_s24 + $0xf4] sm:$0xf] }
  0xb3   : > { %v6764_v23 = vpop.permute.xlu0 %3169  ;;  %3982 = vrot.lane.b32.xlu1 %v5655_v16, %s6014_s30  ;;  %v5532_v42 = vcombine.low %v6762_v40, %v6768_v45  ;;  %v2806_v51 = vshrl.u32 %v5482_v13, 16  ;;  %v2905_v1 = vsel %vm6119_vm5, %v5502_v21, %v2904_v22  ;;  %v2816_v43 = vor.u32 %v2814_v53, %v6747_v57  ;;  %v6832_v32 = vld [vmem:[%s6084_s24 + $0xb4] sm:$0xf] }
  0xb4   : > { %v6772_v7 = vpop.permute.xlu1 %3175  ;;  %v266_v63 = vsel %vm6252_vm8, %v264_v33, %v265_v6  ;;  %v4987_v16 = vrot.slane %v4973_v47, 10  ;;  %v292_v45 = vrot.slane %v290_v12, 4  ;;  %v293_v18 = vrot.slane %v4975_v50, 6  ;;  %v5125_v33 = vld [vmem:[%s6084_s24 + $0xb0] sm:$0xc] }
  0xb5   : > { %v5498_v40 = vrot.slane %v2806_v51, 11  ;;  %v2914_v53 = vsel %vm6119_vm5, %v2906_v38, %v2913_v48  ;;  %v283_v6 = vrot.slane %v5923_v29, 6  ;;  %v2822_v13 = vrot.slane %v2820_v62, 7  ;;  %v5127_v51 = vld [vmem:[%s6084_s24 + $0xb8] sm:$0x3] }
  0xb6   : > { %3974 = vrot.lane.b32.xlu0 %v5651_v56, %s6014_s30  ;;  %v5718_v22 = vcombine.low %v2905_v1, %v2914_v53  ;;  %v5530_v17 = vcombine.low %v256_v52, %v259_v49  ;;  %v5531_v56 = vcombine.low %v263_v58, %v266_v63  ;;  %v4986_v21 = vrot.slane %v6804_v60, 10  ;;  %v5308_v29 = vld [vmem:[%s6084_s24 + $0x74] sm:$0xc] }
  0xb7   : > { %v6788_v26 = vpop.permute.xlu0 %3173  ;;  %v2817_v38 = vsel %vm6119_vm5, %v5498_v40, %v2816_v43  ;;  %v2825_v54 = vor.u32 %v2823_v19, %v2822_v13  ;;  %v5151_v47 = vrot.slane %v5137_v2, 10  ;;  %v1088_v50 = vrot.slane %v6816_v10, 6  ;;  %v5316_v19 = vld [vmem:[%s6084_s24 + $0xb4] sm:$0xc] }
  0xb8   : > { %v6798_v55 = vpop.permute.xlu1 %3179  ;;  %4308 = vrot.lane.b32.xlu1 %v5718_v22, %s6016_s5  ;;  %v1091_v57 = vrot.slane %v5139_v24, 6  ;;  %v6839_v52 = vsel %vm6252_vm8, %v4987_v16, %v290_v12  ;;  %v6843_v49 = vsel %vm6252_vm8, %v292_v45, %v293_v18  ;;  %v286_v58 = vrot.slane %v4972_v3, 6  ;;  %v5317_v24 = vld [vmem:[%s6084_s24 + $0xbc] sm:$0x3] }
  0xb9   : > { %9021 = vst [vmem:[#allocation6_spill] sm:$0xff] %v6798_v55  ;;  %v5147_v60 = vrot.slane %v5125_v33, 10  ;;  %v285_v48 = vrot.slane %v283_v6, 4  ;;  %v2826_v43 = vsel %vm6119_vm5, %v2818_v31, %v2825_v54  ;;  %v1089_v2 = vsel %vm6252_vm8, %v5151_v47, %v1088_v50  ;;  %v5309_v31 = vld [vmem:[%s6084_s24 + $0x7c] sm:$0x3] }
  0xba   : > { %v1090_v63 = vrot.slane %v1088_v50, 4  ;;  %v5714_v40 = vcombine.low %v2817_v38, %v2826_v43  ;;  %v1060_v62 = vrot.slane %v6832_v32, 6  ;;  %v1063_v3 = vrot.slane %v5127_v51, 6  ;;  %v5924_v38 = vld [vmem:[%s6084_s24 + $0xb8] sm:$0xf] }
  0xbb   : > { %v6821_v25 = vpop.permute.xlu0 %3177  ;;  %v6857_v16 = vsel %vm3677_vm12, %v5532_v42, %v6648_v20  ;;  %v6861_v45 = vsel %vm3677_vm12, %v5530_v17, %v6664_v61  ;;  %v6865_v18 = vsel %vm3677_vm12, %v5531_v56, %v6690_v46  ;;  %v6881_v13 = vsel %vm6252_vm8, %v4986_v21, %v283_v6  ;;  %v6888_v17 = vld [vmem:[%s6084_s24 + $0xa0] sm:$0xc]  ;;  %v5514_v47 = vld [vmem:[%s6084_s24 + $0x124] sm:$0x8]  ;;  %v5925_v51 = vld [vmem:[%s6084_s24 + $0x78] sm:$0xf] }
  0xbc   : > { %v6826_v37 = vpop.permute.xlu1 %3207  ;;  %v1092_v53 = vsel %vm6252_vm8, %v1090_v63, %v1091_v57  ;;  %4300 = vrot.lane.b32.xlu0 %v5714_v40, %s6016_s5  ;;  %v1061_v61 = vsel %vm6252_vm8, %v5147_v60, %v1060_v62  ;;  %v1062_v42 = vrot.slane %v1060_v62, 4  ;;  %v6885_v33 = vsel %vm6252_vm8, %v285_v48, %v286_v58  ;;  %v5515_v60 = vld [vmem:[%s6084_s24 + $0x12c] sm:$0x7]  ;;  %v5506_v40 = vld [vmem:[%s6084_s24 + $0xe4] sm:$0x8] }
  0xbd   : > { %v5583_v20 = vcombine.low %v1089_v2, %v1092_v53  ;;  %v5328_v56 = vrot.slane %v5316_v19, 10  ;;  %v1941_v54 = vrot.slane %v5924_v38, 6  ;;  %v1944_v21 = vrot.slane %v5317_v24, 6  ;;  %v5507_v24 = vld [vmem:[%s6084_s24 + $0xec] sm:$0x7] }
  0xbe   : > { %v1064_v6 = vsel %vm6252_vm8, %v1062_v42, %v1063_v3  ;;  %v5324_v57 = vrot.slane %v5308_v29, 10  ;;  %v1913_v58 = vrot.slane %v5925_v51, 6  ;;  %v1916_v63 = vrot.slane %v5309_v31, 6 }
  0xbf   : > { %v6845_v1 = vpop.permute.xlu0 %3205  ;;  %3335 = vrot.lane.b32.xlu1 %v5583_v20, %s6015_s4  ;;  %v5579_v48 = vcombine.low %v1061_v61, %v1064_v6  ;;  %v1942_v43 = vsel %vm6252_vm8, %v5328_v56, %v1941_v54  ;;  %v1943_v2 = vrot.slane %v1941_v54, 4  ;;  %v6911_v20 = vld [vmem:[%s6084_s24 + $0xa8] sm:$0x3]  ;;  %v5526_v42 = vrot.slane %v5514_v47, 11 }
  0xc0   : > { %v6851_v12 = vpop.permute.xlu1 %3211  ;;  %v1914_v3 = vsel %vm6252_vm8, %v5324_v57, %v1913_v58  ;;  %v1915_v53 = vrot.slane %v1913_v58, 4  ;;  %v3051_v31 = vrot.slane %v6758_v5, 7  ;;  %v3054_v56 = vrot.slane %v5515_v60, 7  ;;  %v5164_v58 = vld [vmem:[%s6084_s24 + $0xf0] sm:$0x8] }
  0xc1   : > { %9022 = vst [vmem:[#allocation7_spill] sm:$0xff] %v6851_v12  ;;  %3327 = vrot.lane.b32.xlu0 %v5579_v48, %s6015_s4  ;;  %v1945_v61 = vsel %vm6252_vm8, %v1943_v2, %v1944_v21  ;;  %v5522_v57 = vrot.slane %v5506_v40, 11  ;;  %v3023_v51 = vrot.slane %v6786_v4, 7  ;;  %v3026_v47 = vrot.slane %v5507_v24, 7  ;;  %v6926_v5 = vld [vmem:[%s6084_s24 + $0xf8] sm:$0xf] }
  0xc2   : > { %v5638_v54 = vcombine.low %v1942_v43, %v1945_v61  ;;  %v1917_v6 = vsel %vm6252_vm8, %v1915_v53, %v1916_v63  ;;  %v3052_v19 = vsel %vm6524_vm11, %v5526_v42, %v3051_v31  ;;  %v3053_v21 = vrot.slane %v3051_v31, 4  ;;  %v5926_v60 = vld [vmem:[%s6084_s24 + $0xa4] sm:$0xf]  ;;  %v5156_v40 = vld [vmem:[%s6084_s24 + $0xb0] sm:$0x8] }
  0xc3   : > { %v6877_v46 = vpop.permute.xlu0 %3209  ;;  %v5634_v48 = vcombine.low %v1914_v3, %v1917_v6  ;;  %v297_v2 = vrot.slane %v5926_v60, 6  ;;  %v300_v43 = vrot.slane %v6911_v20, 6  ;;  %v3024_v4 = vsel %vm6524_vm11, %v5522_v57, %v3023_v51  ;;  %v6942_v42 = vld [vmem:[%s6084_s24 + $0xb8] sm:$0xf] }
  0xc4   : > { %v6892_v50 = vpop.permute.xlu1 %3215  ;;  %3629 = vrot.lane.b32.xlu1 %v5638_v54, %s6022_s11  ;;  %v3025_v63 = vrot.slane %v3023_v51, 4  ;;  %v3055_v53 = vsel %vm6524_vm11, %v3053_v21, %v3054_v56  ;;  %v1234_v24 = vshrl.u32 %v5164_v58, 16  ;;  %v1239_v61 = vshrl.u32 %v6816_v10, 16 }
  0xc5   : > { %3621 = vrot.lane.b32.xlu0 %v5634_v48, %s6022_s11  ;;  %v1242_v20 = vshll.u32 %v6816_v10, 16  ;;  %v5726_v31 = vcombine.low %v3052_v19, %v3055_v53  ;;  %v1248_v6 = vshrl.u32 %v6926_v5, 16  ;;  %v1251_v57 = vshll.u32 %v6926_v5, 16 }
  0xc6   : > { %v3027_v54 = vsel %vm6524_vm11, %v3025_v63, %v3026_v47  ;;  %v5175_v56 = vrot.slane %v1234_v24, 11  ;;  %v1241_v58 = vrot.slane %v1239_v61, 7  ;;  %v1146_v21 = vshrl.u32 %v5156_v40, 16  ;;  %v5346_v63 = vld [vmem:[%s6084_s24 + $0x100] sm:$0xe] }
  0xc7   : > { %v6908_v29 = vpop.permute.xlu0 %3213  ;;  %v5722_v48 = vcombine.low %v3024_v4, %v3027_v54  ;;  %v1250_v10 = vrot.slane %v1248_v6, 7  ;;  %v1151_v60 = vshrl.u32 %v6832_v32, 16  ;;  %v1154_v19 = vshll.u32 %v6832_v32, 16  ;;  %v5348_v6 = vld [vmem:[%s6084_s24 + $0x108] sm:$0x1] }
  0xc8   : > { %v6917_v38 = vpop.permute.xlu1 %3219  ;;  %4348 = vrot.lane.b32.xlu1 %v5726_v31, %s6017_s6  ;;  %v1160_v47 = vshrl.u32 %v6942_v42, 16  ;;  %v299_v53 = vrot.slane %v297_v2, 4  ;;  %v1244_v62 = vor.u32 %v1242_v20, %v1241_v58  ;;  %v1246_v4 = vrot.slane %v1241_v58, 4 }
  0xc9   : > { %9023 = vst [vmem:[#allocation8_spill] sm:$0xff] %v6917_v38  ;;  %4340 = vrot.lane.b32.xlu0 %v5722_v48, %s6017_s6  ;;  %v1163_v24 = vshll.u32 %v6942_v42, 16  ;;  %v1253_v40 = vor.u32 %v1251_v57, %v1250_v10  ;;  %v5171_v61 = vrot.slane %v1146_v21, 11  ;;  %v1153_v54 = vrot.slane %v1151_v60, 7  ;;  %v5334_v21 = vld [vmem:[%s6084_s24 + $0xc0] sm:$0xe] }
  0xca   : > { %v1162_v31 = vrot.slane %v1160_v47, 7  ;;  %v9024_v32 = vcombine.low %v6839_v52, %v6843_v49  ;;  %v9025_v20 = vcombine.low %v6881_v13, %v6885_v33  ;;  %v1245_v48 = vsel %vm6119_vm5, %v5175_v56, %v1244_v62  ;;  %v5927_v56 = vld [vmem:[%s6084_s24 + $0x104] sm:$0xf] }
  0xcb   : > { %v6934_v3 = vpop.permute.xlu0 %3217  ;;  %v5362_v58 = vrot.slane %v5346_v63, 9  ;;  %v1254_v52 = vsel %vm6119_vm5, %v1246_v4, %v1253_v40  ;;  %v1156_v49 = vor.u32 %v1154_v19, %v1153_v54  ;;  %v9027_v13 = vrot.slane %v6888_v17, 10  ;;  %v5336_v63 = vld [vmem:[%s6084_s24 + $0xc8] sm:$0x1]  ;;  %v2392_v19 = vld [vmem:[%s6084_s24 + $0x50] sm:$0x8] }
  0xcc   : > { %v6948_v51 = vpop.permute.xlu1 %3247  ;;  %v6965_v12 = vsel %vm3677_vm12, %v9024_v32, %v6700_v39  ;;  %v6972_v57 = vsel %vm3677_vm12, %v9025_v20, %v6713_v59  ;;  %v1158_v39 = vrot.slane %v1153_v54, 4  ;;  %v1165_v10 = vor.u32 %v1163_v24, %v1162_v31  ;;  %v2377_v40 = vld [vmem:[%s6084_s24 + $0x54] sm:$0xf]  ;;  %v5928_v31 = vld [vmem:[%s6084_s24 + $0xc4] sm:$0xf] }
  0xcd   : > { %v298_v59 = vsel %vm6252_vm8, %v9027_v13, %v297_v2  ;;  %v301_v33 = vsel %vm6252_vm8, %v299_v53, %v300_v43  ;;  %v5591_v62 = vcombine.low %v1245_v48, %v1254_v52  ;;  %v2049_v47 = vrot.slane %v5927_v56, 5  ;;  %v7000_v20 = vld [vmem:[%s6084_s24 + $0x58] sm:$0xf]  ;;  %v2369_v48 = vld [vmem:[%s6084_s24 + $0x14] sm:$0xf] }
  0xce   : > { %v1157_v4 = vsel %vm6119_vm5, %v5171_v61, %v1156_v49  ;;  %v1166_v17 = vsel %vm6119_vm5, %v1158_v39, %v1165_v10  ;;  %v2052_v24 = vrot.slane %v5348_v6, 5  ;;  %v5358_v2 = vrot.slane %v5334_v21, 9  ;;  %v2384_v6 = vld [vmem:[%s6084_s24 + $0x10] sm:$0x8] }
  0xcf   : > { %v6958_v22 = vpop.permute.xlu0 %3245  ;;  %3375 = vrot.lane.b32.xlu1 %v5591_v62, %s6016_s5  ;;  %v5587_v43 = vcombine.low %v1157_v4, %v1166_v17  ;;  %v2050_v53 = vsel %vm6086_vm3, %v5362_v58, %v2049_v47  ;;  %v2051_v54 = vrot.slane %v2049_v47, 4  ;;  %v2021_v32 = vrot.slane %v5928_v31, 5  ;;  %v7013_v47 = vld [vmem:[%s6084_s24 + $0x18] sm:$0xf]  ;;  %v5189_v31 = vld [vmem:[%s6084_s24 + $0xfc] sm:$0x1] }
  0xd0   : > { %v5536_v61 = vcombine.low %v298_v59, %v301_v33  ;;  %v2024_v52 = vrot.slane %v5336_v63, 5  ;;  %v2509_v49 = vshrl.u32 %v2392_v19, 16  ;;  %v2514_v13 = vshrl.u32 %v2377_v40, 16 }
  0xd1   : > { %3367 = vrot.lane.b32.xlu0 %v5587_v43, %s6016_s5  ;;  %v2053_v58 = vsel %vm6086_vm3, %v2051_v54, %v2052_v24  ;;  %v2022_v39 = vsel %vm6086_vm3, %v5358_v2, %v2021_v32  ;;  %v2023_v10 = vrot.slane %v2021_v32, 4  ;;  %v2517_v59 = vshll.u32 %v2377_v40, 16  ;;  %v5188_v2 = vld [vmem:[%s6084_s24 + $0xf4] sm:$0xe] }
  0xd2   : > { %v6979_v60 = vpop.permute.xlu1 %3251  ;;  %v5646_v62 = vcombine.low %v2050_v53, %v2053_v58  ;;  %v5421_v56 = vrot.slane %v2509_v49, 11  ;;  %v2523_v33 = vshrl.u32 %v7000_v20, 16  ;;  %v2516_v4 = vrot.slane %v2514_v13, 7 }
  0xd3   : > { %9026 = vst [vmem:[#allocation9_spill] sm:$0xff] %v6979_v60  ;;  %v2025_v19 = vsel %vm6086_vm3, %v2023_v10, %v2024_v52  ;;  %v2526_v17 = vshll.u32 %v7000_v20, 16  ;;  %v2421_v24 = vshrl.u32 %v2384_v6, 16  ;;  %v2426_v53 = vshrl.u32 %v2369_v48, 16  ;;  %v5180_v10 = vld [vmem:[%s6084_s24 + $0xb4] sm:$0xe] }
  0xd4   : > { %3669 = vrot.lane.b32.xlu1 %v5646_v62, %s6023_s19  ;;  %v5642_v43 = vcombine.low %v2022_v39, %v2025_v19  ;;  %v2525_v40 = vrot.slane %v2523_v33, 7  ;;  %v2429_v54 = vshll.u32 %v2369_v48, 16  ;;  %v2519_v49 = vor.u32 %v2517_v59, %v2516_v4 }
  0xd5   : > { %v2521_v58 = vrot.slane %v2516_v4, 4  ;;  %v5417_v60 = vrot.slane %v2421_v24, 11  ;;  %v2435_v52 = vshrl.u32 %v7013_v47, 16  ;;  %v3698_v6 = vsel %vm3677_vm12, %v5536_v61, %v6739_v41  ;;  %v5181_v24 = vld [vmem:[%s6084_s24 + $0xbc] sm:$0x1] }
  0xd6   : > { %v7015_v63 = vpop.permute.xlu1 %3285  ;;  %3661 = vrot.lane.b32.xlu0 %v5642_v43, %s6023_s19  ;;  %v2528_v13 = vor.u32 %v2526_v17, %v2525_v40  ;;  %v2428_v39 = vrot.slane %v2426_v53, 7  ;;  %v2438_v48 = vshll.u32 %v7013_v47, 16  ;;  %v7034_v62 = vsel %vm9008_vm13, %v6857_v16, %v6764_v23 }
  0xd7   : > { %v7004_v21 = vpop.permute.xlu0 %3249  ;;  %v2520_v59 = vsel %vm6119_vm5, %v5421_v56, %v2519_v49  ;;  %v2437_v33 = vrot.slane %v2435_v52, 7  ;;  %v5199_v19 = vrot.slane %v5188_v2, 9  ;;  %v1376_v17 = vrot.slane %v6926_v5, 5  ;;  %v2584_v56 = vld [vmem:[%s6084_s24 + $0x54] sm:$0x8] }
  0xd8   : > { %v2529_v41 = vsel %vm6119_vm5, %v2521_v58, %v2528_v13  ;;  %v2431_v61 = vor.u32 %v2429_v54, %v2428_v39  ;;  %v2433_v4 = vrot.slane %v2428_v39, 4  ;;  %v1379_v16 = vrot.slane %v5189_v31, 5  ;;  %v2585_v58 = vld [vmem:[%s6084_s24 + $0x5c] sm:$0x7]  ;;  %v2576_v52 = vld [vmem:[%s6084_s24 + $0x14] sm:$0x8] }
  0xd9   : > { %v5679_v40 = vcombine.low %v2520_v59, %v2529_v41  ;;  %v2440_v23 = vor.u32 %v2438_v48, %v2437_v33  ;;  %v5195_v53 = vrot.slane %v5180_v10, 9  ;;  %v1377_v49 = vsel %vm6086_vm3, %v5199_v19, %v1376_v17  ;;  %v2577_v39 = vld [vmem:[%s6084_s24 + $0x1c] sm:$0x7]  ;;  %v5219_v33 = vld [vmem:[%s6084_s24 + $0x70] sm:$0xe] }
  0xda   : > { %v2432_v2 = vsel %vm6119_vm5, %v5417_v60, %v2431_v61  ;;  %v1378_v54 = vrot.slane %v1376_v17, 4  ;;  %v1348_v5 = vrot.slane %v6942_v42, 5  ;;  %v3714_v31 = vsel %vm9008_vm13, %v6965_v12, %v6772_v7  ;;  %v5221_v17 = vld [vmem:[%s6084_s24 + $0x78] sm:$0x1] }
  0xdb   : > { %v7023_v32 = vpop.permute.xlu0 %3253  ;;  %v7060_v60 = vsel %vm9008_vm13, %v6972_v57, %v6788_v26  ;;  %4086 = vrot.lane.b32.xlu1 %v5679_v40, %s6010_s26  ;;  %v2441_v10 = vsel %vm6119_vm5, %v2433_v4, %v2440_v23  ;;  %v1351_v42 = vrot.slane %v5181_v24, 5  ;;  %v7072_v26 = vld [vmem:[%s6084_s24 + $0x74] sm:$0xf]  ;;  %v5429_v41 = vrot.slane %v2584_v56, 11 }
  0xdc   : > { %v5675_v48 = vcombine.low %v2432_v2, %v2441_v10  ;;  %v1380_v59 = vsel %vm6086_vm3, %v1378_v54, %v1379_v16  ;;  %v1349_v7 = vsel %vm6086_vm3, %v5195_v53, %v1348_v5  ;;  %v1350_v12 = vrot.slane %v1348_v5, 4  ;;  %v5207_v53 = vld [vmem:[%s6084_s24 + $0x30] sm:$0xe]  ;;  %v7091_v54 = vld [vmem:[%s6084_s24 + $0x34] sm:$0xf] }
  0xdd   : > { %v5599_v19 = vcombine.low %v1377_v49, %v1380_v59  ;;  %v2654_v61 = vrot.slane %v7000_v20, 7  ;;  %v2657_v4 = vrot.slane %v2585_v58, 7  ;;  %v5425_v40 = vrot.slane %v2576_v52, 11 }
  0xde   : > { %4078 = vrot.lane.b32.xlu0 %v5675_v48, %s6010_s26  ;;  %v1352_v24 = vsel %vm6086_vm3, %v1350_v12, %v1351_v42  ;;  %v2626_v23 = vrot.slane %v7013_v47, 7  ;;  %v2629_v16 = vrot.slane %v2577_v39, 7  ;;  %v7085_v2 = vsel %vm9008_vm13, %v3698_v6, %v6821_v25  ;;  %v5209_v6 = vld [vmem:[%s6084_s24 + $0x38] sm:$0x1] }
  0xdf   : > { %v7042_v43 = vpop.permute.xlu1 %3972  ;;  %v7052_v13 = vpop.permute.xlu0 %3293  ;;  %3415 = vrot.lane.b32.xlu1 %v5599_v19, %s6017_s6  ;;  %v5595_v20 = vcombine.low %v1349_v7, %v1352_v24  ;;  %v2655_v56 = vsel %vm6524_vm11, %v5429_v41, %v2654_v61  ;;  %v2656_v49 = vrot.slane %v2654_v61, 4  ;;  %v3706_v47 = vsel %vm9008_vm13, %v6865_v18, %v6625_v8  ;;  %v5437_v7 = vld [vmem:[%s6084_s24 + $0xc0] sm:$0xf] }
  0xe0   : > { %v2627_v5 = vsel %vm6524_vm11, %v5425_v40, %v2626_v23  ;;  %v2628_v25 = vrot.slane %v2626_v23, 4  ;;  %v5233_v10 = vrot.slane %v5219_v33, 9  ;;  %v1484_v42 = vrot.slane %v7072_v26, 5 }
  0xe1   : > { %v2658_v52 = vsel %vm6524_vm11, %v2656_v49, %v2657_v4  ;;  %v1487_v39 = vrot.slane %v5221_v17, 5  ;;  %v5229_v18 = vrot.slane %v5207_v53, 9  ;;  %v1456_v59 = vrot.slane %v7091_v54, 5  ;;  %v5433_v4 = vld [vmem:[%s6084_s24 + $0x80] sm:$0xf] }
  0xe2   : > { %3407 = vrot.lane.b32.xlu0 %v5595_v20, %s6017_s6  ;;  %v5687_v48 = vcombine.low %v2655_v56, %v2658_v52  ;;  %v2630_v8 = vsel %vm6524_vm11, %v2628_v25, %v2629_v16  ;;  %v1485_v33 = vsel %vm6086_vm3, %v5233_v10, %v1484_v42  ;;  %v1486_v41 = vrot.slane %v1484_v42, 4  ;;  %v5246_v16 = vld [vmem:[%s6084_s24 + $0x70] sm:$0x8]  ;;  %v7141_v20 = vld [vmem:[%s6084_s24 + $0x78] sm:$0xf] }
  0xe3   : > { %v7074_v57 = vpop.permute.xlu1 %3325  ;;  %v5683_v19 = vcombine.low %v2627_v5, %v2630_v8  ;;  %v1459_v61 = vrot.slane %v5209_v6, 5  ;;  %v7116_v17 = vsel %vm9007_vm14, %v3706_v47, %v6826_v37  ;;  %v3704_v24 = vsel %vm9008_vm13, %v6861_v45, %v6638_v44  ;;  %v5238_v56 = vld [vmem:[%s6084_s24 + $0x30] sm:$0x8]  ;;  %v7158_v5 = vld [vmem:[%s6084_s24 + $0x38] sm:$0xf] }
  0xe4   : > { %4126 = vrot.lane.b32.xlu1 %v5687_v48, %s6009_s25  ;;  %v1457_v40 = vsel %vm6086_vm3, %v5229_v18, %v1456_v59  ;;  %v1458_v23 = vrot.slane %v1456_v59, 4  ;;  %v7127_v53 = vsel %vm9007_vm14, %v3704_v24, %v6845_v1  ;;  %v7132_v37 = vsel %vm9007_vm14, %v7034_v62, %v6877_v46  ;;  %v7150_v46 = vld [vmem:[%s6084_s24 + $0xc4] sm:$0xf] }
  0xe5   : > { %v7136_v44 = vsel %vm9007_vm14, %v3714_v31, %v6892_v50  ;;  %v1488_v45 = vsel %vm6086_vm3, %v1486_v41, %v1487_v39  ;;  %v5695_v62 = vcombine.low %v5437_v7, %v7150_v46  ;;  %v7154_v50 = vld [vmem:[%s6084_s24 + $0x84] sm:$0xf]  ;;  %v1630_v6 = vshrl.u32 %v5246_v16, 16 }
  0xe6   : > { %4118 = vrot.lane.b32.xlu0 %v5683_v19, %s6009_s25  ;;  %v5607_v1 = vcombine.low %v1485_v33, %v1488_v45  ;;  %v1460_v47 = vsel %vm6086_vm3, %v1458_v23, %v1459_v61  ;;  %v5691_v31 = vcombine.low %v5433_v4, %v7154_v50  ;;  %v1635_v52 = vshrl.u32 %v7072_v26, 16  ;;  %v5391_v45 = vld [vmem:[%s6084_s24 + $0xcc] sm:$0x3] }
  0xe7   : > { %v7099_v58 = vpop.permute.xlu0 %3980  ;;  %v5603_v25 = vcombine.low %v1457_v40, %v1460_v47  ;;  %v1638_v10 = vshll.u32 %v7072_v26, 16  ;;  %v1644_v42 = vshrl.u32 %v7141_v20, 16  ;;  %v1647_v39 = vshll.u32 %v7141_v20, 16 }
  0xe8   : > { %3455 = vrot.lane.b32.xlu1 %v5607_v1, %s6017_s6  ;;  %v1542_v48 = vshrl.u32 %v5238_v56, 16  ;;  %v1547_v8 = vshrl.u32 %v7091_v54, 16  ;;  %v5257_v59 = vrot.slane %v1630_v6, 11  ;;  %v1637_v7 = vrot.slane %v1635_v52, 7  ;;  %v5931_v6 = vld [vmem:[%s6084_s24 + $0xc8] sm:$0xf] }
  0xe9   : > { %v7109_v12 = vpop.permute.xlu1 %3365  ;;  %v1550_v19 = vshll.u32 %v7091_v54, 16  ;;  %v1556_v33 = vshrl.u32 %v7158_v5, 16  ;;  %v1646_v26 = vrot.slane %v1644_v42, 7  ;;  %v1559_v4 = vshll.u32 %v7158_v5, 16  ;;  %v5390_v54 = vld [vmem:[%s6084_s24 + $0xc4] sm:$0xc] }
  0xea   : > { %3447 = vrot.lane.b32.xlu0 %v5603_v25, %s6017_s6  ;;  %v5253_v41 = vrot.slane %v1542_v48, 11  ;;  %v1549_v61 = vrot.slane %v1547_v8, 7  ;;  %v3729_v24 = vsel %vm9007_vm14, %v7060_v60, %v6908_v29  ;;  %v1640_v40 = vor.u32 %v1638_v10, %v1637_v7  ;;  %v5270_v42 = vld [vmem:[%s6084_s24 + $0x74] sm:$0xc]  ;;  %v5271_v10 = vld [vmem:[%s6084_s24 + $0x7c] sm:$0x3] }
  0xeb   : > { %v7144_v49 = vpop.permute.xlu0 %3333  ;;  %v1642_v23 = vrot.slane %v1637_v7, 4  ;;  %v1558_v16 = vrot.slane %v1556_v33, 7  ;;  %v1649_v1 = vor.u32 %v1647_v39, %v1646_v26  ;;  %v2309_v52 = vrot.slane %v5931_v6, 6  ;;  %v5262_v8 = vld [vmem:[%s6084_s24 + $0x34] sm:$0xc] }
  0xec   : > { %4174 = vrot.lane.b32.xlu1 %v5695_v62, %s6011_s27  ;;  %v1552_v47 = vor.u32 %v1550_v19, %v1549_v61  ;;  %v1554_v25 = vrot.slane %v1549_v61, 4  ;;  %v1641_v29 = vsel %vm6119_vm5, %v5257_v59, %v1640_v40  ;;  %v5406_v7 = vrot.slane %v5390_v54, 10 }
  0xed   : > { %v1561_v60 = vor.u32 %v1559_v4, %v1558_v16  ;;  %v1650_v62 = vsel %vm6119_vm5, %v1642_v23, %v1649_v1  ;;  %v2312_v19 = vrot.slane %v5391_v45, 6  ;;  %v5281_v61 = vrot.slane %v5270_v42, 10  ;;  %v5263_v4 = vld [vmem:[%s6084_s24 + $0x3c] sm:$0x3]  ;;  %v5398_v45 = vld [vmem:[%s6084_s24 + $0x104] sm:$0xc] }
  0xee   : > { %4166 = vrot.lane.b32.xlu0 %v5691_v31, %s6011_s27  ;;  %v1553_v39 = vsel %vm6119_vm5, %v5253_v41, %v1552_v47  ;;  %v5615_v33 = vcombine.low %v1641_v29, %v1650_v62  ;;  %v1772_v59 = vrot.slane %v7141_v20, 6  ;;  %v2311_v16 = vrot.slane %v2309_v52, 4  ;;  %v5450_v29 = vld [vmem:[%s6084_s24 + $0xc4] sm:$0x8] }
  0xef   : > { %v7166_v18 = vpop.permute.xlu1 %4076  ;;  %v1562_v26 = vsel %vm6119_vm5, %v1554_v25, %v1561_v60  ;;  %v1775_v31 = vrot.slane %v5271_v10, 6  ;;  %v5277_v6 = vrot.slane %v5262_v8, 10  ;;  %v3738_v41 = vsel %vm3736_vm15, %v7127_v53, %v6958_v22  ;;  %v5451_v10 = vld [vmem:[%s6084_s24 + $0xcc] sm:$0x7] }
  0xf0   : > { %v5611_v40 = vcombine.low %v1553_v39, %v1562_v26  ;;  %3495 = vrot.lane.b32.xlu1 %v5615_v33, %s6018_s7  ;;  %v1773_v23 = vsel %vm6252_vm8, %v5281_v61, %v1772_v59  ;;  %v1774_v54 = vrot.slane %v1772_v59, 4  ;;  %v1744_v20 = vrot.slane %v7158_v5, 6  ;;  %v5443_v33 = vld [vmem:[%s6084_s24 + $0x8c] sm:$0x7]  ;;  %v5932_v59 = vld [vmem:[%s6084_s24 + $0x108] sm:$0xf] }
  0xf1   : > { %v7212_v25 = vsel %vm9007_vm14, %v7085_v2, %v6934_v3  ;;  %v7217_v53 = vsel %vm3736_vm15, %v7116_v17, %v6948_v51  ;;  %v7221_v42 = vsel %vm3753_vm0, %v3738_v41, %v7015_v63  ;;  %v1747_v5 = vrot.slane %v5263_v4, 6  ;;  %v5442_v63 = vld [vmem:[%s6084_s24 + $0x84] sm:$0x8]  ;;  %v5399_v61 = vld [vmem:[%s6084_s24 + $0x10c] sm:$0x3] }
  0xf2   : > { %v7177_v56 = vpop.permute.xlu0 %3373  ;;  %9028 = vst [vmem:[#allocation10_spill] sm:$0xff] %v7212_v25  ;;  %3487 = vrot.lane.b32.xlu0 %v5611_v40, %s6018_s7  ;;  %v3746_v3 = vsel %vm3736_vm15, %v3729_v24, %v7023_v32  ;;  %v1776_v2 = vsel %vm6252_vm8, %v1774_v54, %v1775_v31  ;;  %v1745_v17 = vsel %vm6252_vm8, %v5277_v6, %v1744_v20  ;;  %v1746_v60 = vrot.slane %v1744_v20, 4  ;;  %v7245_v31 = vld [vmem:[%s6084_s24 + $0xc8] sm:$0xf]  ;;  %v5286_v20 = vld [vmem:[%s6084_s24 + $0x80] sm:$0xe] }
  0xf3   : > { %v7182_v48 = vpop.permute.xlu1 %3405  ;;  %v7235_v8 = vsel %vm6252_vm8, %v5406_v7, %v2309_v52  ;;  %v2313_v62 = vsel %vm6252_vm8, %v2311_v16, %v2312_v19  ;;  %v5623_v39 = vcombine.low %v1773_v23, %v1776_v2  ;;  %v5410_v24 = vrot.slane %v5398_v45, 10  ;;  %v7254_v23 = vld [vmem:[%s6084_s24 + $0x88] sm:$0xf] }
  0xf4   : > { %v1748_v26 = vsel %vm6252_vm8, %v1746_v60, %v1747_v5  ;;  %v2337_v4 = vrot.slane %v5932_v59, 6  ;;  %v5461_v40 = vrot.slane %v5450_v29, 11  ;;  %v2750_v52 = vrot.slane %v7245_v31, 7 }
  0xf5   : > { %3535 = vrot.lane.b32.xlu1 %v5623_v39, %s6019_s8  ;;  %v5619_v19 = vcombine.low %v1745_v17, %v1748_v26  ;;  %v2753_v16 = vrot.slane %v5451_v10, 7  ;;  %v5457_v41 = vrot.slane %v5442_v63, 11  ;;  %v2722_v54 = vrot.slane %v7254_v23, 7  ;;  %v5287_v63 = vld [vmem:[%s6084_s24 + $0x88] sm:$0x1] }
  0xf6   : > { %v7260_v45 = vsel %vm3753_vm0, %v3746_v3, %v7052_v13  ;;  %v2751_v5 = vsel %vm6524_vm11, %v5461_v40, %v2750_v52  ;;  %v2752_v29 = vrot.slane %v2750_v52, 4  ;;  %v2725_v2 = vrot.slane %v5443_v33, 7  ;;  %v5084_v39 = vld [vmem:[%s6084_s24 + $0xd0] sm:$0x8]  ;;  %v7273_v40 = vld [vmem:[%s6084_s24 + $0xd8] sm:$0xf] }
  0xf7   : > { %v5658_v17 = vcombine.low %v7235_v8, %v2313_v62  ;;  %3527 = vrot.lane.b32.xlu0 %v5619_v19, %s6019_s8  ;;  %v2723_v60 = vsel %vm6524_vm11, %v5457_v41, %v2722_v54  ;;  %v2724_v10 = vrot.slane %v2722_v54, 4  ;;  %v2339_v26 = vrot.slane %v2337_v4, 4 }
  0xf8   : > { %v7205_v1 = vpop.permute.xlu0 %4084  ;;  %v7207_v47 = vpop.permute.xlu1 %4116  ;;  %v2340_v13 = vrot.slane %v5399_v61, 6  ;;  %v2754_v3 = vsel %vm6524_vm11, %v2752_v29, %v2753_v16  ;;  %v5301_v59 = vrot.slane %v5286_v20, 9  ;;  %v2338_v62 = vsel %vm6252_vm8, %v5410_v24, %v2337_v4  ;;  %v5935_v20 = vld [vmem:[%s6084_s24 + $0xd4] sm:$0xf] }
  0xf9   : > { %v5703_v52 = vcombine.low %v2751_v5, %v2754_v3  ;;  %v2726_v19 = vsel %vm6524_vm11, %v2724_v10, %v2725_v2  ;;  %v1832_v61 = vrot.slane %v7154_v50, 5  ;;  %v1835_v16 = vrot.slane %v5287_v63, 5  ;;  %v2366_v5 = vld [vmem:[%s6084_s24] sm:$0xf]  ;;  %v5469_v63 = vld [vmem:[%s6084_s24 + $0xf4] sm:$0xf] }
  0xfa   : > { %v5699_v41 = vcombine.low %v2723_v60, %v2726_v19  ;;  %v860_v54 = vshrl.u32 %v5084_v39, 16  ;;  %v865_v29 = vshrl.u32 %v5935_v20, 16  ;;  %v868_v24 = vshll.u32 %v5935_v20, 16  ;;  %v5468_v19 = vld [vmem:[%s6084_s24 + $0xf0] sm:$0xf] }
  0xfb   : > { %4214 = vrot.lane.b32.xlu1 %v5703_v52, %s6013_s29  ;;  %v1833_v14 = vsel %vm6086_vm3, %v5301_v59, %v1832_v61  ;;  %v1834_v36 = vrot.slane %v1832_v61, 4  ;;  %v874_v4 = vshrl.u32 %v7273_v40, 16  ;;  %v2341_v50 = vsel %vm6252_vm8, %v2339_v26, %v2340_v13  ;;  %v5294_v13 = vld [vmem:[%s6084_s24 + $0xc0] sm:$0xe] }
  0xfc   : > { %v7248_v7 = vpop.permute.xlu0 %3413  ;;  %v7250_v6 = vpop.permute.xlu1 %3445  ;;  %4206 = vrot.lane.b32.xlu0 %v5699_v41, %s6013_s29  ;;  %v5094_v2 = vrot.slane %v860_v54, 11  ;;  %v867_v60 = vrot.slane %v865_v29, 7  ;;  %v877_v10 = vshll.u32 %v7273_v40, 16  ;;  %v4358_v3 = vsel %vm3677_vm12, %v7042_v43, %v5658_v17  ;;  %v5295_v29 = vld [vmem:[%s6084_s24 + $0xc8] sm:$0x1] }
  0xfd   : > { %v1836_v59 = vsel %vm6086_vm3, %v1834_v36, %v1835_v16  ;;  %v876_v52 = vrot.slane %v874_v4, 7  ;;  %v2833_v26 = vshrl.u32 %v5469_v63, 16  ;;  %v3772_v38 = vsel %vm3770_vm1, %v7221_v42, %v7074_v57  ;;  %v5936_v36 = vld [vmem:[%s6084_s24 + $0x4] sm:$0xf] }
  0xfe   : > { %v5627_v41 = vcombine.low %v1833_v14, %v1836_v59  ;;  %v870_v54 = vor.u32 %v868_v24, %v867_v60  ;;  %v872_v20 = vrot.slane %v867_v60, 4  ;;  %v5662_v43 = vcombine.low %v2338_v62, %v2341_v50  ;;  %v5100_v60 = vld [vmem:[%s6084_s24 + $0x94] sm:$0xe]  ;;  %v5101_v50 = vld [vmem:[%s6084_s24 + $0x9c] sm:$0x1] }
  0xff   : > { %v879_v17 = vor.u32 %v877_v10, %v876_v52  ;;  %v5666_v16 = vcombine.low %v2366_v5, %v5936_v36  ;;  %v5707_v55 = vcombine.low %v5468_v19, %v5469_v63  ;;  %v5305_v14 = vrot.slane %v5294_v13, 9  ;;  %v2374_v13 = vld [vmem:[%s6084_s24 + $0x40] sm:$0xf] }
 0x100   : > { %v7275_v33 = vpop.permute.xlu0 %4124  ;;  %v7277_v8 = vpop.permute.xlu1 %4164  ;;  %3567 = vrot.lane.b32.xlu1 %v5627_v41, %s6020_s9  ;;  %v871_v4 = vsel %vm6119_vm5, %v5094_v2, %v870_v54  ;;  %v1860_v24 = vrot.slane %v7150_v46, 5  ;;  %v3789_v57 = vsel %vm3787_vm2, %v3772_v38, %v7109_v12  ;;  %v7321_v62 = vrot.slane %v2833_v26, 7  ;;  %v7337_v41 = vld [vmem:[%s6084_s24 + $0x98] sm:$0xf] }
 0x101   : > { %v880_v42 = vsel %vm6119_vm5, %v872_v20, %v879_v17  ;;  %v1863_v5 = vrot.slane %v5295_v29, 5  ;;  %v2836_v46 = vshll.u32 %v5469_v63, 16  ;;  %v4370_v38 = vsel %vm3677_vm12, %v7099_v58, %v5662_v43  ;;  %v5938_v17 = vld [vmem:[%s6084_s24 + $0x44] sm:$0xf] }
 0x102   : > { %v7326_v10 = vcombine.low %v871_v4, %v880_v42  ;;  %v1861_v52 = vsel %vm6086_vm3, %v5305_v14, %v1860_v24  ;;  %v1862_v19 = vrot.slane %v1860_v24, 4  ;;  %v3780_v12 = vsel %vm3770_vm1, %v7260_v45, %v7144_v49  ;;  %v5476_v49 = vld [vmem:[%s6084_s24 + $0x130] sm:$0xf]  ;;  %v5108_v45 = vld [vmem:[%s6084_s24 + $0xd4] sm:$0xe] }
 0x103   : > { %v5114_v26 = vrot.slane %v5100_v60, 9  ;;  %v959_v63 = vrot.slane %v7337_v41, 5  ;;  %v4381_v54 = vsel %vm9008_vm13, %v4358_v3, %v5666_v16  ;;  %v962_v20 = vrot.slane %v5101_v50, 5  ;;  %v7354_v16 = vld [vmem:[%s6084_s24 + $0x134] sm:$0xf] }
 0x104   : > { %v7295_v39 = vpop.permute.xlu0 %3453  ;;  %3257 = vrot.lane.b32.xlu0 %v7326_v10, %s6012_s28  ;;  %4262 = vrot.lane.b32.xlu1 %v5707_v55, %s6015_s4  ;;  %v1864_v58 = vsel %vm6086_vm3, %v1862_v19, %v1863_v5  ;;  %v5670_v36 = vcombine.low %v2374_v13, %v5938_v17  ;;  %v5109_v55 = vld [vmem:[%s6084_s24 + $0xdc] sm:$0x1]  ;;  %v4397_v24 = vsel %vm9007_vm14, %v4381_v54, %v7166_v18  ;;  %v5341_v50 = vld [vmem:[%s6084_s24 + $0xe4] sm:$0xf]  ;;  %v2921_v19 = vshrl.u32 %v7354_v16, 16 }
 0x105   : > { %v7303_v61 = vpop.permute.xlu1 %3485  ;;  %v5631_v43 = vcombine.low %v1861_v52, %v1864_v58  ;;  %v960_v4 = vsel %vm6086_vm3, %v5114_v26, %v959_v63  ;;  %v961_v3 = vrot.slane %v959_v63, 4  ;;  %v7363_v60 = vsel %vm3787_vm2, %v3780_v12, %v7177_v56  ;;  %v5370_v26 = vld [vmem:[%s6084_s24 + $0xe0] sm:$0x8]  ;;  %v5371_v54 = vld [vmem:[%s6084_s24 + $0xe8] sm:$0xf] }
 0x106   : > { %v7366_v42 = vor.u32 %v2836_v46, %v7321_v62  ;;  %v5118_v13 = vrot.slane %v5108_v45, 9  ;;  %v987_v18 = vrot.slane %v7273_v40, 5  ;;  %v7378_v56 = vsel %vm3804_vm4, %v3789_v57, %v7182_v48  ;;  %v5484_v17 = vld [vmem:[%s6084_s24 + $0xf0] sm:$0x8]  ;;  %v7390_v48 = vld [vmem:[%s6084_s24 + $0xf8] sm:$0xf] }
 0x107   : > { %v963_v52 = vsel %vm6086_vm3, %v961_v3, %v962_v20  ;;  %v5711_v12 = vcombine.low %v5476_v49, %v7354_v16  ;;  %v990_v63 = vrot.slane %v5109_v55, 5  ;;  %v4389_v20 = vsel %vm9008_vm13, %v4370_v38, %v5670_v36  ;;  %v5353_v3 = vld [vmem:[%s6084_s24 + $0x124] sm:$0xf] }
 0x108   : > { %v7315_v59 = vpop.permute.xlu0 %4172  ;;  %3575 = vrot.lane.b32.xlu0 %v5631_v43, %s6020_s9  ;;  %v5572_v46 = vcombine.low %v960_v4, %v963_v52  ;;  %v2924_v45 = vshll.u32 %v7354_v16, 16  ;;  %v988_v40 = vsel %vm6086_vm3, %v5118_v13, %v987_v18  ;;  %v989_v43 = vrot.slane %v987_v18, 4  ;;  %v5378_v18 = vld [vmem:[%s6084_s24 + $0x120] sm:$0x8] }
 0x109   : > { %v7324_v2 = vpop.permute.xlu1 %3525  ;;  %v7396_v49 = vsel %vm9007_vm14, %v4389_v20, %v7205_v1  ;;  %v2136_v4 = vshrl.u32 %v5370_v26, 16  ;;  %v2141_v38 = vshrl.u32 %v5341_v50, 16  ;;  %v2144_v36 = vshll.u32 %v5341_v50, 16 }
 0x10a   : > { %3289 = vrot.lane.b32.xlu1 %v5572_v46, %s6013_s29  ;;  %v7400_v16 = vrot.slane %v2921_v19, 7  ;;  %v991_v55 = vsel %vm6086_vm3, %v989_v43, %v990_v63  ;;  %v2150_v52 = vshrl.u32 %v5371_v54, 16  ;;  %v2153_v13 = vshll.u32 %v5371_v54, 16  ;;  %v5379_v43 = vld [vmem:[%s6084_s24 + $0x128] sm:$0xf] }
 0x10b   : > { %v7408_v1 = vsel %vm3736_vm15, %v4397_v24, %v7207_v47  ;;  %v5576_v46 = vcombine.low %v988_v40, %v991_v55  ;;  %v5384_v26 = vrot.slane %v2136_v4, 11  ;;  %v2143_v20 = vrot.slane %v2141_v38, 7 }
 0x10c   : > { %v7348_v29 = vpop.permute.xlu0 %3493  ;;  %4270 = vrot.lane.b32.xlu0 %v5711_v12, %s6015_s4  ;;  %v2152_v5 = vrot.slane %v2150_v52, 7  ;;  %v2828_v19 = vshrl.u32 %v5484_v17, 16  ;;  %v2842_v35 = vshrl.u32 %v7390_v48, 16  ;;  %v2845_v63 = vshll.u32 %v7390_v48, 16 }
 0x10d   : > { %v7357_v14 = vpop.permute.xlu1 %4204  ;;  %v2146_v12 = vor.u32 %v2144_v36, %v2143_v20  ;;  %v2148_v47 = vrot.slane %v2143_v20, 4  ;;  %v2224_v24 = vshrl.u32 %v5378_v18, 16  ;;  %v2229_v40 = vshrl.u32 %v5353_v3, 16 }
 0x10e   : > { %3583 = vrot.lane.b32.xlu1 %v6365_v30, %s6021_s10  ;;  %v2155_v4 = vor.u32 %v2153_v13, %v2152_v5  ;;  %v5499_v38 = vrot.slane %v2828_v19, 11  ;;  %v2844_v55 = vrot.slane %v2842_v35, 7  ;;  %v2232_v17 = vshll.u32 %v5353_v3, 16  ;;  %v5128_v13 = vld [vmem:[%s6084_s24 + $0xc0] sm:$0xc] }
 0x10f   : > { %v2147_v52 = vsel %vm6119_vm5, %v5384_v26, %v2146_v12  ;;  %v5388_v11 = vrot.slane %v2224_v24, 11  ;;  %v2231_v25 = vrot.slane %v2229_v40, 7  ;;  %v2238_v30 = vshrl.u32 %v5379_v43, 16  ;;  %v5890_v26 = vld [vmem:[%s8999_s1] sm:$0xff]   ;;  %v5130_v40 = vld [vmem:[%s6084_s24 + $0xc8] sm:$0x3] }
 0x110   : > { %v7382_v58 = vpop.permute.xlu0 %3533  ;;  %3297 = vrot.lane.b32.xlu0 %v5576_v46, %s6013_s29  ;;  %v2156_v18 = vsel %vm6119_vm5, %v2148_v47, %v2155_v4  ;;  %v2839_v35 = vsel %vm6119_vm5, %v5499_v38, %v7366_v42  ;;  %v2847_v5 = vor.u32 %v2845_v63, %v2844_v55  ;;  %v2241_v3 = vshll.u32 %v5379_v43, 16  ;;  %v7431_v46 = vld [vmem:[%s6084_s24 + $0xc4] sm:$0xf]  ;;  %v5492_v4 = vld [vmem:[%s6084_s24 + $0x130] sm:$0x8] }
 0x111   : > { %v7392_v57 = vpop.permute.xlu1 %3255  ;;  %v5652_v19 = vcombine.low %v2147_v52, %v2156_v18  ;;  %v2234_v12 = vor.u32 %v2232_v17, %v2231_v25  ;;  %v2236_v24 = vrot.slane %v2231_v25, 4  ;;  %v2240_v47 = vrot.slane %v2238_v30, 7  ;;  %v7453_v55 = vld [vmem:[%s6084_s24 + $0x138] sm:$0xf]  ;;  %v5310_v18 = vld [vmem:[%s6084_s24 + $0x84] sm:$0xc] }
 0x112   : > { %v7441_v42 = vor.u32 %v2924_v45, %v7400_v16  ;;  %v7446_v63 = vsel %vm3804_vm4, %v7363_v60, %v7248_v7  ;;  %v9029_v43 = vrot.slane %v7321_v62, 4  ;;  %v5148_v7 = vrot.slane %v5128_v13, 10  ;;  %v5311_v13 = vld [vmem:[%s6084_s24 + $0x8c] sm:$0x3] }
 0x113   : > { %3976 = vrot.lane.b32.xlu1 %v5652_v19, %s6014_s30  ;;  %v2235_v45 = vsel %vm6119_vm5, %v5388_v11, %v2234_v12  ;;  %v2243_v17 = vor.u32 %v2241_v3, %v2240_v47  ;;  %v6024_v62 = vmov 0   ;;  %v1067_v60 = vrot.slane %v7431_v46, 6  ;;  %v5891_v19 = vld [vmem:[%s8999_s1 + $0x8] sm:$0xff]  }
 0x114   : > { %v7410_v50 = vpop.permute.xlu0 %4212  ;;  %v2848_v38 = vsel %vm6119_vm5, %v9029_v43, %v2847_v5  ;;  %3591 = vrot.lane.b32.xlu0 %v6658_v9, %s6021_s10  ;;  %4651 = vmatprep.subr.bf16.mxu0 %v6024_v62  ;;  %v1070_v52 = vrot.slane %v5130_v40, 6  ;;  %v2916_v30 = vshrl.u32 %v5492_v4, 16  ;;  %v2928_v11 = vrot.slane %v7400_v16, 4  ;;  %v7481_v4 = vld [vmem:[%s6084_s24 + $0x104] sm:$0xf] }
 0x115   : > { %v7415_v54 = vpop.permute.xlu1 %3573  ;;  %v5715_v25 = vcombine.low %v2839_v35, %v2848_v38  ;;  %5795 = vmatprep.subr.bf16.mxu1 %v6024_v62  ;;  %v2244_v35 = vsel %vm6119_vm5, %v2236_v24, %v2243_v17  ;;  %v2930_v5 = vshrl.u32 %v7453_v55, 16  ;;  %v2933_v3 = vshll.u32 %v7453_v55, 16  ;;  %4652 = vmatpush1.bf16.msra.mxu0 %v5890_v26  ;;  %v5140_v24 = vld [vmem:[%s6084_s24 + $0x100] sm:$0xc] }
 0x116   : > { %5809 = vmatpush1.bf16.msra.mxu1 %v5890_v26  ;;  %v5656_v12 = vcombine.low %v2235_v45, %v2244_v35  ;;  %v1068_v47 = vsel %vm6252_vm8, %v5148_v7, %v1067_v60  ;;  %v1069_v16 = vrot.slane %v1067_v60, 4  ;;  %v5503_v40 = vrot.slane %v2916_v30, 11  ;;  %4653 = vmatprep.subr.bf16.mxu0 %v6024_v62  ;;  %v5142_v7 = vld [vmem:[%s6084_s24 + $0x108] sm:$0x3] }
 0x117   : > { %5796 = vmatprep.subr.bf16.mxu1 %v6024_v62  ;;  %v3823_v43 = vsel %vm3821_vm6, %v7378_v56, %v7250_v6  ;;  %v4421_v38 = vsel %vm3736_vm15, %v7396_v49, %v7275_v33  ;;  %4302 = vrot.lane.b32.xlu1 %v5715_v25, %s6016_s5  ;;  %v2932_v45 = vrot.slane %v2930_v5, 7  ;;  %v5325_v17 = vrot.slane %v5310_v18, 10  ;;  %v5508_v18 = vld [vmem:[%s6084_s24 + $0xf4] sm:$0x8] }
 0x118   : > { %v7422_v36 = vpop.permute.xlu0 %3565  ;;  %3984 = vrot.lane.b32.xlu0 %v5656_v12, %s6014_s30  ;;  %v1071_v60 = vsel %vm6252_vm8, %v1069_v16, %v1070_v52  ;;  %v2927_v30 = vsel %vm6119_vm5, %v5503_v40, %v7441_v42  ;;  %v1920_v6 = vrot.slane %v7254_v23, 6  ;;  %v1923_v56 = vrot.slane %v5311_v13, 6  ;;  %v5892_v52 = vld [vmem:[%s8999_s1 + $0x10] sm:$0xff]   ;;  %v5509_v13 = vld [vmem:[%s6084_s24 + $0xfc] sm:$0x7] }
 0x119   : > { %v7436_v20 = vpop.permute.xlu1 %4268  ;;  %v5580_v33 = vcombine.low %v1068_v47, %v1071_v60  ;;  %v2935_v49 = vor.u32 %v2933_v3, %v2932_v45  ;;  %v5152_v35 = vrot.slane %v5140_v24, 10  ;;  %v1095_v25 = vrot.slane %v7481_v4, 6  ;;  %4654 = vmatpush1.bf16.msra.mxu0 %v5891_v19  ;;  %v5318_v16 = vld [vmem:[%s6084_s24 + $0xc4] sm:$0xc]  ;;  %v5319_v40 = vld [vmem:[%s6084_s24 + $0xcc] sm:$0x3] }
 0x11a   : > { %5810 = vmatpush1.bf16.msra.mxu1 %v5891_v19  ;;  %v7508_v23 = vsel %vm3753_vm0, %v7408_v1, %v7277_v8  ;;  %v1921_v42 = vsel %vm6252_vm8, %v5325_v17, %v1920_v6  ;;  %v1922_v5 = vrot.slane %v1920_v6, 4  ;;  %v1098_v3 = vrot.slane %v5142_v7, 6  ;;  %4655 = vmatprep.subr.bf16.mxu0 %v6024_v62  ;;  %v5158_v6 = vld [vmem:[%s6084_s24 + $0xc0] sm:$0x8] }
 0x11b   : > { %5797 = vmatprep.subr.bf16.mxu1 %v6024_v62  ;;  %v7520_v12 = vsel %vm3821_vm6, %v7446_v63, %v7295_v39  ;;  %3329 = vrot.lane.b32.xlu1 %v5580_v33, %s6015_s4  ;;  %v2936_v8 = vsel %vm6119_vm5, %v2928_v11, %v2935_v49  ;;  %v1096_v1 = vsel %vm6252_vm8, %v5152_v35, %v1095_v25  ;;  %v1097_v47 = vrot.slane %v1095_v25, 4 }
 0x11c   : > { %v7464_v9 = vpop.permute.xlu0 %4260  ;;  %v5719_v24 = vcombine.low %v2927_v30, %v2936_v8  ;;  %v1924_v45 = vsel %vm6252_vm8, %v1922_v5, %v1923_v56  ;;  %v5523_v17 = vrot.slane %v5508_v18, 11  ;;  %v3030_v7 = vrot.slane %v7390_v48, 7  ;;  %v5893_v30 = vld [vmem:[%s8999_s1 + $0x18] sm:$0xff]   ;;  %v7544_v48 = vld [vmem:[%s6084_s24 + $0xc8] sm:$0xf] }
 0x11d   : > { %v7483_v26 = vpop.permute.xlu1 %3295  ;;  %v5635_v63 = vcombine.low %v1921_v42, %v1924_v45  ;;  %v1099_v11 = vsel %vm6252_vm8, %v1097_v47, %v1098_v3  ;;  %v3033_v60 = vrot.slane %v5509_v13, 7  ;;  %4656 = vmatpush1.bf16.msra.mxu0 %v5892_v52  ;;  %v5329_v33 = vrot.slane %v5318_v16, 10  ;;  %v5337_v47 = vld [vmem:[%s6084_s24 + $0xd0] sm:$0xe]  ;;  %v5894_v16 = vld [vmem:[%s8999_s1 + $0x20] sm:$0xff]  }
 0x11e   : > { %5811 = vmatpush1.bf16.msra.mxu1 %v5892_v52  ;;  %4310 = vrot.lane.b32.xlu0 %v5719_v24, %s6016_s5  ;;  %v5584_v56 = vcombine.low %v1096_v1, %v1099_v11  ;;  %v1948_v49 = vrot.slane %v7245_v31, 6  ;;  %v1951_v35 = vrot.slane %v5319_v40, 6  ;;  %v3840_v25 = vsel %vm3838_vm7, %v3823_v43, %v7303_v61  ;;  %v5516_v31 = vld [vmem:[%s6084_s24 + $0x134] sm:$0x8]  ;;  %v5517_v43 = vld [vmem:[%s6084_s24 + $0x13c] sm:$0x7] }
 0x11f   : > { %4657 = vmatprep.subr.bf16.mxu0 %v6024_v62  ;;  %v7550_v18 = vsel %vm3753_vm0, %v4421_v38, %v7315_v59  ;;  %3623 = vrot.lane.b32.xlu1 %v5635_v63, %s6022_s11  ;;  %v3031_v52 = vsel %vm6524_vm11, %v5523_v17, %v3030_v7  ;;  %v3032_v42 = vrot.slane %v3030_v7, 4  ;;  %v1168_v61 = vshrl.u32 %v5158_v6, 16  ;;  %v5339_v6 = vld [vmem:[%s6084_s24 + $0xd8] sm:$0x1] }
 0x120   : > { %v7515_v19 = vpop.permute.xlu0 %3287  ;;  %5798 = vmatprep.subr.bf16.mxu1 %v6024_v62  ;;  %v1949_v5 = vsel %vm6252_vm8, %v5329_v33, %v1948_v49  ;;  %v1950_v3 = vrot.slane %v1948_v49, 4  ;;  %v1173_v38 = vshrl.u32 %v7431_v46, 16  ;;  %v1176_v8 = vshll.u32 %v7431_v46, 16 }
 0x121   : > { %v7531_v39 = vpop.permute.xlu1 %3589  ;;  %v3034_v59 = vsel %vm6524_vm11, %v3032_v42, %v3033_v60  ;;  %v1182_v1 = vshrl.u32 %v7544_v48, 16  ;;  %4658 = vmatpush1.bf16.msra.mxu0 %v5893_v30  ;;  %v5172_v45 = vrot.slane %v1168_v61, 11  ;;  %v1185_v46 = vshll.u32 %v7544_v48, 16 }
 0x122   : > { %5812 = vmatpush1.bf16.msra.mxu1 %v5893_v30  ;;  %3337 = vrot.lane.b32.xlu0 %v5584_v56, %s6015_s4  ;;  %v5723_v40 = vcombine.low %v3031_v52, %v3034_v59  ;;  %v1952_v24 = vsel %vm6252_vm8, %v1950_v3, %v1951_v35  ;;  %v1175_v11 = vrot.slane %v1173_v38, 7  ;;  %v5527_v60 = vrot.slane %v5516_v31, 11  ;;  %v5166_v35 = vld [vmem:[%s6084_s24 + $0x100] sm:$0x8]  ;;  %v7608_v59 = vld [vmem:[%s6084_s24 + $0x108] sm:$0xf] }
 0x123   : > { %4659 = vmatprep.subr.bf16.mxu0 %v6024_v62  ;;  %v5639_v63 = vcombine.low %v1949_v5, %v1952_v24  ;;  %v1184_v7 = vrot.slane %v1182_v1, 7  ;;  %5799 = vmatprep.subr.bf16.mxu1 %v6024_v62  ;;  %v7582_v30 = vsel %vm9006_vm9, %v3840_v25, %v7324_v2  ;;  %v3058_v56 = vrot.slane %v7453_v55, 7  ;;  %v5895_v2 = vld [vmem:[%s8999_s1 + $0x28] sm:$0xff]   ;;  %v2386_v24 = vld [vmem:[%s6084_s24 + $0x20] sm:$0x8] }
 0x124   : > { %v7560_v13 = vpop.permute.xlu0 %3581  ;;  %4342 = vrot.lane.b32.xlu1 %v5723_v40, %s6017_s6  ;;  %v3061_v33 = vrot.slane %v5517_v43, 7  ;;  %v5359_v49 = vrot.slane %v5337_v47, 9  ;;  %v3848_v52 = vsel %vm3838_vm7, %v7520_v12, %v7348_v29  ;;  %v1178_v42 = vor.u32 %v1176_v8, %v1175_v11  ;;  %v5939_v12 = vld [vmem:[%s6084_s24 + $0xd4] sm:$0xf]  ;;  %v2371_v40 = vld [vmem:[%s6084_s24 + $0x24] sm:$0xf] }
 0x125   : > { %v7576_v17 = vpop.permute.xlu1 %3982  ;;  %v1180_v31 = vrot.slane %v1175_v11, 4  ;;  %v1187_v5 = vor.u32 %v1185_v46, %v1184_v7  ;;  %4660 = vmatpush1.bf16.msra.mxu0 %v5894_v16  ;;  %v4444_v55 = vsel %vm3770_vm1, %v7508_v23, %v6958_v22  ;;  %v3059_v25 = vsel %vm6524_vm11, %v5527_v60, %v3058_v56  ;;  %v7626_v60 = vld [vmem:[%s6084_s24 + $0x28] sm:$0xf] }
 0x126   : > { %5813 = vmatpush1.bf16.msra.mxu1 %v5894_v16  ;;  %3631 = vrot.lane.b32.xlu0 %v5639_v63, %s6022_s11  ;;  %v3060_v29 = vrot.slane %v3058_v56, 4  ;;  %v2028_v3 = vrot.slane %v5939_v12, 5  ;;  %v1179_v43 = vsel %vm6119_vm5, %v5172_v45, %v1178_v42  ;;  %v2031_v23 = vrot.slane %v5339_v6, 5  ;;  %v5896_v6 = vld [vmem:[%s8999_s1 + $0x30] sm:$0xff]  }
 0x127   : > { %4661 = vmatprep.subr.bf16.mxu0 %v6024_v62  ;;  %v1188_v22 = vsel %vm6119_vm5, %v1180_v31, %v1187_v5  ;;  %v1256_v38 = vshrl.u32 %v5166_v35, 16  ;;  %5800 = vmatprep.subr.bf16.mxu1 %v6024_v62  ;;  %v7621_v46 = vsel %vm3787_vm2, %v4444_v55, %v7357_v14  ;;  %v1261_v11 = vshrl.u32 %v7481_v4, 16 }
 0x128   : > { %v7601_v61 = vpop.permute.xlu0 %3974  ;;  %v5588_v8 = vcombine.low %v1179_v43, %v1188_v22  ;;  %v3062_v1 = vsel %vm6524_vm11, %v3060_v29, %v3061_v33  ;;  %v2029_v47 = vsel %vm6086_vm3, %v5359_v49, %v2028_v3  ;;  %v2030_v16 = vrot.slane %v2028_v3, 4 }
 0x129   : > { %v5727_v63 = vcombine.low %v3059_v25, %v3062_v1  ;;  %v1264_v7 = vshll.u32 %v7481_v4, 16  ;;  %4662 = vmatpush1.bf16.msra.mxu0 %v5895_v2  ;;  %v7633_v56 = vsel %vm9006_vm9, %v3848_v52, %v7382_v58  ;;  %v1270_v4 = vshrl.u32 %v7608_v59, 16  ;;  %v5349_v58 = vld [vmem:[%s6084_s24 + $0x110] sm:$0xe]  ;;  %v5351_v25 = vld [vmem:[%s6084_s24 + $0x118] sm:$0x1] }
 0x12a   : > { %v7617_v45 = vpop.permute.xlu1 %4308  ;;  %5814 = vmatpush1.bf16.msra.mxu1 %v5895_v2  ;;  %3369 = vrot.lane.b32.xlu1 %v5588_v8, %s6016_s5  ;;  %v2032_v14 = vsel %vm6086_vm3, %v2030_v16, %v2031_v23  ;;  %v1273_v33 = vshll.u32 %v7608_v59, 16  ;;  %v5176_v35 = vrot.slane %v1256_v38, 11  ;;  %v1263_v42 = vrot.slane %v1261_v11, 7  ;;  %v5897_v23 = vld [vmem:[%s8999_s1 + $0x38] sm:$0xff]  }
 0x12b   : > { %4663 = vmatprep.subr.bf16.mxu0 %v6024_v62  ;;  %4350 = vrot.lane.b32.xlu0 %v5727_v63, %s6017_s6  ;;  %v5643_v49 = vcombine.low %v2029_v47, %v2032_v14  ;;  %v2443_v31 = vshrl.u32 %v2386_v24, 16  ;;  %v1272_v52 = vrot.slane %v1270_v4, 7  ;;  %v2448_v5 = vshrl.u32 %v2371_v40, 16  ;;  %v5940_v63 = vld [vmem:[%s6084_s24 + $0x114] sm:$0xf] }
 0x12c   : > { %5801 = vmatprep.subr.bf16.mxu1 %v6024_v62  ;;  %v2451_v2 = vshll.u32 %v2371_v40, 16  ;;  %v2457_v55 = vshrl.u32 %v7626_v60, 16  ;;  %v1266_v12 = vor.u32 %v1264_v7, %v1263_v42  ;;  %v1268_v3 = vrot.slane %v1263_v42, 4  ;;  %v5183_v42 = vld [vmem:[%s6084_s24 + $0xcc] sm:$0x1] }
 0x12d   : > { %v5418_v43 = vrot.slane %v2443_v31, 11  ;;  %v2460_v22 = vshll.u32 %v7626_v60, 16  ;;  %4664 = vmatpush1.bf16.msra.mxu0 %v5896_v6  ;;  %v1275_v38 = vor.u32 %v1273_v33, %v1272_v52  ;;  %v2450_v8 = vrot.slane %v2448_v5, 7  ;;  %v2379_v52 = vld [vmem:[%s6084_s24 + $0x64] sm:$0xf] }
 0x12e   : > { %v7646_v29 = vpop.permute.xlu0 %4300  ;;  %5815 = vmatpush1.bf16.msra.mxu1 %v5896_v6  ;;  %3663 = vrot.lane.b32.xlu1 %v5643_v49, %s6023_s19  ;;  %v2459_v1 = vrot.slane %v2457_v55, 7  ;;  %v5363_v47 = vrot.slane %v5349_v58, 9  ;;  %v7659_v40 = vsel %vm3736_vm15, %v7136_v44, %v7392_v57  ;;  %v1267_v24 = vsel %vm6119_vm5, %v5176_v35, %v1266_v12  ;;  %v5182_v6 = vld [vmem:[%s6084_s24 + $0xc4] sm:$0xe]  ;;  %v2394_v44 = vld [vmem:[%s6084_s24 + $0x60] sm:$0x8] }
 0x12f   : > { %4665 = vmatprep.subr.bf16.mxu0 %v6024_v62  ;;  %v2056_v11 = vrot.slane %v5940_v63, 5  ;;  %v2059_v7 = vrot.slane %v5351_v25, 5  ;;  %5802 = vmatprep.subr.bf16.mxu1 %v6024_v62  ;;  %v1276_v14 = vsel %vm6119_vm5, %v1268_v3, %v1275_v38  ;;  %v2453_v4 = vor.u32 %v2451_v2, %v2450_v8  ;;  %v5898_v5 = vld [vmem:[%s8999_s1 + $0x40] sm:$0xff]  }
 0x130   : > { %v2455_v33 = vrot.slane %v2450_v8, 4  ;;  %v2462_v49 = vor.u32 %v2460_v22, %v2459_v1  ;;  %v5592_v31 = vcombine.low %v1267_v24, %v1276_v14  ;;  %v5196_v12 = vrot.slane %v5182_v6, 9  ;;  %v7684_v22 = vld [vmem:[%s6084_s24 + $0x68] sm:$0xf]  ;;  %v2578_v1 = vld [vmem:[%s6084_s24 + $0x24] sm:$0x8] }
 0x131   : > { %v7654_v16 = vpop.permute.xlu1 %3335  ;;  %v2057_v35 = vsel %vm6086_vm3, %v5363_v47, %v2056_v11  ;;  %v2058_v58 = vrot.slane %v2056_v11, 4  ;;  %4666 = vmatpush1.bf16.msra.mxu0 %v5897_v23  ;;  %v2454_v55 = vsel %vm6119_vm5, %v5418_v43, %v2453_v4  ;;  %v1355_v3 = vrot.slane %v7544_v48, 5  ;;  %v2579_v11 = vld [vmem:[%s6084_s24 + $0x2c] sm:$0x7] }
 0x132   : > { %5816 = vmatpush1.bf16.msra.mxu1 %v5897_v23  ;;  %v2463_v25 = vsel %vm6119_vm5, %v2455_v33, %v2462_v49  ;;  %4667 = vmatprep.subr.bf16.mxu0 %v6024_v62  ;;  %v1358_v38 = vrot.slane %v5183_v42, 5  ;;  %v2531_v8 = vshrl.u32 %v2394_v44, 16  ;;  %v2536_v63 = vshrl.u32 %v2379_v52, 16  ;;  %v5190_v49 = vld [vmem:[%s6084_s24 + $0x104] sm:$0xe]  ;;  %v5900_v42 = vld [vmem:[%s8999_s1 + $0x48] sm:$0xff]  }
 0x133   : > { %v7676_v2 = vpop.permute.xlu0 %3327  ;;  %5803 = vmatprep.subr.bf16.mxu1 %v6024_v62  ;;  %3377 = vrot.lane.b32.xlu0 %v5592_v31, %s6016_s5  ;;  %v5676_v23 = vcombine.low %v2454_v55, %v2463_v25  ;;  %v2060_v43 = vsel %vm6086_vm3, %v2058_v58, %v2059_v7  ;;  %v1356_v48 = vsel %vm6086_vm3, %v5196_v12, %v1355_v3  ;;  %v1357_v24 = vrot.slane %v1355_v3, 4 }
 0x134   : > { %v5647_v47 = vcombine.low %v2057_v35, %v2060_v43  ;;  %v4448_v14 = vsel %vm3770_vm1, %v7550_v18, %v7023_v32  ;;  %v2539_v7 = vshll.u32 %v2379_v52, 16  ;;  %v2545_v4 = vshrl.u32 %v7684_v22, 16  ;;  %v5191_v18 = vld [vmem:[%s6084_s24 + $0x10c] sm:$0x1] }
 0x135   : > { %4080 = vrot.lane.b32.xlu1 %v5676_v23, %s6010_s26  ;;  %v2548_v33 = vshll.u32 %v7684_v22, 16  ;;  %4668 = vmatpush1.bf16.msra.mxu0 %v5898_v5  ;;  %v1359_v44 = vsel %vm6086_vm3, %v1357_v24, %v1358_v38  ;;  %v5422_v31 = vrot.slane %v2531_v8, 11  ;;  %v2538_v35 = vrot.slane %v2536_v63, 7  ;;  %v5400_v38 = vld [vmem:[%s6084_s24 + $0x114] sm:$0xc] }
 0x136   : > { %v7695_v6 = vpop.permute.xlu1 %3629  ;;  %v5426_v32 = vrot.slane %v2578_v1, 11  ;;  %5817 = vmatpush1.bf16.msra.mxu1 %v5898_v5  ;;  %4669 = vmatprep.subr.bf16.mxu0 %v6024_v62  ;;  %v4461_v52 = vsel %vm3787_vm2, %v4448_v14, %v7410_v50  ;;  %v7718_v55 = vsel %vm9004_vm10, %v7633_v56, %v7415_v54  ;;  %v5596_v25 = vcombine.low %v1356_v48, %v1359_v44  ;;  %v5401_v1 = vld [vmem:[%s6084_s24 + $0x11c] sm:$0x3] }
 0x137   : > { %v7711_v58 = vpop.permute.xlu0 %3621  ;;  %3671 = vrot.lane.b32.xlu0 %v5647_v47, %s6023_s19  ;;  %v2547_v12 = vrot.slane %v2545_v4, 7  ;;  %5804 = vmatprep.subr.bf16.mxu1 %v6024_v62  ;;  %v2541_v5 = vor.u32 %v2539_v7, %v2538_v35  ;;  %v2543_v3 = vrot.slane %v2538_v35, 4  ;;  %v2633_v23 = vrot.slane %v7626_v60, 7  ;;  %v5902_v47 = vld [vmem:[%s8999_s1 + $0x50] sm:$0xff]   ;;  %v5210_v4 = vld [vmem:[%s6084_s24 + $0x40] sm:$0xe] }
 0x138   : > { %v2636_v43 = vrot.slane %v2579_v11, 7  ;;  %v5200_v8 = vrot.slane %v5190_v49, 9  ;;  %v1383_v54 = vrot.slane %v7608_v59, 5  ;;  %v1386_v56 = vrot.slane %v5191_v18, 5  ;;  %v5212_v35 = vld [vmem:[%s6084_s24 + $0x48] sm:$0x1] }
 0x139   : > { %3409 = vrot.lane.b32.xlu1 %v5596_v25, %s6017_s6  ;;  %v2550_v50 = vor.u32 %v2548_v33, %v2547_v12  ;;  %4670 = vmatpush1.bf16.msra.mxu0 %v5900_v42  ;;  %v3874_v60 = vsel %vm9004_vm10, %v7582_v30, %v7422_v36  ;;  %v2542_v24 = vsel %vm6119_vm5, %v5422_v31, %v2541_v5  ;;  %v2635_v63 = vrot.slane %v2633_v23, 4  ;;  %v5941_v36 = vld [vmem:[%s6084_s24 + $0x118] sm:$0xf]  ;;  %v7747_v33 = vld [vmem:[%s6084_s24 + $0x44] sm:$0xf] }
 0x13a   : > { %v7730_v48 = vpop.permute.xlu1 %4348  ;;  %v2634_v59 = vsel %vm6524_vm11, %v5426_v32, %v2633_v23  ;;  %5818 = vmatpush1.bf16.msra.mxu1 %v5900_v42  ;;  %4671 = vmatprep.subr.bf16.mxu0 %v6024_v62  ;;  %v1384_v14 = vsel %vm6086_vm3, %v5200_v8, %v1383_v54  ;;  %v1385_v7 = vrot.slane %v1383_v54, 4  ;;  %v2344_v30 = vrot.slane %v5941_v36, 6  ;;  %v2586_v32 = vld [vmem:[%s6084_s24 + $0x64] sm:$0x8]  ;;  %v5903_v23 = vld [vmem:[%s8999_s1 + $0x58] sm:$0xff]  }
 0x13b   : > { %v2551_v11 = vsel %vm6119_vm5, %v2543_v3, %v2550_v50  ;;  %5805 = vmatprep.subr.bf16.mxu1 %v6024_v62  ;;  %v2637_v42 = vsel %vm6524_vm11, %v2635_v63, %v2636_v43  ;;  %v5411_v44 = vrot.slane %v5400_v38, 10  ;;  %v2347_v31 = vrot.slane %v5401_v1, 6  ;;  %v7754_v18 = vpop.permute.xlu0 %4340  ;;  %v2587_v50 = vld [vmem:[%s6084_s24 + $0x6c] sm:$0x7]  ;;  %v5942_v8 = vld [vmem:[%s6084_s24 + $0xd8] sm:$0xf] }
 0x13c   : > { %v5680_v49 = vcombine.low %v2542_v24, %v2551_v11  ;;  %v4477_v25 = vsel %vm3804_vm4, %v4461_v52, %v7436_v20  ;;  %v5684_v12 = vcombine.low %v2634_v59, %v2637_v42  ;;  %v1387_v5 = vsel %vm6086_vm3, %v1385_v7, %v1386_v56  ;;  %v5392_v20 = vld [vmem:[%s6084_s24 + $0xd4] sm:$0xc]  ;;  %v5393_v63 = vld [vmem:[%s6084_s24 + $0xdc] sm:$0x3] }
 0x13d   : > { %v2346_v3 = vrot.slane %v2344_v30, 4  ;;  %4672 = vmatpush1.bf16.msra.mxu0 %v5902_v47  ;;  %v7766_v43 = vsel %vm3804_vm4, %v7621_v46, %v7464_v9  ;;  %vm9005_vm10 = vcmask 850944   ;;  %v5600_v38 = vcombine.low %v1384_v14, %v1387_v5  ;;  %v5222_v14 = vld [vmem:[%s6084_s24 + $0x80] sm:$0xe] }
 0x13e   : > { %4088 = vrot.lane.b32.xlu0 %v5680_v49, %s6010_s26  ;;  %v5230_v52 = vrot.slane %v5210_v4, 9  ;;  %5819 = vmatpush1.bf16.msra.mxu1 %v5902_v47  ;;  %v2316_v54 = vrot.slane %v5942_v8, 6  ;;  %v1463_v56 = vrot.slane %v7747_v33, 5  ;;  %v1466_v1 = vrot.slane %v5212_v35, 5  ;;  %v5904_v4 = vld [vmem:[%s8999_s1 + $0x60] sm:$0xff]  }
 0x13f   : > { %4120 = vrot.lane.b32.xlu1 %v5684_v12, %s6009_s25  ;;  %v5430_v9 = vrot.slane %v2586_v32, 11  ;;  %4673 = vmatprep.subr.bf16.mxu0 %v6024_v62  ;;  %v7780_v24 = vsel %vm3753_vm0, %v7659_v40, %v7483_v26  ;;  %v7784_v47 = vsel %vm6252_vm8, %v5411_v44, %v2344_v30  ;;  %v7788_v59 = vsel %vm6252_vm8, %v2346_v3, %v2347_v31  ;;  %v7797_v30 = vld [vmem:[%s6084_s24 + $0x84] sm:$0xf]  ;;  %v5224_v31 = vld [vmem:[%s6084_s24 + $0x88] sm:$0x1] }
 0x140   : > { %v2661_v11 = vrot.slane %v7684_v22, 7  ;;  %5806 = vmatprep.subr.bf16.mxu1 %v6024_v62  ;;  %v5407_v7 = vrot.slane %v5392_v20, 10  ;;  %v1464_v26 = vsel %vm6086_vm3, %v5230_v52, %v1463_v56  ;;  %v1465_v40 = vrot.slane %v1463_v56, 4  ;;  %v5240_v12 = vld [vmem:[%s6084_s24 + $0x40] sm:$0x8] }
 0x141   : > { %v7775_v46 = vpop.permute.xlu1 %3375  ;;  %v2664_v36 = vrot.slane %v2587_v50, 7  ;;  %4674 = vmatpush1.bf16.msra.mxu0 %v5903_v23  ;;  %v7805_v22 = vsel %vm9005_vm10, %v7718_v55, %v7531_v39  ;;  %v7809_v49 = vsel %vm9005_vm10, %v3874_v60, %v7560_v13  ;;  %v5663_v32 = vcombine.low %v7784_v47, %v7788_v59  ;;  %v5434_v60 = vld [vmem:[%s6084_s24 + $0x90] sm:$0xf]  ;;  %v5241_v20 = vld [vmem:[%s6084_s24 + $0x48] sm:$0xf] }
 0x142   : > { %3417 = vrot.lane.b32.xlu0 %v5600_v38, %s6017_s6  ;;  %v2662_v42 = vsel %vm6524_vm11, %v5430_v9, %v2661_v11  ;;  %v2663_v44 = vrot.slane %v2661_v11, 4  ;;  %5820 = vmatpush1.bf16.msra.mxu1 %v5903_v23  ;;  %v2318_v39 = vrot.slane %v2316_v54, 4  ;;  %v2319_v55 = vrot.slane %v5393_v63, 6  ;;  %v7841_v9 = vld [vmem:[%s6084_s24 + $0x94] sm:$0xf] }
 0x143   : > { %v7815_v35 = vpop.permute.xlu0 %3367  ;;  %v1467_v13 = vsel %vm6086_vm3, %v1465_v40, %v1466_v1  ;;  %4675 = vmatprep.subr.bf16.mxu0 %v6024_v62  ;;  %v5234_v23 = vrot.slane %v5222_v14, 9  ;;  %v1491_v38 = vrot.slane %v7797_v30, 5  ;;  %5807 = vmatprep.subr.bf16.mxu1 %v6024_v62  ;;  %v7831_v52 = vsel %vm6252_vm8, %v5407_v7, %v2316_v54  ;;  %v5438_v7 = vld [vmem:[%s6084_s24 + $0xd0] sm:$0xf] }
 0x144   : > { %v5604_v5 = vcombine.low %v1464_v26, %v1467_v13  ;;  %v2665_v3 = vsel %vm6524_vm11, %v2663_v44, %v2664_v36  ;;  %v7835_v8 = vsel %vm3821_vm6, %v4477_v25, %v7617_v45  ;;  %v1494_v56 = vrot.slane %v5224_v31, 5  ;;  %v5264_v45 = vld [vmem:[%s6084_s24 + $0x44] sm:$0xc] }
 0x145   : > { %v5688_v50 = vcombine.low %v2662_v42, %v2665_v3  ;;  %4676 = vmatpush1.bf16.msra.mxu0 %v5904_v4  ;;  %v5692_v63 = vcombine.low %v5434_v60, %v7841_v9  ;;  %v1492_v54 = vsel %vm6086_vm3, %v5234_v23, %v1491_v38  ;;  %v1493_v11 = vrot.slane %v1491_v38, 4  ;;  %v5265_v42 = vld [vmem:[%s6084_s24 + $0x4c] sm:$0x3]  ;;  %v5248_v60 = vld [vmem:[%s6084_s24 + $0x80] sm:$0x8] }
 0x146   : > { %v7837_v1 = vpop.permute.xlu1 %3669  ;;  %3449 = vrot.lane.b32.xlu1 %v5604_v5, %s6017_s6  ;;  %v1564_v14 = vshrl.u32 %v5240_v12, 16  ;;  %5821 = vmatpush1.bf16.msra.mxu1 %v5904_v4  ;;  %v1569_v25 = vshrl.u32 %v7747_v33, 16  ;;  %v1572_v26 = vshll.u32 %v7747_v33, 16  ;;  %v1578_v40 = vshrl.u32 %v5241_v20, 16  ;;  %v7867_v23 = vld [vmem:[%s6084_s24 + $0xd4] sm:$0xf] }
 0x147   : > { %4128 = vrot.lane.b32.xlu0 %v5688_v50, %s6009_s25  ;;  %v1581_v36 = vshll.u32 %v5241_v20, 16  ;;  %4677 = vmatprep.subr.bf16.mxu0 %v6024_v62  ;;  %v7855_v44 = vsel %vm6252_vm8, %v2318_v39, %v2319_v55  ;;  %v4485_v4 = vsel %vm3821_vm6, %v7766_v43, %v7646_v29  ;;  %v1495_v31 = vsel %vm6086_vm3, %v1493_v11, %v1494_v56  ;;  %v5249_v38 = vld [vmem:[%s6084_s24 + $0x88] sm:$0xf] }
 0x148   : > { %v5254_v13 = vrot.slane %v1564_v14, 11  ;;  %5808 = vmatprep.subr.bf16.mxu1 %v6024_v62  ;;  %v7864_v33 = vpop.permute.xlu0 %3661  ;;  %v5608_v12 = vcombine.low %v1492_v54, %v1495_v31  ;;  %v1571_v5 = vrot.slane %v1569_v25, 7  ;;  %v1580_v3 = vrot.slane %v1578_v40, 7  ;;  %v5272_v31 = vld [vmem:[%s6084_s24 + $0x84] sm:$0xc] }
 0x149   : > { %v5696_v39 = vcombine.low %v5438_v7, %v7867_v23  ;;  %vm3906_vm10 = vcmask 916480   ;;  %v5278_v29 = vrot.slane %v5264_v45, 10  ;;  %v1751_v43 = vrot.slane %v5241_v20, 6  ;;  %v5444_v45 = vld [vmem:[%s6084_s24 + $0x94] sm:$0x8] }
 0x14a   : > { %4168 = vrot.lane.b32.xlu1 %v5692_v63, %s6011_s27  ;;  %v1754_v55 = vrot.slane %v5265_v42, 6  ;;  %v1574_v62 = vor.u32 %v1572_v26, %v1571_v5  ;;  %v1576_v50 = vrot.slane %v1571_v5, 4  ;;  %v1583_v56 = vor.u32 %v1581_v36, %v1580_v3  ;;  %v5445_v42 = vld [vmem:[%s6084_s24 + $0x9c] sm:$0x7] }
 0x14b   : > { %3457 = vrot.lane.b32.xlu0 %v5608_v12, %s6017_s6  ;;  %v1652_v54 = vshrl.u32 %v5248_v60, 16  ;;  %v1752_v14 = vsel %vm6252_vm8, %v5278_v29, %v1751_v43  ;;  %v1753_v63 = vrot.slane %v1751_v43, 4  ;;  %v1657_v7 = vshrl.u32 %v7797_v30, 16 }
 0x14c   : > { %v1660_v20 = vshll.u32 %v7797_v30, 16  ;;  %v1575_v25 = vsel %vm6119_vm5, %v5254_v13, %v1574_v62  ;;  %v1584_v26 = vsel %vm6119_vm5, %v1576_v50, %v1583_v56  ;;  %v1666_v36 = vshrl.u32 %v5249_v38, 16  ;;  %v5273_v50 = vld [vmem:[%s6084_s24 + $0x8c] sm:$0x3] }
 0x14d   : > { %v7873_v11 = vpop.permute.xlu1 %4086  ;;  %v5258_v40 = vrot.slane %v1652_v54, 11  ;;  %v5612_v60 = vcombine.low %v1575_v25, %v1584_v26  ;;  %v1755_v12 = vsel %vm6252_vm8, %v1753_v63, %v1754_v55  ;;  %v1659_v5 = vrot.slane %v1657_v7, 7 }
 0x14e   : > { %v1669_v3 = vshll.u32 %v5249_v38, 16  ;;  %v5620_v30 = vcombine.low %v1752_v14, %v1755_v12  ;;  %v1668_v13 = vrot.slane %v1666_v36, 7  ;;  %v5458_v43 = vrot.slane %v5444_v45, 11 }
 0x14f   : > { %4176 = vrot.lane.b32.xlu0 %v5696_v39, %s6011_s27  ;;  %v2729_v62 = vrot.slane %v7337_v41, 7  ;;  %3489 = vrot.lane.b32.xlu1 %v5612_v60, %s6018_s7  ;;  %v1662_v54 = vor.u32 %v1660_v20, %v1659_v5  ;;  %v1664_v25 = vrot.slane %v1659_v5, 4  ;;  %v2732_v55 = vrot.slane %v5445_v42, 7  ;;  %v5086_v42 = vld [vmem:[%s6084_s24 + $0xe0] sm:$0x8] }
 0x150   : > { %v7888_v29 = vpop.permute.xlu0 %4078  ;;  %v5282_v63 = vrot.slane %v5272_v31, 10  ;;  %v1671_v7 = vor.u32 %v1669_v3, %v1668_v13  ;;  %v1779_v45 = vrot.slane %v5249_v38, 6  ;;  %v1782_v26 = vrot.slane %v5273_v50, 6  ;;  %v5453_v13 = vld [vmem:[%s6084_s24 + $0xdc] sm:$0x7] }
 0x151   : > { %v7893_v56 = vpop.permute.xlu1 %3415  ;;  %v2730_v39 = vsel %vm6524_vm11, %v5458_v43, %v2729_v62  ;;  %v2731_v14 = vrot.slane %v2729_v62, 4  ;;  %v1663_v41 = vsel %vm6119_vm5, %v5258_v40, %v1662_v54  ;;  %v4501_v36 = vsel %vm3838_vm7, %v4485_v4, %v7754_v18  ;;  %v5452_v18 = vld [vmem:[%s6084_s24 + $0xd4] sm:$0x8]  ;;  %v7934_v54 = vld [vmem:[%s6084_s24 + $0xe4] sm:$0xf] }
 0x152   : > { %v4509_v20 = vsel %vm3838_vm7, %v7835_v8, %v7730_v48  ;;  %v1672_v60 = vsel %vm6119_vm5, %v1664_v25, %v1671_v7  ;;  %v1780_v40 = vsel %vm6252_vm8, %v5282_v63, %v1779_v45  ;;  %v1781_v12 = vrot.slane %v1779_v45, 4  ;;  %5745 = vmatprep.mubr.msk.bf16.mxu0 %vm9006_vm9, %v4501_v36  ;;  %v7917_v48 = vld [vmem:[%s6084_s24 + $0xe8] sm:$0xf]  ;;  %v5289_v8 = vld [vmem:[%s6084_s24 + $0x98] sm:$0x1] }
 0x153   : > { %v2733_v38 = vsel %vm6524_vm11, %v2731_v14, %v2732_v55  ;;  %5749 = vmatprep.mubr.msk.bf16.mxu1 %vm9006_vm9, %v4509_v20  ;;  %v7925_v4 = vsel %vm3906_vm10, %v7805_v22, %v7695_v6  ;;  %3529 = vrot.lane.b32.xlu1 %v5620_v30, %s6019_s8  ;;  %v5616_v5 = vcombine.low %v1663_v41, %v1672_v60  ;;  %v882_v50 = vshrl.u32 %v5086_v42, 16  ;;  %v5296_v22 = vld [vmem:[%s6084_s24 + $0xd0] sm:$0xe]  ;;  %v5297_v42 = vld [vmem:[%s6084_s24 + $0xd8] sm:$0x1] }
 0x154   : > { %v7906_v31 = vpop.permute.xlu0 %3407  ;;  %v5700_v3 = vcombine.low %v2730_v39, %v2733_v38  ;;  %v1783_v62 = vsel %vm6252_vm8, %v1781_v12, %v1782_v26  ;;  %v887_v25 = vshrl.u32 %v7934_v54, 16  ;;  %v890_v6 = vshll.u32 %v7934_v54, 16  ;;  %v5905_v39 = vld [vmem:[%s8999_s1 + $0x68] ss:$0 sps:$4 sm:$0xff]   ;;  %v7948_v26 = vld [vmem:[%s6084_s24 + $0xd8] sm:$0xf] }
 0x155   : > { %3497 = vrot.lane.b32.xlu0 %v5616_v5, %s6018_s7  ;;  %v5624_v30 = vcombine.low %v1780_v40, %v1783_v62  ;;  %v896_v55 = vshrl.u32 %v7917_v48, 16  ;;  %v899_v63 = vshll.u32 %v7917_v48, 16  ;;  %v5462_v7 = vrot.slane %v5452_v18, 11  ;;  %v5288_v12 = vld [vmem:[%s6084_s24 + $0x90] sm:$0xe] }
 0x156   : > { %v7929_v43 = vpop.permute.xlu1 %4126  ;;  %v5095_v45 = vrot.slane %v882_v50, 11  ;;  %v889_v41 = vrot.slane %v887_v25, 7  ;;  %v2757_v36 = vrot.slane %v7948_v26, 7  ;;  %v2760_v20 = vrot.slane %v5453_v13, 7 }
 0x157   : > { %4208 = vrot.lane.b32.xlu1 %v5700_v3, %s6013_s29  ;;  %v898_v60 = vrot.slane %v896_v55, 7  ;;  %vm4647_vm9 = vcmask 1043456   ;;  %v5306_v38 = vrot.slane %v5296_v22, 9  ;;  %v1867_v40 = vrot.slane %v7867_v23, 5 }
 0x158   : > { %v7945_v14 = vpop.permute.xlu0 %4118  ;;  %v892_v5 = vor.u32 %v890_v6, %v889_v41  ;;  %v894_v62 = vrot.slane %v889_v41, 4  ;;  %v2758_v50 = vsel %vm6524_vm11, %v5462_v7, %v2757_v36  ;;  %v2759_v25 = vrot.slane %v2757_v36, 4 }
 0x159   : > { %3537 = vrot.lane.b32.xlu0 %v5624_v30, %s6019_s8  ;;  %v901_v13 = vor.u32 %v899_v63, %v898_v60  ;;  %v4649_v3 = vsel %vm4647_vm9, %v5905_v39, 0  ;;  %v1868_v22 = vsel %vm6086_vm3, %v5306_v38, %v1867_v40  ;;  %v1869_v55 = vrot.slane %v1867_v40, 4  ;;  %v2376_v30 = vld [vmem:[%s6084_s24 + $0x50] sm:$0xf] }
 0x15a   : > { %v7955_v18 = vpop.permute.xlu1 %3455  ;;  %v893_v6 = vsel %vm6119_vm5, %v5095_v45, %v892_v5  ;;  %v2761_v41 = vsel %vm6524_vm11, %v2759_v25, %v2760_v20  ;;  %4678 = vmatpush1.bf16.msra.mxu0 %v4649_v3  ;;  %5822 = vmatpush1.bf16.msra.mxu1 %v4649_v3  ;;  %v1870_v7 = vrot.slane %v5297_v42, 5  ;;  %v5302_v36 = vrot.slane %v5288_v12, 9  ;;  %v5947_v5 = vld [vmem:[%s6084_s24 + $0x54] sm:$0xf]  ;;  %v2368_v25 = vld [vmem:[%s6084_s24 + $0x10] sm:$0xf] }
 0x15b   : > { %v902_v63 = vsel %vm6119_vm5, %v894_v62, %v901_v13  ;;  %v5704_v39 = vcombine.low %v2758_v50, %v2761_v41  ;;  %v1839_v60 = vrot.slane %v7841_v9, 5  ;;  %v1842_v38 = vrot.slane %v5289_v8, 5  ;;  %v5478_v13 = vld [vmem:[%s6084_s24 + $0x140] sm:$0xf]  ;;  %v8003_v3 = vld [vmem:[%s6084_s24 + $0x144] sm:$0xf] }
 0x15c   : > { %v7963_v23 = vpop.permute.xlu0 %3447  ;;  %v3908_v45 = vsel %vm3906_vm10, %v7809_v49, %v7711_v58  ;;  %v7978_v20 = vcombine.low %v893_v6, %v902_v63  ;;  %v1871_v42 = vsel %vm6086_vm3, %v1869_v55, %v1870_v7  ;;  %vm3923_vm9 = vcmask 982016   ;;  %v5102_v6 = vld [vmem:[%s6084_s24 + $0xa4] sm:$0xe]  ;;  %v5103_v41 = vld [vmem:[%s6084_s24 + $0xac] sm:$0x1] }
 0x15d   : > { %4216 = vrot.lane.b32.xlu0 %v5704_v39, %s6013_s29  ;;  %v1840_v9 = vsel %vm6086_vm3, %v5302_v36, %v1839_v60  ;;  %v1841_v8 = vrot.slane %v1839_v60, 4  ;;  %v3925_v12 = vsel %vm3923_vm9, %v3908_v45, %v7864_v33  ;;  %v5671_v58 = vcombine.low %v2376_v30, %v5947_v5  ;;  %v5356_v39 = vld [vmem:[%s6084_s24 + $0x134] sm:$0xf] }
 0x15e   : > { %v7973_v40 = vpop.permute.xlu1 %4174  ;;  %v4373_v62 = vsel %vm3677_vm12, %v7576_v17, %v5663_v32  ;;  %3259 = vrot.lane.b32.xlu1 %v7978_v20, %s6012_s28  ;;  %v5632_v50 = vcombine.low %v1868_v22, %v1871_v42  ;;  %4684 = vmatmul.mubr.bf16.vlgmr.msra.gmra.mrb[0].mxu0 %v3925_v12  ;;  %v3937_v33 = vsel %vm3923_vm9, %v7925_v4, %v7837_v1  ;;  %v5470_v1 = vld [vmem:[%s6084_s24 + $0x100] sm:$0xf]  ;;  %v8020_v4 = vld [vmem:[%s6084_s24 + $0x104] sm:$0xf]  ;;  %v5115_v45 = vrot.slane %v5102_v6, 9 }
 0x15f   : > { %v8008_v17 = vsel %vm3736_vm15, %v7132_v37, %v7004_v21  ;;  %v3757_v47 = vsel %vm3753_vm0, %v7217_v53, %v7515_v19  ;;  %v3782_v59 = vsel %vm3770_vm1, %v7780_v24, %v7654_v16  ;;  %v1843_v32 = vsel %vm6086_vm3, %v1841_v8, %v1842_v38  ;;  %4716 = vmatmul.mubr.bf16.vlgmr.msra.gmra.mrb[0].mxu1 %v3937_v33  ;;  %v5110_v22 = vld [vmem:[%s6084_s24 + $0xe4] sm:$0xe]  ;;  %v5111_v24 = vld [vmem:[%s6084_s24 + $0xec] sm:$0x1]  ;;  %v8055_v42 = vld [vmem:[%s6084_s24 + $0xa8] sm:$0xf] }
 0x160   : > { %v7988_v49 = vpop.permute.xlu0 %4166  ;;  %v9030_v37 = vcombine.low %v7831_v52, %v7855_v44  ;;  %v3774_v53 = vsel %vm3770_vm1, %v3757_v47, %v7676_v2  ;;  %v8032_v19 = vsel %vm3787_vm2, %v3782_v59, %v7775_v46  ;;  %v5628_v16 = vcombine.low %v1840_v9, %v1843_v32  ;;  %v5948_v44 = vld [vmem:[%s6084_s24 + $0x14] sm:$0xf]  ;;  %v5380_v12 = vld [vmem:[%s6084_s24 + $0x130] sm:$0x8] }
 0x161   : > { %v8041_v52 = vsel %vm3787_vm2, %v3774_v53, %v7815_v35  ;;  %v5667_v2 = vcombine.low %v2368_v25, %v5948_v44  ;;  %v2943_v46 = vshrl.u32 %v8003_v3, 16  ;;  %v5712_v36 = vcombine.low %v5478_v13, %v8003_v3  ;;  %v5344_v59 = vld [vmem:[%s6084_s24 + $0xf4] sm:$0xf] }
 0x162   : > { %v4361_v55 = vsel %vm3677_vm12, %v7601_v61, %v9030_v37  ;;  %v8037_v7 = vpop.permute.xlu1 %3495  ;;  %v4391_v61 = vsel %vm9008_vm13, %v4373_v62, %v5671_v58  ;;  %3577 = vrot.lane.b32.xlu1 %v5632_v50, %s6020_s9  ;;  %3569 = vrot.lane.b32.xlu0 %v5628_v16, %s6020_s9  ;;  %v5708_v30 = vcombine.low %v5470_v1, %v8020_v4  ;;  %v5119_v63 = vrot.slane %v5110_v22, 9  ;;  %v5381_v50 = vld [vmem:[%s6084_s24 + $0x138] sm:$0xf] }
 0x163   : > { %v994_v35 = vrot.slane %v7917_v48, 5  ;;  %v997_v38 = vrot.slane %v5111_v24, 5  ;;  %v966_v9 = vrot.slane %v8055_v42, 5  ;;  %v969_v8 = vrot.slane %v5103_v41, 5 }
 0x164   : > { %v8052_v60 = vpop.permute.xlu0 %3487  ;;  %v8061_v5 = vsel %vm9007_vm14, %v4391_v61, %v7873_v11  ;;  %v2946_v58 = vshll.u32 %v8003_v3, 16  ;;  %v8068_v33 = vsel %vm9008_vm13, %v4361_v55, %v5667_v2  ;;  %v2855_v25 = vshrl.u32 %v8020_v4, 16  ;;  %v5372_v11 = vld [vmem:[%s6084_s24 + $0xf0] sm:$0x8]  ;;  %v5373_v55 = vld [vmem:[%s6084_s24 + $0xf8] sm:$0xf] }
 0x165   : > { %v995_v48 = vsel %vm6086_vm3, %v5119_v63, %v994_v35  ;;  %v996_v62 = vrot.slane %v994_v35, 4  ;;  %v967_v13 = vsel %vm6086_vm3, %v5115_v45, %v966_v9  ;;  %v968_v47 = vrot.slane %v966_v9, 4  ;;  %v5494_v45 = vld [vmem:[%s6084_s24 + $0x140] sm:$0x8] }
 0x166   : > { %4272 = vrot.lane.b32.xlu1 %v5712_v36, %s6015_s4  ;;  %4264 = vrot.lane.b32.xlu0 %v5708_v30, %s6015_s4  ;;  %v2246_v1 = vshrl.u32 %v5380_v12, 16  ;;  %v2251_v22 = vshrl.u32 %v5356_v39, 16  ;;  %v2254_v37 = vshll.u32 %v5356_v39, 16  ;;  %v2260_v24 = vshrl.u32 %v5381_v50, 16 }
 0x167   : > { %v8075_v32 = vpop.permute.xlu1 %3535  ;;  %v998_v3 = vsel %vm6086_vm3, %v996_v62, %v997_v38  ;;  %v970_v16 = vsel %vm6086_vm3, %v968_v47, %v969_v8  ;;  %v2263_v6 = vshll.u32 %v5381_v50, 16  ;;  %v2158_v2 = vshrl.u32 %v5372_v11, 16  ;;  %v8090_v47 = vld [vmem:[%s6084_s24 + $0x148] sm:$0xf] }
 0x168   : > { %v5577_v53 = vcombine.low %v995_v48, %v998_v3  ;;  %v5573_v41 = vcombine.low %v967_v13, %v970_v16  ;;  %v5389_v61 = vrot.slane %v2246_v1, 11  ;;  %v2253_v44 = vrot.slane %v2251_v22, 7  ;;  %v5486_v22 = vld [vmem:[%s6084_s24 + $0x100] sm:$0x8] }
 0x169   : > { %v8084_v36 = vpop.permute.xlu0 %3527  ;;  %v2262_v30 = vrot.slane %v2260_v24, 7  ;;  %v2163_v63 = vshrl.u32 %v5344_v59, 16  ;;  %v2166_v35 = vshll.u32 %v5344_v59, 16  ;;  %v2172_v38 = vshrl.u32 %v5373_v55, 16 }
 0x16a   : > { %v2945_v39 = vrot.slane %v2943_v46, 7  ;;  %3299 = vrot.lane.b32.xlu1 %v5577_v53, %s6013_s29  ;;  %3291 = vrot.lane.b32.xlu0 %v5573_v41, %s6013_s29  ;;  %v2256_v9 = vor.u32 %v2254_v37, %v2253_v44  ;;  %v2258_v8 = vrot.slane %v2253_v44, 4  ;;  %v2175_v12 = vshll.u32 %v5373_v55, 16  ;;  %v8108_v41 = vld [vmem:[%s6084_s24 + $0x108] sm:$0xf] }
 0x16b   : > { %v2265_v48 = vor.u32 %v2263_v6, %v2262_v30  ;;  %v5385_v62 = vrot.slane %v2158_v2, 11  ;;  %v2165_v50 = vrot.slane %v2163_v63, 7  ;;  %v2174_v13 = vrot.slane %v2172_v38, 7  ;;  %v8119_v63 = vld [vmem:[%s6084_s24 + $0x114] sm:$0xf] }
 0x16c   : > { %v8094_v59 = vrot.slane %v2855_v25, 7  ;;  %v2858_v46 = vshll.u32 %v8020_v4, 16  ;;  %v2257_v3 = vsel %vm6119_vm5, %v5389_v61, %v2256_v9  ;;  %v2938_v1 = vshrl.u32 %v5494_v45, 16  ;;  %v5143_v61 = vld [vmem:[%s6084_s24 + $0x110] sm:$0xc] }
 0x16d   : > { %v8092_v11 = vpop.permute.xlu1 %4214  ;;  %v2266_v37 = vsel %vm6119_vm5, %v2258_v8, %v2265_v48  ;;  %v2168_v55 = vor.u32 %v2166_v35, %v2165_v50  ;;  %v2170_v53 = vrot.slane %v2165_v50, 4  ;;  %v2177_v16 = vor.u32 %v2175_v12, %v2174_v13  ;;  %v5131_v8 = vld [vmem:[%s6084_s24 + $0xd0] sm:$0xc]  ;;  %v8125_v12 = vld [vmem:[%s6084_s24 + $0xd4] sm:$0xf] }
 0x16e   : > { %3593 = vrot.lane.b32.xlu1 %v7326_v10, %s6021_s10  ;;  %3585 = vrot.lane.b32.xlu0 %v6412_v27, %s6021_s10  ;;  %v5657_v4 = vcombine.low %v2257_v3, %v2266_v37  ;;  %v5504_v25 = vrot.slane %v2938_v1, 11  ;;  %v2948_v24 = vor.u32 %v2946_v58, %v2945_v39  ;;  %v2952_v6 = vshrl.u32 %v8090_v47, 16  ;;  %v8111_v44 = vpop.permute.xlu0 %4206  ;;  %v5145_v58 = vld [vmem:[%s6084_s24 + $0x118] sm:$0x3] }
 0x16f   : > { %v2169_v2 = vsel %vm6119_vm5, %v5385_v62, %v2168_v55  ;;  %v2178_v10 = vsel %vm6119_vm5, %v2170_v53, %v2177_v16  ;;  %v2955_v27 = vshll.u32 %v8090_v47, 16  ;;  %v2850_v30 = vshrl.u32 %v5486_v22, 16  ;;  %v5133_v1 = vld [vmem:[%s6084_s24 + $0xd8] sm:$0x3] }
 0x170   : > { %v5653_v35 = vcombine.low %v2169_v2, %v2178_v10  ;;  %v2950_v38 = vrot.slane %v2945_v39, 4  ;;  %v2954_v45 = vrot.slane %v2952_v6, 7  ;;  %v2860_v9 = vor.u32 %v2858_v46, %v8094_v59 }
 0x171   : > { %v4399_v62 = vsel %vm9007_vm14, %v8068_v33, %v7888_v29  ;;  %v5500_v50 = vrot.slane %v2850_v30, 11  ;;  %v2864_v13 = vshrl.u32 %v8108_v41, 16  ;;  %v2867_v3 = vshll.u32 %v8108_v41, 16 }
 0x172   : > { %v8127_v48 = vpop.permute.xlu1 %3567  ;;  %3986 = vrot.lane.b32.xlu1 %v5657_v4, %s6014_s30  ;;  %3978 = vrot.lane.b32.xlu0 %v5653_v35, %s6014_s30  ;;  %v2949_v39 = vsel %vm6119_vm5, %v5504_v25, %v2948_v24  ;;  %v2957_v46 = vor.u32 %v2955_v27, %v2954_v45  ;;  %v2862_v22 = vrot.slane %v8094_v59, 4  ;;  %v5153_v37 = vrot.slane %v5143_v61, 10  ;;  %v5320_v24 = vld [vmem:[%s6084_s24 + $0xd4] sm:$0xc] }
 0x173   : > { %v2861_v29 = vsel %vm6119_vm5, %v5500_v50, %v2860_v9  ;;  %v2866_v33 = vrot.slane %v2864_v13, 7  ;;  %v1102_v55 = vrot.slane %v8119_v63, 6  ;;  %v1105_v53 = vrot.slane %v5145_v58, 6  ;;  %v5321_v58 = vld [vmem:[%s6084_s24 + $0xdc] sm:$0x3] }
 0x174   : > { %v2958_v16 = vsel %vm6119_vm5, %v2950_v38, %v2957_v46  ;;  %v5149_v4 = vrot.slane %v5131_v8, 10  ;;  %v1074_v6 = vrot.slane %v8125_v12, 6  ;;  %v1077_v25 = vrot.slane %v5133_v1, 6  ;;  %v5312_v8 = vld [vmem:[%s6084_s24 + $0x94] sm:$0xc] }
 0x175   : > { %v5720_v61 = vcombine.low %v2949_v39, %v2958_v16  ;;  %v2869_v10 = vor.u32 %v2867_v3, %v2866_v33  ;;  %v1103_v27 = vsel %vm6252_vm8, %v5153_v37, %v1102_v55  ;;  %v1104_v30 = vrot.slane %v1102_v55, 4  ;;  %v5518_v46 = vld [vmem:[%s6084_s24 + $0x144] sm:$0x8] }
 0x176   : > { %v8147_v2 = vpop.permute.xlu0 %3257  ;;  %v8149_v59 = vpop.permute.xlu1 %4262  ;;  %v3816_v35 = vsel %vm3804_vm4, %v8032_v19, %v7893_v56  ;;  %v3808_v38 = vsel %vm3804_vm4, %v8041_v52, %v7906_v31  ;;  %v1075_v45 = vsel %vm6252_vm8, %v5149_v4, %v1074_v6  ;;  %v1076_v9 = vrot.slane %v1074_v6, 4  ;;  %v5313_v19 = vld [vmem:[%s6084_s24 + $0x9c] sm:$0x3]  ;;  %v5950_v4 = vld [vmem:[%s6084_s24 + $0x98] sm:$0xf] }
 0x177   : > { %4312 = vrot.lane.b32.xlu1 %v5720_v61, %s6016_s5  ;;  %v2870_v50 = vsel %vm6119_vm5, %v2862_v22, %v2869_v10  ;;  %v1106_v13 = vsel %vm6252_vm8, %v1104_v30, %v1105_v53  ;;  %v5330_v3 = vrot.slane %v5320_v24, 10  ;;  %v1955_v56 = vrot.slane %v7948_v26, 6  ;;  %v5510_v24 = vld [vmem:[%s6084_s24 + $0x104] sm:$0x8]  ;;  %v5511_v61 = vld [vmem:[%s6084_s24 + $0x10c] sm:$0x7] }
 0x178   : > { %v5716_v31 = vcombine.low %v2861_v29, %v2870_v50  ;;  %v5585_v52 = vcombine.low %v1103_v27, %v1106_v13  ;;  %v1078_v1 = vsel %vm6252_vm8, %v1076_v9, %v1077_v25  ;;  %v1958_v39 = vrot.slane %v5321_v58, 6  ;;  %v5519_v29 = vld [vmem:[%s6084_s24 + $0x14c] sm:$0x7] }
 0x179   : > { %v4423_v22 = vsel %vm3736_vm15, %v8061_v5, %v7929_v43  ;;  %v1956_v26 = vsel %vm6252_vm8, %v5330_v3, %v1955_v56  ;;  %v1957_v33 = vrot.slane %v1955_v56, 4  ;;  %v5326_v55 = vrot.slane %v5312_v8, 10  ;;  %v5168_v8 = vld [vmem:[%s6084_s24 + $0x110] sm:$0x8]  ;;  %v8213_v56 = vld [vmem:[%s6084_s24 + $0x118] sm:$0xf] }
 0x17a   : > { %v8173_v37 = vpop.permute.xlu0 %3575  ;;  %v4415_v53 = vsel %vm3736_vm15, %v4399_v62, %v7945_v14  ;;  %4304 = vrot.lane.b32.xlu0 %v5716_v31, %s6016_s5  ;;  %v5581_v16 = vcombine.low %v1075_v45, %v1078_v1  ;;  %v1927_v6 = vrot.slane %v5950_v4, 6  ;;  %v1930_v25 = vrot.slane %v5313_v19, 6  ;;  %v5160_v1 = vld [vmem:[%s6084_s24 + $0xd0] sm:$0x8] }
 0x17b   : > { %v3833_v43 = vsel %vm3821_vm6, %v3816_v35, %v7955_v18  ;;  %v3825_v5 = vsel %vm3821_vm6, %v3808_v38, %v7963_v23  ;;  %3339 = vrot.lane.b32.xlu1 %v5585_v52, %s6015_s4  ;;  %v1959_v14 = vsel %vm6252_vm8, %v1957_v33, %v1958_v39  ;;  %v5528_v62 = vrot.slane %v5518_v46, 11  ;;  %v8230_v33 = vld [vmem:[%s6084_s24 + $0xd8] sm:$0xf] }
 0x17c   : > { %v8187_v10 = vpop.permute.xlu1 %3289  ;;  %v5640_v27 = vcombine.low %v1956_v26, %v1959_v14  ;;  %v1928_v30 = vsel %vm6252_vm8, %v5326_v55, %v1927_v6  ;;  %v1929_v58 = vrot.slane %v1927_v6, 4  ;;  %v3065_v45 = vrot.slane %v8090_v47, 7 }
 0x17d   : > { %v3068_v18 = vrot.slane %v5519_v29, 7  ;;  %v5524_v35 = vrot.slane %v5510_v24, 11  ;;  %v3037_v23 = vrot.slane %v8108_v41, 7  ;;  %v3040_v38 = vrot.slane %v5511_v61, 7 }
 0x17e   : > { %v8199_v9 = vpop.permute.xlu0 %4270  ;;  %v8205_v50 = vsel %vm3753_vm0, %v4423_v22, %v7973_v40  ;;  %3331 = vrot.lane.b32.xlu0 %v5581_v16, %s6015_s4  ;;  %v1931_v13 = vsel %vm6252_vm8, %v1929_v58, %v1930_v25  ;;  %v3066_v47 = vsel %vm6524_vm11, %v5528_v62, %v3065_v45  ;;  %v3067_v3 = vrot.slane %v3065_v45, 4 }
 0x17f   : > { %v8219_v41 = vsel %vm3753_vm0, %v4415_v53, %v7988_v49  ;;  %3633 = vrot.lane.b32.xlu1 %v5640_v27, %s6022_s11  ;;  %v5636_v40 = vcombine.low %v1928_v30, %v1931_v13  ;;  %v3038_v31 = vsel %vm6524_vm11, %v5524_v35, %v3037_v23  ;;  %v3039_v52 = vrot.slane %v3037_v23, 4  ;;  %v5352_v27 = vld [vmem:[%s6084_s24 + $0x120] sm:$0xe] }
 0x180   : > { %v8215_v19 = vpop.permute.xlu1 %3583  ;;  %v3069_v39 = vsel %vm6524_vm11, %v3067_v3, %v3068_v18  ;;  %v1278_v46 = vshrl.u32 %v5168_v8, 16  ;;  %v1283_v22 = vshrl.u32 %v8119_v63, 16  ;;  %v1286_v26 = vshll.u32 %v8119_v63, 16 }
 0x181   : > { %v5728_v55 = vcombine.low %v3066_v47, %v3069_v39  ;;  %v3041_v29 = vsel %vm6524_vm11, %v3039_v52, %v3040_v38  ;;  %v1292_v53 = vshrl.u32 %v8213_v56, 16  ;;  %v1295_v16 = vshll.u32 %v8213_v56, 16  ;;  %v5354_v47 = vld [vmem:[%s6084_s24 + $0x128] sm:$0x1]  ;;  %v5340_v52 = vld [vmem:[%s6084_s24 + $0xe0] sm:$0xe] }
 0x182   : > { %v8232_v49 = vpop.permute.xlu0 %3297  ;;  %3625 = vrot.lane.b32.xlu0 %v5636_v40, %s6022_s11  ;;  %v5724_v4 = vcombine.low %v3038_v31, %v3041_v29  ;;  %v5177_v6 = vrot.slane %v1278_v46, 11  ;;  %v1285_v25 = vrot.slane %v1283_v22, 7  ;;  %v1190_v24 = vshrl.u32 %v5160_v1, 16  ;;  %v5951_v40 = vld [vmem:[%s6084_s24 + $0x124] sm:$0xf] }
 0x183   : > { %4352 = vrot.lane.b32.xlu1 %v5728_v55, %s6017_s6  ;;  %v1294_v63 = vrot.slane %v1292_v53, 7  ;;  %v1195_v61 = vshrl.u32 %v8125_v12, 16  ;;  %v1198_v14 = vshll.u32 %v8125_v12, 16  ;;  %v1204_v62 = vshrl.u32 %v8230_v33, 16  ;;  %v2381_v53 = vld [vmem:[%s6084_s24 + $0x74] sm:$0xf] }
 0x184   : > { %v3850_v30 = vsel %vm3838_vm7, %v3833_v43, %v8037_v7  ;;  %v1288_v58 = vor.u32 %v1286_v26, %v1285_v25  ;;  %v1290_v45 = vrot.slane %v1285_v25, 4  ;;  %v1207_v18 = vshll.u32 %v8230_v33, 16 }
 0x185   : > { %v8247_v35 = vpop.permute.xlu1 %3976  ;;  %v1297_v38 = vor.u32 %v1295_v16, %v1294_v63  ;;  %v5173_v8 = vrot.slane %v1190_v24, 11  ;;  %v1197_v12 = vrot.slane %v1195_v61, 7  ;;  %v1206_v13 = vrot.slane %v1204_v62, 7  ;;  %v5952_v24 = vld [vmem:[%s6084_s24 + $0xe4] sm:$0xf] }
 0x186   : > { %v8249_v23 = vpop.permute.xlu0 %3591  ;;  %v3842_v3 = vsel %vm3838_vm7, %v3825_v5, %v8052_v60  ;;  %4344 = vrot.lane.b32.xlu0 %v5724_v4, %s6017_s6  ;;  %v1289_v7 = vsel %vm6119_vm5, %v5177_v6, %v1288_v58  ;;  %v5364_v43 = vrot.slane %v5352_v27, 9  ;;  %v2063_v31 = vrot.slane %v5951_v40, 5  ;;  %v5342_v60 = vld [vmem:[%s6084_s24 + $0xe8] sm:$0x1]  ;;  %v2396_v61 = vld [vmem:[%s6084_s24 + $0x70] sm:$0x8] }
 0x187   : > { %v1298_v1 = vsel %vm6119_vm5, %v1290_v45, %v1297_v38  ;;  %v1200_v39 = vor.u32 %v1198_v14, %v1197_v12  ;;  %v1202_v46 = vrot.slane %v1197_v12, 4  ;;  %v1209_v22 = vor.u32 %v1207_v18, %v1206_v13  ;;  %v8274_v14 = vld [vmem:[%s6084_s24 + $0x78] sm:$0xf]  ;;  %v2373_v38 = vld [vmem:[%s6084_s24 + $0x34] sm:$0xf] }
 0x188   : > { %v5593_v5 = vcombine.low %v1289_v7, %v1298_v1  ;;  %v2064_v26 = vsel %vm6086_vm3, %v5364_v43, %v2063_v31  ;;  %v2065_v55 = vrot.slane %v2063_v31, 4  ;;  %v2066_v29 = vrot.slane %v5354_v47, 5  ;;  %v8296_v31 = vld [vmem:[%s6084_s24 + $0x38] sm:$0xf] }
 0x189   : > { %v8265_v16 = vpop.permute.xlu1 %4302  ;;  %v1201_v4 = vsel %vm6119_vm5, %v5173_v8, %v1200_v39  ;;  %v1210_v6 = vsel %vm6119_vm5, %v1202_v46, %v1209_v22  ;;  %v5360_v25 = vrot.slane %v5340_v52, 9  ;;  %v2035_v63 = vrot.slane %v5952_v24, 5  ;;  %v2388_v8 = vld [vmem:[%s6084_s24 + $0x30] sm:$0x8] }
 0x18a   : > { %v8276_v62 = vpop.permute.xlu0 %3984  ;;  %vm9031_vm14 = vcmask 719872   ;;  %3379 = vrot.lane.b32.xlu1 %v5593_v5, %s6016_s5  ;;  %v5589_v58 = vcombine.low %v1201_v4, %v1210_v6  ;;  %v2067_v45 = vsel %vm6086_vm3, %v2065_v55, %v2066_v29  ;;  %v2038_v18 = vrot.slane %v5342_v60, 5  ;;  %v5192_v4 = vld [vmem:[%s6084_s24 + $0x114] sm:$0xe] }
 0x18b   : > { %v8280_v27 = vsel %vm9031_vm14, %v3850_v30, %v8075_v32  ;;  %vm9032_vm13 = vmmov %vm9031_vm14  ;;  %v5648_v13 = vcombine.low %v2064_v26, %v2067_v45  ;;  %v2036_v47 = vsel %vm6086_vm3, %v5360_v25, %v2035_v63  ;;  %v2037_v32 = vrot.slane %v2035_v63, 4 }
 0x18c   : > { %v8289_v12 = vsel %vm9032_vm13, %v3842_v3, %v8084_v36  ;;  %3371 = vrot.lane.b32.xlu0 %v5589_v58, %s6016_s5  ;;  %v2553_v30 = vshrl.u32 %v2396_v61, 16  ;;  %v2558_v7 = vshrl.u32 %v2381_v53, 16  ;;  %v2561_v43 = vshll.u32 %v2381_v53, 16  ;;  %v5193_v58 = vld [vmem:[%s6084_s24 + $0x11c] sm:$0x1] }
 0x18d   : > { %v2567_v40 = vshrl.u32 %v8274_v14, 16  ;;  %v8298_v52 = vpop.permute.xlu1 %3329  ;;  %v2039_v36 = vsel %vm6086_vm3, %v2037_v32, %v2038_v18  ;;  %v2570_v3 = vshll.u32 %v8274_v14, 16  ;;  %v2465_v1 = vshrl.u32 %v2388_v8, 16  ;;  %v5185_v32 = vld [vmem:[%s6084_s24 + $0xdc] sm:$0x1] }
 0x18e   : > { %v2470_v39 = vshrl.u32 %v2373_v38, 16  ;;  %3673 = vrot.lane.b32.xlu1 %v5648_v13, %s6023_s19  ;;  %v5644_v46 = vcombine.low %v2036_v47, %v2039_v36  ;;  %v5423_v22 = vrot.slane %v2553_v30, 11  ;;  %v2560_v60 = vrot.slane %v2558_v7, 7  ;;  %v5184_v47 = vld [vmem:[%s6084_s24 + $0xd4] sm:$0xe] }
 0x18f   : > { %v2569_v5 = vrot.slane %v2567_v40, 7  ;;  %v5419_v26 = vrot.slane %v2465_v1, 11  ;;  %v2473_v29 = vshll.u32 %v2373_v38, 16  ;;  %v2479_v53 = vshrl.u32 %v8296_v31, 16  ;;  %v5394_v1 = vld [vmem:[%s6084_s24 + $0xe4] sm:$0xc] }
 0x190   : > { %v2472_v55 = vrot.slane %v2470_v39, 7  ;;  %v8306_v6 = vpop.permute.xlu0 %4310  ;;  %3665 = vrot.lane.b32.xlu0 %v5644_v46, %s6023_s19  ;;  %v2563_v25 = vor.u32 %v2561_v43, %v2560_v60  ;;  %v2565_v24 = vrot.slane %v2560_v60, 4  ;;  %v2482_v61 = vshll.u32 %v8296_v31, 16  ;;  %v5395_v39 = vld [vmem:[%s6084_s24 + $0xec] sm:$0x3] }
 0x191   : > { %v2572_v63 = vor.u32 %v2570_v3, %v2569_v5  ;;  %v8311_v45 = vpop.permute.xlu1 %3623  ;;  %v4449_v18 = vsel %vm3770_vm1, %v8205_v50, %v7392_v57  ;;  %v2481_v13 = vrot.slane %v2479_v53, 7  ;;  %v4445_v30 = vsel %vm3770_vm1, %v8219_v41, %v6948_v51  ;;  %v2588_v5 = vld [vmem:[%s6084_s24 + $0x74] sm:$0x8] }
 0x192   : > { %v2475_v38 = vor.u32 %v2473_v29, %v2472_v55  ;;  %v2477_v8 = vrot.slane %v2472_v55, 4  ;;  %v2564_v7 = vsel %vm6119_vm5, %v5423_v22, %v2563_v25  ;;  %v5201_v40 = vrot.slane %v5192_v4, 9 }
 0x193   : > { %v2573_v43 = vsel %vm6119_vm5, %v2565_v24, %v2572_v63  ;;  %v2484_v50 = vor.u32 %v2482_v61, %v2481_v13  ;;  %v1390_v3 = vrot.slane %v8213_v56, 5  ;;  %v1393_v51 = vrot.slane %v5193_v58, 5  ;;  %v5953_v24 = vld [vmem:[%s6084_s24 + $0xe8] sm:$0xf]  ;;  %v2580_v61 = vld [vmem:[%s6084_s24 + $0x34] sm:$0x8] }
 0x194   : > { %v5681_v36 = vcombine.low %v2564_v7, %v2573_v43  ;;  %v2476_v57 = vsel %vm6119_vm5, %v5419_v26, %v2475_v38  ;;  %v8330_v46 = vpop.permute.xlu0 %3337  ;;  %v5197_v41 = vrot.slane %v5184_v47, 9  ;;  %v1362_v22 = vrot.slane %v8230_v33, 5  ;;  %v2581_v13 = vld [vmem:[%s6084_s24 + $0x3c] sm:$0x7] }
 0x195   : > { %v1365_v60 = vrot.slane %v5185_v32, 5  ;;  %v4463_v55 = vsel %vm3787_vm2, %v4449_v18, %v8092_v11  ;;  %v2485_v56 = vsel %vm6119_vm5, %v2477_v8, %v2484_v50  ;;  %v1391_v26 = vsel %vm6086_vm3, %v5201_v40, %v1390_v3  ;;  %v2589_v11 = vld [vmem:[%s6084_s24 + $0x7c] sm:$0x7] }
 0x196   : > { %4090 = vrot.lane.b32.xlu1 %v5681_v36, %s6010_s26  ;;  %v1392_v29 = vrot.slane %v1390_v3, 4  ;;  %v8341_v53 = vpop.permute.xlu1 %4342  ;;  %v5677_v4 = vcombine.low %v2476_v57, %v2485_v56  ;;  %v1363_v33 = vsel %vm6086_vm3, %v5197_v41, %v1362_v22  ;;  %v1364_v25 = vrot.slane %v1362_v22, 4  ;;  %v5225_v41 = vld [vmem:[%s6084_s24 + $0x90] sm:$0xe]  ;;  %v8369_v22 = vld [vmem:[%s6084_s24 + $0x94] sm:$0xf] }
 0x197   : > { %v2323_v63 = vrot.slane %v5953_v24, 6  ;;  %v5408_v18 = vrot.slane %v5394_v1, 10  ;;  %v2326_v38 = vrot.slane %v5395_v39, 6  ;;  %v5431_v8 = vrot.slane %v2588_v5, 11 }
 0x198   : > { %v1394_v58 = vsel %vm6086_vm3, %v1392_v29, %v1393_v51  ;;  %v4455_v47 = vsel %vm3787_vm2, %v4445_v30, %v8111_v44  ;;  %4082 = vrot.lane.b32.xlu0 %v5677_v4, %s6010_s26  ;;  %v1366_v7 = vsel %vm6086_vm3, %v1364_v25, %v1365_v60  ;;  %v8356_v40 = vpop.permute.xlu0 %3631  ;;  %v2668_v57 = vrot.slane %v8274_v14, 7  ;;  %v9034_v44 = vld [vmem:[#allocation10_spill] sm:$0xff]  ;;  %v5227_v4 = vld [vmem:[%s6084_s24 + $0x98] sm:$0x1]  ;;  %s4953_s26 = sshll.u32 %s9087_s13, 5 }
 0x199   : > { %v5601_v32 = vcombine.low %v1391_v26, %v1394_v58  ;;  %v2325_v43 = vrot.slane %v2323_v63, 4  ;;  %v5597_v36 = vcombine.low %v1363_v33, %v1366_v7  ;;  %v2671_v50 = vrot.slane %v2589_v11, 7  ;;  %v5213_v33 = vld [vmem:[%s6084_s24 + $0x50] sm:$0xe] }
 0x19a   : > { %v5427_v3 = vrot.slane %v2580_v61, 11  ;;  %vm9033_vm13 = vcmask 785408   ;;  %v3750_v30 = vsel %vm3736_vm15, %v9034_v44, %v8147_v2  ;;  %v2640_v39 = vrot.slane %v8296_v31, 7 }
 0x19b   : > { %v3876_v1 = vsel %vm9033_vm13, %v8289_v12, %v8127_v48  ;;  %3419 = vrot.lane.b32.xlu1 %v5601_v32, %s6017_s6  ;;  %v2643_v51 = vrot.slane %v2581_v13, 7  ;;  %v2324_v14 = vsel %vm6252_vm8, %v5408_v18, %v2323_v63  ;;  %v2327_v48 = vsel %vm6252_vm8, %v2325_v43, %v2326_v38  ;;  %vm9035_vm14 = vmmov %vm9033_vm13  ;;  %v5215_v63 = vld [vmem:[%s6084_s24 + $0x58] sm:$0x1]  ;;  %v5435_v43 = vld [vmem:[%s6084_s24 + $0xa0] sm:$0xf] }
 0x19c   : > { %v2669_v12 = vsel %vm6524_vm11, %v5431_v8, %v2668_v57  ;;  %v2670_v60 = vrot.slane %v2668_v57, 4  ;;  %v8377_v5 = vpop.permute.xlu1 %3369  ;;  %v4471_v31 = vsel %vm3804_vm4, %v4455_v47, %v8149_v59  ;;  %v8384_v56 = vsel %vm9035_vm14, %v8280_v27, %v8173_v37  ;;  %3411 = vrot.lane.b32.xlu0 %v5597_v36, %s6017_s6  ;;  %v8398_v27 = vld [vmem:[%s6084_s24 + $0x54] sm:$0xf]  ;;  %v5439_v47 = vld [vmem:[%s6084_s24 + $0xe0] sm:$0xf] }
 0x19d   : > { %v2641_v26 = vsel %vm6524_vm11, %v5427_v3, %v2640_v39  ;;  %v2642_v29 = vrot.slane %v2640_v39, 4  ;;  %v3759_v25 = vsel %vm3753_vm0, %v8008_v17, %v8187_v10  ;;  %v5235_v24 = vrot.slane %v5225_v41, 9  ;;  %v8405_v38 = vpop.permute.xlu0 %4350 }
 0x19e   : > { %v2672_v59 = vsel %vm6524_vm11, %v2670_v60, %v2671_v50  ;;  %v1498_v37 = vrot.slane %v8369_v22, 5  ;;  %v4479_v11 = vsel %vm3804_vm4, %v4463_v55, %v8199_v9  ;;  %v5660_v61 = vcombine.low %v2324_v14, %v2327_v48  ;;  %v8443_v14 = vld [vmem:[%s6084_s24 + $0xa4] sm:$0xf] }
 0x19f   : > { %v5689_v58 = vcombine.low %v2669_v12, %v2672_v59  ;;  %v2644_v18 = vsel %vm6524_vm11, %v2642_v29, %v2643_v51  ;;  %v1501_v13 = vrot.slane %v5227_v4, 5  ;;  %vm9036_vm13 = vcmask 850944   ;;  %v5251_v51 = vld [vmem:[%s6084_s24 + $0x98] sm:$0xf] }
 0x1a0   : > { %v5685_v17 = vcombine.low %v2641_v26, %v2644_v18  ;;  %v1499_v10 = vsel %vm6086_vm3, %v5235_v24, %v1498_v37  ;;  %v1500_v8 = vrot.slane %v1498_v37, 4  ;;  %v3893_v32 = vsel %vm9036_vm13, %v3876_v1, %v8215_v19  ;;  %v8415_v36 = vpop.permute.xlu1 %3663  ;;  %v5250_v1 = vld [vmem:[%s6084_s24 + $0x90] sm:$0x8] }
 0x1a1   : > { %4130 = vrot.lane.b32.xlu1 %v5689_v58, %s6009_s25  ;;  %v5231_v9 = vrot.slane %v5213_v33, 9  ;;  %v1470_v55 = vrot.slane %v8398_v27, 5  ;;  %v1473_v7 = vrot.slane %v5215_v63, 5  ;;  %v3767_v57 = vsel %vm3753_vm0, %v3750_v30, %v8232_v49  ;;  %v5274_v63 = vld [vmem:[%s6084_s24 + $0x94] sm:$0xc] }
 0x1a2   : > { %4122 = vrot.lane.b32.xlu0 %v5685_v17, %s6009_s25  ;;  %v4487_v19 = vsel %vm3821_vm6, %v4471_v31, %v8265_v16  ;;  %v1502_v50 = vsel %vm6086_vm3, %v1500_v8, %v1501_v13  ;;  %v8426_v3 = vsel %vm3770_vm1, %v3759_v25, %v8298_v52  ;;  %v8431_v44 = vsel %vm3677_vm12, %v8247_v35, %v5660_v61  ;;  %v5242_v16 = vld [vmem:[%s6084_s24 + $0x50] sm:$0x8]  ;;  %s4951_s25 = sshll.u32 %s5991_s12, 3 }
 0x1a3   : > { %v5609_v39 = vcombine.low %v1499_v10, %v1502_v50  ;;  %v1471_v49 = vsel %vm6086_vm3, %v5231_v9, %v1470_v55  ;;  %v1472_v30 = vrot.slane %v1470_v55, 4  ;;  %v8439_v41 = vsel %vm3821_vm6, %v4479_v11, %v8306_v6  ;;  %p188_p6 = scmp.lt.s32.totalorder %s4951_s25, 15 }
 0x1a4   : > { %v5697_v52 = vcombine.low %v5439_v47, %v7934_v54  ;;  %v5693_v48 = vcombine.low %v5435_v43, %v8443_v14  ;;  %v8448_v35 = vsel %vm3770_vm1, %v3767_v57, %v8330_v46  ;;  %v1674_v60 = vshrl.u32 %v5250_v1, 16  ;;  %v5243_v54 = vld [vmem:[%s6084_s24 + $0x58] sm:$0xf]  ;;  %v5275_v47 = vld [vmem:[%s6084_s24 + $0x9c] sm:$0x3] }
 0x1a5   : > { %3459 = vrot.lane.b32.xlu1 %v5609_v39, %s6017_s6  ;;  %v1474_v12 = vsel %vm6086_vm3, %v1472_v30, %v1473_v7  ;;  %v1679_v6 = vshrl.u32 %v8369_v22, 16  ;;  %v1682_v31 = vshll.u32 %v8369_v22, 16  ;;  %v8456_v26 = vpop.permute.xlu0 %3377  ;;  %v1688_v4 = vshrl.u32 %v5251_v51, 16  ;;  %v5267_v39 = vld [vmem:[%s6084_s24 + $0x5c] sm:$0x3]  ;;  %s9089_s25 = smov (!%p188_p6, %s4951_s25), 15 }
 0x1a6   : > { %v5605_v29 = vcombine.low %v1471_v49, %v1474_v12  ;;  %v1691_v33 = vshll.u32 %v5251_v51, 16  ;;  %v1586_v25 = vshrl.u32 %v5242_v16, 16  ;;  %v5259_v46 = vrot.slane %v1674_v60, 11  ;;  %v5454_v16 = vld [vmem:[%s6084_s24 + $0xe4] sm:$0x8]  ;;  %s4952_s12 = sshll.u32 %s9089_s25, 1 }
 0x1a7   : > { %v1681_v59 = vrot.slane %v1679_v6, 7  ;;  %v1591_v24 = vshrl.u32 %v8398_v27, 16  ;;  %v1594_v37 = vshll.u32 %v8398_v27, 16  ;;  %v8461_v11 = vpop.permute.xlu1 %4080  ;;  %v1690_v22 = vrot.slane %v1688_v4, 7  ;;  %v5266_v27 = vld [vmem:[%s6084_s24 + $0x54] sm:$0xc] }
 0x1a8   : > { %3451 = vrot.lane.b32.xlu0 %v5605_v29, %s6017_s6  ;;  %v5255_v61 = vrot.slane %v1586_v25, 11  ;;  %v1600_v58 = vshrl.u32 %v5243_v54, 16  ;;  %v1603_v18 = vshll.u32 %v5243_v54, 16  ;;  %v4503_v13 = vsel %vm3838_vm7, %v4487_v19, %v8341_v53  ;;  %v5446_v25 = vld [vmem:[%s6084_s24 + $0xa4] sm:$0x8] }
 0x1a9   : > { %4178 = vrot.lane.b32.xlu1 %v5697_v52, %s6011_s27  ;;  %v1684_v17 = vor.u32 %v1682_v31, %v1681_v59  ;;  %v1686_v10 = vrot.slane %v1681_v59, 4  ;;  %v1593_v8 = vrot.slane %v1591_v24, 7  ;;  %v8471_v9 = vsel %vm3906_vm10, %v3893_v32, %v8311_v45  ;;  %v8474_v57 = vpop.permute.xlu0 %3671 }
 0x1aa   : > { %v1693_v55 = vor.u32 %v1691_v33, %v1690_v22  ;;  %v1602_v7 = vrot.slane %v1600_v58, 7  ;;  %v5283_v43 = vrot.slane %v5274_v63, 10  ;;  %vm9037_vm14 = vcmask 719872   ;;  %v5298_v58 = vld [vmem:[%s6084_s24 + $0xe0] sm:$0xe] }
 0x1ab   : > { %5746 = vmatprep.mubr.msk.bf16.mxu0 %vm9037_vm14, %v4503_v13  ;;  %v1685_v50 = vsel %vm6119_vm5, %v5259_v46, %v1684_v17  ;;  %v1596_v1 = vor.u32 %v1594_v37, %v1593_v8  ;;  %v1598_v53 = vrot.slane %v1593_v8, 4  ;;  %v1786_v19 = vrot.slane %v5251_v51, 6  ;;  %v8483_v52 = vpop.permute.xlu1 %3409  ;;  %v5447_v46 = vld [vmem:[%s6084_s24 + $0xac] sm:$0x7]  ;;  %vm9038_vm13 = vmmov %vm9037_vm14  ;;  %v5290_v13 = vld [vmem:[%s6084_s24 + $0xa0] sm:$0xe] }
 0x1ac   : > { %4170 = vrot.lane.b32.xlu0 %v5693_v48, %s6011_s27  ;;  %v1694_v45 = vsel %vm6119_vm5, %v1686_v10, %v1693_v55  ;;  %v1605_v32 = vor.u32 %v1603_v18, %v1602_v7  ;;  %v1789_v49 = vrot.slane %v5275_v47, 6  ;;  %v5279_v30 = vrot.slane %v5266_v27, 10  ;;  %v5455_v48 = vld [vmem:[%s6084_s24 + $0xec] sm:$0x7]  ;;  %v5299_v18 = vld [vmem:[%s6084_s24 + $0xe8] sm:$0x1]  ;;  %s192_s27 = sadd.s32 %s4953_s26, %s4952_s12 }
 0x1ad   : > { %v5617_v12 = vcombine.low %v1685_v50, %v1694_v45  ;;  %v1597_v60 = vsel %vm6119_vm5, %v5255_v61, %v1596_v1  ;;  %v1787_v51 = vsel %vm6252_vm8, %v5283_v43, %v1786_v19  ;;  %v1788_v6 = vrot.slane %v1786_v19, 4  ;;  %v5291_v43 = vld [vmem:[%s6084_s24 + $0xa8] sm:$0x1] }
 0x1ae   : > { %v1606_v31 = vsel %vm6119_vm5, %v1598_v53, %v1605_v32  ;;  %v1758_v29 = vrot.slane %v5243_v54, 6  ;;  %v1761_v4 = vrot.slane %v5267_v39, 6  ;;  %v8495_v33 = vsel %vm3787_vm2, %v8426_v3, %v8377_v5  ;;  %v8508_v3 = vld [vmem:[%s6084_s24 + $0xe8] sm:$0xf]  ;;  %v2370_v39 = vld [vmem:[%s6084_s24 + $0x20] sm:$0xf] }
 0x1af   : > { %3499 = vrot.lane.b32.xlu1 %v5617_v12, %s6018_s7  ;;  %v5613_v59 = vcombine.low %v1597_v60, %v1606_v31  ;;  %v1790_v24 = vsel %vm6252_vm8, %v1788_v6, %v1789_v49  ;;  %v4511_v54 = vsel %vm3838_vm7, %v8439_v41, %v8405_v38  ;;  %v5463_v37 = vrot.slane %v5454_v16, 11  ;;  %v5956_v32 = vld [vmem:[%s6084_s24 + $0xe4] sm:$0xf] }
 0x1b0   : > { %v5625_v63 = vcombine.low %v1787_v51, %v1790_v24  ;;  %v1759_v22 = vsel %vm6252_vm8, %v5279_v30, %v1758_v29  ;;  %v1760_v5 = vrot.slane %v1758_v29, 4  ;;  %v2764_v61 = vrot.slane %v8508_v3, 7  ;;  %5750 = vmatprep.mubr.msk.bf16.mxu1 %vm9038_vm13, %v4511_v54  ;;  %v8514_v17 = vpop.permute.xlu0 %4088  ;;  %v5481_v30 = vld [vmem:[%s6084_s24 + $0x154] sm:$0xf]  ;;  %v5480_v54 = vld [vmem:[%s6084_s24 + $0x150] sm:$0xf] }
 0x1b1   : > { %3491 = vrot.lane.b32.xlu0 %v5613_v59, %s6018_s7  ;;  %v2767_v38 = vrot.slane %v5455_v48, 7  ;;  %v5459_v41 = vrot.slane %v5446_v25, 11  ;;  %v2736_v10 = vrot.slane %v8055_v42, 7  ;;  %v2739_v8 = vrot.slane %v5447_v46, 7  ;;  %v8529_v50 = vpop.permute.xlu1 %4120  ;;  %v5473_v48 = vld [vmem:[%s6084_s24 + $0x114] sm:$0xf] }
 0x1b2   : > { %v1762_v47 = vsel %vm6252_vm8, %v1760_v5, %v1761_v4  ;;  %v2765_v27 = vsel %vm6524_vm11, %v5463_v37, %v2764_v61  ;;  %v2766_v55 = vrot.slane %v2764_v61, 4  ;;  %v8526_v7 = vsel %vm3787_vm2, %v8448_v35, %v8456_v26 }
 0x1b3   : > { %3539 = vrot.lane.b32.xlu1 %v5625_v63, %s6019_s8  ;;  %v5621_v42 = vcombine.low %v1759_v22, %v1762_v47  ;;  %v2737_v1 = vsel %vm6524_vm11, %v5459_v41, %v2736_v10  ;;  %v2738_v53 = vrot.slane %v2736_v10, 4  ;;  %v5307_v19 = vrot.slane %v5298_v58, 9  ;;  %v5472_v47 = vld [vmem:[%s6084_s24 + $0x110] sm:$0xf] }
 0x1b4   : > { %v2768_v45 = vsel %vm6524_vm11, %v2766_v55, %v2767_v38  ;;  %v1874_v49 = vrot.slane %v5956_v32, 5  ;;  %v1877_v35 = vrot.slane %v5299_v18, 5  ;;  %v5303_v26 = vrot.slane %v5290_v13, 9  ;;  %v8539_v16 = vpop.permute.xlu0 %3417  ;;  %v5322_v32 = vld [vmem:[%s6084_s24 + $0xe4] sm:$0xc] }
 0x1b5   : > { %3531 = vrot.lane.b32.xlu0 %v5621_v42, %s6019_s8  ;;  %v5705_v12 = vcombine.low %v2765_v27, %v2768_v45  ;;  %v2740_v60 = vsel %vm6524_vm11, %v2738_v53, %v2739_v8  ;;  %v1846_v51 = vrot.slane %v8443_v14, 5  ;;  %v1849_v6 = vrot.slane %v5291_v43, 5  ;;  %v5957_v14 = vld [vmem:[%s6084_s24 + $0x24] sm:$0xf]  ;;  %v8579_v27 = vld [vmem:[%s6084_s24 + $0x158] sm:$0xf] }
 0x1b6   : > { %v5701_v31 = vcombine.low %v2737_v1, %v2740_v60  ;;  %v1875_v29 = vsel %vm6086_vm3, %v5307_v19, %v1874_v49  ;;  %v1876_v4 = vrot.slane %v1874_v49, 4  ;;  %v3928_v25 = vsel %vm3923_vm9, %v8471_v9, %v8415_v36  ;;  %v8591_v53 = vld [vmem:[%s6084_s24 + $0x118] sm:$0xf] }
 0x1b7   : > { %4218 = vrot.lane.b32.xlu1 %v5705_v12, %s6013_s29  ;;  %v1847_v46 = vsel %vm6086_vm3, %v5303_v26, %v1846_v51  ;;  %v1848_v59 = vrot.slane %v1846_v51, 4  ;;  %4692 = vmatmul.mubr.bf16.gmra.mrb[4].mxu0 %v3928_v25  ;;  %v5668_v24 = vcombine.low %v2370_v39, %v5957_v14  ;;  %v2965_v37 = vshrl.u32 %v5481_v30, 16  ;;  %v5323_v26 = vld [vmem:[%s6084_s24 + $0xec] sm:$0x3] }
 0x1b8   : > { %vm9039_vm14 = vcmask 850944   ;;  %v1878_v36 = vsel %vm6086_vm3, %v1876_v4, %v1877_v35  ;;  %v2968_v9 = vshll.u32 %v5481_v30, 16  ;;  %v2877_v22 = vshrl.u32 %v5473_v48, 16  ;;  %v8561_v5 = vpop.permute.xlu1 %3449  ;;  %v5315_v14 = vld [vmem:[%s6084_s24 + $0xac] sm:$0x3] }
 0x1b9   : > { %v3901_v63 = vsel %vm9039_vm14, %v8384_v56, %v8249_v23  ;;  %4210 = vrot.lane.b32.xlu0 %v5701_v31, %s6013_s29  ;;  %v5633_v61 = vcombine.low %v1875_v29, %v1878_v36  ;;  %v1850_v58 = vsel %vm6086_vm3, %v1848_v59, %v1849_v6  ;;  %vm9040_vm13 = vcmask 130048   ;;  %v5496_v56 = vld [vmem:[%s6084_s24 + $0x150] sm:$0x8]  ;;  %v8569_v38 = vpop.permute.xlu0 %4128  ;;  %v5314_v6 = vld [vmem:[%s6084_s24 + $0xa4] sm:$0xc]  ;;  %s4954_s29 = sshll.u32 %s192_s27, 2 }
 0x1ba   : > { %v4385_v18 = vsel %vm9040_vm13, %v8431_v44, %v5668_v24  ;;  %v2967_v23 = vrot.slane %v2965_v37, 7  ;;  %v3918_v41 = vsel %vm3906_vm10, %v3901_v63, %v8356_v40  ;;  %v5629_v10 = vcombine.low %v1847_v46, %v1850_v58  ;;  %v5958_v37 = vld [vmem:[%s6084_s24 + $0xa8] sm:$0xf] }
 0x1bb   : > { %vm9041_vm14 = vcmask 195584   ;;  %v5713_v13 = vcombine.low %v5480_v54, %v5481_v30  ;;  %3579 = vrot.lane.b32.xlu1 %v5633_v61, %s6020_s9  ;;  %v2879_v44 = vrot.slane %v2877_v22, 7  ;;  %v2880_v55 = vshll.u32 %v5473_v48, 16 }
 0x1bc   : > { %v8575_v8 = vsel %vm9041_vm14, %v4385_v18, %v8461_v11  ;;  %v3940_v43 = vsel %vm3923_vm9, %v3918_v41, %v8474_v57  ;;  %v8587_v40 = vsel %vm3804_vm4, %v8495_v33, %v8483_v52  ;;  %v5488_v11 = vld [vmem:[%s6084_s24 + $0x110] sm:$0x8]  ;;  %v2960_v42 = vshrl.u32 %v5496_v56, 16  ;;  %v8593_v19 = vpop.permute.xlu1 %4168  ;;  %v5520_v18 = vld [vmem:[%s6084_s24 + $0x154] sm:$0x8] }
 0x1bd   : > { %4724 = vmatmul.mubr.bf16.gmra.mrb[4].mxu1 %v3940_v43  ;;  %v2970_v1 = vor.u32 %v2968_v9, %v2967_v23  ;;  %3571 = vrot.lane.b32.xlu0 %v5629_v10, %s6020_s9  ;;  %v5709_v39 = vcombine.low %v5472_v47, %v5473_v48  ;;  %v2974_v57 = vshrl.u32 %v8579_v27, 16  ;;  %v2977_v45 = vshll.u32 %v8579_v27, 16  ;;  %v8599_v52 = vpop.permute.xlu0 %3457  ;;  %v9042_v47 = vld [vmem:[#allocation2_spill] sm:$0xff] }
 0x1be   : > { %v5505_v33 = vrot.slane %v2960_v42, 11  ;;  %v2972_v49 = vrot.slane %v2967_v23, 4  ;;  %v2872_v35 = vshrl.u32 %v5488_v11, 16  ;;  %v2882_v12 = vor.u32 %v2880_v55, %v2879_v44  ;;  %v5513_v11 = vld [vmem:[%s6084_s24 + $0x11c] sm:$0x7] }
 0x1bf   : > { %4274 = vrot.lane.b32.xlu1 %v5713_v13, %s6015_s4  ;;  %v2976_v30 = vrot.slane %v2974_v57, 7  ;;  %v2886_v60 = vshrl.u32 %v8591_v53, 16  ;;  %v2889_v51 = vshll.u32 %v8591_v53, 16  ;;  %v2884_v29 = vrot.slane %v2879_v44, 4  ;;  %v5521_v13 = vld [vmem:[%s6084_s24 + $0x15c] sm:$0x7] }
 0x1c0   : > { %v2971_v48 = vsel %vm6119_vm5, %v5505_v33, %v2970_v1  ;;  %v5501_v31 = vrot.slane %v2872_v35, 11  ;;  %v5331_v46 = vrot.slane %v5322_v32, 10  ;;  %v1962_v59 = vrot.slane %v8508_v3, 6  ;;  %v5355_v57 = vld [vmem:[%s6084_s24 + $0x130] sm:$0xe] }
 0x1c1   : > { %4266 = vrot.lane.b32.xlu0 %v5709_v39, %s6015_s4  ;;  %v2979_v4 = vor.u32 %v2977_v45, %v2976_v30  ;;  %v2888_v25 = vrot.slane %v2886_v60, 7  ;;  %v1965_v24 = vrot.slane %v5323_v26, 6  ;;  %v5327_v54 = vrot.slane %v5314_v6, 10  ;;  %v8612_v36 = vpop.permute.xlu1 %3489  ;;  %v8614_v9 = vpop.permute.xlu0 %4176  ;;  %v5357_v45 = vld [vmem:[%s6084_s24 + $0x138] sm:$0x1] }
 0x1c2   : > { %v1934_v63 = vrot.slane %v5958_v37, 6  ;;  %v2883_v3 = vsel %vm6119_vm5, %v5501_v31, %v2882_v12  ;;  %v1964_v58 = vrot.slane %v1962_v59, 4  ;;  %v1963_v56 = vsel %vm6252_vm8, %v5331_v46, %v1962_v59  ;;  %v5343_v26 = vld [vmem:[%s6084_s24 + $0xf0] sm:$0xe] }
 0x1c3   : > { %3595 = vrot.lane.b32.xlu1 %v7978_v20, %s6021_s10  ;;  %v2980_v22 = vsel %vm6119_vm5, %v2972_v49, %v2979_v4  ;;  %v2891_v61 = vor.u32 %v2889_v51, %v2888_v25  ;;  %v1937_v10 = vrot.slane %v5315_v14, 6  ;;  %v5512_v20 = vld [vmem:[%s6084_s24 + $0x114] sm:$0x8]  ;;  %v5529_v39 = vrot.slane %v5520_v18, 11 }
 0x1c4   : > { %v5721_v23 = vcombine.low %v2971_v48, %v2980_v22  ;;  %v1936_v41 = vrot.slane %v1934_v63, 4  ;;  %v1966_v55 = vsel %vm6252_vm8, %v1964_v58, %v1965_v24  ;;  %v1935_v43 = vsel %vm6252_vm8, %v5327_v54, %v1934_v63  ;;  %v5960_v54 = vld [vmem:[%s6084_s24 + $0xf4] sm:$0xf] }
 0x1c5   : > { %3587 = vrot.lane.b32.xlu0 %v9042_v47, %s6021_s10  ;;  %v2892_v44 = vsel %vm6119_vm5, %v2884_v29, %v2891_v61  ;;  %v8640_v32 = vpop.permute.xlu1 %3529  ;;  %v5641_v34 = vcombine.low %v1963_v56, %v1966_v55  ;;  %v3072_v33 = vrot.slane %v8579_v27, 7  ;;  %v3075_v49 = vrot.slane %v5521_v13, 7  ;;  %v5959_v29 = vld [vmem:[%s6084_s24 + $0x134] sm:$0xf]  ;;  %v5345_v27 = vld [vmem:[%s6084_s24 + $0xf8] sm:$0x1]  ;;  %vm9047_vm5 = vmmov %vm9041_vm14 }
 0x1c6   : > { %v5717_v42 = vcombine.low %v2883_v3, %v2892_v44  ;;  %v1938_v1 = vsel %vm6252_vm8, %v1936_v41, %v1937_v10  ;;  %v5525_v35 = vrot.slane %v5512_v20, 11  ;;  %v3044_v12 = vrot.slane %v8591_v53, 7  ;;  %vm9052_vm14 = vmmov %vm9047_vm5 }
 0x1c7   : > { %4314 = vrot.lane.b32.xlu1 %v5721_v23, %s6016_s5  ;;  %v5637_v30 = vcombine.low %v1935_v43, %v1938_v1  ;;  %v3047_v60 = vrot.slane %v5513_v11, 7  ;;  %v8646_v51 = vpop.permute.xlu0 %3497  ;;  %v3073_v6 = vsel %vm6524_vm11, %v5529_v39, %v3072_v33  ;;  %v3074_v48 = vrot.slane %v3072_v33, 4  ;;  %v4981_v1 = vld [vmem:[%s6084_s24 + $0xb8] sm:$0x3]  ;;  %v5961_v39 = vld [vmem:[%s6084_s24 + $0xb4] sm:$0xf] }
 0x1c8   : > { %v5365_v31 = vrot.slane %v5355_v57, 9  ;;  %v2070_v4 = vrot.slane %v5959_v29, 5  ;;  %v3045_v25 = vsel %vm6524_vm11, %v5525_v35, %v3044_v12  ;;  %v3046_v46 = vrot.slane %v3044_v12, 4  ;;  %v5402_v33 = vld [vmem:[%s6084_s24 + $0x124] sm:$0xc] }
 0x1c9   : > { %4306 = vrot.lane.b32.xlu0 %v5717_v42, %s6016_s5  ;;  %v2073_v59 = vrot.slane %v5357_v45, 5  ;;  %v5361_v53 = vrot.slane %v5343_v26, 9  ;;  %v3076_v14 = vsel %vm6524_vm11, %v3074_v48, %v3075_v49  ;;  %v2042_v37 = vrot.slane %v5960_v54, 5  ;;  %v8659_v63 = vpop.permute.xlu1 %4208  ;;  %v4979_v42 = vld [vmem:[%s6084_s24 + $0xb0] sm:$0xc]  ;;  %s8871_s5 = scalar_lea.vmem %s9001_s3, %s4954_s29 }
 0x1ca   : > { %v2072_v24 = vrot.slane %v2070_v4, 4  ;;  %v5729_v22 = vcombine.low %v3073_v6, %v3076_v14  ;;  %v3048_v3 = vsel %vm6524_vm11, %v3046_v46, %v3047_v60  ;;  %v2071_v61 = vsel %vm6086_vm3, %v5365_v31, %v2070_v4  ;;  %v5962_v45 = vld [vmem:[%s6084_s24 + $0x128] sm:$0xf]  ;;  %v5403_v49 = vld [vmem:[%s6084_s24 + $0x12c] sm:$0x3] }
 0x1cb   : > { %3635 = vrot.lane.b32.xlu1 %v5641_v34, %s6022_s11  ;;  %v2045_v58 = vrot.slane %v5345_v27, 5  ;;  %v8665_v18 = vpop.permute.xlu0 %3537  ;;  %v5725_v23 = vcombine.low %v3045_v25, %v3048_v3  ;;  %v2044_v41 = vrot.slane %v2042_v37, 4  ;;  %v2043_v10 = vsel %vm6086_vm3, %v5361_v53, %v2042_v37  ;;  %v5963_v12 = vld [vmem:[%s6084_s24 + $0x74] sm:$0xf]  ;;  %v4969_v31 = vld [vmem:[%s6084_s24 + $0x78] sm:$0x3] }
 0x1cc   : > { %v2074_v56 = vsel %vm6086_vm3, %v2072_v24, %v2073_v59  ;;  %v304_v57 = vrot.slane %v5961_v39, 6  ;;  %v2351_v34 = vrot.slane %v5962_v45, 6  ;;  %v276_v60 = vrot.slane %v5963_v12, 6  ;;  %v9048_v12 = vld [vmem:[#allocation3_spill] sm:$0xff] }
 0x1cd   : > { %3627 = vrot.lane.b32.xlu0 %v5637_v30, %s6022_s11  ;;  %v5649_v15 = vcombine.low %v2071_v61, %v2074_v56  ;;  %v2046_v13 = vsel %vm6086_vm3, %v2044_v41, %v2045_v58  ;;  %v4967_v30 = vld [vmem:[%s6084_s24 + $0x70] sm:$0xc]  ;;  %v4989_v6 = vrot.slane %v4979_v42, 10  ;;  %v307_v48 = vrot.slane %v4981_v1, 6  ;;  %vm9045_vm3 = vmmov %vm9040_vm13 }
 0x1ce   : > { %v5645_v47 = vcombine.low %v2043_v10, %v2046_v13  ;;  %v306_v29 = vrot.slane %v304_v57, 4  ;;  %v5412_v4 = vrot.slane %v5402_v33, 10  ;;  %v2353_v27 = vrot.slane %v2351_v34, 4  ;;  %v2378_v10 = vld [vmem:[%s6084_s24 + $0x60] sm:$0xf]  ;;  %v9043_v1 = vld [vmem:[#allocation4_spill] sm:$0xff]  ;;  %vm9049_vm11 = vmmov %vm9045_vm3 }
 0x1cf   : > { %4354 = vrot.lane.b32.xlu1 %v5729_v22, %s6017_s6  ;;  %v8675_v20 = vpop.permute.xlu0 %4216  ;;  %v2354_v25 = vrot.slane %v5403_v49, 6  ;;  %v4985_v53 = vrot.slane %v4967_v30, 10  ;;  %v278_v14 = vrot.slane %v276_v60, 4  ;;  %v279_v24 = vrot.slane %v4969_v31, 6  ;;  %v9046_v49 = vld [vmem:[#allocation8_spill] sm:$0xff]  ;;  %vm9051_vm13 = vmmov %vm9045_vm3 }
 0x1d0   : > { %v8678_v44 = vpop.permute.xlu1 %3259  ;;  %v305_v54 = vsel %vm6252_vm8, %v4989_v6, %v304_v57  ;;  %v308_v37 = vsel %vm6252_vm8, %v306_v29, %v307_v48  ;;  %v2352_v22 = vsel %vm6252_vm8, %v5412_v4, %v2351_v34  ;;  %v9044_v34 = vld [vmem:[#allocation6_spill] sm:$0xff]  ;;  %v9050_v29 = vld [vmem:[#allocation5_spill] sm:$0xff] }
 0x1d1   : > { %4346 = vrot.lane.b32.xlu0 %v5725_v23, %s6017_s6  ;;  %v2355_v3 = vsel %vm6252_vm8, %v2353_v27, %v2354_v25  ;;  %v277_v58 = vsel %vm6252_vm8, %v4985_v53, %v276_v60  ;;  %v280_v23 = vsel %vm6252_vm8, %v278_v14, %v279_v24  ;;  %v5537_v56 = vcombine.low %v305_v54, %v308_v37  ;;  %v9053_v53 = vld [vmem:[#allocation7_spill] sm:$0xff]  ;;  %v9055_v37 = vld [vmem:[#allocation9_spill] sm:$0xff] }
 0x1d2   : > { %v5664_v41 = vcombine.low %v2352_v22, %v2355_v3  ;;  %v5533_v13 = vcombine.low %v277_v58, %v280_v23 }
 0x1d3   : > { %3675 = vrot.lane.b32.xlu1 %v5649_v15, %s6023_s19  ;;  %v3701_v39 = vsel %vm3677_vm12, %v5537_v56, %v9043_v1 }
 0x1d4   : > { %v8682_v55 = vpop.permute.xlu1 %3577  ;;  %v8684_v0 = vpop.permute.xlu0 %3569  ;;  %v4376_v57 = vsel %vm3677_vm12, %v8276_v62, %v5664_v41  ;;  %v3718_v33 = vsel %vm9045_vm3, %v3701_v39, %v9044_v34  ;;  %v3689_v60 = vsel %vm3677_vm12, %v5533_v13, %v9048_v12  ;;  %vm9054_vm3 = vmmov %vm9047_vm5  ;;  %v3827_v39 = vsel %vm3821_vm6, %v8587_v40, %v8561_v5 }
 0x1d5   : > { %3667 = vrot.lane.b32.xlu0 %v5645_v47, %s6023_s19  ;;  %v5964_v47 = vld [vmem:[%s6084_s24 + $0x64] sm:$0xf]  ;;  %v3735_v30 = vsel %vm9047_vm5, %v3718_v33, %v9046_v49  ;;  %v3710_v4 = vsel %vm9051_vm13, %v3689_v60, %v9050_v29  ;;  %vm9056_vm5 = vcmask 719872  }
 0x1d6   : > { %v5672_v42 = vcombine.low %v2378_v10, %v5964_v47  ;;  %v3752_v48 = vsel %vm3736_vm15, %v3735_v30, %v8678_v44  ;;  %v3727_v14 = vsel %vm9054_vm3, %v3710_v4, %v9053_v53  ;;  %vm9058_vm13 = vmmov %vm9056_vm5  ;;  %v5965_v53 = vld [vmem:[%s6084_s24 + $0x138] sm:$0xf] }
 0x1d7   : > { %v3744_v22 = vsel %vm3736_vm15, %v3727_v14, %v9055_v37  ;;  %vm9060_vm3 = vmmov %vm9056_vm5  ;;  %v2358_v14 = vrot.slane %v5965_v53, 6 }
 0x1d8   : > { %v8686_v43 = vpop.permute.xlu1 %4272  ;;  %v8688_v11 = vpop.permute.xlu0 %4264  ;;  %v4393_v6 = vsel %vm9049_vm11, %v4376_v57, %v5672_v42  ;;  %vm9057_vm11 = vmmov %vm9056_vm5 }
 0x1d9   : > { %v4409_v62 = vsel %vm9052_vm14, %v4393_v6, %v8514_v17  ;;  %vm9059_vm14 = vcmask 785408  }
 0x1da   : > { %v4425_v24 = vsel %vm3736_vm15, %v4409_v62, %v8569_v38 }
 0x1db   : > { %v4441_v3 = vsel %vm3753_vm0, %v4425_v24, %v8614_v9  ;;  %v5404_v24 = vld [vmem:[%s6084_s24 + $0x134] sm:$0xc] }
 0x1dc   : > { %v3300_v35 = vpop.permute.xlu1 %3299  ;;  %v3292_v26 = vpop.permute.xlu0 %3291  ;;  %v4450_v41 = vsel %vm3770_vm1, %v4441_v3, %v8147_v2  ;;  %v5966_v3 = vld [vmem:[%s6084_s24 + $0xf8] sm:$0xf] }
 0x1dd   : > { %v3769_v27 = vsel %vm3753_vm0, %v3752_v48, %v3300_v35  ;;  %v3761_v58 = vsel %vm3753_vm0, %v3744_v22, %v3292_v26  ;;  %v4417_v35 = vsel %vm3736_vm15, %v8575_v8, %v8529_v50  ;;  %v4465_v10 = vsel %vm3787_vm2, %v4450_v41, %v8675_v20 }
 0x1de   : > { %v4433_v38 = vsel %vm3753_vm0, %v4417_v35, %v8593_v19  ;;  %v4481_v9 = vsel %vm3804_vm4, %v4465_v10, %v8686_v43  ;;  %v5397_v35 = vld [vmem:[%s6084_s24 + $0xfc] sm:$0x3] }
 0x1df   : > { %v4446_v13 = vsel %vm3770_vm1, %v4433_v38, %v7004_v21  ;;  %v3818_v21 = vsel %vm3804_vm4, %v8526_v7, %v8539_v16  ;;  %v3844_v7 = vsel %vm3838_vm7, %v3827_v39, %v8612_v36  ;;  %v2360_v38 = vrot.slane %v2358_v14, 4  ;;  %v2372_v39 = vld [vmem:[%s6084_s24 + $0x30] sm:$0xf] }
 0x1e0   : > { %v8699_v46 = vpop.permute.xlu1 %3593  ;;  %v8701_v59 = vpop.permute.xlu0 %3585  ;;  %v4457_v47 = vsel %vm3787_vm2, %v4446_v13, %v8659_v63  ;;  %v3835_v63 = vsel %vm3821_vm6, %v3818_v21, %v8599_v52  ;;  %v2333_v13 = vrot.slane %v5397_v35, 6  ;;  %v2380_v21 = vld [vmem:[%s6084_s24 + $0x70] sm:$0xf] }
 0x1e1   : > { %v4473_v2 = vsel %vm3804_vm4, %v4457_v47, %v8688_v11  ;;  %v3852_v1 = vsel %vm3838_vm7, %v3835_v63, %v8646_v51  ;;  %v3861_v51 = vsel %vm9060_vm3, %v3844_v7, %v8640_v32  ;;  %vm9065_vm3 = vcmask 195584  }
 0x1e2   : > { %v3869_v57 = vsel %vm9058_vm13, %v3852_v1, %v8665_v18 }
 0x1e3   : > { %v3886_v16 = vsel %vm9059_vm14, %v3869_v57, %v8682_v55 }
 0x1e4   : > { %v8711_v61 = vpop.permute.xlu1 %3986  ;;  %v8718_v15 = vpop.permute.xlu0 %3978 }
 0x1e9   : > { %v4313_v45 = vpop.permute.xlu1 %4312 }
 0x1ea   : > { %v4497_v50 = vsel %vm3821_vm6, %v4481_v9, %v4313_v45 }
 0x1ec   : > { %v4305_v31 = vpop.permute.xlu0 %4304 }
 0x1ed   : > { %v3340_v25 = vpop.permute.xlu1 %3339  ;;  %v4489_v20 = vsel %vm3821_vm6, %v4473_v2, %v4305_v31 }
 0x1ee   : > { %v3786_v54 = vsel %vm3770_vm1, %v3769_v27, %v3340_v25 }
 0x1f0   : > { %v3332_v17 = vpop.permute.xlu0 %3331 }
 0x1f1   : > { %v3778_v23 = vsel %vm3770_vm1, %v3761_v58, %v3332_v17  ;;  %v3634_v56 = vpop.permute.xlu1 %3633  ;;  %v2330_v58 = vrot.slane %v5966_v3, 6  ;;  %v5396_v17 = vld [vmem:[%s6084_s24 + $0xf4] sm:$0xc] }
 0x1f2   : > { %v5409_v9 = vrot.slane %v5396_v17, 10 }
 0x1f4   : > { %v3626_v26 = vpop.permute.xlu0 %3625  ;;  %v2331_v2 = vsel %vm6252_vm8, %v5409_v9, %v2330_v58 }
 0x1f5   : > { %v4353_v8 = vpop.permute.xlu1 %4352 }
 0x1f6   : > { %v4513_v19 = vsel %vm3838_vm7, %v4497_v50, %v4353_v8 }
 0x1f7   : > { %5751 = vmatprep.mubr.msk.bf16.mxu1 %vm9056_vm5, %v4513_v19  ;;  %vm9061_vm5 = vcmask 850944  }
 0x1f8   : > { %v4345_v43 = vpop.permute.xlu0 %4344  ;;  %v3903_v34 = vsel %vm9061_vm5, %v3886_v16, %v8699_v46  ;;  %vm9063_vm13 = vmmov %vm9061_vm5 }
 0x1f9   : > { %v4505_v42 = vsel %vm3838_vm7, %v4489_v20, %v4345_v43  ;;  %v3920_v18 = vsel %vm3906_vm10, %v3903_v34, %v3634_v56  ;;  %v5413_v56 = vrot.slane %v5404_v24, 10  ;;  %v8862_v43 = vld [vmem:[%s9000_s2] ss:$0 sm:$0xff] }
 0x1fa   : > { %5747 = vmatprep.mubr.msk.bf16.mxu0 %vm9057_vm11, %v4505_v42  ;;  %vm9062_vm11 = vmmov %vm9059_vm14  ;;  %vm9064_vm14 = vcmask 130048  }
 0x1fb   : > { %v3878_v40 = vsel %vm9062_vm11, %v3861_v51, %v8684_v0  ;;  %v2359_v8 = vsel %vm6252_vm8, %v5413_v56, %v2358_v14  ;;  %vm9066_vm5 = vmmov %vm9064_vm14 }
 0x1fc   : > { %v3380_v11 = vpop.permute.xlu1 %3379  ;;  %v3895_v36 = vsel %vm9063_vm13, %v3878_v40, %v8701_v59 }
 0x1fd   : > { %v8786_v45 = vsel %vm3787_vm2, %v3786_v54, %v3380_v11  ;;  %v3912_v32 = vsel %vm3906_vm10, %v3895_v36, %v3626_v26  ;;  %v5405_v54 = vld [vmem:[%s6084_s24 + $0x13c] sm:$0x3]  ;;  %v2332_v26 = vrot.slane %v2330_v58, 4 }
 0x1fe   : > { %v3372_v52 = vpop.permute.xlu0 %3371  ;;  %v2361_v41 = vrot.slane %v5405_v54, 6 }
 0x1ff   : > { %v8797_v5 = vsel %vm3787_vm2, %v3778_v23, %v3372_v52  ;;  %v2334_v20 = vsel %vm6252_vm8, %v2332_v26, %v2333_v13  ;;  %v5967_v52 = vld [vmem:[%s6084_s24 + $0x74] sm:$0xf] }
 0x200   : > { %v3674_v33 = vpop.permute.xlu1 %3673  ;;  %v2362_v47 = vsel %vm6252_vm8, %v2360_v38, %v2361_v41  ;;  %v5661_v11 = vcombine.low %v2331_v2, %v2334_v20  ;;  %v5673_v28 = vcombine.low %v2380_v21, %v5967_v52  ;;  %vm4812_vm8 = vcmask 191488  }
 0x201   : > { %v3943_v55 = vsel %vm3923_vm9, %v3920_v18, %v3674_v33  ;;  %v5665_v42 = vcombine.low %v2359_v8, %v2362_v47 }
 0x202   : > { %v3666_v49 = vpop.permute.xlu0 %3665  ;;  %4732 = vmatmul.mubr.bf16.gmra.mrb[8].mxu1 %v3943_v55  ;;  %v4367_v54 = vsel %vm3677_vm12, %v8718_v15, %v5661_v11 }
 0x203   : > { %v3931_v46 = vsel %vm3923_vm9, %v3912_v32, %v3666_v49  ;;  %v4379_v18 = vsel %vm3677_vm12, %v8711_v61, %v5665_v42  ;;  %v5968_v32 = vld [vmem:[%s6084_s24 + $0x34] sm:$0xf]  ;;  %vm9067_vm12 = vmmov %vm9065_vm3 }
 0x204   : > { %4700 = vmatmul.mubr.bf16.gmra.mrb[8].mxu0 %v3931_v46  ;;  %v5669_v49 = vcombine.low %v2372_v39, %v5968_v32  ;;  %v4395_v17 = vsel %vm9064_vm14, %v4379_v18, %v5673_v28 }
 0x206   : > { %v4387_v9 = vsel %vm9066_vm5, %v4367_v54, %v5669_v49 }
 0x208   : > { %v8807_v30 = vpop.permute.xlu1 %4090 }
 0x209   : > { %v4411_v56 = vsel %vm9065_vm3, %v4395_v17, %v8807_v30 }
 0x20a   : > { %v8809_v0 = vpop.permute.xlu0 %4082 }
 0x20b   : > { %v4403_v26 = vsel %vm9067_vm12, %v4387_v9, %v8809_v0 }
 0x20d   : > { %v8811_v12 = vpop.permute.xlu1 %3419 }
 0x20e   : > { %v8813_v59 = vpop.permute.xlu0 %3411  ;;  %v3820_v0 = vsel %vm3804_vm4, %v8786_v45, %v8811_v12 }
 0x213   : > { %v8815_v60 = vpop.permute.xlu1 %4130 }
 0x214   : > { %v8817_v6 = vpop.permute.xlu0 %4122  ;;  %v4427_v15 = vsel %vm3736_vm15, %v4411_v56, %v8815_v60 }
 0x215   : > { %v4419_v30 = vsel %vm3736_vm15, %v4403_v26, %v8817_v6  ;;  %vm9068_vm15 = vcmask 719872  }
 0x217   : > { %v8819_v48 = vpop.permute.xlu1 %3459 }
 0x218   : > { %v3837_v42 = vsel %vm3821_vm6, %v3820_v0, %v8819_v48 }
 0x21a   : > { %v8821_v31 = vpop.permute.xlu0 %3451 }
 0x21b   : > { %v8823_v29 = vpop.permute.xlu1 %4178 }
 0x21c   : > { %v4443_v13 = vsel %vm3753_vm0, %v4427_v15, %v8823_v29 }
 0x21d   : > { %v4451_v60 = vsel %vm3770_vm1, %v4443_v13, %v8678_v44  ;;  %v3812_v44 = vsel %vm3804_vm4, %v8797_v5, %v8813_v59 }
 0x21e   : > { %v8825_v4 = vpop.permute.xlu0 %4170  ;;  %v3829_v48 = vsel %vm3821_vm6, %v3812_v44, %v8821_v31 }
 0x21f   : > { %v4435_v47 = vsel %vm3753_vm0, %v4419_v30, %v8825_v4  ;;  %vm9069_vm0 = vmmov %vm9062_vm11 }
 0x220   : > { %v4447_v6 = vsel %vm3770_vm1, %v4435_v47, %v9055_v37  ;;  %vm9070_vm1 = vmmov %vm9068_vm15 }
 0x221   : > { %v8828_v62 = vpop.permute.xlu1 %3499  ;;  %vm9072_vm11 = vmmov %vm9063_vm13 }
 0x222   : > { %v3854_v21 = vsel %vm3838_vm7, %v3837_v42, %v8828_v62  ;;  %vm9074_vm13 = vmmov %vm9070_vm1 }
 0x223   : > { %v8830_v27 = vpop.permute.xlu0 %3491 }
 0x224   : > { %v3846_v5 = vsel %vm3838_vm7, %v3829_v48, %v8830_v27 }
 0x225   : > { %v8832_v25 = vpop.permute.xlu1 %3539 }
 0x226   : > { %v3871_v37 = vsel %vm9068_vm15, %v3854_v21, %v8832_v25 }
 0x227   : > { %v8837_v22 = vpop.permute.xlu0 %3531 }
 0x229   : > { %v8842_v23 = vpop.permute.xlu1 %4218 }
 0x22a   : > { %v4467_v29 = vsel %vm3787_vm2, %v4451_v60, %v8842_v23 }
 0x22b   : > { %v8844_v10 = vpop.permute.xlu0 %4210 }
 0x22c   : > { %v4459_v45 = vsel %vm3787_vm2, %v4447_v6, %v8844_v10  ;;  %vm9071_vm2 = vmmov %vm9070_vm1 }
 0x22d   : > { %v8847_v50 = vpop.permute.xlu1 %3579  ;;  %v3863_v31 = vsel %vm9071_vm2, %v3846_v5, %v8837_v22 }
 0x22e   : > { %v3888_v59 = vsel %vm9069_vm0, %v3871_v37, %v8847_v50 }
 0x22f   : > { %v8853_v19 = vpop.permute.xlu0 %3571 }
 0x231   : > { %v4275_v63 = vpop.permute.xlu1 %4274  ;;  %v4685_v1 = vpop.f32.mrb[0].mxu0 }
 0x232   : > { %v4686_v7 = vadd.f32 %v8862_v43, %v4685_v1  ;;  %v4717_v16 = vpop.f32.mrb[0].mxu1  ;;  %v4687_v34 = vpop.f32.mrb[1].mxu0  ;;  %v4483_v4 = vsel %vm3804_vm4, %v4467_v29, %v4275_v63 }
 0x233   : > { %v4267_v57 = vpop.permute.xlu0 %4266  ;;  %v4718_v51 = vadd.f32 %v8862_v43, %v4717_v16  ;;  %v4719_v40 = vpop.f32.mrb[1].mxu1 }
 0x234   : > { %v5779_v36 = vpack.c.bf16 %v4686_v7, %v4686_v7  ;;  %v4688_v55 = vpop.f32.mrb[2].mxu0  ;;  %v4720_v14 = vpop.f32.mrb[2].mxu1  ;;  %v4475_v63 = vsel %vm3804_vm4, %v4459_v45, %v4267_v57  ;;  %vm9073_vm4 = vmmov %vm9069_vm0 }
 0x235   : > { %v3596_v33 = vpop.permute.xlu1 %3595  ;;  %v5787_v46 = vpack.c.bf16 %v4718_v51, %v4718_v51  ;;  %v4689_v53 = vadd.f32 %v8862_v43, %v4688_v55  ;;  %v4690_v24 = vpop.f32.mrb[3].mxu0  ;;  %v4721_v61 = vadd.f32 %v8862_v43, %v4720_v14  ;;  %v3880_v39 = vsel %vm9073_vm4, %v3863_v31, %v8853_v19 }
 0x236   : > { %4813 = vst.msk [vmem:[%s8871_s5] sm:$0xf] %vm4812_vm8, %v5779_v36  ;;  %v4722_v58 = vpop.f32.mrb[3].mxu1  ;;  %v3905_v25 = vsel %vm9072_vm11, %v3888_v59, %v3596_v33 }
 0x237   : > { %v3588_v3 = vpop.permute.xlu0 %3587  ;;  %4821 = vst.msk [vmem:[%s8871_s5 + $0x20] sm:$0xf] %vm4812_vm8, %v5787_v46  ;;  %v5780_v35 = vpack.c.bf16 %v4689_v53, %v4689_v53  ;;  %v5788_v41 = vpack.c.bf16 %v4721_v61, %v4721_v61 }
 0x239   : > { %v4315_v38 = vpop.permute.xlu1 %4314  ;;  %4814 = vst.msk [vmem:[%s8871_s5 + $0x4] sm:$0xf] %vm4812_vm8, %v5780_v35  ;;  %4822 = vst.msk [vmem:[%s8871_s5 + $0x24] sm:$0xf] %vm4812_vm8, %v5788_v41 }
 0x23a   : > { %v4499_v12 = vsel %vm3821_vm6, %v4483_v4, %v4315_v38 }
 0x23b   : > { %v4307_v8 = vpop.permute.xlu0 %4306 }
 0x23c   : > { %v4491_v62 = vsel %vm3821_vm6, %v4475_v63, %v4307_v8  ;;  %vm9075_vm6 = vmmov %vm9072_vm11 }
 0x23d   : > { %v3636_v2 = vpop.permute.xlu1 %3635  ;;  %v3897_v57 = vsel %vm9075_vm6, %v3880_v39, %v3588_v3 }
 0x23e   : > { %v3922_v27 = vsel %vm3906_vm10, %v3905_v25, %v3636_v2 }
 0x23f   : > { %v3628_v20 = vpop.permute.xlu0 %3627 }
 0x240   : > { %v3914_v16 = vsel %vm3906_vm10, %v3897_v57, %v3628_v20 }
 0x241   : > { %v4355_v23 = vpop.permute.xlu1 %4354 }
 0x242   : > { %v4515_v1 = vsel %vm3838_vm7, %v4499_v12, %v4355_v23 }
 0x243   : > { %v4347_v10 = vpop.permute.xlu0 %4346  ;;  %5752 = vmatprep.mubr.msk.bf16.mxu1 %vm9070_vm1, %v4515_v1 }
 0x244   : > { %v4507_v11 = vsel %vm3838_vm7, %v4491_v62, %v4347_v10 }
 0x245   : > { %5748 = vmatprep.mubr.msk.bf16.mxu0 %vm9074_vm13, %v4507_v11  ;;  %v3676_v50 = vpop.permute.xlu1 %3675 }
 0x246   : > { %v3946_v7 = vsel %vm3923_vm9, %v3922_v27, %v3676_v50 }
 0x247   : > { %v3668_v22 = vpop.permute.xlu0 %3667  ;;  %4740 = vmatmul.mubr.bf16.gmra.mrb[12].mxu1 %v3946_v7 }
 0x248   : > { %v3934_v52 = vsel %vm3923_vm9, %v3914_v16, %v3668_v22 }
 0x249   : > { %4708 = vmatmul.mubr.bf16.gmra.mrb[12].mxu0 %v3934_v52 }
 0x28a   : > { %v4693_v28 = vpop.f32.mrb[4].mxu0 }
 0x28b   : > { %v4694_v19 = vadd.f32 %v8862_v43, %v4693_v28  ;;  %v4695_v51 = vpop.f32.mrb[5].mxu0 }
 0x28c   : > { %v4696_v34 = vpop.f32.mrb[6].mxu0 }
 0x28d   : > { %v5781_v40 = vpack.c.bf16 %v4694_v19, %v4694_v19  ;;  %v4697_v18 = vadd.f32 %v8862_v43, %v4696_v34  ;;  %v4698_v33 = vpop.f32.mrb[7].mxu0 }
 0x28f   : > { %4815 = vst.msk [vmem:[%s8871_s5 + $0x8] sm:$0xf] %vm4812_vm8, %v5781_v40  ;;  %v5782_v36 = vpack.c.bf16 %v4697_v18, %v4697_v18 }
 0x290   : > { %v4725_v55 = vpop.f32.mrb[4].mxu1 }
 0x291   : > { %v4726_v32 = vadd.f32 %v8862_v43, %v4725_v55  ;;  %v4727_v49 = vpop.f32.mrb[5].mxu1  ;;  %4816 = vst.msk [vmem:[%s8871_s5 + $0xc] sm:$0xf] %vm4812_vm8, %v5782_v36 }
 0x292   : > { %v4728_v46 = vpop.f32.mrb[6].mxu1 }
 0x293   : > { %v5789_v53 = vpack.c.bf16 %v4726_v32, %v4726_v32  ;;  %v4729_v14 = vadd.f32 %v8862_v43, %v4728_v46  ;;  %v4730_v24 = vpop.f32.mrb[7].mxu1 }
 0x295   : > { %4823 = vst.msk [vmem:[%s8871_s5 + $0x28] sm:$0xf] %vm4812_vm8, %v5789_v53  ;;  %v5790_v54 = vpack.c.bf16 %v4729_v14, %v4729_v14 }
 0x297   : > { %4824 = vst.msk [vmem:[%s8871_s5 + $0x2c] sm:$0xf] %vm4812_vm8, %v5790_v54 }
 0x2d5   : > { %v4733_v3 = vpop.f32.mrb[8].mxu1 }
 0x2d6   : > { %v4734_v61 = vadd.f32 %v8862_v43, %v4733_v3  ;;  %v4735_v58 = vpop.f32.mrb[9].mxu1 }
 0x2d7   : > { %v4701_v17 = vpop.f32.mrb[8].mxu0  ;;  %v4736_v35 = vpop.f32.mrb[10].mxu1 }
 0x2d8   : > { %v4702_v56 = vadd.f32 %v8862_v43, %v4701_v17  ;;  %v5791_v38 = vpack.c.bf16 %v4734_v61, %v4734_v61  ;;  %v4703_v41 = vpop.f32.mrb[9].mxu0  ;;  %v4737_v9 = vadd.f32 %v8862_v43, %v4736_v35  ;;  %v4738_v15 = vpop.f32.mrb[11].mxu1 }
 0x2d9   : > { %v4704_v26 = vpop.f32.mrb[10].mxu0 }
 0x2da   : > { %v5783_v13 = vpack.c.bf16 %v4702_v56, %v4702_v56  ;;  %4825 = vst.msk [vmem:[%s8871_s5 + $0x30] sm:$0xf] %vm4812_vm8, %v5791_v38  ;;  %v4705_v8 = vadd.f32 %v8862_v43, %v4704_v26  ;;  %v5792_v30 = vpack.c.bf16 %v4737_v9, %v4737_v9  ;;  %v4706_v47 = vpop.f32.mrb[11].mxu0 }
 0x2dc   : > { %4817 = vst.msk [vmem:[%s8871_s5 + $0x10] sm:$0xf] %vm4812_vm8, %v5783_v13  ;;  %v5784_v2 = vpack.c.bf16 %v4705_v8, %v4705_v8  ;;  %4826 = vst.msk [vmem:[%s8871_s5 + $0x34] sm:$0xf] %vm4812_vm8, %v5792_v30 }
 0x2de   : > { %4818 = vst.msk [vmem:[%s8871_s5 + $0x14] sm:$0xf] %vm4812_vm8, %v5784_v2 }
 0x31a   : > { %v4741_v60 = vpop.f32.mrb[12].mxu1 }
 0x31b   : > { %v4742_v0 = vadd.f32 %v8862_v43, %v4741_v60  ;;  %v4743_v29 = vpop.f32.mrb[13].mxu1 }
 0x31c   : > { %v4709_v20 = vpop.f32.mrb[12].mxu0  ;;  %v4744_v42 = vpop.f32.mrb[14].mxu1 }
 0x31d   : > { %v4710_v6 = vadd.f32 %v8862_v43, %v4709_v20  ;;  %v5793_v4 = vpack.c.bf16 %v4742_v0, %v4742_v0  ;;  %v4711_v44 = vpop.f32.mrb[13].mxu0  ;;  %v4745_v21 = vadd.f32 %v8862_v43, %v4744_v42  ;;  %v4746_v45 = vpop.f32.mrb[15].mxu1 }
 0x31e   : > { %v4712_v12 = vpop.f32.mrb[14].mxu0 }
 0x31f   : > { %v5785_v23 = vpack.c.bf16 %v4710_v6, %v4710_v6  ;;  %4827 = vst.msk [vmem:[%s8871_s5 + $0x38] sm:$0xf] %vm4812_vm8, %v5793_v4  ;;  %v4713_v48 = vadd.f32 %v8862_v43, %v4712_v12  ;;  %v5794_v37 = vpack.c.bf16 %v4745_v21, %v4745_v21  ;;  %v4714_v63 = vpop.f32.mrb[15].mxu0 }
 0x321   : > { %4819 = vst.msk [vmem:[%s8871_s5 + $0x18] sm:$0xf] %vm4812_vm8, %v5785_v23  ;;  %v5786_v1 = vpack.c.bf16 %v4713_v48, %v4713_v48  ;;  %4828 = vst.msk [vmem:[%s8871_s5 + $0x3c] sm:$0xf] %vm4812_vm8, %v5794_v37 }
 0x323   : > { %4820 = vst.msk [vmem:[%s8871_s5 + $0x1c] sm:$0xf] %vm4812_vm8, %v5786_v1 }
 0x324 PF: > { %s13_s16 = sadd.s32 1, %s6007_s16   ;;  %s9076_s12 = smov %s5999_s14 }
 0x325   : > { %p10_p7 = scmp.ge.s32.totalorder %s13_s16, 6   ;;  %s9077_s13 = smov %s6003_s15 }
 0x326   : > { %s9078_s14 = smov %s9081_s17  ;;  %s9079_s15 = smov %s9085_s18 }
 0x327   :  { %12 = sbr.rel (!%p10_p7) target bundleno = 3 (0x3), region = 69 }

</bundles_post_ra>
